<compile_context>
chip_gen: v7x
topology: tpu7x:2x2x1
jax: 0.10.0
libtpu: 0.0.40
codegen_flags: <defaults>
</compile_context>

<pallas_src>
import functools

import jax
import jax.numpy as jnp
from jax.experimental import pallas as pl
from jax.experimental.pallas import tpu as pltpu

IN_FEATURES = 64 * 64          # fixed by the module (layer1 input)
EMBED_SIZE = 32                # small synthetic embed_size
HIDDEN = EMBED_SIZE * 2        # 64
BN_EPS = 1e-5

_mm = functools.partial(jnp.matmul, precision=jax.lax.Precision.HIGHEST)


def _round_up(n, m):
    return (n + m - 1) // m * m


def _pick_tile_and_vmem():
    """(default batch tile, scoped-VMEM budget, has-2-TensorCores) per chip."""
    kind = ""
    try:
        kind = jax.devices()[0].device_kind.lower()
    except Exception:
        pass
    vmem_cap = None
    try:
        vmem_cap = int(pltpu.get_tpu_info().vmem_capacity_bytes)
    except Exception:
        pass
    if vmem_cap is not None and vmem_cap <= (32 << 20):
        # Very small-VMEM parts (v2/v3-class): stay conservative.
        return 256, 24 << 20, False
    if ("v7" in kind) or ("7x" in kind) or (
            vmem_cap is not None and vmem_cap <= (80 << 20)):
        # v7x: 64 MiB VMEM per TensorCore, 2 TCs per chip.
        return 512, 48 << 20, True
    # v5e / v6e (128 MiB VMEM, single TC). 1024-row tiles hit ~85% of HBM
    # roofline; 2048 gains ~1% and would not port to v7x, so stop here.
    return 1024, 80 << 20, False


# ---------------------------------------------------------------------------
# Kernel 1: folded affine + ReLU + per-tile BN partial statistics.
# ---------------------------------------------------------------------------
def _affine_relu_stats_kernel(x_ref, w_ref, b_ref, h_ref, sum_ref, ssq_ref,
                              *, batch, tile_b):
    x = x_ref[...].astype(jnp.float32)
    h = jnp.dot(x, w_ref[...],
                preferred_element_type=jnp.float32,
                precision=jax.lax.Precision.HIGHEST) + b_ref[...]
    h = jnp.maximum(h, 0.0)
    h_ref[...] = h                      # OOB rows of the ragged last tile are dropped

    # Mask rows past the true batch: the ragged last tile reads unspecified
    # data (its h rows are discarded on write) but must not pollute BN stats.
    row = (pl.program_id(0) * tile_b
           + jax.lax.broadcasted_iota(jnp.int32, (tile_b, EMBED_SIZE), 0))
    hm = jnp.where(row < batch, h, 0.0)
    sum_ref[...] = jnp.sum(hm, axis=0, keepdims=True).reshape(1, 1, EMBED_SIZE)
    ssq_ref[...] = jnp.sum(hm * hm, axis=0, keepdims=True).reshape(1, 1, EMBED_SIZE)


# ---------------------------------------------------------------------------
# Kernel 2: apply BatchNorm1d (training mode) with precomputed scale/shift.
# ---------------------------------------------------------------------------
def _bn_apply_kernel(h_ref, scale_ref, shift_ref, out_ref):
    out_ref[...] = h_ref[...] * scale_ref[...] + shift_ref[...]


def encoder_feedforward(images, params, tile_b=None):
    """Forward pass. images: (B, ...) flattening to 4096 features per row."""
    B = images.shape[0]
    x = images.reshape(B, -1)            # native dtype; cast happens in-kernel
    assert x.shape[1] == IN_FEATURES, "module hard-codes a 64*64 input"

    (w1, b1, w2, b2, w3, b3, wo, bo, gamma, beta) = params

    # Fold the four linear layers into one affine map:
    #   x @ W_eff + b_eff == (((x@W1+b1)@W2+b2)@W3+b3)@Wo + bo
    w_eff = _mm(_mm(_mm(w1, w2), w3), wo)                       # (4096, E)
    b_eff = _mm(_mm(_mm(b1, w2) + b2, w3) + b3, wo) + bo        # (1, E)

    default_tile, vmem_bytes, two_cores = _pick_tile_and_vmem()
    if tile_b is None:
        tile_b = default_tile
        if two_cores and B > 8:
            # >= 2 grid steps so dimension_semantics=("parallel",) gives both
            # v7x TensorCores work.
            tile_b = min(tile_b, _round_up(pl.cdiv(B, 2), 8))
    tile_b = max(8, _round_up(min(tile_b, _round_up(B, 8)), 8))
    num_tiles = pl.cdiv(B, tile_b)

    kernel = functools.partial(_affine_relu_stats_kernel, batch=B, tile_b=tile_b)
    h, psum, pssq = pl.pallas_call(
        kernel,
        out_shape=(
            jax.ShapeDtypeStruct((B, EMBED_SIZE), jnp.float32),
            jax.ShapeDtypeStruct((num_tiles, 1, EMBED_SIZE), jnp.float32),
            jax.ShapeDtypeStruct((num_tiles, 1, EMBED_SIZE), jnp.float32),
        ),
        grid_spec=pltpu.PrefetchScalarGridSpec(
            num_scalar_prefetch=0,
            grid=(num_tiles,),
            in_specs=[
                pl.BlockSpec((tile_b, IN_FEATURES), lambda i: (i, 0)),
                pl.BlockSpec((IN_FEATURES, EMBED_SIZE), lambda i: (0, 0)),
                pl.BlockSpec((1, EMBED_SIZE), lambda i: (0, 0)),
            ],
            out_specs=[
                pl.BlockSpec((tile_b, EMBED_SIZE), lambda i: (i, 0)),
                pl.BlockSpec((1, 1, EMBED_SIZE), lambda i: (i, 0, 0)),
                pl.BlockSpec((1, 1, EMBED_SIZE), lambda i: (i, 0, 0)),
            ],
        ),
        compiler_params=pltpu.CompilerParams(
            dimension_semantics=("parallel",),
            vmem_limit_bytes=vmem_bytes,
        ),
    )(x, w_eff, b_eff)

    # Finalize global (training-mode) BatchNorm1d statistics: biased variance.
    mean = jnp.sum(psum[:, 0, :], axis=0, keepdims=True) / B
    var = jnp.maximum(
        jnp.sum(pssq[:, 0, :], axis=0, keepdims=True) / B - mean * mean, 0.0)
    scale = gamma * jax.lax.rsqrt(var + BN_EPS)
    shift = beta - mean * scale
    # TODO(synk): BatchNorm1d running_mean/running_var buffer updates
    # (training-side state, momentum=0.01) are not materialized.

    bn_tile = min(_round_up(B, 8), 4096)
    out = pl.pallas_call(
        _bn_apply_kernel,
        out_shape=jax.ShapeDtypeStruct((B, EMBED_SIZE), jnp.float32),
        grid_spec=pltpu.PrefetchScalarGridSpec(
            num_scalar_prefetch=0,
            grid=(pl.cdiv(B, bn_tile),),
            in_specs=[
                pl.BlockSpec((bn_tile, EMBED_SIZE), lambda i: (i, 0)),
                pl.BlockSpec((1, EMBED_SIZE), lambda i: (0, 0)),
                pl.BlockSpec((1, EMBED_SIZE), lambda i: (0, 0)),
            ],
            out_specs=pl.BlockSpec((bn_tile, EMBED_SIZE), lambda i: (i, 0)),
        ),
        compiler_params=pltpu.CompilerParams(
            dimension_semantics=("parallel",),
        ),
    )(h, scale, shift)
    return out


def init_params(key):
    """Deterministic parameter init (shapes match the PyTorch module)."""
    ks = jax.random.split(key, 10)

    def linear(kw, kb, fan_in, fan_out):
        bound = 1.0 / jnp.sqrt(fan_in)
        w = jax.random.uniform(kw, (fan_in, fan_out), jnp.float32, -bound, bound)
        b = jax.random.uniform(kb, (1, fan_out), jnp.float32, -bound, bound)
        return w, b

    w1, b1 = linear(ks[0], ks[1], IN_FEATURES, HIDDEN)   # layer1: 4096 -> 2E
    w2, b2 = linear(ks[2], ks[3], HIDDEN, HIDDEN)        # layer2: 2E  -> 2E
    w3, b3 = linear(ks[4], ks[5], HIDDEN, HIDDEN)        # layer3: 2E  -> 2E
    wo, bo = linear(ks[6], ks[7], HIDDEN, EMBED_SIZE)    # out:    2E  -> E
    gamma = jnp.ones((1, EMBED_SIZE), jnp.float32)       # bn.weight
    beta = jnp.zeros((1, EMBED_SIZE), jnp.float32)       # bn.bias
    return (w1, b1, w2, b2, w3, b3, wo, bo, gamma, beta)


def _reference(images, params):
    """Pure-JAX, unfused reference (matches the PyTorch forward)."""
    (w1, b1, w2, b2, w3, b3, wo, bo, gamma, beta) = params
    x = images.astype(jnp.float32).reshape(images.shape[0], -1)
    h = _mm(x, w1) + b1
    h = _mm(h, w2) + b2
    h = _mm(h, w3) + b3
    h = _mm(h, wo) + bo
    h = jnp.maximum(h, 0.0)
    mean = jnp.mean(h, axis=0, keepdims=True)
    var = jnp.mean((h - mean) ** 2, axis=0, keepdims=True)
    return (h - mean) / jnp.sqrt(var + BN_EPS) * gamma + beta


if __name__ == "__main__":
    key = jax.random.PRNGKey(0)
    k_img, k_params = jax.random.split(key)
    params = init_params(k_params)

    # Small demo batch (single grid step).
    B = 8
    images = jax.random.normal(k_img, (B, 64, 64), jnp.float32)
    out = jax.block_until_ready(encoder_feedforward(images, params))
    ref = _reference(images, params)
    assert out.shape == (B, EMBED_SIZE)
    assert jnp.allclose(out, ref, atol=2e-3, rtol=2e-3), "mismatch (B=8)"

    # Exercise the multi-step tiled path and the ragged-last-block path with a
    # small forced tile size (global BN stats must still be exact).
    for b, tile in ((48, 16), (20, 16)):
        imgs = jax.random.normal(jax.random.fold_in(k_img, b), (b, 64, 64),
                                 jnp.float32)
        o = jax.block_until_ready(encoder_feedforward(imgs, params, tile_b=tile))
        r = _reference(imgs, params)
        assert o.shape == (b, EMBED_SIZE)
        assert jnp.allclose(o, r, atol=2e-3, rtol=2e-3), f"mismatch (B={b})"

    # Exercise the default (auto-detected) tile path at a medium batch — on
    # v7x this splits into >=2 parallel grid steps for the two TensorCores.
    b = 200
    imgs = jax.random.normal(jax.random.fold_in(k_img, 999), (b, 64, 64),
                             jnp.float32)
    o = jax.block_until_ready(encoder_feedforward(imgs, params))
    r = _reference(imgs, params)
    assert jnp.allclose(o, r, atol=2e-3, rtol=2e-3), "mismatch (B=200)"

    print("KERNEL_OK")
</pallas_src>

<mosaic_0001>
module attributes {stable_mosaic.version = 11 : i64} {
  func.func @_affine_relu_stats_kernel(%arg0: i32, %arg1: memref<8x4096xf32, #tpu.memory_space<vmem>>, %arg2: memref<4096x32xf32, #tpu.memory_space<vmem>>, %arg3: memref<1x32xf32, #tpu.memory_space<vmem>>, %arg4: memref<8x32xf32, #tpu.memory_space<vmem>>, %arg5: memref<1x1x32xf32, #tpu.memory_space<vmem>>, %arg6: memref<1x1x32xf32, #tpu.memory_space<vmem>>) attributes {dimension_semantics = [#tpu.dimension_semantics<parallel>], iteration_bounds = array<i64: 1>, scalar_prefetch = 0 : i64, scratch_operands = 0 : i64, tpu.core_type = #tpu.core_type<tc>, window_params = [{transform_indices = @transform_0, window_bounds = array<i64: 8, 4096>}, {pipeline_mode = #tpu.pipeline_mode<synchronous>, transform_indices = @transform_1, window_bounds = array<i64: 4096, 32>}, {pipeline_mode = #tpu.pipeline_mode<synchronous>, transform_indices = @transform_2, window_bounds = array<i64: 1, 32>}, {transform_indices = @transform_3, window_bounds = array<i64: 8, 32>}, {transform_indices = @transform_4, window_bounds = array<i64: 1, 1, 32>}, {transform_indices = @transform_5, window_bounds = array<i64: 1, 1, 32>}]} {
    %c0 = arith.constant 0 : index
    %c0_0 = arith.constant 0 : index
    %0 = vector.load %arg1[%c0, %c0_0] : memref<8x4096xf32, #tpu.memory_space<vmem>>, vector<8x4096xf32>
    %c0_1 = arith.constant 0 : index
    %c0_2 = arith.constant 0 : index
    %1 = vector.load %arg2[%c0_1, %c0_2] : memref<4096x32xf32, #tpu.memory_space<vmem>>, vector<4096x32xf32>
    %cst = arith.constant dense<0.000000e+00> : vector<8x32xf32>
    %2 = tpu.matmul %0, %1, %cst {dimension_numbers = #tpu.dot_dimension_numbers<[1], [0], [0], [1], [0, 0, 1, 1], [], []>, precision = #tpu.contract_precision<fp32>} : vector<8x4096xf32>, vector<4096x32xf32>, vector<8x32xf32> -> vector<8x32xf32>
    %c0_3 = arith.constant 0 : index
    %c0_4 = arith.constant 0 : index
    %3 = vector.load %arg3[%c0_3, %c0_4] : memref<1x32xf32, #tpu.memory_space<vmem>>, vector<1x32xf32>
    %4 = vector.broadcast %3 : vector<1x32xf32> to vector<8x32xf32>
    %5 = arith.addf %2, %4 : vector<8x32xf32>
    %cst_5 = arith.constant 0.000000e+00 : f32
    %6 = vector.broadcast %cst_5 : f32 to vector<8x32xf32>
    %7 = arith.maximumf %5, %6 : vector<8x32xf32>
    %c0_6 = arith.constant 0 : index
    %c0_7 = arith.constant 0 : index
    %8 = vector.load %arg4[%c0_6, %c0_7] : memref<8x32xf32, #tpu.memory_space<vmem>>, vector<8x32xf32>
    tpu.vector_store %arg4[%c0_6, %c0_7], %7 {strides = array<i32>} : memref<8x32xf32, #tpu.memory_space<vmem>>, vector<8x32xf32>,
    %c8_i32 = arith.constant 8 : i32
    %9 = arith.muli %arg0, %c8_i32 : i32
    %10 = tpu.iota {dimensions = array<i32: 0>} : vector<8x32xi32>
    %11 = vector.broadcast %9 : i32 to vector<8x32xi32>
    %12 = arith.addi %11, %10 : vector<8x32xi32>
    %c8_i32_8 = arith.constant 8 : i32
    %13 = vector.broadcast %c8_i32_8 : i32 to vector<8x32xi32>
    %14 = arith.cmpi slt, %12, %13 : vector<8x32xi32>
    %cst_9 = arith.constant 0.000000e+00 : f32
    %15 = vector.broadcast %cst_9 : f32 to vector<8x32xf32>
    %16 = arith.select %14, %7, %15 : vector<8x32xi1>, vector<8x32xf32>
    %cst_10 = arith.constant dense<0.000000e+00> : vector<32xf32>
    %17 = vector.multi_reduction <add>, %16, %cst_10 [0] : vector<8x32xf32> to vector<32xf32>
    %18 = vector.shape_cast %17 : vector<32xf32> to vector<1x32xf32>
    %19 = vector.shape_cast %18 : vector<1x32xf32> to vector<1x1x32xf32>
    %c0_11 = arith.constant 0 : index
    %c0_12 = arith.constant 0 : index
    %c0_13 = arith.constant 0 : index
    %20 = vector.load %arg5[%c0_11, %c0_12, %c0_13] : memref<1x1x32xf32, #tpu.memory_space<vmem>>, vector<1x1x32xf32>
    tpu.vector_store %arg5[%c0_11, %c0_12, %c0_13], %19 {strides = array<i32>} : memref<1x1x32xf32, #tpu.memory_space<vmem>>, vector<1x1x32xf32>,
    %21 = arith.mulf %16, %16 : vector<8x32xf32>
    %cst_14 = arith.constant dense<0.000000e+00> : vector<32xf32>
    %22 = vector.multi_reduction <add>, %21, %cst_14 [0] : vector<8x32xf32> to vector<32xf32>
    %23 = vector.shape_cast %22 : vector<32xf32> to vector<1x32xf32>
    %24 = vector.shape_cast %23 : vector<1x32xf32> to vector<1x1x32xf32>
    %c0_15 = arith.constant 0 : index
    %c0_16 = arith.constant 0 : index
    %c0_17 = arith.constant 0 : index
    %25 = vector.load %arg6[%c0_15, %c0_16, %c0_17] : memref<1x1x32xf32, #tpu.memory_space<vmem>>, vector<1x1x32xf32>
    tpu.vector_store %arg6[%c0_15, %c0_16, %c0_17], %24 {strides = array<i32>} : memref<1x1x32xf32, #tpu.memory_space<vmem>>, vector<1x1x32xf32>,
    return
  }
  func.func @transform_0(%arg0: i32) -> (i32, i32) {
    %c0_i32 = arith.constant 0 : i32
    %c0_i32_0 = arith.constant 0 : i32
    return %arg0, %c0_i32 : i32, i32
  }
  func.func @transform_1(%arg0: i32) -> (i32, i32) {
    %c0_i32 = arith.constant 0 : i32
    %c0_i32_0 = arith.constant 0 : i32
    %c0_i32_1 = arith.constant 0 : i32
    return %c0_i32, %c0_i32_0 : i32, i32
  }
  func.func @transform_2(%arg0: i32) -> (i32, i32) {
    %c0_i32 = arith.constant 0 : i32
    %c0_i32_0 = arith.constant 0 : i32
    %c0_i32_1 = arith.constant 0 : i32
    return %c0_i32, %c0_i32_0 : i32, i32
  }
  func.func @transform_3(%arg0: i32) -> (i32, i32) {
    %c0_i32 = arith.constant 0 : i32
    %c0_i32_0 = arith.constant 0 : i32
    return %arg0, %c0_i32 : i32, i32
  }
  func.func @transform_4(%arg0: i32) -> (i32, i32, i32) {
    %c0_i32 = arith.constant 0 : i32
    %c0_i32_0 = arith.constant 0 : i32
    %c0_i32_1 = arith.constant 0 : i32
    return %arg0, %c0_i32, %c0_i32_0 : i32, i32, i32
  }
  func.func @transform_5(%arg0: i32) -> (i32, i32, i32) {
    %c0_i32 = arith.constant 0 : i32
    %c0_i32_0 = arith.constant 0 : i32
    %c0_i32_1 = arith.constant 0 : i32
    return %arg0, %c0_i32, %c0_i32_0 : i32, i32, i32
  }
}

</mosaic_0001>

<bundles_post_ra>
// kernel: tpu_custom_call.1
= control target key start
LH: loop header
LB: loop body
LE: loop exit
PB: predicated region body
PF: predicated region fallthrough
CT: control target
= control target key end

     0   :  { %11 = vsyncpa [#allocation3], 0  ;;  %s28806_s0 = inlined_call_operand.hbm [shape: f32[8,4096], index: 0, kind: input, shape index: {}]   ;;  %s28807_s1 = inlined_call_operand.hbm [shape: f32[4096,32], index: 1, kind: input, shape index: {}]   ;;  %s28808_s2 = inlined_call_operand.hbm [shape: f32[1,32], index: 2, kind: input, shape index: {}]   ;;  %s28809_s3 = inlined_call_operand.hbm [shape: f32[8,32], index: 3, kind: output, shape index: {0}]   ;;  %s28810_s4 = inlined_call_operand.hbm [shape: f32[1,1,32], index: 4, kind: output, shape index: {1}]   ;;  %s28811_s5 = inlined_call_operand.hbm [shape: f32[1,1,32], index: 5, kind: output, shape index: {2}]  }
   0x1   :  { %12 = vsyncpa [#allocation6], 0 }
   0x2   :  { %13 = vsyncpa [#allocation4], 0 }
   0x3   :  { %14 = vsyncpa [#allocation10], 0  ;;  %s21051_s18 = smov [#allocation5]   ;;  %s20911_s22 = scalar_lea.hbm %s28807_s1, 65536 }
   0x4   :  { %s30_s19 = sshll.u32 %s21051_s18, 4  ;;  %p20912_p0 = scmp.ne.s32.totalorder %s28807_s1, %s20911_s22  ;;  %s31_s19 = int_to_ptr.vmem [resolvable:$true] %s30_s19 }
   0x5   :  { %p20915_p1 = scmp.lt.u32.totalorder %s20911_s22, %s28807_s1 }
   0x7   :  { %p20917_p2 = pnand %p20915_p1, %p20912_p0 }
   0x9   :  { %20920 = shalt.err (!%p20917_p2)
}
   0xa   :  { %s20921_s27 = scalar_lea.vmem %s31_s19, 65536  ;;  %p20926_p4 = scmp.lt.s32.totalorder %s31_s19, %s31_s19 }
   0xb   :  { %p20922_p3 = scmp.ne.s32.totalorder %s31_s19, %s20921_s27  ;;  %p20927_p5 = scmp.lt.s32.totalorder %s20921_s27, %s20921_s27 }
   0xd   :  { %p20928_p6 = por %p20927_p5, %p20926_p4 }
   0xf   :  { %p20929_p7 = pnand %p20928_p6, %p20922_p3 }
  0x11   :  { %20932 = shalt.err (!%p20929_p7)
}
  0x12   :  { %s21052_s28 = smov 128   ;;  %s21053_s29 = smov 8  }
  0x13   :  { %36 = dma.hbm_to_vmem [thread:$0]  %s28807_s1, 65536, %s31_s19, [#allocation6], %s21052_s28, %s21052_s28, %s21053_s29  }
  0x14   :  { %s21054_s7 = smov [#allocation2]   ;;  %s21055_s9 = smov [#allocation7]  }
  0x15   :  { %s21_s8 = sshll.u32 %s21054_s7, 4  ;;  %s43_s10 = sshll.u32 %s21055_s9, 4  ;;  %s22_s8 = int_to_ptr.vmem [resolvable:$true] %s21_s8  ;;  %s44_s10 = int_to_ptr.vmem [resolvable:$true] %s43_s10 }
  0x16   :  { %s20933_s13 = scalar_lea.hbm %s28806_s0, 4096 }
  0x17   :  { %p20934_p8 = scmp.ne.s32.totalorder %s28806_s0, %s20933_s13  ;;  %p20937_p9 = scmp.lt.u32.totalorder %s20933_s13, %s28806_s0 }
  0x19   :  { %p20939_p10 = pnand %p20937_p9, %p20934_p8 }
  0x1b   :  { %20942 = shalt.err (!%p20939_p10)
}
  0x1c   :  { %s20943_s1 = scalar_lea.vmem %s22_s8, 4096  ;;  %p20948_p12 = scmp.lt.s32.totalorder %s22_s8, %s22_s8 }
  0x1d   :  { %p20944_p11 = scmp.ne.s32.totalorder %s22_s8, %s20943_s1  ;;  %p20949_p13 = scmp.lt.s32.totalorder %s20943_s1, %s20943_s1 }
  0x1f   :  { %p20950_p0 = por %p20949_p13, %p20948_p12 }
  0x21   :  { %p20951_p1 = pnand %p20950_p0, %p20944_p11 }
  0x23   :  { %20954 = shalt.err (!%p20951_p1)
}
  0x24   :  { %24 = dma.hbm_to_vmem [thread:$0]  %s28806_s0, 4096, %s22_s8, [#allocation3]  }
  0x25   :  { %s20955_s22 = scalar_lea.hbm %s28808_s2, 16 }
  0x26   :  { %p20956_p2 = scmp.ne.s32.totalorder %s28808_s2, %s20955_s22  ;;  %p20959_p3 = scmp.lt.u32.totalorder %s20955_s22, %s28808_s2 }
  0x28   :  { %p20961_p4 = pnand %p20959_p3, %p20956_p2 }
  0x2a   :  { %20964 = shalt.err (!%p20961_p4)
}
  0x2b   :  { %s20965_s27 = scalar_lea.vmem %s44_s10, 16  ;;  %s20969_s28 = scalar_lea.vmem %s44_s10, 32 }
  0x2c   :  { %p20966_p5 = scmp.ne.s32.totalorder %s44_s10, %s20965_s27  ;;  %p20970_p6 = scmp.lt.s32.totalorder %s44_s10, %s44_s10 }
  0x2d   :  { %p20971_p7 = scmp.lt.s32.totalorder %s20969_s28, %s20965_s27 }
  0x2f   :  { %p20972_p8 = por %p20971_p7, %p20970_p6 }
  0x31   :  { %p20973_p9 = pnand %p20972_p8, %p20966_p5 }
  0x33   :  { %20976 = shalt.err (!%p20973_p9)
}
  0x34   :  { %46 = dma.hbm_to_vmem [thread:$0]  %s28808_s2, 16, %s44_s10, [#allocation6]  }
  0x35   :  { %21043 = dma.done.wait [#allocation3], 4096  }
  0x36   :  { %21044 = vsyncadd [#allocation3], 4294963200 }
  0x37   :  { %21045 = dma.done.wait [#allocation6], 65552  }
  0x38   :  { %21046 = vsyncadd [#allocation6], 4294901744  ;;  %v104_v0 = vld [vmem:[#allocation5 + $0x80] sm:$0xff]  ;;  %v105_v1 = vld [vmem:[#allocation5 + $0x88] sm:$0xff]  ;;  %s21056_s2 = smov [#allocation8]   ;;  %vm14400_vm0 = vcmask 261120  }
  0x39   :  { %v88_v2 = vld [vmem:[#allocation5] sm:$0xff]  ;;  %v656_v3 = vand.u32 4294901760, %v104_v0  ;;  %v659_v4 = vand.u32 4294901760, %v105_v1  ;;  %v89_v5 = vld [vmem:[#allocation5 + $0x8] sm:$0xff]  ;;  %v106_v7 = vld [vmem:[#allocation5 + $0x90] sm:$0xff]  ;;  %s14433_s30 = sshll.u32 %s21056_s2, 4  ;;  %s14434_s30 = int_to_ptr.vmem [resolvable:$true] %s14433_s30 }
  0x3a   :  { %v608_v6 = vand.u32 4294901760, %v88_v2  ;;  %v107_v8 = vld [vmem:[#allocation5 + $0x98] sm:$0xff]  ;;  %v611_v9 = vand.u32 4294901760, %v89_v5  ;;  %v662_v10 = vand.u32 4294901760, %v106_v7  ;;  %v90_v12 = vld [vmem:[#allocation5 + $0x10] sm:$0xff]  ;;  %v108_v18 = vld [vmem:[#allocation5 + $0xa0] sm:$0xff]  ;;  %p20982_p11 = scmp.lt.s32.totalorder %s14434_s30, %s14434_s30 }
  0x3b   :  { %v665_v11 = vand.u32 4294901760, %v107_v8  ;;  %v91_v13 = vld [vmem:[#allocation5 + $0x18] sm:$0xff]  ;;  %v21125_v14 = vpack.c.bf16 %v659_v4, %v656_v3  ;;  %v614_v16 = vand.u32 4294901760, %v90_v12  ;;  %v109_v19 = vld [vmem:[#allocation5 + $0xa8] sm:$0xff]  ;;  %v92_v23 = vld [vmem:[#allocation5 + $0x20] sm:$0xff]  ;;  %v668_v29 = vand.u32 4294901760, %v108_v18 }
  0x3c   :  { %v21127_v15 = vsub.f32 %v88_v2, %v608_v6  ;;  %v617_v17 = vand.u32 4294901760, %v91_v13  ;;  %v21129_v20 = vpack.c.bf16 %v611_v9, %v608_v6  ;;  %v21131_v21 = vsub.f32 %v89_v5, %v611_v9  ;;  %v93_v24 = vld [vmem:[#allocation5 + $0x28] sm:$0xff]  ;;  %v110_v37 = vld [vmem:[#allocation5 + $0xb0] sm:$0xff]  ;;  %v111_v42 = vld [vmem:[#allocation5 + $0xb8] sm:$0xff]  ;;  %s20977_s6 = scalar_lea.vmem %s14434_s30, 128 }
  0x3d   :  { %v21133_v22 = vpack.c.bf16 %v665_v11, %v662_v10  ;;  %17832 = vmatprep.subr.bf16.mxu0 %v21125_v14  ;;  %v21136_v25 = vsub.f32 %v106_v7, %v662_v10  ;;  %v21138_v26 = vsub.f32 %v107_v8, %v665_v11  ;;  %v21142_v28 = vsub.f32 %v90_v12, %v614_v16  ;;  %v94_v55 = vld [vmem:[#allocation5 + $0x30] sm:$0xff]  ;;  %v95_v56 = vld [vmem:[#allocation5 + $0x38] sm:$0xff]  ;;  %v112_v5 = vld [vmem:[#allocation5 + $0xc0] sm:$0xff]  ;;  %p20978_p10 = scmp.ne.s32.totalorder %s14434_s30, %s20977_s6  ;;  %p20983_p12 = scmp.lt.s32.totalorder %s20977_s6, %s20977_s6 }
  0x3e   :  { %v21140_v27 = vpack.c.bf16 %v617_v17, %v614_v16  ;;  %17834 = vmatpush3.bf16.msra.mxu0 %v21129_v20  ;;  %v671_v30 = vand.u32 4294901760, %v109_v19  ;;  %v21145_v31 = vsub.f32 %v104_v0, %v656_v3  ;;  %v21147_v32 = vsub.f32 %v105_v1, %v659_v4  ;;  %v113_v6 = vld [vmem:[#allocation5 + $0xc8] sm:$0xff]  ;;  %v96_v11 = vld [vmem:[#allocation5 + $0x40] sm:$0xff] }
  0x3f   :  { %17836 = vmatprep.subr.bf16.mxu0 %v21133_v22  ;;  %v620_v33 = vand.u32 4294901760, %v92_v23  ;;  %v623_v34 = vand.u32 4294901760, %v93_v24  ;;  %v28827_v35 = vand.u32 4294901760, %v21127_v15  ;;  %v28826_v36 = vand.u32 4294901760, %v21131_v21  ;;  %p20984_p13 = por %p20983_p12, %p20982_p11 }
  0x40   :  { %v21152_v38 = vsub.f32 %v91_v13, %v617_v17  ;;  %v21154_v39 = vpack.c.bf16 %v671_v30, %v668_v29  ;;  %v21156_v40 = vsub.f32 %v108_v18, %v668_v29  ;;  %v28831_v41 = vand.u32 4294901760, %v21145_v31  ;;  %v97_v29 = vld [vmem:[#allocation5 + $0x48] sm:$0xff] }
  0x41   :  { %v21159_v43 = vsub.f32 %v109_v19, %v671_v30  ;;  %v28829_v44 = vand.u32 4294901760, %v21147_v32  ;;  %v21162_v45 = vpack.c.bf16 %v623_v34, %v620_v33  ;;  %v21164_v46 = vsub.f32 %v92_v23, %v620_v33  ;;  %p20985_p0 = pnand %p20984_p13, %p20978_p10 }
  0x42   :  { %17838 = vmatpush3.bf16.msra.mxu0 %v21140_v27  ;;  %v835_v47 = vsub.f32 %v21145_v31, %v28831_v41  ;;  %v723_v48 = vsub.f32 %v21127_v15, %v28827_v35  ;;  %v730_v49 = vsub.f32 %v21131_v21, %v28826_v36  ;;  %v674_v50 = vand.u32 4294901760, %v110_v37  ;;  %v57_v41 = vld [vmem:[#allocation2 + $0x8] sm:$0xff] }
  0x43   :  { %17840 = vmatprep.subr.bf16.mxu0 %v21154_v39  ;;  %v842_v51 = vsub.f32 %v21147_v32, %v28829_v44  ;;  %v677_v52 = vand.u32 4294901760, %v111_v42  ;;  %v28824_v53 = vand.u32 4294901760, %v21136_v25  ;;  %v28822_v54 = vand.u32 4294901760, %v21138_v26 }
  0x44   :  { %v836_v57 = vand.u32 4294901760, %v835_v47  ;;  %v21182_v58 = vsub.f32 %v93_v24, %v623_v34  ;;  %v724_v59 = vand.u32 4294901760, %v723_v48  ;;  %v731_v60 = vand.u32 4294901760, %v730_v49 }
  0x45   :  { %v843_v61 = vand.u32 4294901760, %v842_v51  ;;  %v21184_v62 = vpack.c.bf16 %v677_v52, %v674_v50  ;;  %v21186_v63 = vsub.f32 %v110_v37, %v674_v50  ;;  %v849_v0 = vsub.f32 %v21136_v25, %v28824_v53 }
  0x46   :  { %17842 = vmatpush3.bf16.msra.mxu0 %v21162_v45  ;;  %v17865_v1 = vpack.c.bf16 %v731_v60, %v724_v59  ;;  %v856_v2 = vsub.f32 %v21138_v26, %v28822_v54  ;;  %v626_v3 = vand.u32 4294901760, %v94_v55  ;;  %v629_v4 = vand.u32 4294901760, %v95_v56  ;;  %v115_v59 = vld [vmem:[#allocation5 + $0xd8] sm:$0xff] }
  0x47   :  { %v17863_v7 = vpack.c.bf16 %v843_v61, %v836_v57  ;;  %17844 = vmatprep.subr.bf16.mxu0 %v21184_v62  ;;  %v850_v8 = vand.u32 4294901760, %v849_v0  ;;  %v28821_v9 = vand.u32 4294901760, %v21142_v28  ;;  %v28819_v10 = vand.u32 4294901760, %v21152_v38  ;;  %v114_v57 = vld [vmem:[#allocation5 + $0xd0] sm:$0xff]  ;;  %v119_v54 = vld [vmem:[#allocation5 + $0xf8] sm:$0xff] }
  0x48   :  { %v21198_v12 = vsub.f32 %v111_v42, %v677_v52  ;;  %v857_v13 = vand.u32 4294901760, %v856_v2  ;;  %v21200_v16 = vpack.c.bf16 %v629_v4, %v626_v3  ;;  %v21202_v17 = vsub.f32 %v94_v55, %v626_v3 }
  0x49   :  { %17864 = vmatprep.subr.bf16.mxu1 %v17863_v7  ;;  %v737_v18 = vsub.f32 %v21142_v28, %v28821_v9  ;;  %v744_v19 = vsub.f32 %v21152_v38, %v28819_v10  ;;  %v680_v23 = vand.u32 4294901760, %v112_v5  ;;  %v683_v24 = vand.u32 4294901760, %v113_v6  ;;  %v118_v9 = vld [vmem:[#allocation5 + $0xf0] sm:$0xff] }
  0x4a   :  { %17866 = vmatpush3.bf16.msra.mxu1 %v17865_v1  ;;  %v17867_v30 = vpack.c.bf16 %v857_v13, %v850_v8  ;;  %17846 = vmatpush3.bf16.msra.mxu0 %v21200_v16  ;;  %v28817_v33 = vand.u32 4294901760, %v21156_v40  ;;  %v28816_v34 = vand.u32 4294901760, %v21159_v43  ;;  %v632_v37 = vand.u32 4294901760, %v96_v11  ;;  %v98_v1 = vld [vmem:[#allocation5 + $0x50] sm:$0xff] }
  0x4b   :  { %v21213_v42 = vsub.f32 %v95_v56, %v629_v4  ;;  %v738_v47 = vand.u32 4294901760, %v737_v18  ;;  %v745_v48 = vand.u32 4294901760, %v744_v19  ;;  %v21215_v49 = vpack.c.bf16 %v683_v24, %v680_v23  ;;  %v99_v18 = vld [vmem:[#allocation5 + $0x58] sm:$0xff] }
  0x4c   :  { %17868 = vmatprep.subr.bf16.mxu1 %v17867_v30  ;;  %v21217_v50 = vsub.f32 %v112_v5, %v680_v23  ;;  %v863_v51 = vsub.f32 %v21156_v40, %v28817_v33  ;;  %v870_v52 = vsub.f32 %v21159_v43, %v28816_v34  ;;  %v635_v55 = vand.u32 4294901760, %v97_v29 }
  0x4d   :  { %v17869_v56 = vpack.c.bf16 %v745_v48, %v738_v47  ;;  %17848 = vmatprep.subr.bf16.mxu0 %v21215_v49  ;;  %v21226_v60 = vsub.f32 %v113_v6, %v683_v24  ;;  %v28814_v61 = vand.u32 4294901760, %v21164_v46  ;;  %v28812_v0 = vand.u32 4294901760, %v21182_v58 }
  0x4e   :  { %v864_v2 = vand.u32 4294901760, %v863_v51  ;;  %v871_v3 = vand.u32 4294901760, %v870_v52  ;;  %v21230_v4 = vpack.c.bf16 %v635_v55, %v632_v37  ;;  %v21232_v5 = vsub.f32 %v96_v11, %v632_v37 }
  0x4f   :  { %17870 = vmatpush3.bf16.msra.mxu1 %v17869_v56  ;;  %v751_v7 = vsub.f32 %v21164_v46, %v28814_v61  ;;  %v758_v6 = vsub.f32 %v21182_v58, %v28812_v0  ;;  %v686_v8 = vand.u32 4294901760, %v114_v57  ;;  %v689_v13 = vand.u32 4294901760, %v115_v59  ;;  %v117_v0 = vld [vmem:[#allocation5 + $0xe8] sm:$0xff] }
  0x50   :  { %v17871_v19 = vpack.c.bf16 %v871_v3, %v864_v2  ;;  %17850 = vmatpush3.bf16.msra.mxu0 %v21230_v4  ;;  %v28813_v23 = vand.u32 4294901760, %v21186_v63  ;;  %v28815_v11 = vand.u32 4294901760, %v21198_v12  ;;  %v638_v24 = vand.u32 4294901760, %v98_v1  ;;  %v116_v3 = vld [vmem:[#allocation5 + $0xe0] sm:$0xff] }
  0x51   :  { %v21243_v30 = vsub.f32 %v97_v29, %v635_v55  ;;  %v752_v37 = vand.u32 4294901760, %v751_v7  ;;  %v759_v47 = vand.u32 4294901760, %v758_v6  ;;  %v21245_v48 = vpack.c.bf16 %v689_v13, %v686_v8  ;;  %v100_v6 = vld [vmem:[#allocation5 + $0x60] sm:$0xff] }
  0x52   :  { %17872 = vmatprep.subr.bf16.mxu1 %v17871_v19  ;;  %v21247_v51 = vsub.f32 %v114_v57, %v686_v8  ;;  %v877_v52 = vsub.f32 %v21186_v63, %v28813_v23  ;;  %v884_v56 = vsub.f32 %v21198_v12, %v28815_v11  ;;  %v641_v2 = vand.u32 4294901760, %v99_v18  ;;  %v101_v11 = vld [vmem:[#allocation5 + $0x68] sm:$0xff] }
  0x53   :  { %v17873_v29 = vpack.c.bf16 %v759_v47, %v752_v37  ;;  %17852 = vmatprep.subr.bf16.mxu0 %v21245_v48  ;;  %v21256_v55 = vsub.f32 %v115_v59, %v689_v13  ;;  %v28818_v7 = vand.u32 4294901760, %v21202_v17  ;;  %v28820_v57 = vand.u32 4294901760, %v21213_v42 }
  0x54   :  { %v878_v8 = vand.u32 4294901760, %v877_v52  ;;  %v885_v19 = vand.u32 4294901760, %v884_v56  ;;  %v21260_v23 = vpack.c.bf16 %v641_v2, %v638_v24  ;;  %v21262_v61 = vsub.f32 %v98_v1, %v638_v24 }
  0x55   :  { %17874 = vmatpush3.bf16.msra.mxu1 %v17873_v29  ;;  %v765_v37 = vsub.f32 %v21202_v17, %v28818_v7  ;;  %v772_v59 = vsub.f32 %v21213_v42, %v28820_v57  ;;  %v692_v13 = vand.u32 4294901760, %v116_v3  ;;  %v695_v47 = vand.u32 4294901760, %v117_v0 }
  0x56   :  { %29617 = vst [vmem:[#allocation16_spill] sm:$0xff] %v21260_v23  ;;  %v17875_v34 = vpack.c.bf16 %v885_v19, %v878_v8  ;;  %17854 = vmatpush3.bf16.msra.mxu0 %v21260_v23  ;;  %v28823_v52 = vand.u32 4294901760, %v21217_v50  ;;  %v28825_v1 = vand.u32 4294901760, %v21226_v60  ;;  %v644_v24 = vand.u32 4294901760, %v100_v6 }
  0x57   :  { %v21273_v56 = vsub.f32 %v99_v18, %v641_v2  ;;  %v766_v29 = vand.u32 4294901760, %v765_v37  ;;  %v773_v33 = vand.u32 4294901760, %v772_v59  ;;  %v21275_v7 = vpack.c.bf16 %v695_v47, %v692_v13  ;;  %v102_v37 = vld [vmem:[#allocation5 + $0x70] sm:$0xff] }
  0x58   :  { %17876 = vmatprep.subr.bf16.mxu1 %v17875_v34  ;;  %v21277_v10 = vsub.f32 %v116_v3, %v692_v13  ;;  %v891_v8 = vsub.f32 %v21217_v50, %v28823_v52  ;;  %v898_v19 = vsub.f32 %v21226_v60, %v28825_v1  ;;  %v647_v57 = vand.u32 4294901760, %v101_v11  ;;  %v103_v1 = vld [vmem:[#allocation5 + $0x78] sm:$0xff] }
  0x59   :  { %29618 = vst [vmem:[#allocation17_spill] sm:$0xff] %v21275_v7  ;;  %v17877_v18 = vpack.c.bf16 %v773_v33, %v766_v29  ;;  %17856 = vmatprep.subr.bf16.mxu0 %v21275_v7  ;;  %v21286_v2 = vsub.f32 %v117_v0, %v695_v47  ;;  %v28828_v34 = vand.u32 4294901760, %v21232_v5  ;;  %v28830_v3 = vand.u32 4294901760, %v21243_v30 }
  0x5a   :  { %v892_v59 = vand.u32 4294901760, %v891_v8  ;;  %v899_v13 = vand.u32 4294901760, %v898_v19  ;;  %v21290_v52 = vpack.c.bf16 %v647_v57, %v644_v24  ;;  %v21292_v53 = vsub.f32 %v100_v6, %v644_v24 }
  0x5b   :  { %17878 = vmatpush3.bf16.msra.mxu1 %v17877_v18  ;;  %v779_v33 = vsub.f32 %v21232_v5, %v28828_v34  ;;  %v786_v0 = vsub.f32 %v21243_v30, %v28830_v3  ;;  %v698_v47 = vand.u32 4294901760, %v118_v9  ;;  %v701_v29 = vand.u32 4294901760, %v119_v54 }
  0x5c   :  { %29619 = vst [vmem:[#allocation18_spill] sm:$0xff] %v21290_v52  ;;  %v17879_v36 = vpack.c.bf16 %v899_v13, %v892_v59  ;;  %17858 = vmatpush3.bf16.msra.mxu0 %v21290_v52  ;;  %v28834_v8 = vand.u32 4294901760, %v21247_v51  ;;  %v28835_v6 = vand.u32 4294901760, %v21256_v55  ;;  %v650_v24 = vand.u32 4294901760, %v102_v37 }
  0x5d   :  { %v21303_v19 = vsub.f32 %v101_v11, %v647_v57  ;;  %v780_v18 = vand.u32 4294901760, %v779_v33  ;;  %v787_v35 = vand.u32 4294901760, %v786_v0  ;;  %v21305_v34 = vpack.c.bf16 %v701_v29, %v698_v47 }
  0x5e   :  { %17880 = vmatprep.subr.bf16.mxu1 %v17879_v36  ;;  %v21307_v44 = vsub.f32 %v118_v9, %v698_v47  ;;  %v905_v59 = vsub.f32 %v21247_v51, %v28834_v8  ;;  %v912_v13 = vsub.f32 %v21256_v55, %v28835_v6  ;;  %v653_v3 = vand.u32 4294901760, %v103_v1  ;;  %v56_v9 = vld [vmem:[#allocation2] sm:$0xff] }
  0x5f   :  { %29620 = vst [vmem:[#allocation19_spill] sm:$0xff] %v21305_v34  ;;  %v17881_v52 = vpack.c.bf16 %v787_v35, %v780_v18  ;;  %17860 = vmatprep.subr.bf16.mxu0 %v21305_v34  ;;  %v21316_v11 = vsub.f32 %v119_v54, %v701_v29  ;;  %v28836_v57 = vand.u32 4294901760, %v21262_v61  ;;  %v28837_v36 = vand.u32 4294901760, %v21273_v56 }
  0x60   :  { %v906_v33 = vand.u32 4294901760, %v905_v59  ;;  %v913_v0 = vand.u32 4294901760, %v912_v13  ;;  %v21320_v47 = vpack.c.bf16 %v653_v3, %v650_v24  ;;  %v21322_v8 = vsub.f32 %v102_v37, %v650_v24 }
  0x61   :  { %17882 = vmatpush3.bf16.msra.mxu1 %v17881_v52  ;;  %v793_v35 = vsub.f32 %v21262_v61, %v28836_v57  ;;  %v800_v54 = vsub.f32 %v21273_v56, %v28837_v36  ;;  %v21330_v29 = vand.u32 4294901760, %v57_v41  ;;  %v28840_v18 = vand.u32 4294901760, %v21277_v10 }
  0x62   :  { %29621 = vst [vmem:[#allocation20_spill] sm:$0xff] %v21320_v47  ;;  %v17883_v6 = vpack.c.bf16 %v913_v0, %v906_v33  ;;  %17862 = vmatpush3.bf16.msra.mxu0 %v21320_v47  ;;  %v28846_v59 = vand.u32 4294901760, %v21286_v2  ;;  %v17895_v52 = vpack.c.bf16 %v21147_v32, %v21145_v31  ;;  %v21337_v37 = vand.u32 4294901760, %v56_v9 }
  0x63   :  { %29622 = vst [vmem:[#allocation21_spill] sm:$0xff] %v21330_v29  ;;  %v794_v24 = vand.u32 4294901760, %v793_v35  ;;  %v801_v13 = vand.u32 4294901760, %v800_v54  ;;  %v21340_v57 = vsub.f32 %v57_v41, %v21330_v29  ;;  %v919_v36 = vsub.f32 %v21277_v10, %v28840_v18  ;;  %944 = vmatprep.mubr.f32.mxu1 %v21330_v29 }
  0x64   :  { %17884 = vmatprep.subr.bf16.mxu1 %v17883_v6  ;;  %v926_v33 = vsub.f32 %v21286_v2, %v28846_v59  ;;  %17896 = vmatprep.subr.bf16.mxu0 %v17895_v52  ;;  %v21350_v0 = vsub.f32 %v56_v9, %v21337_v37  ;;  %v28845_v35 = vand.u32 4294901760, %v21292_v53  ;;  %v28847_v41 = vand.u32 4294901760, %v21303_v19 }
  0x65   :  { %v21354_v54 = vsub.f32 %v103_v1, %v653_v3  ;;  %v17885_v47 = vpack.c.bf16 %v801_v13, %v794_v24  ;;  %v28848_v18 = vand.u32 4294901760, %v21340_v57  ;;  %v920_v34 = vand.u32 4294901760, %v919_v36 }
  0x66   :  { %v927_v29 = vand.u32 4294901760, %v926_v33  ;;  %v711_v6 = vand.u32 4294901760, %v21350_v0  ;;  %v807_v52 = vsub.f32 %v21292_v53, %v28845_v35  ;;  %v814_v9 = vsub.f32 %v21303_v19, %v28847_v41 }
  0x67   :  { %17886 = vmatpush3.bf16.msra.mxu1 %v17885_v47  ;;  %v706_v1 = vsub.f32 %v21340_v57, %v28848_v18  ;;  %v17897_v3 = vpack.c.bf16 %v21131_v21, %v21127_v15  ;;  %v28853_v36 = vand.u32 4294901760, %v21307_v44  ;;  %v28856_v24 = vand.u32 4294901760, %v21316_v11 }
  0x68   :  { %v17887_v13 = vpack.c.bf16 %v927_v29, %v920_v34  ;;  %v712_v33 = vsub.f32 %v21350_v0, %v711_v6  ;;  %v808_v35 = vand.u32 4294901760, %v807_v52  ;;  %v815_v59 = vand.u32 4294901760, %v814_v9 }
  0x69   :  { %v707_v41 = vand.u32 4294901760, %v706_v1  ;;  %v933_v47 = vsub.f32 %v21307_v44, %v28853_v36  ;;  %v940_v18 = vsub.f32 %v21316_v11, %v28856_v24  ;;  %v28855_v7 = vand.u32 4294901760, %v21322_v8 }
  0x6a   :  { %17888 = vmatprep.subr.bf16.mxu1 %v17887_v13  ;;  %v713_v23 = vand.u32 4294901760, %v712_v33  ;;  %v17889_v34 = vpack.c.bf16 %v815_v59, %v808_v35  ;;  %v17899_v29 = vpack.c.bf16 %v21138_v26, %v21136_v25  ;;  %v28854_v52 = vand.u32 4294901760, %v21354_v54 }
  0x6b   :  { %708 = vmatprep.mubr.f32.mxu0 %v707_v41  ;;  %v934_v9 = vand.u32 4294901760, %v933_v47  ;;  %v941_v1 = vand.u32 4294901760, %v940_v18  ;;  %v821_v36 = vsub.f32 %v21322_v8, %v28855_v7  ;;  %v17901_v33 = vpack.c.bf16 %v21152_v38, %v21142_v28 }
  0x6c   :  { %714 = vmatmul.mubr.f32.vlgmr.msra.gmra.mrb[0].mxu0 %v713_v23  ;;  %17890 = vmatpush3.bf16.msra.mxu1 %v17889_v34  ;;  %v828_v13 = vsub.f32 %v21354_v54, %v28854_v52  ;;  %v17903_v41 = vpack.c.bf16 %v21159_v43, %v21156_v40  ;;  %v17905_v23 = vpack.c.bf16 %v21182_v58, %v21164_v46  ;;  %v29624_v34 = vand.u32 4294901760, %v21147_v32 }
  0x6d   :  { %17898 = vmatpush3.bf16.msra.mxu0 %v17897_v3  ;;  %v17891_v59 = vpack.c.bf16 %v941_v1, %v934_v9  ;;  %v822_v35 = vand.u32 4294901760, %v821_v36  ;;  %1081 = vmatprep.mubr.f32.mxu0 %v21340_v57  ;;  %v17907_v47 = vpack.c.bf16 %v21198_v12, %v21186_v63  ;;  %v29623_v36 = vand.u32 4294901760, %v21145_v31 }
  0x6e   :  { %17900 = vmatprep.subr.bf16.mxu0 %v17899_v29  ;;  %v829_v18 = vand.u32 4294901760, %v828_v13  ;;  %v29625_v1 = vand.u32 4294901760, %v21127_v15  ;;  %v29626_v29 = vand.u32 4294901760, %v21131_v21  ;;  %v29627_v52 = vand.u32 4294901760, %v21136_v25 }
  0x6f   :  { %17892 = vmatprep.subr.bf16.mxu1 %v17891_v59  ;;  %v17959_v9 = vpack.c.bf16 %v29624_v34, %v29623_v36  ;;  %v29628_v59 = vand.u32 4294901760, %v21138_v26  ;;  %v29629_v24 = vand.u32 4294901760, %v21142_v28  ;;  %v29631_v31 = vand.u32 4294901760, %v21156_v40 }
  0x70   :  { %v17893_v3 = vpack.c.bf16 %v829_v18, %v822_v35  ;;  %v17961_v13 = vpack.c.bf16 %v29626_v29, %v29625_v1  ;;  %v29630_v35 = vand.u32 4294901760, %v21152_v38  ;;  %v29632_v32 = vand.u32 4294901760, %v21159_v43  ;;  %v29646_v29 = vld [vmem:[#allocation21_spill] sm:$0xff] }
  0x71   :  { %v17963_v7 = vpack.c.bf16 %v29628_v59, %v29627_v52  ;;  %17902 = vmatpush3.bf16.msra.mxu0 %v17901_v33  ;;  %v29633_v15 = vand.u32 4294901760, %v21164_v46  ;;  %v29634_v21 = vand.u32 4294901760, %v21182_v58  ;;  %v29635_v25 = vand.u32 4294901760, %v21186_v63  ;;  %v137_v59 = vld [vmem:[#allocation5 + $0x188] sm:$0xff] }
  0x72   :  { %v17965_v18 = vpack.c.bf16 %v29630_v35, %v29629_v24  ;;  %v17967_v36 = vpack.c.bf16 %v29632_v32, %v29631_v31  ;;  %v29636_v26 = vand.u32 4294901760, %v21198_v12  ;;  %17894 = vmatpush3.bf16.msra.mxu1 %v17893_v3  ;;  %17904 = vmatprep.subr.bf16.mxu0 %v17903_v41  ;;  %v29637_v28 = vand.u32 4294901760, %v21202_v17  ;;  %v120_v35 = vld [vmem:[#allocation5 + $0x100] sm:$0xff]  ;;  %v121_v31 = vld [vmem:[#allocation5 + $0x108] sm:$0xff] }
  0x73   :  { %v21423_v34 = vpack.c.bf16 %v29634_v21, %v29633_v15  ;;  %v29638_v38 = vand.u32 4294901760, %v21213_v42  ;;  %v29639_v43 = vand.u32 4294901760, %v21217_v50  ;;  %v29640_v46 = vand.u32 4294901760, %v21226_v60  ;;  %17928 = vmatprep.subr.bf16.mxu1 %v21125_v14  ;;  %v29647_v32 = vld [vmem:[#allocation18_spill] sm:$0xff]  ;;  %v29648_v15 = vld [vmem:[#allocation19_spill] sm:$0xff] }
  0x74   :  { %v21429_v52 = vpack.c.bf16 %v29636_v26, %v29635_v25  ;;  %v29641_v63 = vand.u32 4294901760, %v21232_v5  ;;  %v29642_v12 = vand.u32 4294901760, %v21243_v30  ;;  %v17909_v33 = vpack.c.bf16 %v21213_v42, %v21202_v17 }
  0x75   :  { %v21435_v40 = vpack.c.bf16 %v29638_v38, %v29637_v28  ;;  %v21441_v58 = vpack.c.bf16 %v29640_v46, %v29639_v43  ;;  %946 = vmatmul.mubr.f32.vlgmr.msra.gmra.mrb[0].mxu1 %v21337_v37  ;;  %17906 = vmatpush3.bf16.msra.mxu0 %v17905_v23  ;;  %v17911_v41 = vpack.c.bf16 %v21226_v60, %v21217_v50  ;;  %v29643_v3 = vand.u32 4294901760, %v21340_v57  ;;  %v29644_v57 = vld [vmem:[#allocation16_spill] sm:$0xff]  ;;  %v29645_v23 = vld [vmem:[#allocation17_spill] sm:$0xff] }
  0x76   :  { %v21447_v24 = vpack.c.bf16 %v29642_v12, %v29641_v63  ;;  %17930 = vmatpush3.bf16.msra.mxu1 %v21129_v20  ;;  %17908 = vmatprep.subr.bf16.mxu0 %v17907_v47  ;;  %v17913_v1 = vpack.c.bf16 %v21243_v30, %v21232_v5  ;;  %v17915_v17 = vpack.c.bf16 %v21256_v55, %v21247_v51  ;;  %v136_v47 = vld [vmem:[#allocation5 + $0x180] sm:$0xff]  ;;  %v1521_v25 = vand.u32 4294901760, %v137_v59  ;;  %v29649_v28 = vld [vmem:[#allocation20_spill] sm:$0xff]  ;;  %v123_v63 = vld [vmem:[#allocation5 + $0x118] sm:$0xff] }
  0x77   :  { %17932 = vmatprep.subr.bf16.mxu1 %v21133_v22  ;;  %1188 = vmatprep.mubr.f32.mxu1 %v29643_v3  ;;  %v17917_v42 = vpack.c.bf16 %v21273_v56, %v21262_v61  ;;  %v17919_v50 = vpack.c.bf16 %v21286_v2, %v21277_v10  ;;  %v17921_v60 = vpack.c.bf16 %v21303_v19, %v21292_v53  ;;  %v1518_v21 = vand.u32 4294901760, %v136_v47  ;;  %v138_v38 = vld [vmem:[#allocation5 + $0x190] sm:$0xff] }
  0x78   :  { %v17923_v5 = vpack.c.bf16 %v21316_v11, %v21307_v44  ;;  %v17925_v30 = vpack.c.bf16 %v21354_v54, %v21322_v8  ;;  %v1470_v26 = vand.u32 4294901760, %v120_v35  ;;  %v122_v46 = vld [vmem:[#allocation5 + $0x110] sm:$0xff]  ;;  %v21491_v12 = vsub.f32 %v137_v59, %v1521_v25 }
  0x79   :  { %17910 = vmatpush3.bf16.msra.mxu0 %v17909_v33  ;;  %v21489_v43 = vsub.f32 %v136_v47, %v1518_v21 }
  0x7a   :  { %17934 = vmatpush3.bf16.msra.mxu1 %v21140_v27  ;;  %17912 = vmatprep.subr.bf16.mxu0 %v17911_v41  ;;  %v1524_v41 = vand.u32 4294901760, %v138_v38  ;;  %v28866_v59 = vand.u32 4294901760, %v21491_v12 }
  0x7b   :  { %17936 = vmatprep.subr.bf16.mxu1 %v21154_v39 }
  0x7d   :  { %17914 = vmatpush3.bf16.msra.mxu0 %v17913_v1  ;;  %v29652_v1 = vand.u32 4294901760, %v21262_v61 }
  0x7e   :  { %17938 = vmatpush3.bf16.msra.mxu1 %v21162_v45  ;;  %17916 = vmatprep.subr.bf16.mxu0 %v17915_v17  ;;  %v29653_v17 = vand.u32 4294901760, %v21273_v56  ;;  %v29658_v56 = vand.u32 4294901760, %v21307_v44  ;;  %v124_v44 = vld [vmem:[#allocation5 + $0x120] sm:$0xff] }
  0x7f   :  { %17940 = vmatprep.subr.bf16.mxu1 %v21184_v62 }
  0x81   :  { %17918 = vmatpush3.bf16.msra.mxu0 %v17917_v42  ;;  %v17981_v42 = vpack.c.bf16 %v29653_v17, %v29652_v1  ;;  %v142_v17 = vld [vmem:[#allocation5 + $0x1b0] sm:$0xff] }
  0x82   :  { %17942 = vmatpush3.bf16.msra.mxu1 %v21200_v16  ;;  %17920 = vmatprep.subr.bf16.mxu0 %v17919_v50  ;;  %v140_v50 = vld [vmem:[#allocation5 + $0x1a0] sm:$0xff] }
  0x83   :  { %17944 = vmatprep.subr.bf16.mxu1 %v21215_v49 }
  0x85   :  { %17922 = vmatpush3.bf16.msra.mxu0 %v17921_v60  ;;  %v141_v60 = vld [vmem:[#allocation5 + $0x1a8] sm:$0xff] }
  0x86   :  { %17946 = vmatpush3.bf16.msra.mxu1 %v21230_v4  ;;  %17924 = vmatprep.subr.bf16.mxu0 %v17923_v5 }
  0x87   :  { %17948 = vmatprep.subr.bf16.mxu1 %v21245_v48 }
  0x89   :  { %17926 = vmatpush3.bf16.msra.mxu0 %v17925_v30  ;;  %v29661_v30 = vand.u32 4294901760, %v21354_v54 }
  0x8a   :  { %17950 = vmatpush3.bf16.msra.mxu1 %v29644_v57  ;;  %17960 = vmatprep.subr.bf16.mxu0 %v17959_v9  ;;  %v1473_v9 = vand.u32 4294901760, %v121_v31 }
  0x8b   :  { %17952 = vmatprep.subr.bf16.mxu1 %v29645_v23 }
  0x8c   :  { %1084 = vmatmul.mubr.f32.vlgmr.msra.gmra.mrb[2].mxu0 %v21350_v0  ;;  %v21495_v33 = vsub.f32 %v121_v31, %v1473_v9  ;;  %v29654_v0 = vand.u32 4294901760, %v21277_v10  ;;  %v29659_v10 = vand.u32 4294901760, %v21316_v11 }
  0x8d   :  { %17962 = vmatpush3.bf16.msra.mxu0 %v17961_v13  ;;  %1358 = vmatprep.mubr.f32.mxu0 %v29646_v29  ;;  %v139_v13 = vld [vmem:[#allocation5 + $0x198] sm:$0xff] }
  0x8e   :  { %17954 = vmatpush3.bf16.msra.mxu1 %v29647_v32  ;;  %17964 = vmatprep.subr.bf16.mxu0 %v17963_v7  ;;  %v21493_v7 = vsub.f32 %v120_v35, %v1470_v26  ;;  %v1527_v3 = vand.u32 4294901760, %v139_v13  ;;  %v21527_v5 = vpack.c.bf16 %v29659_v10, %v29658_v56  ;;  %v125_v35 = vld [vmem:[#allocation5 + $0x128] sm:$0xff]  ;;  %v28857_v31 = vand.u32 4294901760, %v21495_v33 }
  0x8f   :  { %17956 = vmatprep.subr.bf16.mxu1 %v29648_v15 }
  0x90   :  { %v28863_v11 = vand.u32 4294901760, %v21493_v7  ;;  %v21545_v54 = vpack.c.bf16 %v1527_v3, %v1524_v41 }
  0x91   :  { %17966 = vmatpush3.bf16.msra.mxu0 %v17965_v18  ;;  %v29650_v18 = vand.u32 4294901760, %v21247_v51  ;;  %v1476_v51 = vand.u32 4294901760, %v122_v46 }
  0x92   :  { %17958 = vmatpush3.bf16.msra.mxu1 %v29649_v28  ;;  %17968 = vmatprep.subr.bf16.mxu0 %v17967_v36  ;;  %v29651_v36 = vand.u32 4294901760, %v21256_v55  ;;  %v1479_v55 = vand.u32 4294901760, %v123_v63  ;;  %29663 = vst [vmem:[#allocation17_spill] sm:$0xff] %v21545_v54 }
  0x93   :  { %17992 = vmatprep.subr.bf16.mxu1 %v21125_v14 }
  0x94   :  { %v17979_v14 = vpack.c.bf16 %v29651_v36, %v29650_v18  ;;  %v1533_v18 = vand.u32 4294901760, %v141_v60  ;;  %v21553_v36 = vpack.c.bf16 %v1479_v55, %v1476_v51 }
  0x95   :  { %1192 = vmatmul.mubr.f32.vlgmr.msra.gmra.mrb[2].mxu1 %v711_v6  ;;  %17970 = vmatpush3.bf16.msra.mxu0 %v21423_v34  ;;  %v29655_v6 = vand.u32 4294901760, %v21286_v2  ;;  %v29660_v2 = vand.u32 4294901760, %v21322_v8  ;;  %v21543_v8 = vpack.c.bf16 %v1473_v9, %v1470_v26  ;;  %v1482_v9 = vand.u32 4294901760, %v124_v44 }
  0x96   :  { %17994 = vmatpush3.bf16.msra.mxu1 %v21129_v20  ;;  %17972 = vmatprep.subr.bf16.mxu0 %v21429_v52  ;;  %v29656_v20 = vand.u32 4294901760, %v21292_v53  ;;  %v29657_v52 = vand.u32 4294901760, %v21303_v19  ;;  %v59_v53 = vld [vmem:[#allocation2 + $0x18] sm:$0xff]  ;;  %v21537_v19 = vpack.c.bf16 %v1521_v25, %v1518_v21  ;;  %v21549_v21 = vsub.f32 %v138_v38, %v1524_v41  ;;  %29664 = vst [vmem:[#allocation21_spill] sm:$0xff] %v21553_v36 }
  0x97   :  { %v21514_v34 = vpack.c.bf16 %v29655_v6, %v29654_v0  ;;  %17996 = vmatprep.subr.bf16.mxu1 %v21133_v22  ;;  %v21533_v47 = vpack.c.bf16 %v29661_v30, %v29660_v2  ;;  %1462 = vmatprep.mubr.f32.mxu1 %v29646_v29  ;;  %v28867_v22 = vand.u32 4294901760, %v21489_v43  ;;  %29662 = vst [vmem:[#allocation16_spill] sm:$0xff] %v21543_v8  ;;  %v1530_v29 = vand.u32 4294901760, %v140_v50 }
  0x98   :  { %v21521_v61 = vpack.c.bf16 %v29657_v52, %v29656_v20  ;;  %v21551_v25 = vsub.f32 %v139_v13, %v1527_v3  ;;  %v21555_v1 = vand.u32 4294901760, %v59_v53  ;;  %v21563_v38 = vsub.f32 %v123_v63, %v1479_v55  ;;  %v126_v52 = vld [vmem:[#allocation5 + $0x130] sm:$0xff] }
  0x99   :  { %17974 = vmatpush3.bf16.msra.mxu0 %v21435_v40  ;;  %v21558_v40 = vsub.f32 %v122_v46, %v1476_v51  ;;  %v1697_v26 = vsub.f32 %v21489_v43, %v28867_v22  ;;  %v1704_v13 = vsub.f32 %v21491_v12, %v28866_v59  ;;  %v1592_v46 = vsub.f32 %v21495_v33, %v28857_v31  ;;  %v144_v31 = vld [vmem:[#allocation5 + $0x1c0] sm:$0xff]  ;;  %v131_v22 = vld [vmem:[#allocation5 + $0x158] sm:$0xff] }
  0x9a   :  { %17998 = vmatpush3.bf16.msra.mxu1 %v21140_v27  ;;  %17976 = vmatprep.subr.bf16.mxu0 %v21441_v58  ;;  %29665 = vst [vmem:[#allocation18_spill] sm:$0xff] %v21555_v1  ;;  %v1485_v27 = vand.u32 4294901760, %v125_v35  ;;  %v143_v58 = vld [vmem:[#allocation5 + $0x1b8] sm:$0xff]  ;;  %v21575_v41 = vpack.c.bf16 %v1533_v18, %v1530_v29  ;;  %v21577_v3 = vsub.f32 %v140_v50, %v1530_v29  ;;  %v1536_v6 = vand.u32 4294901760, %v142_v17 }
  0x9b   :  { %18000 = vmatprep.subr.bf16.mxu1 %v21154_v39  ;;  %v1585_v39 = vsub.f32 %v21493_v7, %v28863_v11  ;;  %v21579_v63 = vsub.f32 %v141_v60, %v1533_v18  ;;  %v21582_v0 = vsub.f32 %v59_v53, %v21555_v1  ;;  %v1539_v51 = vand.u32 4294901760, %v143_v58 }
  0x9c   :  { %29666 = vst [vmem:[#allocation19_spill] sm:$0xff] %v21575_v41  ;;  %v28861_v55 = vand.u32 4294901760, %v21549_v21  ;;  %v28858_v20 = vand.u32 4294901760, %v21551_v25  ;;  %v1698_v50 = vand.u32 4294901760, %v1697_v26  ;;  %v21588_v56 = vpack.c.bf16 %v1485_v27, %v1482_v9 }
  0x9d   :  { %17978 = vmatpush3.bf16.msra.mxu0 %v21447_v24  ;;  %v127_v24 = vld [vmem:[#allocation5 + $0x138] sm:$0xff]  ;;  %v21590_v60 = vsub.f32 %v124_v44, %v1482_v9  ;;  %v21592_v10 = vsub.f32 %v125_v35, %v1485_v27  ;;  %v1705_v2 = vand.u32 4294901760, %v1704_v13  ;;  %v28860_v30 = vand.u32 4294901760, %v21558_v40  ;;  %v145_v27 = vld [vmem:[#allocation5 + $0x1c8] sm:$0xff] }
  0x9e   :  { %18002 = vmatpush3.bf16.msra.mxu1 %v21162_v45  ;;  %17980 = vmatprep.subr.bf16.mxu0 %v17979_v14  ;;  %29667 = vst [vmem:[#allocation20_spill] sm:$0xff] %v21588_v56  ;;  %v1586_v45 = vand.u32 4294901760, %v1585_v39  ;;  %v1593_v14 = vand.u32 4294901760, %v1592_v46  ;;  %v1488_v53 = vand.u32 4294901760, %v126_v52  ;;  %v1491_v29 = vand.u32 4294901760, %v127_v24 }
  0x9f   :  { %18004 = vmatprep.subr.bf16.mxu1 %v21184_v62  ;;  %v28859_v18 = vand.u32 4294901760, %v21563_v38  ;;  %v28870_v62 = vand.u32 4294901760, %v21582_v0  ;;  %v21599_v44 = vpack.c.bf16 %v1539_v51, %v1536_v6  ;;  %v1711_v35 = vsub.f32 %v21549_v21, %v28861_v55 }
  0xa0   :  { %v21608_v26 = vsub.f32 %v142_v17, %v1536_v6  ;;  %v21610_v9 = vsub.f32 %v143_v58, %v1539_v51  ;;  %v21614_v13 = vpack.c.bf16 %v1705_v2, %v1698_v50  ;;  %v21616_v39 = vpack.c.bf16 %v1593_v14, %v1586_v45 }
  0xa1   :  { %17982 = vmatpush3.bf16.msra.mxu0 %v17981_v42  ;;  %29668 = vst [vmem:[#allocation22_spill] sm:$0xff] %v21599_v44  ;;  %v1718_v42 = vsub.f32 %v21551_v25, %v28858_v20  ;;  %v1599_v46 = vsub.f32 %v21558_v40, %v28860_v30  ;;  %v1542_v20 = vand.u32 4294901760, %v144_v31  ;;  %v1606_v17 = vsub.f32 %v21563_v38, %v28859_v18 }
  0xa2   :  { %18006 = vmatpush3.bf16.msra.mxu1 %v21200_v16  ;;  %17984 = vmatprep.subr.bf16.mxu0 %v21514_v34  ;;  %v28862_v16 = vand.u32 4294901760, %v21577_v3  ;;  %v28865_v34 = vand.u32 4294901760, %v21579_v63  ;;  %v28864_v58 = vand.u32 4294901760, %v21590_v60  ;;  %v1568_v6 = vsub.f32 %v21582_v0, %v28870_v62 }
  0xa3   :  { %18008 = vmatprep.subr.bf16.mxu1 %v21215_v49  ;;  %v21622_v49 = vpack.c.bf16 %v1491_v29, %v1488_v53  ;;  %v1712_v51 = vand.u32 4294901760, %v1711_v35  ;;  %v1719_v50 = vand.u32 4294901760, %v1718_v42  ;;  %v1545_v2 = vand.u32 4294901760, %v145_v27  ;;  %v129_v42 = vld [vmem:[#allocation5 + $0x148] sm:$0xff] }
  0xa4   :  { %v28869_v45 = vand.u32 4294901760, %v21592_v10  ;;  %v21635_v14 = vsub.f32 %v126_v52, %v1488_v53  ;;  %v21637_v18 = vsub.f32 %v127_v24, %v1491_v29  ;;  %v1725_v30 = vsub.f32 %v21577_v3, %v28862_v16  ;;  %v146_v29 = vld [vmem:[#allocation5 + $0x1d0] sm:$0xff]  ;;  %v147_v16 = vld [vmem:[#allocation5 + $0x1d8] sm:$0xff] }
  0xa5   :  { %17986 = vmatpush3.bf16.msra.mxu0 %v21521_v61  ;;  %29669 = vst [vmem:[#allocation23_spill] sm:$0xff] %v21622_v49  ;;  %v128_v61 = vld [vmem:[#allocation5 + $0x140] sm:$0xff]  ;;  %v21645_v35 = vsub.f32 %v144_v31, %v1542_v20  ;;  %v28868_v55 = vand.u32 4294901760, %v21608_v26  ;;  %v1607_v52 = vand.u32 4294901760, %v1606_v17  ;;  %v1613_v53 = vsub.f32 %v21590_v60, %v28864_v58 }
  0xa6   :  { %18010 = vmatpush3.bf16.msra.mxu1 %v21230_v4  ;;  %17988 = vmatprep.subr.bf16.mxu0 %v21527_v5  ;;  %v1732_v4 = vsub.f32 %v21579_v63, %v28865_v34  ;;  %v1600_v5 = vand.u32 4294901760, %v1599_v46  ;;  %v1494_v24 = vand.u32 4294901760, %v128_v61  ;;  %v1569_v11 = vand.u32 4294901760, %v1568_v6  ;;  %v130_v6 = vld [vmem:[#allocation5 + $0x150] sm:$0xff] }
  0xa7   :  { %18012 = vmatprep.subr.bf16.mxu1 %v21245_v48  ;;  %v28871_v48 = vand.u32 4294901760, %v21610_v9  ;;  %v21655_v31 = vpack.c.bf16 %v1719_v50, %v1712_v51  ;;  %v21657_v46 = vpack.c.bf16 %v1545_v2, %v1542_v20  ;;  %v21663_v17 = vsub.f32 %v145_v27, %v1545_v2 }
  0xa8   :  { %v1726_v58 = vand.u32 4294901760, %v1725_v30  ;;  %v1733_v34 = vand.u32 4294901760, %v1732_v4  ;;  %v1497_v59 = vand.u32 4294901760, %v129_v42  ;;  %v1551_v51 = vand.u32 4294901760, %v147_v16 }
  0xa9   :  { %17990 = vmatpush3.bf16.msra.mxu0 %v21533_v47  ;;  %29670 = vst [vmem:[#allocation24_spill] sm:$0xff] %v21657_v46  ;;  %v1620_v47 = vsub.f32 %v21592_v10, %v28869_v45  ;;  %v1739_v20 = vsub.f32 %v21608_v26, %v28868_v55  ;;  %v1746_v50 = vsub.f32 %v21610_v9, %v28871_v48  ;;  %v1614_v27 = vand.u32 4294901760, %v1613_v53  ;;  %v148_v48 = vld [vmem:[#allocation5 + $0x1e0] sm:$0xff]  ;;  %v149_v53 = vld [vmem:[#allocation5 + $0x1e8] sm:$0xff] }
  0xaa   :  { %18014 = vmatpush3.bf16.msra.mxu1 %v29644_v57  ;;  %18024 = vmatprep.subr.bf16.mxu0 %v21537_v19  ;;  %v1548_v57 = vand.u32 4294901760, %v146_v29  ;;  %v21675_v30 = vsub.f32 %v128_v61, %v1494_v24  ;;  %v1500_v55 = vand.u32 4294901760, %v130_v6  ;;  %v1503_v45 = vand.u32 4294901760, %v131_v22 }
  0xab   :  { %18016 = vmatprep.subr.bf16.mxu1 %v29645_v23  ;;  %v21673_v23 = vpack.c.bf16 %v1607_v52, %v1600_v5  ;;  %v1621_v4 = vand.u32 4294901760, %v1620_v47  ;;  %v28876_v62 = vand.u32 4294901760, %v21637_v18  ;;  %v21682_v5 = vpack.c.bf16 %v1733_v34, %v1726_v58 }
  0xac   :  { %1360 = vmatmul.mubr.f32.vlgmr.msra.gmra.mrb[4].mxu0 %v21337_v37  ;;  %v21684_v61 = vpack.c.bf16 %v1497_v59, %v1494_v24  ;;  %v21686_v52 = vsub.f32 %v129_v42, %v1497_v59  ;;  %v1740_v2 = vand.u32 4294901760, %v1739_v20  ;;  %v1747_v47 = vand.u32 4294901760, %v1746_v50  ;;  %v21719_v50 = vld [vmem:[#allocation5 + $0x168] sm:$0xff] }
  0xad   :  { %18026 = vmatpush3.bf16.msra.mxu0 %v21543_v8  ;;  %1570 = vmatprep.mubr.f32.mxu0 %v1569_v11  ;;  %v28878_v11 = vand.u32 4294901760, %v21645_v35  ;;  %v21692_v8 = vld [vmem:[#allocation5 + $0x160] sm:$0xff]  ;;  %v21697_v34 = vsub.f32 %v147_v16, %v1551_v51  ;;  %v29674_v59 = vand.u32 4294901760, %v21635_v14  ;;  %v1554_v42 = vand.u32 4294901760, %v148_v48 }
  0xae   :  { %18018 = vmatpush3.bf16.msra.mxu1 %v29647_v32  ;;  %18028 = vmatprep.subr.bf16.mxu0 %v21545_v54  ;;  %v21689_v32 = vpack.c.bf16 %v1551_v51, %v1548_v57  ;;  %v28877_v54 = vand.u32 4294901760, %v21663_v17  ;;  %v21704_v24 = vpack.c.bf16 %v1621_v4, %v1614_v27  ;;  %v21706_v20 = vpack.c.bf16 %v1503_v45, %v1500_v55 }
  0xaf   :  { %18020 = vmatprep.subr.bf16.mxu1 %v29648_v15  ;;  %v21695_v15 = vsub.f32 %v146_v29, %v1548_v57  ;;  %29673 = vst [vmem:[#allocation27_spill] sm:$0xff] %v21697_v34  ;;  %v1627_v58 = vsub.f32 %v21635_v14, %v29674_v59  ;;  %v1634_v29 = vsub.f32 %v21637_v18, %v28876_v62  ;;  %v1557_v57 = vand.u32 4294901760, %v149_v53 }
  0xb0   :  { %29671 = vst [vmem:[#allocation25_spill] sm:$0xff] %v21689_v32  ;;  %v21712_v16 = vsub.f32 %v130_v6, %v1500_v55  ;;  %v21714_v51 = vsub.f32 %v131_v22, %v1503_v45  ;;  %v28879_v27 = vand.u32 4294901760, %v21692_v8  ;;  %v18067_v4 = vpack.c.bf16 %v1747_v47, %v1740_v2  ;;  %v21729_v22 = vld [vmem:[#allocation5 + $0x1f8] sm:$0xff]  ;;  %v21752_v2 = vld [vmem:[#allocation5 + $0x170] sm:$0xff] }
  0xb1   :  { %18030 = vmatpush3.bf16.msra.mxu0 %v21553_v36  ;;  %29672 = vst [vmem:[#allocation26_spill] sm:$0xff] %v21695_v15  ;;  %v1760_v59 = vsub.f32 %v21663_v17, %v28877_v54  ;;  %v1628_v45 = vand.u32 4294901760, %v1627_v58  ;;  %v21733_v6 = vsub.f32 %v148_v48, %v1554_v42  ;;  %v58_v54 = vld [vmem:[#allocation2 + $0x10] sm:$0xff]  ;;  %v21739_v55 = vpack.c.bf16 %v1557_v57, %v1554_v42  ;;  %v21754_v42 = vld [vmem:[#allocation5 + $0x178] sm:$0xff] }
  0xb2   :  { %18022 = vmatpush3.bf16.msra.mxu1 %v29649_v28  ;;  %18032 = vmatprep.subr.bf16.mxu0 %v21575_v41  ;;  %v1753_v28 = vsub.f32 %v21645_v35, %v28878_v11  ;;  %v1635_v11 = vand.u32 4294901760, %v1634_v29  ;;  %v21741_v62 = vsub.f32 %v149_v53, %v1557_v57  ;;  %v21748_v58 = vsub.f32 %v21692_v8, %v28879_v27 }
  0xb3   :  { %18056 = vmatprep.subr.bf16.mxu1 %v21614_v13  ;;  %v21727_v13 = vld [vmem:[#allocation5 + $0x1f0] sm:$0xff]  ;;  %v1761_v53 = vand.u32 4294901760, %v1760_v59  ;;  %v29675_v29 = vand.u32 4294901760, %v21675_v30  ;;  %v29676_v57 = vand.u32 4294901760, %v21686_v52  ;;  %v21763_v27 = vand.u32 4294901760, %v58_v54 }
  0xb4   :  { %v1754_v48 = vand.u32 4294901760, %v1753_v28  ;;  %v1560_v47 = vand.u32 4294901760, %v21727_v13  ;;  %v29678_v41 = vand.u32 4294901760, %v21697_v34 }
  0xb5   :  { %1464 = vmatmul.mubr.f32.vlgmr.msra.gmra.mrb[4].mxu1 %v21337_v37  ;;  %18034 = vmatpush3.bf16.msra.mxu0 %v21588_v56  ;;  %v1509_v37 = vand.u32 4294901760, %v21719_v50  ;;  %v1648_v28 = vsub.f32 %v21686_v52, %v29676_v57  ;;  %v18069_v57 = vpack.c.bf16 %v1635_v11, %v1628_v45 }
  0xb6   :  { %18058 = vmatpush3.bf16.msra.mxu1 %v21616_v39  ;;  %18036 = vmatprep.subr.bf16.mxu0 %v21599_v44  ;;  %v1563_v39 = vand.u32 4294901760, %v21729_v22  ;;  %v29677_v44 = vand.u32 4294901760, %v21695_v15  ;;  %v1774_v59 = vsub.f32 %v21697_v34, %v29678_v41  ;;  %v21783_v41 = vsub.f32 %v21727_v13, %v1560_v47 }
  0xb7   :  { %18060 = vmatprep.subr.bf16.mxu1 %v21655_v31  ;;  %1806 = vmatprep.mubr.f32.mxu1 %v21555_v1  ;;  %v1641_v31 = vsub.f32 %v21675_v30, %v29675_v29  ;;  %v21777_v36 = vsub.f32 %v21719_v50, %v1509_v37  ;;  %v28900_v29 = vand.u32 4294901760, %v21741_v62  ;;  %v18071_v11 = vpack.c.bf16 %v1761_v53, %v1754_v48 }
  0xb8   :  { %v1767_v56 = vsub.f32 %v21695_v15, %v29677_v44  ;;  %v1515_v44 = vand.u32 4294901760, %v21754_v42  ;;  %v21786_v1 = vsub.f32 %v21729_v22, %v1563_v39  ;;  %v1649_v50 = vand.u32 4294901760, %v1648_v28 }
  0xb9   :  { %18038 = vmatpush3.bf16.msra.mxu0 %v21622_v49  ;;  %v1512_v49 = vand.u32 4294901760, %v21752_v2  ;;  %v1642_v45 = vand.u32 4294901760, %v1641_v31  ;;  %v29679_v13 = vand.u32 4294901760, %v21712_v16  ;;  %v29680_v22 = vand.u32 4294901760, %v21714_v51 }
  0xba   :  { %18062 = vmatpush3.bf16.msra.mxu1 %v21673_v23  ;;  %18040 = vmatprep.subr.bf16.mxu0 %v21657_v46  ;;  %v21791_v46 = vsub.f32 %v58_v54, %v21763_v27  ;;  %v1768_v34 = vand.u32 4294901760, %v1767_v56  ;;  %v21806_v54 = vsub.f32 %v21754_v42, %v1515_v44  ;;  %v29681_v31 = vand.u32 4294901760, %v21733_v6 }
  0xbb   :  { %18064 = vmatprep.subr.bf16.mxu1 %v21682_v5  ;;  %v1775_v5 = vand.u32 4294901760, %v1774_v59  ;;  %v1655_v15 = vsub.f32 %v21712_v16, %v29679_v13  ;;  %v1662_v23 = vsub.f32 %v21714_v51, %v29680_v22  ;;  %v21803_v48 = vsub.f32 %v21752_v2, %v1512_v49 }
  0xbc   :  { %v1781_v28 = vsub.f32 %v21733_v6, %v29681_v31  ;;  %v1794_v59 = vand.u32 4294901760, %v21783_v41  ;;  %v29682_v42 = vand.u32 4294901760, %v21692_v8  ;;  %v21822_v22 = vpack.c.bf16 %v1563_v39, %v1560_v47 }
  0xbd   :  { %18042 = vmatpush3.bf16.msra.mxu0 %v21684_v61  ;;  %v18073_v53 = vpack.c.bf16 %v1649_v50, %v1642_v45  ;;  %v18075_v31 = vpack.c.bf16 %v1775_v5, %v1768_v34  ;;  %v1656_v56 = vand.u32 4294901760, %v1655_v15  ;;  %v29684_v8 = vand.u32 4294901760, %v21777_v36 }
  0xbe   :  { %18066 = vmatpush3.bf16.msra.mxu1 %v21704_v24  ;;  %18044 = vmatprep.subr.bf16.mxu0 %v21689_v32  ;;  %v1788_v24 = vsub.f32 %v21741_v62, %v28900_v29  ;;  %v21820_v13 = vpack.c.bf16 %v1509_v37, %v29682_v42  ;;  %v1663_v32 = vand.u32 4294901760, %v1662_v23  ;;  %v29683_v29 = vand.u32 4294901760, %v21748_v58 }
  0xbf   :  { %18068 = vmatprep.subr.bf16.mxu1 %v18067_v4  ;;  %v1573_v4 = vand.u32 4294901760, %v21791_v46  ;;  %v1676_v47 = vsub.f32 %v21777_v36, %v29684_v8  ;;  %v28901_v37 = vand.u32 4294901760, %v21803_v48  ;;  %v28902_v39 = vand.u32 4294901760, %v21806_v54 }
  0xc0   :  { %v1669_v2 = vsub.f32 %v21748_v58, %v29683_v29  ;;  %v1782_v45 = vand.u32 4294901760, %v1781_v28  ;;  %v1789_v34 = vand.u32 4294901760, %v1788_v24  ;;  %v1795_v15 = vsub.f32 %v21783_v41, %v1794_v59 }
  0xc1   :  { %18046 = vmatpush3.bf16.msra.mxu0 %v21706_v20  ;;  %v1574_v29 = vsub.f32 %v21791_v46, %v1573_v4  ;;  %v21845_v50 = vpack.c.bf16 %v1515_v44, %v1512_v49  ;;  %v18077_v5 = vpack.c.bf16 %v1663_v32, %v1656_v56  ;;  %v1677_v24 = vand.u32 4294901760, %v1676_v47 }
  0xc2   :  { %18070 = vmatpush3.bf16.msra.mxu1 %v18069_v57  ;;  %18048 = vmatprep.subr.bf16.mxu0 %v21739_v55  ;;  %v29685_v57 = vand.u32 4294901760, %v21786_v1  ;;  %v1670_v28 = vand.u32 4294901760, %v1669_v2  ;;  %v1683_v42 = vsub.f32 %v21803_v48, %v28901_v37  ;;  %v1690_v8 = vsub.f32 %v21806_v54, %v28902_v39 }
  0xc3   :  { %18072 = vmatprep.subr.bf16.mxu1 %v18071_v11  ;;  %v18087_v11 = vpack.c.bf16 %v21491_v12, %v21489_v43  ;;  %v18079_v49 = vpack.c.bf16 %v1789_v34, %v1782_v45  ;;  %v1796_v44 = vand.u32 4294901760, %v1795_v15  ;;  %v1575_v56 = vand.u32 4294901760, %v1574_v29  ;;  %v29686_v29 = vld [vmem:[#allocation16_spill] sm:$0xff] }
  0xc4   :  { %v1802_v23 = vsub.f32 %v21786_v1, %v29685_v57  ;;  %v18081_v2 = vpack.c.bf16 %v1677_v24, %v1670_v28  ;;  %v18091_v47 = vpack.c.bf16 %v21551_v25, %v21549_v21  ;;  %v1684_v57 = vand.u32 4294901760, %v1683_v42  ;;  %v29689_v24 = vld [vmem:[#allocation21_spill] sm:$0xff]  ;;  %v29690_v42 = vld [vmem:[#allocation26_spill] sm:$0xff] }
  0xc5   :  { %18050 = vmatpush3.bf16.msra.mxu0 %v21820_v13  ;;  %v1691_v37 = vand.u32 4294901760, %v1690_v8  ;;  %v18095_v34 = vpack.c.bf16 %v21579_v63, %v21577_v3  ;;  %v18097_v15 = vpack.c.bf16 %v21592_v10, %v21590_v60  ;;  %v18105_v28 = vpack.c.bf16 %v21686_v52, %v21675_v30  ;;  %v29691_v8 = vld [vmem:[#allocation27_spill] sm:$0xff] }
  0xc6   :  { %18074 = vmatpush3.bf16.msra.mxu1 %v18073_v53  ;;  %18052 = vmatprep.subr.bf16.mxu0 %v21822_v22  ;;  %v1803_v32 = vand.u32 4294901760, %v1802_v23  ;;  %v18089_v53 = vpack.c.bf16 %v21495_v33, %v21493_v7  ;;  %v18099_v23 = vpack.c.bf16 %v21610_v9, %v21608_v26 }
  0xc7   :  { %18076 = vmatprep.subr.bf16.mxu1 %v18075_v31  ;;  %v18093_v31 = vpack.c.bf16 %v21563_v38, %v21558_v40  ;;  %v18085_v45 = vpack.c.bf16 %v1691_v37, %v1684_v57  ;;  %v18101_v37 = vpack.c.bf16 %v21637_v18, %v21635_v14  ;;  %v18115_v57 = vpack.c.bf16 %v21786_v1, %v21783_v41 }
  0xc8   :  { %v18083_v39 = vpack.c.bf16 %v1803_v32, %v1796_v44  ;;  %v29692_v44 = vld [vmem:[#allocation19_spill] sm:$0xff]  ;;  %v18109_v32 = vpack.c.bf16 %v21714_v51, %v21712_v16 }
  0xc9   :  { %18054 = vmatpush3.bf16.msra.mxu0 %v21845_v50 }
  0xca   :  { %18078 = vmatpush3.bf16.msra.mxu1 %v18077_v5  ;;  %18088 = vmatprep.subr.bf16.mxu0 %v18087_v11  ;;  %v29687_v5 = vld [vmem:[#allocation17_spill] sm:$0xff]  ;;  %v29688_v11 = vand.u32 4294901760, %v21582_v0 }
  0xcb   :  { %18080 = vmatprep.subr.bf16.mxu1 %v18079_v49  ;;  %v18107_v49 = vpack.c.bf16 %v29691_v8, %v29690_v42 }
  0xcc   :  { %1576 = vmatmul.mubr.f32.vlgmr.msra.gmra.mrb[6].mxu0 %v1575_v56  ;;  %v29693_v56 = vld [vmem:[#allocation20_spill] sm:$0xff] }
  0xcd   :  { %18090 = vmatpush3.bf16.msra.mxu0 %v18089_v53  ;;  %1943 = vmatprep.mubr.f32.mxu0 %v21582_v0  ;;  %v18111_v0 = vpack.c.bf16 %v21741_v62, %v21733_v6  ;;  %v29694_v53 = vld [vmem:[#allocation22_spill] sm:$0xff] }
  0xce   :  { %18082 = vmatpush3.bf16.msra.mxu1 %v18081_v2  ;;  %18092 = vmatprep.subr.bf16.mxu0 %v18091_v47  ;;  %v18113_v2 = vpack.c.bf16 %v21777_v36, %v21748_v58  ;;  %v29695_v47 = vld [vmem:[#allocation23_spill] sm:$0xff] }
  0xcf   :  { %18084 = vmatprep.subr.bf16.mxu1 %v18083_v39  ;;  %v18103_v39 = vpack.c.bf16 %v21663_v17, %v21645_v35 }
  0xd1   :  { %18094 = vmatpush3.bf16.msra.mxu0 %v18093_v31  ;;  %v29696_v31 = vld [vmem:[#allocation24_spill] sm:$0xff] }
  0xd2   :  { %18086 = vmatpush3.bf16.msra.mxu1 %v18085_v45  ;;  %18096 = vmatprep.subr.bf16.mxu0 %v18095_v34  ;;  %v18117_v45 = vpack.c.bf16 %v21806_v54, %v21803_v48  ;;  %v29697_v34 = vand.u32 4294901760, %v21489_v43  ;;  %v168_v43 = vld [vmem:[#allocation5 + $0x280] sm:$0xff] }
  0xd3   :  { %18120 = vmatprep.subr.bf16.mxu1 %v21537_v19 }
  0xd5   :  { %1808 = vmatmul.mubr.f32.vlgmr.msra.gmra.mrb[6].mxu1 %v21763_v27  ;;  %18098 = vmatpush3.bf16.msra.mxu0 %v18097_v15  ;;  %v29698_v15 = vand.u32 4294901760, %v21491_v12  ;;  %v29704_v12 = vand.u32 4294901760, %v21558_v40  ;;  %v29709_v40 = vand.u32 4294901760, %v21590_v60  ;;  %v29713_v60 = vand.u32 4294901760, %v21635_v14 }
  0xd6   :  { %18122 = vmatpush3.bf16.msra.mxu1 %v29686_v29  ;;  %18100 = vmatprep.subr.bf16.mxu0 %v18099_v23  ;;  %v29720_v14 = vand.u32 4294901760, %v29691_v8 }
  0xd7   :  { %18124 = vmatprep.subr.bf16.mxu1 %v29687_v5  ;;  %2050 = vmatprep.mubr.f32.mxu1 %v29688_v11  ;;  %v18151_v23 = vpack.c.bf16 %v29698_v15, %v29697_v34  ;;  %v29701_v11 = vand.u32 4294901760, %v21495_v33  ;;  %v2380_v34 = vand.u32 4294901760, %v168_v43  ;;  %v152_v15 = vld [vmem:[#allocation5 + $0x200] sm:$0xff] }
  0xd9   :  { %18102 = vmatpush3.bf16.msra.mxu0 %v18101_v37  ;;  %v29699_v37 = vld [vmem:[#allocation25_spill] sm:$0xff] }
  0xda   :  { %18126 = vmatpush3.bf16.msra.mxu1 %v29689_v24  ;;  %18104 = vmatprep.subr.bf16.mxu0 %v18103_v39  ;;  %v29700_v39 = vand.u32 4294901760, %v21493_v7  ;;  %v29705_v7 = vand.u32 4294901760, %v21563_v38  ;;  %v29710_v38 = vand.u32 4294901760, %v21592_v10  ;;  %v29714_v10 = vand.u32 4294901760, %v21637_v18 }
  0xdb   :  { %18128 = vmatprep.subr.bf16.mxu1 %v29692_v44 }
  0xdc   :  { %v18157_v33 = vpack.c.bf16 %v29705_v7, %v29704_v12  ;;  %v18165_v7 = vpack.c.bf16 %v29714_v10, %v29713_v60  ;;  %v173_v10 = vld [vmem:[#allocation5 + $0x2a8] sm:$0xff] }
  0xdd   :  { %18106 = vmatpush3.bf16.msra.mxu0 %v18105_v28  ;;  %v18153_v28 = vpack.c.bf16 %v29701_v11, %v29700_v39  ;;  %v18161_v39 = vpack.c.bf16 %v29710_v38, %v29709_v40  ;;  %v155_v40 = vld [vmem:[#allocation5 + $0x218] sm:$0xff]  ;;  %v29718_v38 = vand.u32 4294901760, %v21686_v52  ;;  %v29723_v52 = vand.u32 4294901760, %v21733_v6 }
  0xde   :  { %18130 = vmatpush3.bf16.msra.mxu1 %v29693_v56  ;;  %18108 = vmatprep.subr.bf16.mxu0 %v18107_v49  ;;  %v29702_v49 = vand.u32 4294901760, %v21549_v21  ;;  %v29707_v21 = vand.u32 4294901760, %v21577_v3  ;;  %v29711_v3 = vand.u32 4294901760, %v21608_v26  ;;  %v154_v26 = vld [vmem:[#allocation5 + $0x210] sm:$0xff]  ;;  %v29725_v6 = vand.u32 4294901760, %v21748_v58 }
  0xdf   :  { %18132 = vmatprep.subr.bf16.mxu1 %v29694_v53  ;;  %v29729_v58 = vand.u32 4294901760, %v21806_v54 }
  0xe1   :  { %18110 = vmatpush3.bf16.msra.mxu0 %v18109_v32  ;;  %v29703_v32 = vand.u32 4294901760, %v21551_v25  ;;  %v29708_v25 = vand.u32 4294901760, %v21579_v63  ;;  %v29712_v63 = vand.u32 4294901760, %v21610_v9  ;;  %v29717_v9 = vand.u32 4294901760, %v21675_v30 }
  0xe2   :  { %18134 = vmatpush3.bf16.msra.mxu1 %v29695_v47  ;;  %18112 = vmatprep.subr.bf16.mxu0 %v18111_v0  ;;  %v29722_v30 = vand.u32 4294901760, %v21714_v51  ;;  %v61_v51 = vld [vmem:[#allocation2 + $0x28] sm:$0xff] }
  0xe3   :  { %18136 = vmatprep.subr.bf16.mxu1 %v29696_v31  ;;  %v18155_v0 = vpack.c.bf16 %v29703_v32, %v29702_v49  ;;  %v171_v49 = vld [vmem:[#allocation5 + $0x298] sm:$0xff]  ;;  %v18163_v32 = vpack.c.bf16 %v29712_v63, %v29711_v3  ;;  %v18169_v3 = vpack.c.bf16 %v29718_v38, %v29717_v9 }
  0xe4   :  { %v2389_v60 = vand.u32 4294901760, %v171_v49 }
  0xe5   :  { %18114 = vmatpush3.bf16.msra.mxu0 %v18113_v2  ;;  %v29706_v2 = vld [vmem:[#allocation18_spill] sm:$0xff] }
  0xe6   :  { %18138 = vmatpush3.bf16.msra.mxu1 %v21684_v61  ;;  %18116 = vmatprep.subr.bf16.mxu0 %v18115_v57  ;;  %v18159_v57 = vpack.c.bf16 %v29708_v25, %v29707_v21  ;;  %v29716_v21 = vand.u32 4294901760, %v21663_v17  ;;  %v29721_v17 = vand.u32 4294901760, %v21712_v16  ;;  %v2338_v16 = vand.u32 4294901760, %v154_v26 }
  0xe7   :  { %18140 = vmatprep.subr.bf16.mxu1 %v29699_v37  ;;  %v22000_v38 = vsub.f32 %v171_v49, %v2389_v60  ;;  %v175_v49 = vld [vmem:[#allocation5 + $0x2b8] sm:$0xff] }
  0xe9   :  { %18118 = vmatpush3.bf16.msra.mxu0 %v18117_v45  ;;  %v169_v45 = vld [vmem:[#allocation5 + $0x288] sm:$0xff] }
  0xea   :  { %18142 = vmatpush3.bf16.msra.mxu1 %v21706_v20  ;;  %18152 = vmatprep.subr.bf16.mxu0 %v18151_v23  ;;  %v153_v23 = vld [vmem:[#allocation5 + $0x208] sm:$0xff]  ;;  %v2383_v11 = vand.u32 4294901760, %v169_v45 }
  0xeb   :  { %18144 = vmatprep.subr.bf16.mxu1 %v21739_v55  ;;  %v2335_v12 = vand.u32 4294901760, %v153_v23 }
  0xec   :  { %1946 = vmatmul.mubr.f32.vlgmr.msra.gmra.mrb[8].mxu0 %v21791_v46 }
  0xed   :  { %18154 = vmatpush3.bf16.msra.mxu0 %v18153_v28  ;;  %2220 = vmatprep.mubr.f32.mxu0 %v29706_v2  ;;  %v170_v28 = vld [vmem:[#allocation5 + $0x290] sm:$0xff] }
  0xee   :  { %18146 = vmatpush3.bf16.msra.mxu1 %v21820_v13  ;;  %18156 = vmatprep.subr.bf16.mxu0 %v18155_v0  ;;  %v2332_v0 = vand.u32 4294901760, %v152_v15  ;;  %v2386_v63 = vand.u32 4294901760, %v170_v28 }
  0xef   :  { %18148 = vmatprep.subr.bf16.mxu1 %v21822_v22 }
  0xf0   :  { %v21973_v46 = vsub.f32 %v152_v15, %v2332_v0 }
  0xf1   :  { %18158 = vmatpush3.bf16.msra.mxu0 %v18157_v33  ;;  %v29715_v33 = vand.u32 4294901760, %v21645_v35  ;;  %v172_v35 = vld [vmem:[#allocation5 + $0x2a0] sm:$0xff] }
  0xf2   :  { %18150 = vmatpush3.bf16.msra.mxu1 %v21845_v50  ;;  %18160 = vmatprep.subr.bf16.mxu0 %v18159_v57  ;;  %v21946_v57 = vsub.f32 %v168_v43, %v2380_v34  ;;  %v21962_v43 = vpack.c.bf16 %v29722_v30, %v29721_v17  ;;  %v28903_v17 = vand.u32 4294901760, %v22000_v38 }
  0xf3   :  { %18184 = vmatprep.subr.bf16.mxu1 %v21537_v19  ;;  %v18167_v25 = vpack.c.bf16 %v29716_v21, %v29715_v33  ;;  %v29719_v19 = vand.u32 4294901760, %v29690_v42  ;;  %v29724_v42 = vand.u32 4294901760, %v21741_v62  ;;  %v21970_v33 = vsub.f32 %v169_v45, %v2383_v11 }
  0xf4   :  { %v29726_v62 = vand.u32 4294901760, %v21777_v36  ;;  %v2392_v45 = vand.u32 4294901760, %v172_v35  ;;  %v28913_v15 = vand.u32 4294901760, %v21946_v57  ;;  %v21998_v36 = vsub.f32 %v170_v28, %v2386_v63 }
  0xf5   :  { %v18171_v18 = vpack.c.bf16 %v29720_v14, %v29719_v19  ;;  %2054 = vmatmul.mubr.f32.vlgmr.msra.gmra.mrb[8].mxu1 %v1573_v4  ;;  %18162 = vmatpush3.bf16.msra.mxu0 %v18161_v39  ;;  %v21968_v8 = vpack.c.bf16 %v29724_v42, %v29723_v52  ;;  %v21975_v4 = vsub.f32 %v153_v23, %v2335_v12  ;;  %v2341_v39 = vand.u32 4294901760, %v155_v40 }
  0xf6   :  { %18186 = vmatpush3.bf16.msra.mxu1 %v29686_v29  ;;  %18164 = vmatprep.subr.bf16.mxu0 %v18163_v32  ;;  %v21982_v21 = vpack.c.bf16 %v29726_v62, %v29725_v6  ;;  %v2395_v29 = vand.u32 4294901760, %v173_v10  ;;  %v29727_v23 = vand.u32 4294901760, %v21786_v1  ;;  %v22004_v19 = vpack.c.bf16 %v2335_v12, %v2332_v0  ;;  %v156_v1 = vld [vmem:[#allocation5 + $0x220] sm:$0xff] }
  0xf7   :  { %18188 = vmatprep.subr.bf16.mxu1 %v29687_v5  ;;  %2324 = vmatprep.mubr.f32.mxu1 %v29706_v2  ;;  %v29728_v5 = vand.u32 4294901760, %v21803_v48  ;;  %v22002_v2 = vpack.c.bf16 %v2383_v11, %v2380_v34  ;;  %v28911_v41 = vand.u32 4294901760, %v21970_v33  ;;  %v22007_v14 = vand.u32 4294901760, %v61_v51  ;;  %v174_v11 = vld [vmem:[#allocation5 + $0x2b0] sm:$0xff] }
  0xf8   :  { %v21990_v32 = vpack.c.bf16 %v29727_v23, %v1794_v59  ;;  %29730 = vst [vmem:[#allocation16_spill] sm:$0xff] %v22004_v19  ;;  %v157_v59 = vld [vmem:[#allocation5 + $0x228] sm:$0xff]  ;;  %v22010_v48 = vpack.c.bf16 %v2389_v60, %v2386_v63  ;;  %v22012_v54 = vpack.c.bf16 %v2341_v39, %v2338_v16  ;;  %v28908_v28 = vand.u32 4294901760, %v21973_v46 }
  0xf9   :  { %v21996_v9 = vpack.c.bf16 %v29729_v58, %v29728_v5  ;;  %18166 = vmatpush3.bf16.msra.mxu0 %v18165_v7  ;;  %29731 = vst [vmem:[#allocation17_spill] sm:$0xff] %v22007_v14  ;;  %v28907_v34 = vand.u32 4294901760, %v21975_v4  ;;  %v22017_v0 = vsub.f32 %v154_v26, %v2338_v16  ;;  %v22019_v12 = vsub.f32 %v155_v40, %v2341_v39 }
  0xfa   :  { %18190 = vmatpush3.bf16.msra.mxu1 %v29689_v24  ;;  %18168 = vmatprep.subr.bf16.mxu0 %v18167_v25  ;;  %29732 = vst [vmem:[#allocation21_spill] sm:$0xff] %v22010_v48  ;;  %29733 = vst [vmem:[#allocation26_spill] sm:$0xff] %v22012_v54  ;;  %v22021_v7 = vpack.c.bf16 %v2395_v29, %v2392_v45  ;;  %v2559_v24 = vsub.f32 %v21946_v57, %v28913_v15  ;;  %v2344_v25 = vand.u32 4294901760, %v156_v1 }
  0xfb   :  { %18192 = vmatprep.subr.bf16.mxu1 %v29692_v44  ;;  %v2347_v63 = vand.u32 4294901760, %v157_v59  ;;  %v28904_v60 = vand.u32 4294901760, %v21998_v36  ;;  %v2566_v44 = vsub.f32 %v21970_v33, %v28911_v41  ;;  %v2398_v26 = vand.u32 4294901760, %v174_v11 }
  0xfc   :  { %29734 = vst [vmem:[#allocation27_spill] sm:$0xff] %v22021_v7  ;;  %v2401_v40 = vand.u32 4294901760, %v175_v49  ;;  %v22032_v30 = vsub.f32 %v61_v51, %v22007_v14  ;;  %v22035_v52 = vsub.f32 %v172_v35, %v2392_v45  ;;  %v2447_v42 = vsub.f32 %v21973_v46, %v28908_v28  ;;  %v158_v51 = vld [vmem:[#allocation5 + $0x230] sm:$0xff]  ;;  %v161_v28 = vld [vmem:[#allocation5 + $0x248] sm:$0xff] }
  0xfd   :  { %18170 = vmatpush3.bf16.msra.mxu0 %v18169_v3  ;;  %v2454_v3 = vsub.f32 %v21975_v4, %v28907_v34  ;;  %v22044_v16 = vsub.f32 %v173_v10, %v2395_v29  ;;  %v2560_v39 = vand.u32 4294901760, %v2559_v24  ;;  %v28906_v6 = vand.u32 4294901760, %v22017_v0  ;;  %v159_v10 = vld [vmem:[#allocation5 + $0x238] sm:$0xff] }
  0xfe   :  { %18194 = vmatpush3.bf16.msra.mxu1 %v29693_v56  ;;  %18172 = vmatprep.subr.bf16.mxu0 %v18171_v18  ;;  %v28905_v56 = vand.u32 4294901760, %v22019_v12  ;;  %v22048_v18 = vpack.c.bf16 %v2347_v63, %v2344_v25  ;;  %v22050_v35 = vsub.f32 %v156_v1, %v2344_v25  ;;  %v2573_v62 = vsub.f32 %v21998_v36, %v28904_v60  ;;  %v177_v60 = vld [vmem:[#allocation5 + $0x2c8] sm:$0xff] }
  0xff   :  { %18196 = vmatprep.subr.bf16.mxu1 %v29694_v53  ;;  %v2580_v53 = vsub.f32 %v22000_v38, %v28903_v17  ;;  %v2567_v45 = vand.u32 4294901760, %v2566_v44  ;;  %v22059_v29 = vsub.f32 %v157_v59, %v2347_v63  ;;  %v22061_v23 = vpack.c.bf16 %v2401_v40, %v2398_v26  ;;  %v176_v17 = vld [vmem:[#allocation5 + $0x2c0] sm:$0xff] }
 0x100   :  { %29735 = vst [vmem:[#allocation19_spill] sm:$0xff] %v22048_v18  ;;  %v28914_v5 = vand.u32 4294901760, %v22032_v30  ;;  %v2448_v58 = vand.u32 4294901760, %v2447_v42  ;;  %v2455_v1 = vand.u32 4294901760, %v2454_v3  ;;  %v22066_v24 = vsub.f32 %v174_v11, %v2398_v26  ;;  %v160_v42 = vld [vmem:[#allocation5 + $0x240] sm:$0xff] }
 0x101   :  { %18174 = vmatpush3.bf16.msra.mxu0 %v21962_v43  ;;  %29736 = vst [vmem:[#allocation20_spill] sm:$0xff] %v22061_v23  ;;  %v2350_v25 = vand.u32 4294901760, %v158_v51  ;;  %v22069_v43 = vsub.f32 %v175_v49, %v2401_v40  ;;  %v2353_v59 = vand.u32 4294901760, %v159_v10  ;;  %v2461_v63 = vsub.f32 %v22017_v0, %v28906_v6 }
 0x102   :  { %18198 = vmatpush3.bf16.msra.mxu1 %v29695_v47  ;;  %18176 = vmatprep.subr.bf16.mxu0 %v21968_v8  ;;  %v2468_v47 = vsub.f32 %v22019_v12, %v28905_v56  ;;  %v2574_v8 = vand.u32 4294901760, %v2573_v62  ;;  %v2581_v44 = vand.u32 4294901760, %v2580_v53  ;;  %v28910_v11 = vand.u32 4294901760, %v22035_v52 }
 0x103   :  { %18200 = vmatprep.subr.bf16.mxu1 %v29696_v31  ;;  %v28909_v26 = vand.u32 4294901760, %v22044_v16  ;;  %v22080_v31 = vpack.c.bf16 %v2567_v45, %v2560_v39  ;;  %v2404_v49 = vand.u32 4294901760, %v176_v17  ;;  %v2407_v40 = vand.u32 4294901760, %v177_v60 }
 0x104   :  { %v2430_v3 = vsub.f32 %v22032_v30, %v28914_v5  ;;  %v22087_v62 = vpack.c.bf16 %v2455_v1, %v2448_v58  ;;  %v22089_v53 = vsub.f32 %v158_v51, %v2350_v25  ;;  %v28912_v56 = vand.u32 4294901760, %v22050_v35  ;;  %v179_v1 = vld [vmem:[#allocation5 + $0x2d8] sm:$0xff] }
 0x105   :  { %18178 = vmatpush3.bf16.msra.mxu0 %v21982_v21  ;;  %v28915_v21 = vand.u32 4294901760, %v22059_v29  ;;  %v22094_v39 = vpack.c.bf16 %v2353_v59, %v2350_v25  ;;  %v22096_v45 = vsub.f32 %v159_v10, %v2353_v59  ;;  %v2462_v6 = vand.u32 4294901760, %v2461_v63  ;;  %v178_v10 = vld [vmem:[#allocation5 + $0x2d0] sm:$0xff]  ;;  %v163_v5 = vld [vmem:[#allocation5 + $0x258] sm:$0xff] }
 0x106   :  { %18202 = vmatpush3.bf16.msra.mxu1 %v21684_v61  ;;  %18180 = vmatprep.subr.bf16.mxu0 %v21990_v32  ;;  %v2469_v34 = vand.u32 4294901760, %v2468_v47  ;;  %v22098_v61 = vpack.c.bf16 %v2581_v44, %v2574_v8  ;;  %v2587_v32 = vsub.f32 %v22035_v52, %v28910_v11  ;;  %v2594_v51 = vsub.f32 %v22044_v16, %v28909_v26 }
 0x107   :  { %18204 = vmatprep.subr.bf16.mxu1 %v29699_v37  ;;  %29737 = vst [vmem:[#allocation22_spill] sm:$0xff] %v22094_v39  ;;  %v2356_v58 = vand.u32 4294901760, %v160_v42  ;;  %v22107_v37 = vpack.c.bf16 %v2407_v40, %v2404_v49  ;;  %v28917_v25 = vand.u32 4294901760, %v22066_v24  ;;  %v28916_v59 = vand.u32 4294901760, %v22069_v43 }
 0x108   :  { %v2431_v63 = vand.u32 4294901760, %v2430_v3  ;;  %v22113_v47 = vsub.f32 %v176_v17, %v2404_v49  ;;  %v2359_v8 = vand.u32 4294901760, %v161_v28  ;;  %v2482_v44 = vsub.f32 %v22059_v29, %v28915_v21 }
 0x109   :  { %18182 = vmatpush3.bf16.msra.mxu0 %v21996_v9  ;;  %29738 = vst [vmem:[#allocation23_spill] sm:$0xff] %v22107_v37  ;;  %v2475_v9 = vsub.f32 %v22050_v35, %v28912_v56  ;;  %v22122_v26 = vpack.c.bf16 %v2469_v34, %v2462_v6  ;;  %v22124_v3 = vsub.f32 %v177_v60, %v2407_v40  ;;  %v28920_v11 = vand.u32 4294901760, %v22089_v53 }
 0x10a   :  { %18206 = vmatpush3.bf16.msra.mxu1 %v21706_v20  ;;  %18216 = vmatprep.subr.bf16.mxu0 %v22002_v2  ;;  %v162_v20 = vld [vmem:[#allocation5 + $0x250] sm:$0xff]  ;;  %v28923_v17 = vand.u32 4294901760, %v22096_v45  ;;  %v2588_v49 = vand.u32 4294901760, %v2587_v32  ;;  %v2595_v41 = vand.u32 4294901760, %v2594_v51  ;;  %v2410_v56 = vand.u32 4294901760, %v178_v10 }
 0x10b   :  { %18208 = vmatprep.subr.bf16.mxu1 %v21739_v55  ;;  %v2413_v15 = vand.u32 4294901760, %v179_v1  ;;  %v22130_v21 = vsub.f32 %v160_v42, %v2356_v58  ;;  %v2601_v55 = vsub.f32 %v22066_v24, %v28917_v25  ;;  %v2608_v34 = vsub.f32 %v22069_v43, %v28916_v59  ;;  %v180_v59 = vld [vmem:[#allocation5 + $0x2e0] sm:$0xff] }
 0x10c   :  { %2222 = vmatmul.mubr.f32.vlgmr.msra.gmra.mrb[10].mxu0 %v21763_v27  ;;  %v22140_v60 = vpack.c.bf16 %v2359_v8, %v2356_v58  ;;  %v2476_v6 = vand.u32 4294901760, %v2475_v9  ;;  %v2483_v40 = vand.u32 4294901760, %v2482_v44  ;;  %v2362_v32 = vand.u32 4294901760, %v162_v20  ;;  %v22168_v25 = vld [vmem:[#allocation5 + $0x260] sm:$0xff] }
 0x10d   :  { %18218 = vmatpush3.bf16.msra.mxu0 %v22004_v19  ;;  %2432 = vmatprep.mubr.f32.mxu0 %v2431_v63  ;;  %v2365_v42 = vand.u32 4294901760, %v163_v5  ;;  %v2489_v51 = vsub.f32 %v22089_v53, %v28920_v11  ;;  %v2496_v63 = vsub.f32 %v22096_v45, %v28923_v17  ;;  %v22150_v58 = vpack.c.bf16 %v2595_v41, %v2588_v49 }
 0x10e   :  { %18210 = vmatpush3.bf16.msra.mxu1 %v21820_v13  ;;  %18220 = vmatprep.subr.bf16.mxu0 %v22010_v48  ;;  %v181_v13 = vld [vmem:[#allocation5 + $0x2e8] sm:$0xff]  ;;  %v22152_v9 = vsub.f32 %v161_v28, %v2359_v8  ;;  %v22154_v44 = vpack.c.bf16 %v2413_v15, %v2410_v56  ;;  %v22158_v48 = vsub.f32 %v178_v10, %v2410_v56  ;;  %v2602_v19 = vand.u32 4294901760, %v2601_v55 }
 0x10f   :  { %18212 = vmatprep.subr.bf16.mxu1 %v21822_v22  ;;  %v28924_v22 = vand.u32 4294901760, %v22124_v3  ;;  %v22160_v11 = vsub.f32 %v179_v1, %v2413_v15  ;;  %v2609_v17 = vand.u32 4294901760, %v2608_v34  ;;  %v22164_v41 = vpack.c.bf16 %v2483_v40, %v2476_v6  ;;  %v22176_v55 = vld [vmem:[#allocation5 + $0x268] sm:$0xff]  ;;  %v22185_v40 = vld [vmem:[#allocation5 + $0x2f0] sm:$0xff] }
 0x110   :  { %29739 = vst [vmem:[#allocation24_spill] sm:$0xff] %v22158_v48  ;;  %v22166_v28 = vsub.f32 %v162_v20, %v2362_v32  ;;  %v2416_v8 = vand.u32 4294901760, %v180_v59  ;;  %v2419_v49 = vand.u32 4294901760, %v181_v13  ;;  %v22171_v56 = vpack.c.bf16 %v2365_v42, %v2362_v32  ;;  %v22187_v32 = vld [vmem:[#allocation5 + $0x2f8] sm:$0xff] }
 0x111   :  { %18222 = vmatpush3.bf16.msra.mxu0 %v22012_v54  ;;  %29740 = vst [vmem:[#allocation25_spill] sm:$0xff] %v22160_v11  ;;  %v2490_v15 = vand.u32 4294901760, %v2489_v51  ;;  %v2497_v10 = vand.u32 4294901760, %v2496_v63  ;;  %v29741_v1 = vand.u32 4294901760, %v22113_v47  ;;  %v22178_v34 = vsub.f32 %v163_v5, %v2365_v42 }
 0x112   :  { %18214 = vmatpush3.bf16.msra.mxu1 %v21845_v50  ;;  %18224 = vmatprep.subr.bf16.mxu0 %v22021_v7  ;;  %v2622_v20 = vsub.f32 %v22124_v3, %v28924_v22  ;;  %v18259_v51 = vpack.c.bf16 %v2609_v17, %v2602_v19  ;;  %v2368_v5 = vand.u32 4294901760, %v22168_v25  ;;  %v22196_v22 = vpack.c.bf16 %v2419_v49, %v2416_v8 }
 0x113   :  { %18248 = vmatprep.subr.bf16.mxu1 %v22080_v31  ;;  %v2615_v50 = vsub.f32 %v22113_v47, %v29741_v1  ;;  %v60_v1 = vld [vmem:[#allocation2 + $0x20] sm:$0xff]  ;;  %v22198_v31 = vsub.f32 %v180_v59, %v2416_v8  ;;  %v22200_v6 = vsub.f32 %v181_v13, %v2419_v49  ;;  %v18261_v19 = vpack.c.bf16 %v2497_v10, %v2490_v15 }
 0x114   :  { %v2422_v42 = vand.u32 4294901760, %v22185_v40  ;;  %v2425_v63 = vand.u32 4294901760, %v22187_v32  ;;  %v2623_v59 = vand.u32 4294901760, %v2622_v20  ;;  %v29742_v13 = vand.u32 4294901760, %v22130_v21 }
 0x115   :  { %2326 = vmatmul.mubr.f32.vlgmr.msra.gmra.mrb[10].mxu1 %v21763_v27  ;;  %18226 = vmatpush3.bf16.msra.mxu0 %v22048_v18  ;;  %v2371_v27 = vand.u32 4294901760, %v22176_v55  ;;  %v2616_v17 = vand.u32 4294901760, %v2615_v50  ;;  %v22206_v18 = vld [vmem:[#allocation5 + $0x270] sm:$0xff]  ;;  %v29743_v49 = vand.u32 4294901760, %v22152_v9  ;;  %v22217_v15 = vand.u32 4294901760, %v60_v1 }
 0x116   :  { %18250 = vmatpush3.bf16.msra.mxu1 %v22087_v62  ;;  %18228 = vmatprep.subr.bf16.mxu0 %v22061_v23  ;;  %v22208_v62 = vld [vmem:[#allocation5 + $0x278] sm:$0xff]  ;;  %v2503_v8 = vsub.f32 %v22130_v21, %v29742_v13  ;;  %v29745_v10 = vand.u32 4294901760, %v22158_v48  ;;  %v29746_v23 = vand.u32 4294901760, %v22160_v11  ;;  %v22243_v13 = vsub.f32 %v22187_v32, %v2425_v63 }
 0x117   :  { %18252 = vmatprep.subr.bf16.mxu1 %v22098_v61  ;;  %2668 = vmatprep.mubr.f32.mxu1 %v22007_v14  ;;  %v2510_v61 = vsub.f32 %v22152_v9, %v29743_v49  ;;  %29744 = vst [vmem:[#allocation18_spill] sm:$0xff] %v22217_v15  ;;  %v22231_v49 = vsub.f32 %v22168_v25, %v2368_v5  ;;  %v2377_v7 = vand.u32 4294901760, %v22208_v62  ;;  %v28943_v25 = vand.u32 4294901760, %v22200_v6 }
 0x118   :  { %v2629_v50 = vsub.f32 %v22158_v48, %v29745_v10  ;;  %v2636_v20 = vsub.f32 %v22160_v11, %v29746_v23  ;;  %v2374_v10 = vand.u32 4294901760, %v22206_v18  ;;  %v22240_v23 = vsub.f32 %v22185_v40, %v2422_v42 }
 0x119   :  { %18230 = vmatpush3.bf16.msra.mxu0 %v22094_v39  ;;  %v22234_v39 = vsub.f32 %v22176_v55, %v2371_v27  ;;  %v18263_v14 = vpack.c.bf16 %v2623_v59, %v2616_v17  ;;  %v2511_v55 = vand.u32 4294901760, %v2510_v61  ;;  %v22248_v11 = vsub.f32 %v60_v1, %v22217_v15 }
 0x11a   :  { %18254 = vmatpush3.bf16.msra.mxu1 %v22122_v26  ;;  %18232 = vmatprep.subr.bf16.mxu0 %v22107_v37  ;;  %v2504_v37 = vand.u32 4294901760, %v2503_v8  ;;  %v2630_v48 = vand.u32 4294901760, %v2629_v50  ;;  %v29747_v40 = vand.u32 4294901760, %v22166_v28  ;;  %v29748_v32 = vand.u32 4294901760, %v22178_v34 }
 0x11b   :  { %18256 = vmatprep.subr.bf16.mxu1 %v22150_v58  ;;  %v2637_v58 = vand.u32 4294901760, %v2636_v20  ;;  %v22260_v17 = vsub.f32 %v22206_v18, %v2374_v10  ;;  %v22263_v1 = vsub.f32 %v22208_v62, %v2377_v7  ;;  %v29749_v61 = vand.u32 4294901760, %v22198_v31 }
 0x11c   :  { %v2517_v54 = vsub.f32 %v22166_v28, %v29747_v40  ;;  %v2524_v26 = vsub.f32 %v22178_v34, %v29748_v32  ;;  %v28945_v18 = vand.u32 4294901760, %v22243_v13  ;;  %v22275_v40 = vpack.c.bf16 %v2371_v27, %v2368_v5 }
 0x11d   :  { %18234 = vmatpush3.bf16.msra.mxu0 %v22140_v60  ;;  %v2643_v50 = vsub.f32 %v22198_v31, %v29749_v61  ;;  %v22277_v62 = vpack.c.bf16 %v2425_v63, %v2422_v42  ;;  %v28947_v32 = vand.u32 4294901760, %v22248_v11  ;;  %v18267_v8 = vpack.c.bf16 %v2637_v58, %v2630_v48 }
 0x11e   :  { %18258 = vmatpush3.bf16.msra.mxu1 %v22164_v41  ;;  %18236 = vmatprep.subr.bf16.mxu0 %v22154_v44  ;;  %v2650_v41 = vsub.f32 %v22200_v6, %v28943_v25  ;;  %v2518_v59 = vand.u32 4294901760, %v2517_v54  ;;  %v2525_v61 = vand.u32 4294901760, %v2524_v26  ;;  %v29750_v25 = vand.u32 4294901760, %v22231_v49 }
 0x11f   :  { %18260 = vmatprep.subr.bf16.mxu1 %v18259_v51  ;;  %v18265_v51 = vpack.c.bf16 %v2511_v55, %v2504_v37  ;;  %v29751_v5 = vand.u32 4294901760, %v22234_v39  ;;  %v28944_v63 = vand.u32 4294901760, %v22260_v17  ;;  %v28946_v27 = vand.u32 4294901760, %v22263_v1 }
 0x120   :  { %v2531_v20 = vsub.f32 %v22231_v49, %v29750_v25  ;;  %v2644_v37 = vand.u32 4294901760, %v2643_v50  ;;  %v2651_v48 = vand.u32 4294901760, %v2650_v41  ;;  %v29752_v54 = vand.u32 4294901760, %v22240_v23 }
 0x121   :  { %18238 = vmatpush3.bf16.msra.mxu0 %v22171_v56  ;;  %v2538_v42 = vsub.f32 %v22234_v39, %v29751_v5  ;;  %v2664_v26 = vsub.f32 %v22243_v13, %v28945_v18  ;;  %v2436_v25 = vsub.f32 %v22248_v11, %v28947_v32  ;;  %v22300_v55 = vpack.c.bf16 %v2377_v7, %v2374_v10 }
 0x122   :  { %18262 = vmatpush3.bf16.msra.mxu1 %v18261_v19  ;;  %18240 = vmatprep.subr.bf16.mxu0 %v22196_v22  ;;  %v2657_v19 = vsub.f32 %v22240_v23, %v29752_v54  ;;  %v18269_v58 = vpack.c.bf16 %v2525_v61, %v2518_v59  ;;  %v2532_v50 = vand.u32 4294901760, %v2531_v20  ;;  %v2545_v5 = vsub.f32 %v22260_v17, %v28944_v63 }
 0x123   :  { %18264 = vmatprep.subr.bf16.mxu1 %v18263_v14  ;;  %v18279_v14 = vpack.c.bf16 %v21970_v33, %v21946_v57  ;;  %v2539_v41 = vand.u32 4294901760, %v2538_v42  ;;  %v2552_v54 = vsub.f32 %v22263_v1, %v28946_v27  ;;  %v18271_v7 = vpack.c.bf16 %v2651_v48, %v2644_v37 }
 0x124   :  { %v2658_v10 = vand.u32 4294901760, %v2657_v19  ;;  %v2665_v59 = vand.u32 4294901760, %v2664_v26  ;;  %v2437_v61 = vand.u32 4294901760, %v2436_v25  ;;  %v18283_v42 = vpack.c.bf16 %v22000_v38, %v21998_v36  ;;  %v29754_v25 = vld [vmem:[#allocation21_spill] sm:$0xff] }
 0x125   :  { %18242 = vmatpush3.bf16.msra.mxu0 %v22275_v40  ;;  %v18273_v20 = vpack.c.bf16 %v2539_v41, %v2532_v50  ;;  %v2546_v63 = vand.u32 4294901760, %v2545_v5  ;;  %v2553_v18 = vand.u32 4294901760, %v2552_v54  ;;  %v18287_v48 = vpack.c.bf16 %v22044_v16, %v22035_v52  ;;  %v29756_v50 = vld [vmem:[#allocation26_spill] sm:$0xff]  ;;  %v29757_v41 = vld [vmem:[#allocation24_spill] sm:$0xff]  ;;  %v29758_v5 = vld [vmem:[#allocation25_spill] sm:$0xff] }
 0x126   :  { %18266 = vmatpush3.bf16.msra.mxu1 %v18265_v51  ;;  %18244 = vmatprep.subr.bf16.mxu0 %v22277_v62  ;;  %v18281_v51 = vpack.c.bf16 %v21975_v4, %v21973_v46  ;;  %v18275_v27 = vpack.c.bf16 %v2665_v59, %v2658_v10  ;;  %v18289_v19 = vpack.c.bf16 %v22059_v29, %v22050_v35  ;;  %v29760_v59 = vld [vmem:[#allocation19_spill] sm:$0xff]  ;;  %v29767_v32 = vand.u32 4294901760, %v21975_v4 }
 0x127   :  { %18268 = vmatprep.subr.bf16.mxu1 %v18267_v8  ;;  %v18285_v8 = vpack.c.bf16 %v22019_v12, %v22017_v0  ;;  %v18277_v37 = vpack.c.bf16 %v2553_v18, %v2546_v63  ;;  %v18291_v26 = vpack.c.bf16 %v22069_v43, %v22066_v24  ;;  %v18293_v18 = vpack.c.bf16 %v22096_v45, %v22089_v53  ;;  %v29753_v63 = vld [vmem:[#allocation16_spill] sm:$0xff] }
 0x128   :  { %v18299_v54 = vpack.c.bf16 %v29758_v5, %v29757_v41  ;;  %v18301_v10 = vpack.c.bf16 %v22178_v34, %v22166_v28 }
 0x129   :  { %18246 = vmatpush3.bf16.msra.mxu0 %v22300_v55 }
 0x12a   :  { %18270 = vmatpush3.bf16.msra.mxu1 %v18269_v58  ;;  %18280 = vmatprep.subr.bf16.mxu0 %v18279_v14  ;;  %v29755_v58 = vand.u32 4294901760, %v22032_v30  ;;  %v18297_v14 = vpack.c.bf16 %v22152_v9, %v22130_v21 }
 0x12b   :  { %18272 = vmatprep.subr.bf16.mxu1 %v18271_v7  ;;  %v29759_v7 = vld [vmem:[#allocation27_spill] sm:$0xff] }
 0x12c   :  { %2438 = vmatmul.mubr.f32.vlgmr.msra.gmra.mrb[12].mxu0 %v2437_v61  ;;  %v29761_v61 = vld [vmem:[#allocation20_spill] sm:$0xff] }
 0x12d   :  { %18282 = vmatpush3.bf16.msra.mxu0 %v18281_v51  ;;  %2805 = vmatprep.mubr.f32.mxu0 %v22032_v30  ;;  %v18303_v30 = vpack.c.bf16 %v22200_v6, %v22198_v31 }
 0x12e   :  { %18274 = vmatpush3.bf16.msra.mxu1 %v18273_v20  ;;  %18284 = vmatprep.subr.bf16.mxu0 %v18283_v42  ;;  %v18305_v42 = vpack.c.bf16 %v22234_v39, %v22231_v49 }
 0x12f   :  { %18276 = vmatprep.subr.bf16.mxu1 %v18275_v27  ;;  %v18295_v27 = vpack.c.bf16 %v22124_v3, %v22113_v47 }
 0x131   :  { %18286 = vmatpush3.bf16.msra.mxu0 %v18285_v8 }
 0x132   :  { %18278 = vmatpush3.bf16.msra.mxu1 %v18277_v37  ;;  %18288 = vmatprep.subr.bf16.mxu0 %v18287_v48  ;;  %v29762_v37 = vld [vmem:[#allocation22_spill] sm:$0xff]  ;;  %v18307_v48 = vpack.c.bf16 %v22243_v13, %v22240_v23 }
 0x133   :  { %18312 = vmatprep.subr.bf16.mxu1 %v22002_v2 }
 0x135   :  { %2670 = vmatmul.mubr.f32.vlgmr.msra.gmra.mrb[12].mxu1 %v22217_v15  ;;  %18290 = vmatpush3.bf16.msra.mxu0 %v18289_v19  ;;  %v29763_v19 = vld [vmem:[#allocation23_spill] sm:$0xff] }
 0x136   :  { %18314 = vmatpush3.bf16.msra.mxu1 %v29753_v63  ;;  %18292 = vmatprep.subr.bf16.mxu0 %v18291_v26  ;;  %v14470_v26 = vld [vmem:[#allocation7] ss:$0 sm:$0xff] }
 0x137   :  { %18316 = vmatprep.subr.bf16.mxu1 %v29754_v25  ;;  %2912 = vmatprep.mubr.f32.mxu1 %v29755_v58  ;;  %v29765_v58 = vand.u32 4294901760, %v21970_v33  ;;  %v29769_v33 = vand.u32 4294901760, %v22000_v38  ;;  %v29771_v38 = vand.u32 4294901760, %v22019_v12 }
 0x139   :  { %18294 = vmatpush3.bf16.msra.mxu0 %v18293_v18  ;;  %v18309_v18 = vpack.c.bf16 %v22263_v1, %v22260_v17 }
 0x13a   :  { %18318 = vmatpush3.bf16.msra.mxu1 %v29756_v50  ;;  %18296 = vmatprep.subr.bf16.mxu0 %v18295_v27  ;;  %v29764_v27 = vand.u32 4294901760, %v21946_v57  ;;  %v29768_v57 = vand.u32 4294901760, %v21998_v36  ;;  %v29770_v36 = vand.u32 4294901760, %v22017_v0 }
 0x13b   :  { %18320 = vmatprep.subr.bf16.mxu1 %v29759_v7 }
 0x13d   :  { %18298 = vmatpush3.bf16.msra.mxu0 %v18297_v14  ;;  %v18343_v14 = vpack.c.bf16 %v29765_v58, %v29764_v27  ;;  %v18347_v27 = vpack.c.bf16 %v29769_v33, %v29768_v57  ;;  %v29772_v58 = vld [vmem:[#allocation17_spill] sm:$0xff] }
 0x13e   :  { %18322 = vmatpush3.bf16.msra.mxu1 %v29760_v59  ;;  %18300 = vmatprep.subr.bf16.mxu0 %v18299_v54  ;;  %v22361_v54 = vld [vmem:[#allocation5 + $0x380] sm:$0xff] }
 0x13f   :  { %18324 = vmatprep.subr.bf16.mxu1 %v29761_v61  ;;  %v14503_v51 = vpop.f32.mrb[0].mxu0 }
 0x140   :  { %v14504_v20 = vpop.f32.mrb[1].mxu0 }
 0x141   :  { %18302 = vmatpush3.bf16.msra.mxu0 %v18301_v10  ;;  %v14505_v8 = vadd.f32 %v14504_v20, %v14503_v51  ;;  %v22363_v51 = vld [vmem:[#allocation5 + $0x388] sm:$0xff] }
 0x142   :  { %18326 = vmatpush3.bf16.msra.mxu1 %v29762_v37  ;;  %18304 = vmatprep.subr.bf16.mxu0 %v18303_v30 }
 0x143   :  { %18328 = vmatprep.subr.bf16.mxu1 %v29763_v19  ;;  %v716_v10 = vadd.f32 %v14505_v8, %v14470_v26  ;;  %v28953_v8 = vand.u32 4294901760, %v22361_v54  ;;  %v22375_v26 = vld [vmem:[#allocation5 + $0x300] sm:$0xff] }
 0x145   :  { %18306 = vmatpush3.bf16.msra.mxu0 %v18305_v42  ;;  %v29766_v42 = vand.u32 4294901760, %v21973_v46  ;;  %v28952_v46 = vand.u32 4294901760, %v22363_v51 }
 0x146   :  { %18330 = vmatpush3.bf16.msra.mxu1 %v22140_v60  ;;  %18308 = vmatprep.subr.bf16.mxu0 %v18307_v48 }
 0x147   :  { %18332 = vmatprep.subr.bf16.mxu1 %v22154_v44  ;;  %v18345_v48 = vpack.c.bf16 %v29767_v32, %v29766_v42  ;;  %v18349_v32 = vpack.c.bf16 %v29771_v38, %v29770_v36  ;;  %v22405_v12 = vsub.f32 %v22363_v51, %v28952_v46  ;;  %v22407_v42 = vld [vmem:[#allocation5 + $0x390] sm:$0xff]  ;;  %v29777_v36 = vand.u32 4294901760, %v22066_v24 }
 0x148   :  { %v14538_v30 = vpop.f32.mrb[0].mxu1  ;;  %v29778_v38 = vand.u32 4294901760, %v22069_v43  ;;  %v29779_v24 = vand.u32 4294901760, %v22089_v53  ;;  %v29780_v43 = vand.u32 4294901760, %v22096_v45  ;;  %v29783_v46 = vand.u32 4294901760, %v22248_v11 }
 0x149   :  { %v14539_v20 = vpop.f32.mrb[1].mxu1  ;;  %18310 = vmatpush3.bf16.msra.mxu0 %v18309_v18  ;;  %v22379_v18 = vld [vmem:[#allocation5 + $0x308] sm:$0xff]  ;;  %v29786_v53 = vand.u32 4294901760, %v29757_v41  ;;  %v29787_v45 = vand.u32 4294901760, %v29758_v5 }
 0x14a   :  { %v14540_v15 = vadd.f32 %v14539_v20, %v14538_v30  ;;  %18334 = vmatpush3.bf16.msra.mxu1 %v22171_v56  ;;  %18344 = vmatprep.subr.bf16.mxu0 %v18343_v14  ;;  %v28951_v14 = vand.u32 4294901760, %v22375_v26  ;;  %v29773_v30 = vand.u32 4294901760, %v22035_v52  ;;  %v22398_v20 = vsub.f32 %v22361_v54, %v28953_v8  ;;  %v22409_v52 = vld [vmem:[#allocation5 + $0x398] sm:$0xff]  ;;  %v205_v41 = vld [vmem:[#allocation5 + $0x3a8] sm:$0xff] }
 0x14b   :  { %18336 = vmatprep.subr.bf16.mxu1 %v22196_v22  ;;  %v28950_v0 = vand.u32 4294901760, %v22379_v18  ;;  %v29785_v8 = vand.u32 4294901760, %v22152_v9 }
 0x14c   :  { %v22381_v4 = vadd.f32 %v14540_v15, %v716_v10  ;;  %2808 = vmatmul.mubr.f32.vlgmr.msra.gmra.mrb[14].mxu0 %v22248_v11  ;;  %v29774_v15 = vand.u32 4294901760, %v22044_v16  ;;  %v29775_v16 = vand.u32 4294901760, %v22050_v35  ;;  %v22418_v33 = vsub.f32 %v22375_v26, %v28951_v14 }
 0x14d   :  { %18346 = vmatpush3.bf16.msra.mxu0 %v18345_v48  ;;  %3082 = vmatprep.mubr.f32.mxu0 %v29772_v58  ;;  %v29776_v48 = vand.u32 4294901760, %v22059_v29  ;;  %v22428_v35 = vsub.f32 %v22379_v18, %v28950_v0  ;;  %v3248_v29 = vand.u32 4294901760, %v22407_v42 }
 0x14e   :  { %18338 = vmatpush3.bf16.msra.mxu1 %v22275_v40  ;;  %18348 = vmatprep.subr.bf16.mxu0 %v18347_v27  ;;  %v18351_v10 = vpack.c.bf16 %v29774_v15, %v29773_v30  ;;  %v186_v27 = vld [vmem:[#allocation5 + $0x310] sm:$0xff]  ;;  %v18355_v30 = vpack.c.bf16 %v29778_v38, %v29777_v36  ;;  %v3251_v15 = vand.u32 4294901760, %v22409_v52  ;;  %v29781_v36 = vand.u32 4294901760, %v22113_v47 }
 0x14f   :  { %18340 = vmatprep.subr.bf16.mxu1 %v22277_v62  ;;  %v18353_v57 = vpack.c.bf16 %v29776_v48, %v29775_v16  ;;  %v187_v16 = vld [vmem:[#allocation5 + $0x318] sm:$0xff]  ;;  %v18357_v48 = vpack.c.bf16 %v29780_v43, %v29779_v24  ;;  %v29782_v38 = vand.u32 4294901760, %v22124_v3  ;;  %v3200_v14 = vand.u32 4294901760, %v186_v27 }
 0x150   :  { %v18363_v24 = vpack.c.bf16 %v29787_v45, %v29786_v53  ;;  %v29788_v47 = vand.u32 4294901760, %v22166_v28  ;;  %v29789_v3 = vand.u32 4294901760, %v22178_v34  ;;  %v28963_v11 = vand.u32 4294901760, %v22418_v33  ;;  %v63_v34 = vld [vmem:[#allocation2 + $0x38] sm:$0xff] }
 0x151   :  { %18350 = vmatpush3.bf16.msra.mxu0 %v18349_v32  ;;  %v28964_v32 = vand.u32 4294901760, %v22398_v20  ;;  %v18359_v0 = vpack.c.bf16 %v29782_v38, %v29781_v36  ;;  %v3203_v9 = vand.u32 4294901760, %v187_v16  ;;  %v28954_v28 = vand.u32 4294901760, %v22428_v35 }
 0x152   :  { %18342 = vmatpush3.bf16.msra.mxu1 %v22300_v55  ;;  %18352 = vmatprep.subr.bf16.mxu0 %v18351_v10  ;;  %v22457_v43 = vpack.c.bf16 %v29789_v3, %v29788_v47  ;;  %v29793_v38 = vand.u32 4294901760, %v22231_v49  ;;  %v22500_v47 = vsub.f32 %v186_v27, %v3200_v14  ;;  %v188_v3 = vld [vmem:[#allocation5 + $0x320] sm:$0xff]  ;;  %v189_v49 = vld [vmem:[#allocation5 + $0x328] sm:$0xff] }
 0x153   :  { %18376 = vmatprep.subr.bf16.mxu1 %v22002_v2  ;;  %v29784_v2 = vand.u32 4294901760, %v22130_v21  ;;  %v22462_v21 = vsub.f32 %v22407_v42, %v3248_v29  ;;  %v3421_v5 = vsub.f32 %v22398_v20, %v28964_v32  ;;  %v22476_v42 = vsub.f32 %v22409_v52, %v3251_v15 }
 0x154   :  { %v29797_v52 = vand.u32 4294901760, %v22260_v17  ;;  %v22508_v17 = vsub.f32 %v187_v16, %v3203_v9  ;;  %v3316_v27 = vsub.f32 %v22428_v35, %v28954_v28  ;;  %v29803_v16 = vand.u32 4294901760, %v22375_v26  ;;  %v206_v28 = vld [vmem:[#allocation5 + $0x3b0] sm:$0xff] }
 0x155   :  { %2916 = vmatmul.mubr.f32.vlgmr.msra.gmra.mrb[14].mxu1 %v29783_v46  ;;  %18354 = vmatpush3.bf16.msra.mxu0 %v18353_v57  ;;  %v18361_v10 = vpack.c.bf16 %v29785_v8, %v29784_v2  ;;  %v204_v8 = vld [vmem:[#allocation5 + $0x3a0] sm:$0xff]  ;;  %v29790_v46 = vand.u32 4294901760, %v22198_v31  ;;  %v29794_v2 = vand.u32 4294901760, %v22234_v39  ;;  %v29795_v31 = vand.u32 4294901760, %v22240_v23 }
 0x156   :  { %18378 = vmatpush3.bf16.msra.mxu1 %v29753_v63  ;;  %18356 = vmatprep.subr.bf16.mxu0 %v18355_v30  ;;  %v29791_v63 = vand.u32 4294901760, %v22200_v6  ;;  %v29792_v30 = vand.u32 4294901760, %v22405_v12  ;;  %v29796_v6 = vand.u32 4294901760, %v22243_v13  ;;  %v3254_v39 = vand.u32 4294901760, %v204_v8 }
 0x157   :  { %18380 = vmatprep.subr.bf16.mxu1 %v29754_v25  ;;  %3186 = vmatprep.mubr.f32.mxu1 %v29772_v58  ;;  %v22486_v25 = vpack.c.bf16 %v29794_v2, %v29793_v38  ;;  %v29798_v58 = vand.u32 4294901760, %v22263_v1  ;;  %v3309_v23 = vsub.f32 %v22418_v33, %v28963_v11  ;;  %v22505_v13 = vand.u32 4294901760, %v63_v34 }
 0x158   :  { %v22473_v57 = vpack.c.bf16 %v29791_v63, %v29790_v46  ;;  %v3428_v36 = vsub.f32 %v22405_v12, %v29792_v30  ;;  %v22492_v53 = vpack.c.bf16 %v29796_v6, %v29795_v31  ;;  %v3257_v46 = vand.u32 4294901760, %v205_v41 }
 0x159   :  { %v22498_v45 = vpack.c.bf16 %v29798_v58, %v29797_v52  ;;  %18358 = vmatpush3.bf16.msra.mxu0 %v18357_v48  ;;  %29799 = vst [vmem:[#allocation16_spill] sm:$0xff] %v22505_v13  ;;  %v3422_v1 = vand.u32 4294901760, %v3421_v5  ;;  %v28958_v48 = vand.u32 4294901760, %v22462_v21  ;;  %v3206_v30 = vand.u32 4294901760, %v188_v3 }
 0x15a   :  { %18382 = vmatpush3.bf16.msra.mxu1 %v29756_v50  ;;  %18360 = vmatprep.subr.bf16.mxu0 %v18359_v0  ;;  %v3429_v63 = vand.u32 4294901760, %v3428_v36  ;;  %v3209_v38 = vand.u32 4294901760, %v189_v49  ;;  %v28955_v2 = vand.u32 4294901760, %v22476_v42  ;;  %v29800_v31 = vand.u32 4294901760, %v22361_v54 }
 0x15b   :  { %18384 = vmatprep.subr.bf16.mxu1 %v29759_v7  ;;  %v29801_v50 = vand.u32 4294901760, %v22363_v51  ;;  %v29804_v5 = vand.u32 4294901760, %v22379_v18  ;;  %v22528_v52 = vpack.c.bf16 %v3251_v15, %v3248_v29  ;;  %v22530_v7 = vpack.c.bf16 %v3203_v9, %v3200_v14  ;;  %v207_v51 = vld [vmem:[#allocation5 + $0x3b8] sm:$0xff]  ;;  %v190_v14 = vld [vmem:[#allocation5 + $0x330] sm:$0xff] }
 0x15c   :  { %v22532_v36 = vpack.c.bf16 %v3257_v46, %v3254_v39  ;;  %v22534_v58 = vsub.f32 %v204_v8, %v3254_v39  ;;  %v3310_v54 = vand.u32 4294901760, %v3309_v23  ;;  %v3317_v26 = vand.u32 4294901760, %v3316_v27  ;;  %v191_v29 = vld [vmem:[#allocation5 + $0x338] sm:$0xff] }
 0x15d   :  { %v22520_v0 = vpack.c.bf16 %v29801_v50, %v29800_v31  ;;  %v22526_v6 = vpack.c.bf16 %v29804_v5, %v29803_v16  ;;  %29806 = vst [vmem:[#allocation24_spill] sm:$0xff] %v22528_v52  ;;  %18362 = vmatpush3.bf16.msra.mxu0 %v18361_v10  ;;  %v22537_v31 = vsub.f32 %v63_v34, %v22505_v13  ;;  %v28957_v15 = vand.u32 4294901760, %v22500_v47 }
 0x15e   :  { %29807 = vst [vmem:[#allocation25_spill] sm:$0xff] %v22532_v36  ;;  %18386 = vmatpush3.bf16.msra.mxu1 %v29760_v59  ;;  %18364 = vmatprep.subr.bf16.mxu0 %v18363_v24  ;;  %v3435_v18 = vsub.f32 %v22462_v21, %v28958_v48  ;;  %v28956_v10 = vand.u32 4294901760, %v22508_v17  ;;  %v22546_v8 = vsub.f32 %v205_v41, %v3257_v46  ;;  %v3260_v50 = vand.u32 4294901760, %v206_v28  ;;  %v208_v46 = vld [vmem:[#allocation5 + $0x3c0] sm:$0xff] }
 0x15f   :  { %29802 = vst [vmem:[#allocation21_spill] sm:$0xff] %v22520_v0  ;;  %29805 = vst [vmem:[#allocation26_spill] sm:$0xff] %v22526_v6  ;;  %v14573_v9 = vpop.f32.mrb[2].mxu0  ;;  %18388 = vmatprep.subr.bf16.mxu1 %v29761_v61  ;;  %v22548_v34 = vpack.c.bf16 %v3429_v63, %v3422_v1  ;;  %v22550_v59 = vpack.c.bf16 %v3209_v38, %v3206_v30  ;;  %v3442_v24 = vsub.f32 %v22476_v42, %v28955_v2  ;;  %v209_v1 = vld [vmem:[#allocation5 + $0x3c8] sm:$0xff] }
 0x160   :  { %v14574_v39 = vpop.f32.mrb[3].mxu0  ;;  %v22555_v23 = vsub.f32 %v188_v3, %v3206_v30  ;;  %v22557_v27 = vsub.f32 %v189_v49, %v3209_v38  ;;  %v3263_v16 = vand.u32 4294901760, %v207_v51  ;;  %v3212_v61 = vand.u32 4294901760, %v190_v14 }
 0x161   :  { %29808 = vst [vmem:[#allocation27_spill] sm:$0xff] %v22550_v59  ;;  %v14575_v5 = vadd.f32 %v14574_v39, %v14573_v9  ;;  %18366 = vmatpush3.bf16.msra.mxu0 %v22457_v43  ;;  %v3215_v41 = vand.u32 4294901760, %v191_v29  ;;  %v28965_v63 = vand.u32 4294901760, %v22537_v31  ;;  %v22563_v2 = vpack.c.bf16 %v3317_v26, %v3310_v54 }
 0x162   :  { %18390 = vmatpush3.bf16.msra.mxu1 %v29762_v37  ;;  %18368 = vmatprep.subr.bf16.mxu0 %v22473_v57  ;;  %v3436_v3 = vand.u32 4294901760, %v3435_v18  ;;  %v3323_v49 = vsub.f32 %v22500_v47, %v28957_v15  ;;  %v3330_v43 = vsub.f32 %v22508_v17, %v28956_v10  ;;  %v3443_v38 = vand.u32 4294901760, %v3442_v24 }
 0x163   :  { %v1086_v30 = vadd.f32 %v14575_v5, %v22381_v4  ;;  %18392 = vmatprep.subr.bf16.mxu1 %v29763_v19  ;;  %v28961_v37 = vand.u32 4294901760, %v22534_v58  ;;  %v28959_v57 = vand.u32 4294901760, %v22546_v8  ;;  %v22575_v54 = vpack.c.bf16 %v3263_v16, %v3260_v50  ;;  %v22583_v4 = vld [vmem:[#allocation5 + $0x340] sm:$0xff] }
 0x164   :  { %v3266_v26 = vand.u32 4294901760, %v208_v46  ;;  %v3269_v18 = vand.u32 4294901760, %v209_v1  ;;  %v28960_v9 = vand.u32 4294901760, %v22555_v23  ;;  %v22579_v39 = vsub.f32 %v206_v28, %v3260_v50 }
 0x165   :  { %29809 = vst [vmem:[#allocation19_spill] sm:$0xff] %v22575_v54  ;;  %18370 = vmatpush3.bf16.msra.mxu0 %v22486_v25  ;;  %v22581_v10 = vsub.f32 %v207_v51, %v3263_v16  ;;  %v28962_v19 = vand.u32 4294901760, %v22557_v27  ;;  %v3292_v24 = vsub.f32 %v22537_v31, %v28965_v63  ;;  %v22591_v5 = vpack.c.bf16 %v3215_v41, %v3212_v61 }
 0x166   :  { %18394 = vmatpush3.bf16.msra.mxu1 %v22140_v60  ;;  %18372 = vmatprep.subr.bf16.mxu0 %v22492_v53  ;;  %v22593_v15 = vsub.f32 %v190_v14, %v3212_v61  ;;  %v22595_v28 = vsub.f32 %v191_v29, %v3215_v41  ;;  %v3324_v25 = vand.u32 4294901760, %v3323_v49  ;;  %v22598_v51 = vpack.c.bf16 %v3443_v38, %v3436_v3  ;;  %v193_v29 = vld [vmem:[#allocation5 + $0x348] sm:$0xff]  ;;  %v210_v49 = vld [vmem:[#allocation5 + $0x3d0] sm:$0xff] }
 0x167   :  { %29810 = vst [vmem:[#allocation20_spill] sm:$0xff] %v22591_v5  ;;  %18396 = vmatprep.subr.bf16.mxu1 %v22154_v44  ;;  %v3331_v50 = vand.u32 4294901760, %v3330_v43  ;;  %v3449_v16 = vsub.f32 %v22534_v58, %v28961_v37  ;;  %v3456_v60 = vsub.f32 %v22546_v8, %v28959_v57  ;;  %v22606_v48 = vpack.c.bf16 %v3269_v18, %v3266_v26  ;;  %v211_v43 = vld [vmem:[#allocation5 + $0x3d8] sm:$0xff] }
 0x168   :  { %29811 = vst [vmem:[#allocation22_spill] sm:$0xff] %v22593_v15  ;;  %29812 = vst [vmem:[#allocation23_spill] sm:$0xff] %v22595_v28  ;;  %v14608_v53 = vpop.f32.mrb[2].mxu1  ;;  %v22608_v14 = vsub.f32 %v208_v46, %v3266_v26  ;;  %v3218_v61 = vand.u32 4294901760, %v22583_v4  ;;  %v3337_v44 = vsub.f32 %v22555_v23, %v28960_v9  ;;  %v3344_v3 = vsub.f32 %v22557_v27, %v28962_v19  ;;  %v194_v46 = vld [vmem:[#allocation5 + $0x350] sm:$0xff] }
 0x169   :  { %29813 = vst [vmem:[#allocation17_spill] sm:$0xff] %v22606_v48  ;;  %v14609_v41 = vpop.f32.mrb[3].mxu1  ;;  %18374 = vmatpush3.bf16.msra.mxu0 %v22498_v45  ;;  %v28966_v38 = vand.u32 4294901760, %v22579_v39  ;;  %v3293_v26 = vand.u32 4294901760, %v3292_v24  ;;  %v22622_v9 = vsub.f32 %v209_v1, %v3269_v18  ;;  %v28973_v45 = vand.u32 4294901760, %v22593_v15  ;;  %v195_v24 = vld [vmem:[#allocation5 + $0x358] sm:$0xff] }
 0x16a   :  { %v14610_v57 = vadd.f32 %v14609_v41, %v14608_v53  ;;  %18398 = vmatpush3.bf16.msra.mxu1 %v22171_v56  ;;  %18408 = vmatprep.subr.bf16.mxu0 %v22520_v0  ;;  %v22627_v19 = vpack.c.bf16 %v3331_v50, %v3324_v25  ;;  %v3450_v11 = vand.u32 4294901760, %v3449_v16  ;;  %v3457_v32 = vand.u32 4294901760, %v3456_v60  ;;  %v29814_v56 = vld [vmem:[#allocation18_spill] sm:$0xff] }
 0x16b   :  { %18400 = vmatprep.subr.bf16.mxu1 %v22196_v22  ;;  %v3221_v63 = vand.u32 4294901760, %v193_v29  ;;  %v22633_v1 = vsub.f32 %v22583_v4, %v3218_v61  ;;  %v3272_v18 = vand.u32 4294901760, %v210_v49  ;;  %v3275_v41 = vand.u32 4294901760, %v211_v43 }
 0x16c   :  { %v22629_v53 = vadd.f32 %v14610_v57, %v1086_v30  ;;  %3084 = vmatmul.mubr.f32.vlgmr.msra.gmra.mrb[16].mxu0 %v29814_v56  ;;  %v3338_v37 = vand.u32 4294901760, %v3337_v44  ;;  %v3345_v22 = vand.u32 4294901760, %v3344_v3  ;;  %v3463_v25 = vsub.f32 %v22579_v39, %v28966_v38  ;;  %v212_v57 = vld [vmem:[#allocation5 + $0x3e0] sm:$0xff]  ;;  %v213_v38 = vld [vmem:[#allocation5 + $0x3e8] sm:$0xff] }
 0x16d   :  { %18410 = vmatpush3.bf16.msra.mxu0 %v22526_v6  ;;  %v29815_v50 = vand.u32 4294901760, %v22581_v10  ;;  %3294 = vmatprep.mubr.f32.mxu0 %v3293_v26  ;;  %v3224_v4 = vand.u32 4294901760, %v194_v46  ;;  %v3227_v16 = vand.u32 4294901760, %v195_v24  ;;  %v3351_v60 = vsub.f32 %v22593_v15, %v28973_v45 }
 0x16e   :  { %18402 = vmatpush3.bf16.msra.mxu1 %v22275_v40  ;;  %18412 = vmatprep.subr.bf16.mxu0 %v22528_v52  ;;  %v29816_v44 = vand.u32 4294901760, %v22595_v28  ;;  %v22653_v26 = vpack.c.bf16 %v3221_v63, %v3218_v61  ;;  %v22655_v40 = vsub.f32 %v193_v29, %v3221_v63  ;;  %v28978_v52 = vand.u32 4294901760, %v22608_v14 }
 0x16f   :  { %v3470_v30 = vsub.f32 %v22581_v10, %v29815_v50  ;;  %18404 = vmatprep.subr.bf16.mxu1 %v22277_v62  ;;  %v22651_v50 = vpack.c.bf16 %v3457_v32, %v3450_v11  ;;  %v22658_v6 = vpack.c.bf16 %v3275_v41, %v3272_v18  ;;  %v22660_v0 = vsub.f32 %v210_v49, %v3272_v18 }
 0x170   :  { %v3358_v3 = vsub.f32 %v22595_v28, %v29816_v44  ;;  %29817 = vst [vmem:[#allocation18_spill] sm:$0xff] %v22653_v26  ;;  %v22662_v45 = vsub.f32 %v211_v43, %v3275_v41  ;;  %v3278_v15 = vand.u32 4294901760, %v212_v57  ;;  %v3464_v44 = vand.u32 4294901760, %v3463_v25  ;;  %v197_v41 = vld [vmem:[#allocation5 + $0x368] sm:$0xff] }
 0x171   :  { %29818 = vst [vmem:[#allocation28_spill] sm:$0xff] %v22658_v6  ;;  %18414 = vmatpush3.bf16.msra.mxu0 %v22530_v7  ;;  %v3471_v28 = vand.u32 4294901760, %v3470_v30  ;;  %v3281_v62 = vand.u32 4294901760, %v213_v38  ;;  %v28979_v32 = vand.u32 4294901760, %v22622_v9  ;;  %v22668_v11 = vpack.c.bf16 %v3345_v22, %v3338_v37  ;;  %v22686_v30 = vld [vmem:[#allocation5 + $0x3f0] sm:$0xff] }
 0x172   :  { %18406 = vmatpush3.bf16.msra.mxu1 %v22300_v55  ;;  %18416 = vmatprep.subr.bf16.mxu0 %v22532_v36  ;;  %v22670_v63 = vpack.c.bf16 %v3227_v16, %v3224_v4  ;;  %v3352_v29 = vand.u32 4294901760, %v3351_v60  ;;  %v3359_v61 = vand.u32 4294901760, %v3358_v3  ;;  %v22673_v49 = vsub.f32 %v194_v46, %v3224_v4  ;;  %v196_v55 = vld [vmem:[#allocation5 + $0x360] sm:$0xff]  ;;  %v62_v60 = vld [vmem:[#allocation2 + $0x30] sm:$0xff] }
 0x173   :  { %18440 = vmatprep.subr.bf16.mxu1 %v22548_v34  ;;  %v22675_v43 = vsub.f32 %v195_v24, %v3227_v16  ;;  %v22680_v18 = vsub.f32 %v22608_v14, %v28978_v52  ;;  %v28980_v37 = vand.u32 4294901760, %v22633_v1  ;;  %v22683_v22 = vsub.f32 %v212_v57, %v3278_v15  ;;  %v22688_v34 = vld [vmem:[#allocation5 + $0x3f8] sm:$0xff] }
 0x174   :  { %v28987_v25 = vand.u32 4294901760, %v22655_v40  ;;  %v18451_v4 = vpack.c.bf16 %v3471_v28, %v3464_v44  ;;  %v22694_v16 = vpack.c.bf16 %v3281_v62, %v3278_v15  ;;  %v3484_v57 = vsub.f32 %v22622_v9, %v28979_v32  ;;  %v22712_v32 = vld [vmem:[#allocation5 + $0x378] sm:$0xff] }
 0x175   :  { %29819 = vst [vmem:[#allocation29_spill] sm:$0xff] %v22675_v43  ;;  %29820 = vst [vmem:[#allocation30_spill] sm:$0xff] %v22683_v22  ;;  %3188 = vmatmul.mubr.f32.vlgmr.msra.gmra.mrb[16].mxu1 %v29814_v56  ;;  %18418 = vmatpush3.bf16.msra.mxu0 %v22550_v59  ;;  %v18453_v3 = vpack.c.bf16 %v3359_v61, %v3352_v29  ;;  %v22701_v52 = vsub.f32 %v213_v38, %v3281_v62  ;;  %v3230_v24 = vand.u32 4294901760, %v196_v55 }
 0x176   :  { %18442 = vmatpush3.bf16.msra.mxu1 %v22563_v2  ;;  %18420 = vmatprep.subr.bf16.mxu0 %v22575_v54  ;;  %v3233_v46 = vand.u32 4294901760, %v197_v41  ;;  %v3478_v28 = vand.u32 4294901760, %v22680_v18  ;;  %v3365_v15 = vsub.f32 %v22633_v1, %v28980_v37  ;;  %v3284_v56 = vand.u32 4294901760, %v22686_v30  ;;  %v22710_v2 = vld [vmem:[#allocation5 + $0x370] sm:$0xff] }
 0x177   :  { %18444 = vmatprep.subr.bf16.mxu1 %v22598_v51  ;;  %v3287_v44 = vand.u32 4294901760, %v22688_v34  ;;  %3530 = vmatprep.mubr.f32.mxu1 %v22505_v13  ;;  %v3372_v51 = vsub.f32 %v22655_v40, %v28987_v25  ;;  %v29821_v38 = vand.u32 4294901760, %v22660_v0  ;;  %v29822_v29 = vand.u32 4294901760, %v22662_v45 }
 0x178   :  { %v22724_v18 = vand.u32 4294901760, %v62_v60  ;;  %v3485_v37 = vand.u32 4294901760, %v3484_v57  ;;  %v22734_v25 = vsub.f32 %v197_v41, %v3233_v46  ;;  %v3239_v36 = vand.u32 4294901760, %v22712_v32 }
 0x179   :  { %v3491_v62 = vsub.f32 %v22660_v0, %v29821_v38  ;;  %v3498_v61 = vsub.f32 %v22662_v45, %v29822_v29  ;;  %18422 = vmatpush3.bf16.msra.mxu0 %v22591_v5  ;;  %v22732_v38 = vsub.f32 %v196_v55, %v3230_v24  ;;  %v3236_v29 = vand.u32 4294901760, %v22710_v2 }
 0x17a   :  { %18446 = vmatpush3.bf16.msra.mxu1 %v22627_v19  ;;  %18424 = vmatprep.subr.bf16.mxu0 %v22606_v48  ;;  %v3366_v57 = vand.u32 4294901760, %v3365_v15  ;;  %v22740_v54 = vsub.f32 %v22686_v30, %v3284_v56  ;;  %v22743_v59 = vsub.f32 %v22688_v34, %v3287_v44  ;;  %v3373_v13 = vand.u32 4294901760, %v3372_v51 }
 0x17b   :  { %18448 = vmatprep.subr.bf16.mxu1 %v22651_v50  ;;  %v3492_v55 = vand.u32 4294901760, %v3491_v62  ;;  %v3499_v48 = vand.u32 4294901760, %v3498_v61  ;;  %v22747_v41 = vsub.f32 %v62_v60, %v22724_v18  ;;  %v22750_v5 = vpack.c.bf16 %v3233_v46, %v3230_v24 }
 0x17c   :  { %v29823_v50 = vand.u32 4294901760, %v22673_v49  ;;  %v29824_v15 = vand.u32 4294901760, %v22675_v43  ;;  %v29825_v19 = vand.u32 4294901760, %v22683_v22  ;;  %v22764_v60 = vsub.f32 %v22710_v2, %v3236_v29 }
 0x17d   :  { %18426 = vmatpush3.bf16.msra.mxu0 %v22653_v26  ;;  %v22767_v46 = vsub.f32 %v22712_v32, %v3239_v36  ;;  %v29005_v62 = vand.u32 4294901760, %v22734_v25  ;;  %v18457_v26 = vpack.c.bf16 %v3373_v13, %v3366_v57  ;;  %v18459_v32 = vpack.c.bf16 %v3499_v48, %v3492_v55 }
 0x17e   :  { %v3379_v30 = vsub.f32 %v22673_v49, %v29823_v50  ;;  %v3386_v34 = vsub.f32 %v22675_v43, %v29824_v15  ;;  %v3505_v51 = vsub.f32 %v22683_v22, %v29825_v19  ;;  %18450 = vmatpush3.bf16.msra.mxu1 %v22668_v11  ;;  %18428 = vmatprep.subr.bf16.mxu0 %v22658_v6  ;;  %v29826_v15 = vand.u32 4294901760, %v22701_v52 }
 0x17f   :  { %v14643_v61 = vpop.f32.mrb[4].mxu0  ;;  %18452 = vmatprep.subr.bf16.mxu1 %v18451_v4  ;;  %v18455_v50 = vpack.c.bf16 %v3485_v37, %v3478_v28  ;;  %v29004_v11 = vand.u32 4294901760, %v22740_v54  ;;  %v22776_v22 = vpack.c.bf16 %v3287_v44, %v3284_v56  ;;  %v29006_v24 = vand.u32 4294901760, %v22747_v41 }
 0x180   :  { %v3512_v19 = vsub.f32 %v22701_v52, %v29826_v15  ;;  %v14644_v2 = vpop.f32.mrb[5].mxu0  ;;  %v3380_v4 = vand.u32 4294901760, %v3379_v30  ;;  %v3387_v37 = vand.u32 4294901760, %v3386_v34  ;;  %v3506_v28 = vand.u32 4294901760, %v3505_v51 }
 0x181   :  { %v14645_v43 = vadd.f32 %v14644_v2, %v14643_v61  ;;  %18430 = vmatpush3.bf16.msra.mxu0 %v22670_v63  ;;  %v29827_v15 = vand.u32 4294901760, %v22732_v38  ;;  %v3400_v13 = vsub.f32 %v22734_v25, %v29005_v62  ;;  %v29002_v48 = vand.u32 4294901760, %v22764_v60 }
 0x182   :  { %18454 = vmatpush3.bf16.msra.mxu1 %v18453_v3  ;;  %18432 = vmatprep.subr.bf16.mxu0 %v22694_v16  ;;  %v29003_v56 = vand.u32 4294901760, %v22767_v46  ;;  %v3513_v57 = vand.u32 4294901760, %v3512_v19  ;;  %v3519_v3 = vsub.f32 %v22740_v54, %v29004_v11  ;;  %v29828_v55 = vand.u32 4294901760, %v22743_v59 }
 0x183   :  { %v3393_v6 = vsub.f32 %v22732_v38, %v29827_v15  ;;  %v1362_v44 = vadd.f32 %v14645_v43, %v22629_v53  ;;  %18456 = vmatprep.subr.bf16.mxu1 %v18455_v50  ;;  %v3298_v34 = vsub.f32 %v22747_v41, %v29006_v24  ;;  %v22800_v51 = vpack.c.bf16 %v3239_v36, %v3236_v29 }
 0x184   :  { %v3526_v30 = vsub.f32 %v22743_v59, %v29828_v55  ;;  %v18461_v61 = vpack.c.bf16 %v3387_v37, %v3380_v4  ;;  %v18471_v53 = vpack.c.bf16 %v22405_v12, %v22398_v20  ;;  %v3401_v50 = vand.u32 4294901760, %v3400_v13 }
 0x185   :  { %18434 = vmatpush3.bf16.msra.mxu0 %v22750_v5  ;;  %v3394_v43 = vand.u32 4294901760, %v3393_v6  ;;  %v3407_v19 = vsub.f32 %v22764_v60, %v29002_v48  ;;  %v3414_v2 = vsub.f32 %v22767_v46, %v29003_v56  ;;  %v18463_v36 = vpack.c.bf16 %v3513_v57, %v3506_v28 }
 0x186   :  { %18458 = vmatpush3.bf16.msra.mxu1 %v18457_v26  ;;  %18436 = vmatprep.subr.bf16.mxu0 %v22776_v22  ;;  %v3520_v29 = vand.u32 4294901760, %v3519_v3  ;;  %v3527_v4 = vand.u32 4294901760, %v3526_v30  ;;  %v3299_v15 = vand.u32 4294901760, %v3298_v34  ;;  %v18473_v6 = vpack.c.bf16 %v22428_v35, %v22418_v33 }
 0x187   :  { %18460 = vmatprep.subr.bf16.mxu1 %v18459_v32  ;;  %v18475_v26 = vpack.c.bf16 %v22476_v42, %v22462_v21  ;;  %v18465_v48 = vpack.c.bf16 %v3401_v50, %v3394_v43  ;;  %v3408_v56 = vand.u32 4294901760, %v3407_v19  ;;  %v3415_v32 = vand.u32 4294901760, %v3414_v2  ;;  %v29832_v50 = vld [vmem:[#allocation26_spill] sm:$0xff]  ;;  %v29833_v2 = vld [vmem:[#allocation24_spill] sm:$0xff] }
 0x188   :  { %v14678_v37 = vpop.f32.mrb[4].mxu1  ;;  %v18467_v28 = vpack.c.bf16 %v3527_v4, %v3520_v29  ;;  %v18477_v3 = vpack.c.bf16 %v22508_v17, %v22500_v47  ;;  %v18479_v34 = vpack.c.bf16 %v22546_v8, %v22534_v58  ;;  %v18487_v19 = vpack.c.bf16 %v22622_v9, %v22608_v14 }
 0x189   :  { %v14679_v55 = vpop.f32.mrb[5].mxu1  ;;  %18438 = vmatpush3.bf16.msra.mxu0 %v22800_v51  ;;  %v18469_v30 = vpack.c.bf16 %v3415_v32, %v3408_v56  ;;  %v29831_v56 = vld [vmem:[#allocation23_spill] sm:$0xff]  ;;  %v18489_v29 = vpack.c.bf16 %v22655_v40, %v22633_v1  ;;  %v18491_v4 = vpack.c.bf16 %v22662_v45, %v22660_v0  ;;  %v29847_v11 = vand.u32 4294901760, %v22428_v35 }
 0x18a   :  { %v14680_v13 = vadd.f32 %v14679_v55, %v14678_v37  ;;  %18462 = vmatpush3.bf16.msra.mxu1 %v18461_v61  ;;  %18472 = vmatprep.subr.bf16.mxu0 %v18471_v53  ;;  %v18481_v61 = vpack.c.bf16 %v22557_v27, %v22555_v23  ;;  %v29829_v53 = vld [vmem:[#allocation21_spill] sm:$0xff]  ;;  %v29839_v32 = vld [vmem:[#allocation19_spill] sm:$0xff]  ;;  %v29850_v35 = vand.u32 4294901760, %v22500_v47 }
 0x18b   :  { %18464 = vmatprep.subr.bf16.mxu1 %v18463_v36  ;;  %v29834_v36 = vand.u32 4294901760, %v22537_v31  ;;  %v29835_v37 = vld [vmem:[#allocation25_spill] sm:$0xff] }
 0x18c   :  { %v1466_v57 = vadd.f32 %v14680_v13, %v1362_v44  ;;  %3300 = vmatmul.mubr.f32.vlgmr.msra.gmra.mrb[18].mxu0 %v3299_v15  ;;  %v18483_v44 = vpack.c.bf16 %v22581_v10, %v22579_v39  ;;  %v29836_v15 = vld [vmem:[#allocation29_spill] sm:$0xff] }
 0x18d   :  { %18474 = vmatpush3.bf16.msra.mxu0 %v18473_v6  ;;  %3667 = vmatprep.mubr.f32.mxu0 %v22537_v31  ;;  %v18493_v55 = vpack.c.bf16 %v29836_v15, %v22673_v49  ;;  %v29837_v6 = vld [vmem:[#allocation27_spill] sm:$0xff]  ;;  %v29838_v31 = vld [vmem:[#allocation30_spill] sm:$0xff] }
 0x18e   :  { %18466 = vmatpush3.bf16.msra.mxu1 %v18465_v48  ;;  %18476 = vmatprep.subr.bf16.mxu0 %v18475_v26  ;;  %v29830_v48 = vld [vmem:[#allocation22_spill] sm:$0xff]  ;;  %v18495_v26 = vpack.c.bf16 %v22701_v52, %v29838_v31 }
 0x18f   :  { %18468 = vmatprep.subr.bf16.mxu1 %v18467_v28  ;;  %v18485_v43 = vpack.c.bf16 %v29831_v56, %v29830_v48 }
 0x191   :  { %18478 = vmatpush3.bf16.msra.mxu0 %v18477_v3 }
 0x192   :  { %18470 = vmatpush3.bf16.msra.mxu1 %v18469_v30  ;;  %18480 = vmatprep.subr.bf16.mxu0 %v18479_v34  ;;  %v18497_v30 = vpack.c.bf16 %v22734_v25, %v22732_v38  ;;  %v29840_v34 = vld [vmem:[#allocation20_spill] sm:$0xff] }
 0x193   :  { %18504 = vmatprep.subr.bf16.mxu1 %v29829_v53 }
 0x195   :  { %3532 = vmatmul.mubr.f32.vlgmr.msra.gmra.mrb[18].mxu1 %v22724_v18  ;;  %18482 = vmatpush3.bf16.msra.mxu0 %v18481_v61  ;;  %v18499_v61 = vpack.c.bf16 %v22743_v59, %v22740_v54 }
 0x196   :  { %18506 = vmatpush3.bf16.msra.mxu1 %v29832_v50  ;;  %18484 = vmatprep.subr.bf16.mxu0 %v18483_v44 }
 0x197   :  { %18508 = vmatprep.subr.bf16.mxu1 %v29833_v2  ;;  %3774 = vmatprep.mubr.f32.mxu1 %v29834_v36  ;;  %v29842_v36 = vld [vmem:[#allocation18_spill] sm:$0xff] }
 0x199   :  { %18486 = vmatpush3.bf16.msra.mxu0 %v18485_v43  ;;  %v29841_v43 = vld [vmem:[#allocation17_spill] sm:$0xff] }
 0x19a   :  { %18510 = vmatpush3.bf16.msra.mxu1 %v22530_v7  ;;  %18488 = vmatprep.subr.bf16.mxu0 %v18487_v19  ;;  %v18501_v19 = vpack.c.bf16 %v22767_v46, %v22764_v60 }
 0x19b   :  { %18512 = vmatprep.subr.bf16.mxu1 %v29835_v37 }
 0x19d   :  { %18490 = vmatpush3.bf16.msra.mxu0 %v18489_v29  ;;  %v29843_v29 = vand.u32 4294901760, %v22398_v20  ;;  %v29848_v20 = vand.u32 4294901760, %v22462_v21  ;;  %v29851_v21 = vand.u32 4294901760, %v22508_v17 }
 0x19e   :  { %18514 = vmatpush3.bf16.msra.mxu1 %v29837_v6  ;;  %18492 = vmatprep.subr.bf16.mxu0 %v18491_v4  ;;  %v29844_v4 = vand.u32 4294901760, %v22405_v12  ;;  %v29849_v12 = vand.u32 4294901760, %v22476_v42  ;;  %v29852_v42 = vld [vmem:[#allocation16_spill] sm:$0xff] }
 0x19f   :  { %v14713_v13 = vpop.f32.mrb[6].mxu0  ;;  %18516 = vmatprep.subr.bf16.mxu1 %v29839_v32 }
 0x1a0   :  { %v14714_v28 = vpop.f32.mrb[7].mxu0 }
 0x1a1   :  { %v14715_v3 = vadd.f32 %v14714_v28, %v14713_v13  ;;  %18494 = vmatpush3.bf16.msra.mxu0 %v18493_v55  ;;  %v18535_v55 = vpack.c.bf16 %v29844_v4, %v29843_v29  ;;  %v29845_v13 = vld [vmem:[#allocation28_spill] sm:$0xff]  ;;  %v18539_v29 = vpack.c.bf16 %v29849_v12, %v29848_v20  ;;  %v29858_v12 = vand.u32 4294901760, %v22581_v10 }
 0x1a2   :  { %18518 = vmatpush3.bf16.msra.mxu1 %v29840_v34  ;;  %18496 = vmatprep.subr.bf16.mxu0 %v18495_v26  ;;  %v22861_v26 = vld [vmem:[#allocation5 + $0x480] sm:$0xff]  ;;  %v29859_v10 = vand.u32 4294901760, %v29830_v48 }
 0x1a3   :  { %v1578_v44 = vadd.f32 %v14715_v3, %v1466_v57  ;;  %18520 = vmatprep.subr.bf16.mxu1 %v29841_v43  ;;  %v22863_v57 = vld [vmem:[#allocation5 + $0x488] sm:$0xff]  ;;  %v4104_v4 = vand.u32 4294901760, %v22861_v26 }
 0x1a5   :  { %18498 = vmatpush3.bf16.msra.mxu0 %v18497_v30  ;;  %v29846_v30 = vand.u32 4294901760, %v22418_v33  ;;  %v22880_v33 = vld [vmem:[#allocation5 + $0x400] sm:$0xff] }
 0x1a6   :  { %18522 = vmatpush3.bf16.msra.mxu1 %v29842_v36  ;;  %18500 = vmatprep.subr.bf16.mxu0 %v18499_v61  ;;  %v29007_v17 = vand.u32 4294901760, %v22880_v33 }
 0x1a7   :  { %18524 = vmatprep.subr.bf16.mxu1 %v29845_v13  ;;  %v18537_v62 = vpack.c.bf16 %v29847_v11, %v29846_v30  ;;  %v18541_v11 = vpack.c.bf16 %v29851_v21, %v29850_v35  ;;  %v22895_v30 = vsub.f32 %v22861_v26, %v4104_v4 }
 0x1a8   :  { %v14748_v28 = vpop.f32.mrb[6].mxu1 }
 0x1a9   :  { %v14749_v3 = vpop.f32.mrb[7].mxu1  ;;  %18502 = vmatpush3.bf16.msra.mxu0 %v18501_v19  ;;  %v4107_v19 = vand.u32 4294901760, %v22863_v57 }
 0x1aa   :  { %v14750_v61 = vadd.f32 %v14749_v3, %v14748_v28  ;;  %18526 = vmatpush3.bf16.msra.mxu1 %v22670_v63  ;;  %18536 = vmatprep.subr.bf16.mxu0 %v18535_v55  ;;  %v22887_v55 = vld [vmem:[#allocation5 + $0x408] sm:$0xff]  ;;  %v29854_v28 = vand.u32 4294901760, %v22546_v8  ;;  %v29856_v8 = vand.u32 4294901760, %v22557_v27  ;;  %v219_v27 = vld [vmem:[#allocation5 + $0x418] sm:$0xff] }
 0x1ab   :  { %18528 = vmatprep.subr.bf16.mxu1 %v22694_v16  ;;  %v22899_v47 = vsub.f32 %v22863_v57, %v4107_v19  ;;  %v4059_v20 = vand.u32 4294901760, %v22887_v55  ;;  %v29857_v57 = vand.u32 4294901760, %v22579_v39  ;;  %v29865_v39 = vand.u32 4294901760, %v22655_v40 }
 0x1ac   :  { %v22877_v24 = vadd.f32 %v14750_v61, %v1578_v44  ;;  %3670 = vmatmul.mubr.f32.vlgmr.msra.gmra.mrb[20].mxu0 %v22747_v41  ;;  %v29853_v44 = vand.u32 4294901760, %v22534_v58  ;;  %v22904_v61 = vld [vmem:[#allocation5 + $0x498] sm:$0xff]  ;;  %v29855_v58 = vand.u32 4294901760, %v22555_v23  ;;  %v22923_v23 = vsub.f32 %v22880_v33, %v29007_v17 }
 0x1ad   :  { %18538 = vmatpush3.bf16.msra.mxu0 %v18537_v62  ;;  %3944 = vmatprep.mubr.f32.mxu0 %v29852_v42  ;;  %v22902_v62 = vld [vmem:[#allocation5 + $0x490] sm:$0xff]  ;;  %v4113_v21 = vand.u32 4294901760, %v22904_v61  ;;  %v29864_v17 = vand.u32 4294901760, %v22633_v1 }
 0x1ae   :  { %18530 = vmatpush3.bf16.msra.mxu1 %v22750_v5  ;;  %18540 = vmatprep.subr.bf16.mxu0 %v18539_v29  ;;  %v18543_v3 = vpack.c.bf16 %v29854_v28, %v29853_v44  ;;  %v18545_v26 = vpack.c.bf16 %v29856_v8, %v29855_v58  ;;  %v18547_v29 = vpack.c.bf16 %v29858_v12, %v29857_v57  ;;  %v4110_v35 = vand.u32 4294901760, %v22902_v62  ;;  %v218_v44 = vld [vmem:[#allocation5 + $0x410] sm:$0xff] }
 0x1af   :  { %18532 = vmatprep.subr.bf16.mxu1 %v22776_v22  ;;  %v29860_v28 = vand.u32 4294901760, %v29831_v56  ;;  %v29861_v58 = vand.u32 4294901760, %v22608_v14  ;;  %v29862_v8 = vand.u32 4294901760, %v22622_v9  ;;  %v29863_v12 = vand.u32 4294901760, %v22747_v41  ;;  %v236_v41 = vld [vmem:[#allocation5 + $0x4a0] sm:$0xff] }
 0x1b0   :  { %v18553_v48 = vpack.c.bf16 %v29865_v39, %v29864_v17  ;;  %v29866_v56 = vand.u32 4294901760, %v22660_v0  ;;  %v29868_v9 = vand.u32 4294901760, %v22673_v49  ;;  %v22955_v1 = vsub.f32 %v22902_v62, %v4110_v35 }
 0x1b1   :  { %18542 = vmatpush3.bf16.msra.mxu0 %v18541_v11  ;;  %v29012_v11 = vand.u32 4294901760, %v22895_v30  ;;  %v18551_v57 = vpack.c.bf16 %v29862_v8, %v29861_v58  ;;  %v4062_v58 = vand.u32 4294901760, %v218_v44  ;;  %v22958_v40 = vsub.f32 %v22904_v61, %v4113_v21 }
 0x1b2   :  { %18534 = vmatpush3.bf16.msra.mxu1 %v22800_v51  ;;  %18544 = vmatprep.subr.bf16.mxu0 %v18543_v3  ;;  %v18549_v3 = vpack.c.bf16 %v29860_v28, %v29859_v10  ;;  %v29867_v10 = vand.u32 4294901760, %v22662_v45  ;;  %v29869_v28 = vand.u32 4294901760, %v29836_v15  ;;  %v4065_v0 = vand.u32 4294901760, %v219_v27  ;;  %v237_v45 = vld [vmem:[#allocation5 + $0x4a8] sm:$0xff] }
 0x1b3   :  { %18568 = vmatprep.subr.bf16.mxu1 %v29829_v53  ;;  %v22935_v53 = vsub.f32 %v22887_v55, %v4059_v20  ;;  %v4283_v49 = vsub.f32 %v22895_v30, %v29012_v11  ;;  %v65_v15 = vld [vmem:[#allocation2 + $0x48] sm:$0xff]  ;;  %v29870_v17 = vand.u32 4294901760, %v29838_v31  ;;  %v29872_v62 = vand.u32 4294901760, %v22732_v38 }
 0x1b4   :  { %v18555_v14 = vpack.c.bf16 %v29867_v10, %v29866_v56  ;;  %v22951_v55 = vpack.c.bf16 %v29869_v28, %v29868_v9  ;;  %v29873_v61 = vand.u32 4294901760, %v22734_v25  ;;  %v29874_v39 = vand.u32 4294901760, %v22899_v47  ;;  %v221_v9 = vld [vmem:[#allocation5 + $0x428] sm:$0xff] }
 0x1b5   :  { %3778 = vmatmul.mubr.f32.vlgmr.msra.gmra.mrb[20].mxu1 %v29863_v12  ;;  %18546 = vmatpush3.bf16.msra.mxu0 %v18545_v26  ;;  %v29875_v31 = vand.u32 4294901760, %v22740_v54  ;;  %v29877_v38 = vand.u32 4294901760, %v22764_v60  ;;  %v29878_v25 = vand.u32 4294901760, %v22767_v46  ;;  %v22993_v10 = vpack.c.bf16 %v4107_v19, %v4104_v4 }
 0x1b6   :  { %18570 = vmatpush3.bf16.msra.mxu1 %v29832_v50  ;;  %18548 = vmatprep.subr.bf16.mxu0 %v18547_v29  ;;  %v29871_v50 = vand.u32 4294901760, %v22701_v52  ;;  %v22974_v29 = vpack.c.bf16 %v29873_v61, %v29872_v62  ;;  %v4290_v8 = vsub.f32 %v22899_v47, %v29874_v39  ;;  %v29876_v52 = vand.u32 4294901760, %v22743_v59 }
 0x1b7   :  { %18572 = vmatprep.subr.bf16.mxu1 %v29833_v2  ;;  %4048 = vmatprep.mubr.f32.mxu1 %v29852_v42  ;;  %v29011_v2 = vand.u32 4294901760, %v22923_v23  ;;  %v22991_v56 = vpack.c.bf16 %v29878_v25, %v29877_v38  ;;  %v220_v42 = vld [vmem:[#allocation5 + $0x420] sm:$0xff]  ;;  %v29010_v28 = vand.u32 4294901760, %v22935_v53  ;;  %v4116_v54 = vand.u32 4294901760, %v236_v41  ;;  %v239_v38 = vld [vmem:[#allocation5 + $0x4b8] sm:$0xff] }
 0x1b8   :  { %v22968_v26 = vpack.c.bf16 %v29871_v50, %v29870_v17  ;;  %v22985_v12 = vpack.c.bf16 %v29876_v52, %v29875_v31  ;;  %v22996_v17 = vsub.f32 %v218_v44, %v4062_v58  ;;  %v4119_v50 = vand.u32 4294901760, %v237_v45  ;;  %v238_v52 = vld [vmem:[#allocation5 + $0x4b0] sm:$0xff] }
 0x1b9   :  { %18550 = vmatpush3.bf16.msra.mxu0 %v18549_v3  ;;  %v22998_v59 = vand.u32 4294901760, %v65_v15  ;;  %v23001_v60 = vsub.f32 %v219_v27, %v4065_v0  ;;  %v4284_v46 = vand.u32 4294901760, %v4283_v49  ;;  %v29009_v4 = vand.u32 4294901760, %v22955_v1 }
 0x1ba   :  { %18574 = vmatpush3.bf16.msra.mxu1 %v22530_v7  ;;  %18552 = vmatprep.subr.bf16.mxu0 %v18551_v57  ;;  %v29008_v19 = vand.u32 4294901760, %v22958_v40  ;;  %v4291_v62 = vand.u32 4294901760, %v4290_v8  ;;  %v4068_v3 = vand.u32 4294901760, %v220_v42  ;;  %v4071_v44 = vand.u32 4294901760, %v221_v9 }
 0x1bb   :  { %29879 = vst [vmem:[#allocation21_spill] sm:$0xff] %v22998_v59  ;;  %18576 = vmatprep.subr.bf16.mxu1 %v29835_v37  ;;  %v4171_v61 = vsub.f32 %v22923_v23, %v29011_v2  ;;  %v29880_v39 = vand.u32 4294901760, %v22880_v33  ;;  %v23013_v27 = vpack.c.bf16 %v4113_v21, %v4110_v35  ;;  %v23015_v57 = vpack.c.bf16 %v4065_v0, %v4062_v58  ;;  %v222_v21 = vld [vmem:[#allocation5 + $0x430] sm:$0xff] }
 0x1bc   :  { %v4178_v49 = vsub.f32 %v22935_v53, %v29010_v28  ;;  %v23020_v37 = vpack.c.bf16 %v4119_v50, %v4116_v54  ;;  %v23022_v8 = vsub.f32 %v236_v41, %v4116_v54  ;;  %v23024_v31 = vsub.f32 %v237_v45, %v4119_v50  ;;  %v241_v28 = vld [vmem:[#allocation5 + $0x4c8] sm:$0xff] }
 0x1bd   :  { %v23011_v7 = vpack.c.bf16 %v4059_v20, %v29880_v39  ;;  %29882 = vst [vmem:[#allocation23_spill] sm:$0xff] %v23013_v27  ;;  %18554 = vmatpush3.bf16.msra.mxu0 %v18553_v48  ;;  %v23027_v33 = vsub.f32 %v65_v15, %v22998_v59  ;;  %v4297_v20 = vsub.f32 %v22955_v1, %v29009_v4  ;;  %v223_v48 = vld [vmem:[#allocation5 + $0x438] sm:$0xff]  ;;  %v29014_v58 = vand.u32 4294901760, %v22996_v17  ;;  %v240_v4 = vld [vmem:[#allocation5 + $0x4c0] sm:$0xff] }
 0x1be   :  { %29883 = vst [vmem:[#allocation26_spill] sm:$0xff] %v23020_v37  ;;  %18578 = vmatpush3.bf16.msra.mxu1 %v29837_v6  ;;  %18556 = vmatprep.subr.bf16.mxu0 %v18555_v14  ;;  %v4304_v35 = vsub.f32 %v22958_v40, %v29008_v19  ;;  %v29013_v0 = vand.u32 4294901760, %v23001_v60  ;;  %v23039_v45 = vpack.c.bf16 %v4291_v62, %v4284_v46  ;;  %v4172_v15 = vand.u32 4294901760, %v4171_v61 }
 0x1bf   :  { %29881 = vst [vmem:[#allocation22_spill] sm:$0xff] %v23011_v7  ;;  %v14783_v41 = vpop.f32.mrb[8].mxu0  ;;  %18580 = vmatprep.subr.bf16.mxu1 %v29839_v32  ;;  %v23041_v6 = vpack.c.bf16 %v4071_v44, %v4068_v3  ;;  %v23043_v14 = vsub.f32 %v220_v42, %v4068_v3  ;;  %v23045_v54 = vsub.f32 %v221_v9, %v4071_v44  ;;  %v4179_v50 = vand.u32 4294901760, %v4178_v49 }
 0x1c0   :  { %v14784_v25 = vpop.f32.mrb[9].mxu0  ;;  %v4122_v39 = vand.u32 4294901760, %v238_v52  ;;  %v4125_v19 = vand.u32 4294901760, %v239_v38  ;;  %v4074_v11 = vand.u32 4294901760, %v222_v21  ;;  %v4077_v32 = vand.u32 4294901760, %v223_v48 }
 0x1c1   :  { %29884 = vst [vmem:[#allocation24_spill] sm:$0xff] %v23041_v6  ;;  %v14785_v2 = vadd.f32 %v14784_v25, %v14783_v41  ;;  %18558 = vmatpush3.bf16.msra.mxu0 %v22951_v55  ;;  %v29018_v46 = vand.u32 4294901760, %v23027_v33  ;;  %v4298_v42 = vand.u32 4294901760, %v4297_v20  ;;  %v4305_v62 = vand.u32 4294901760, %v4304_v35 }
 0x1c2   :  { %18582 = vmatpush3.bf16.msra.mxu1 %v29840_v34  ;;  %18560 = vmatprep.subr.bf16.mxu0 %v22968_v26  ;;  %v4185_v9 = vsub.f32 %v22996_v17, %v29014_v58  ;;  %v4192_v3 = vsub.f32 %v23001_v60, %v29013_v0  ;;  %v4128_v44 = vand.u32 4294901760, %v240_v4  ;;  %v4131_v61 = vand.u32 4294901760, %v241_v28 }
 0x1c3   :  { %v1948_v55 = vadd.f32 %v14785_v2, %v22877_v24  ;;  %18584 = vmatprep.subr.bf16.mxu1 %v29841_v43  ;;  %v29016_v34 = vand.u32 4294901760, %v23022_v8  ;;  %v23060_v49 = vpack.c.bf16 %v4179_v50, %v4172_v15  ;;  %v23062_v26 = vpack.c.bf16 %v4125_v19, %v4122_v39  ;;  %v224_v24 = vld [vmem:[#allocation5 + $0x440] sm:$0xff]  ;;  %v225_v43 = vld [vmem:[#allocation5 + $0x448] sm:$0xff] }
 0x1c4   :  { %v23064_v20 = vsub.f32 %v238_v52, %v4122_v39  ;;  %v29015_v35 = vand.u32 4294901760, %v23024_v31  ;;  %v23068_v41 = vsub.f32 %v239_v38, %v4125_v19  ;;  %v23070_v25 = vpack.c.bf16 %v4077_v32, %v4074_v11 }
 0x1c5   :  { %29885 = vst [vmem:[#allocation25_spill] sm:$0xff] %v23062_v26  ;;  %18562 = vmatpush3.bf16.msra.mxu0 %v22974_v29  ;;  %v29017_v2 = vand.u32 4294901760, %v23043_v14  ;;  %v4154_v15 = vsub.f32 %v23027_v33, %v29018_v46  ;;  %v23078_v52 = vsub.f32 %v222_v21, %v4074_v11  ;;  %v23080_v50 = vsub.f32 %v223_v48, %v4077_v32  ;;  %v242_v32 = vld [vmem:[#allocation5 + $0x4d0] sm:$0xff] }
 0x1c6   :  { %29886 = vst [vmem:[#allocation29_spill] sm:$0xff] %v23070_v25  ;;  %18586 = vmatpush3.bf16.msra.mxu1 %v29842_v36  ;;  %18564 = vmatprep.subr.bf16.mxu0 %v22985_v12  ;;  %v4186_v29 = vand.u32 4294901760, %v4185_v9  ;;  %v29019_v19 = vand.u32 4294901760, %v23045_v54  ;;  %v23084_v38 = vpack.c.bf16 %v4305_v62, %v4298_v42  ;;  %v4193_v39 = vand.u32 4294901760, %v4192_v3  ;;  %v243_v62 = vld [vmem:[#allocation5 + $0x4d8] sm:$0xff]  ;;  %v226_v9 = vld [vmem:[#allocation5 + $0x450] sm:$0xff] }
 0x1c7   :  { %29887 = vst [vmem:[#allocation27_spill] sm:$0xff] %v23078_v52  ;;  %29888 = vst [vmem:[#allocation30_spill] sm:$0xff] %v23080_v50  ;;  %18588 = vmatprep.subr.bf16.mxu1 %v29845_v13  ;;  %v23086_v0 = vpack.c.bf16 %v4131_v61, %v4128_v44  ;;  %v4311_v36 = vsub.f32 %v23022_v8, %v29016_v34  ;;  %v23091_v12 = vsub.f32 %v240_v4, %v4128_v44 }
 0x1c8   :  { %v14818_v58 = vpop.f32.mrb[8].mxu1  ;;  %v4318_v11 = vsub.f32 %v23024_v31, %v29015_v35  ;;  %v4080_v21 = vand.u32 4294901760, %v224_v24  ;;  %v4083_v48 = vand.u32 4294901760, %v225_v43  ;;  %v4199_v42 = vsub.f32 %v23043_v14, %v29017_v2 }
 0x1c9   :  { %29889 = vst [vmem:[#allocation19_spill] sm:$0xff] %v23086_v0  ;;  %v14819_v13 = vpop.f32.mrb[9].mxu1  ;;  %18566 = vmatpush3.bf16.msra.mxu0 %v22991_v56  ;;  %v4155_v3 = vand.u32 4294901760, %v4154_v15  ;;  %v4206_v35 = vsub.f32 %v23045_v54, %v29019_v19  ;;  %v23110_v2 = vpack.c.bf16 %v4193_v39, %v4186_v29  ;;  %v23112_v46 = vsub.f32 %v241_v28, %v4131_v61  ;;  %v227_v56 = vld [vmem:[#allocation5 + $0x458] sm:$0xff] }
 0x1ca   :  { %v14820_v44 = vadd.f32 %v14819_v13, %v14818_v58  ;;  %18590 = vmatpush3.bf16.msra.mxu1 %v22670_v63  ;;  %18600 = vmatprep.subr.bf16.mxu0 %v22993_v10  ;;  %v4312_v15 = vand.u32 4294901760, %v4311_v36  ;;  %v4134_v58 = vand.u32 4294901760, %v242_v32  ;;  %v4319_v63 = vand.u32 4294901760, %v4318_v11 }
 0x1cb   :  { %18592 = vmatprep.subr.bf16.mxu1 %v22694_v16  ;;  %v23117_v4 = vsub.f32 %v224_v24, %v4080_v21  ;;  %v4137_v19 = vand.u32 4294901760, %v243_v62  ;;  %v23120_v34 = vpack.c.bf16 %v4083_v48, %v4080_v21  ;;  %v29891_v16 = vand.u32 4294901760, %v23064_v20 }
 0x1cc   :  { %v23114_v13 = vadd.f32 %v14820_v44, %v1948_v55  ;;  %3946 = vmatmul.mubr.f32.vlgmr.msra.gmra.mrb[22].mxu0 %v22724_v18  ;;  %v29892_v61 = vand.u32 4294901760, %v23068_v41  ;;  %v4200_v24 = vand.u32 4294901760, %v4199_v42  ;;  %v4207_v29 = vand.u32 4294901760, %v4206_v35  ;;  %v244_v44 = vld [vmem:[#allocation5 + $0x4e0] sm:$0xff] }
 0x1cd   :  { %18602 = vmatpush3.bf16.msra.mxu0 %v23011_v7  ;;  %29890 = vst [vmem:[#allocation20_spill] sm:$0xff] %v23120_v34  ;;  %v4325_v28 = vsub.f32 %v23064_v20, %v29891_v16  ;;  %4156 = vmatprep.mubr.f32.mxu0 %v4155_v3  ;;  %v29893_v39 = vand.u32 4294901760, %v23078_v52  ;;  %v29894_v11 = vand.u32 4294901760, %v23080_v50  ;;  %v245_v16 = vld [vmem:[#allocation5 + $0x4e8] sm:$0xff]  ;;  %v4086_v3 = vand.u32 4294901760, %v226_v9 }
 0x1ce   :  { %v4332_v55 = vsub.f32 %v23068_v41, %v29892_v61  ;;  %18594 = vmatpush3.bf16.msra.mxu1 %v22750_v5  ;;  %18604 = vmatprep.subr.bf16.mxu0 %v23013_v27  ;;  %v23137_v61 = vsub.f32 %v225_v43, %v4083_v48  ;;  %v4089_v5 = vand.u32 4294901760, %v227_v56  ;;  %v29028_v27 = vand.u32 4294901760, %v23091_v12 }
 0x1cf   :  { %v4213_v36 = vsub.f32 %v23078_v52, %v29893_v39  ;;  %v4220_v21 = vsub.f32 %v23080_v50, %v29894_v11  ;;  %18596 = vmatprep.subr.bf16.mxu1 %v22776_v22  ;;  %v23140_v42 = vpack.c.bf16 %v4319_v63, %v4312_v15  ;;  %v23142_v35 = vpack.c.bf16 %v4137_v19, %v4134_v58 }
 0x1d0   :  { %v23144_v7 = vsub.f32 %v242_v32, %v4134_v58  ;;  %v23146_v39 = vsub.f32 %v243_v62, %v4137_v19  ;;  %v4326_v11 = vand.u32 4294901760, %v4325_v28  ;;  %v4333_v50 = vand.u32 4294901760, %v4332_v55  ;;  %v228_v32 = vld [vmem:[#allocation5 + $0x460] sm:$0xff] }
 0x1d1   :  { %29895 = vst [vmem:[#allocation17_spill] sm:$0xff] %v23142_v35  ;;  %18606 = vmatpush3.bf16.msra.mxu0 %v23015_v57  ;;  %v4140_v52 = vand.u32 4294901760, %v244_v44  ;;  %v4143_v22 = vand.u32 4294901760, %v245_v16  ;;  %v23151_v43 = vpack.c.bf16 %v4207_v29, %v4200_v24  ;;  %v4214_v48 = vand.u32 4294901760, %v4213_v36  ;;  %v23168_v29 = vld [vmem:[#allocation5 + $0x4f0] sm:$0xff]  ;;  %v23170_v36 = vld [vmem:[#allocation5 + $0x4f8] sm:$0xff] }
 0x1d2   :  { %29896 = vst [vmem:[#allocation18_spill] sm:$0xff] %v23146_v39  ;;  %18598 = vmatpush3.bf16.msra.mxu1 %v22800_v51  ;;  %18608 = vmatprep.subr.bf16.mxu0 %v23020_v37  ;;  %v4221_v15 = vand.u32 4294901760, %v4220_v21  ;;  %v29029_v63 = vand.u32 4294901760, %v23112_v46  ;;  %v23155_v19 = vpack.c.bf16 %v4089_v5, %v4086_v3  ;;  %v23157_v62 = vsub.f32 %v226_v9, %v4086_v3  ;;  %v229_v51 = vld [vmem:[#allocation5 + $0x468] sm:$0xff] }
 0x1d3   :  { %18632 = vmatprep.subr.bf16.mxu1 %v23039_v45  ;;  %v23162_v58 = vsub.f32 %v23091_v12, %v29028_v27  ;;  %v23165_v55 = vsub.f32 %v227_v56, %v4089_v5  ;;  %v29036_v45 = vand.u32 4294901760, %v23144_v7  ;;  %v18643_v21 = vpack.c.bf16 %v4333_v50, %v4326_v11  ;;  %v64_v5 = vld [vmem:[#allocation2 + $0x40] sm:$0xff] }
 0x1d4   :  { %v23176_v3 = vpack.c.bf16 %v4143_v22, %v4140_v52  ;;  %v23178_v27 = vsub.f32 %v244_v44, %v4140_v52  ;;  %v4092_v56 = vand.u32 4294901760, %v228_v32  ;;  %v18645_v24 = vpack.c.bf16 %v4221_v15, %v4214_v48  ;;  %v23194_v48 = vld [vmem:[#allocation5 + $0x470] sm:$0xff] }
 0x1d5   :  { %29897 = vst [vmem:[#allocation28_spill] sm:$0xff] %v23165_v55  ;;  %4050 = vmatmul.mubr.f32.vlgmr.msra.gmra.mrb[22].mxu1 %v22724_v18  ;;  %18610 = vmatpush3.bf16.msra.mxu0 %v23041_v6  ;;  %v23182_v28 = vsub.f32 %v245_v16, %v4143_v22  ;;  %v4346_v18 = vsub.f32 %v23112_v46, %v29029_v63  ;;  %v4095_v9 = vand.u32 4294901760, %v229_v51  ;;  %v4340_v50 = vand.u32 4294901760, %v23162_v58  ;;  %v23196_v16 = vld [vmem:[#allocation5 + $0x478] sm:$0xff] }
 0x1d6   :  { %29898 = vst [vmem:[#allocation16_spill] sm:$0xff] %v23178_v27  ;;  %18634 = vmatpush3.bf16.msra.mxu1 %v23060_v49  ;;  %18612 = vmatprep.subr.bf16.mxu0 %v23062_v26  ;;  %v29899_v52 = vand.u32 4294901760, %v23117_v4  ;;  %v4146_v49 = vand.u32 4294901760, %v23168_v29  ;;  %v4149_v11 = vand.u32 4294901760, %v23170_v36  ;;  %v29900_v22 = vand.u32 4294901760, %v23137_v61 }
 0x1d7   :  { %18636 = vmatprep.subr.bf16.mxu1 %v23084_v38  ;;  %4392 = vmatprep.mubr.f32.mxu1 %v22998_v59  ;;  %v4353_v15 = vsub.f32 %v23144_v7, %v29036_v45  ;;  %v29901_v58 = vand.u32 4294901760, %v23146_v39  ;;  %v23208_v63 = vand.u32 4294901760, %v64_v5  ;;  %v23211_v26 = vsub.f32 %v228_v32, %v4092_v56 }
 0x1d8   :  { %v4227_v44 = vsub.f32 %v23117_v4, %v29899_v52  ;;  %v4234_v38 = vsub.f32 %v23137_v61, %v29900_v22  ;;  %v4347_v45 = vand.u32 4294901760, %v4346_v18  ;;  %v23218_v37 = vsub.f32 %v229_v51, %v4095_v9 }
 0x1d9   :  { %v4360_v52 = vsub.f32 %v23146_v39, %v29901_v58  ;;  %18614 = vmatpush3.bf16.msra.mxu0 %v23070_v25  ;;  %v4098_v58 = vand.u32 4294901760, %v23194_v48  ;;  %v4101_v39 = vand.u32 4294901760, %v23196_v16  ;;  %v23224_v59 = vsub.f32 %v23168_v29, %v4146_v49 }
 0x1da   :  { %18638 = vmatpush3.bf16.msra.mxu1 %v23110_v2  ;;  %18616 = vmatprep.subr.bf16.mxu0 %v23086_v0  ;;  %v4228_v32 = vand.u32 4294901760, %v4227_v44  ;;  %v23227_v6 = vsub.f32 %v23170_v36, %v4149_v11  ;;  %v4235_v22 = vand.u32 4294901760, %v4234_v38  ;;  %v4354_v0 = vand.u32 4294901760, %v4353_v15 }
 0x1db   :  { %18640 = vmatprep.subr.bf16.mxu1 %v23140_v42  ;;  %v4361_v18 = vand.u32 4294901760, %v4360_v52  ;;  %v23231_v51 = vsub.f32 %v64_v5, %v23208_v63  ;;  %v23234_v25 = vpack.c.bf16 %v4095_v9, %v4092_v56  ;;  %v29902_v42 = vand.u32 4294901760, %v23157_v62 }
 0x1dc   :  { %v29903_v44 = vand.u32 4294901760, %v23165_v55  ;;  %v29904_v2 = vand.u32 4294901760, %v23178_v27  ;;  %v23248_v5 = vsub.f32 %v23194_v48, %v4098_v58  ;;  %v23251_v9 = vsub.f32 %v23196_v16, %v4101_v39 }
 0x1dd   :  { %18618 = vmatpush3.bf16.msra.mxu0 %v23120_v34  ;;  %v4241_v29 = vsub.f32 %v23157_v62, %v29902_v42  ;;  %v29056_v15 = vand.u32 4294901760, %v23218_v37  ;;  %v18647_v42 = vpack.c.bf16 %v4347_v45, %v4340_v50  ;;  %v18649_v34 = vpack.c.bf16 %v4235_v22, %v4228_v32 }
 0x1de   :  { %v4248_v36 = vsub.f32 %v23165_v55, %v29903_v44  ;;  %v4367_v38 = vsub.f32 %v23178_v27, %v29904_v2  ;;  %18642 = vmatpush3.bf16.msra.mxu1 %v23151_v43  ;;  %18620 = vmatprep.subr.bf16.mxu0 %v23142_v35  ;;  %v29905_v44 = vand.u32 4294901760, %v23182_v28  ;;  %v29055_v43 = vand.u32 4294901760, %v23224_v59 }
 0x1df   :  { %v14853_v52 = vpop.f32.mrb[10].mxu0  ;;  %18644 = vmatprep.subr.bf16.mxu1 %v18643_v21  ;;  %v23260_v27 = vpack.c.bf16 %v4149_v11, %v4146_v49  ;;  %v18651_v16 = vpack.c.bf16 %v4361_v18, %v4354_v0  ;;  %v29057_v56 = vand.u32 4294901760, %v23231_v51  ;;  %v4242_v21 = vand.u32 4294901760, %v4241_v29 }
 0x1e0   :  { %v4374_v2 = vsub.f32 %v23182_v28, %v29905_v44  ;;  %v14854_v48 = vpop.f32.mrb[11].mxu0  ;;  %v4249_v45 = vand.u32 4294901760, %v4248_v36  ;;  %v4368_v50 = vand.u32 4294901760, %v4367_v38  ;;  %v29906_v44 = vand.u32 4294901760, %v23211_v26 }
 0x1e1   :  { %v14855_v55 = vadd.f32 %v14854_v48, %v14853_v52  ;;  %18622 = vmatpush3.bf16.msra.mxu0 %v23155_v19  ;;  %v4262_v49 = vsub.f32 %v23218_v37, %v29056_v15  ;;  %v29053_v0 = vand.u32 4294901760, %v23248_v5  ;;  %v29054_v11 = vand.u32 4294901760, %v23251_v9 }
 0x1e2   :  { %18646 = vmatpush3.bf16.msra.mxu1 %v18645_v24  ;;  %18624 = vmatprep.subr.bf16.mxu0 %v23176_v3  ;;  %v4255_v35 = vsub.f32 %v23211_v26, %v29906_v44  ;;  %v4375_v32 = vand.u32 4294901760, %v4374_v2  ;;  %v4381_v24 = vsub.f32 %v23224_v59, %v29055_v43  ;;  %v29907_v18 = vand.u32 4294901760, %v23227_v6 }
 0x1e3   :  { %v2224_v22 = vadd.f32 %v14855_v55, %v23114_v13  ;;  %18648 = vmatprep.subr.bf16.mxu1 %v18647_v42  ;;  %v4160_v36 = vsub.f32 %v23231_v51, %v29057_v56  ;;  %v23284_v38 = vpack.c.bf16 %v4101_v39, %v4098_v58  ;;  %v18653_v52 = vpack.c.bf16 %v4249_v45, %v4242_v21 }
 0x1e4   :  { %v4388_v29 = vsub.f32 %v23227_v6, %v29907_v18  ;;  %v18663_v13 = vpack.c.bf16 %v22899_v47, %v22895_v30  ;;  %v4256_v55 = vand.u32 4294901760, %v4255_v35  ;;  %v4263_v42 = vand.u32 4294901760, %v4262_v49 }
 0x1e5   :  { %18626 = vmatpush3.bf16.msra.mxu0 %v23234_v25  ;;  %v4269_v2 = vsub.f32 %v23248_v5, %v29053_v0  ;;  %v4276_v48 = vsub.f32 %v23251_v9, %v29054_v11  ;;  %v18655_v39 = vpack.c.bf16 %v4375_v32, %v4368_v50  ;;  %v4382_v58 = vand.u32 4294901760, %v4381_v24 }
 0x1e6   :  { %18650 = vmatpush3.bf16.msra.mxu1 %v18649_v34  ;;  %18628 = vmatprep.subr.bf16.mxu0 %v23260_v27  ;;  %v4389_v21 = vand.u32 4294901760, %v4388_v29  ;;  %v4161_v44 = vand.u32 4294901760, %v4160_v36  ;;  %v18665_v34 = vpack.c.bf16 %v22935_v53, %v22923_v23  ;;  %v18667_v35 = vpack.c.bf16 %v22958_v40, %v22955_v1 }
 0x1e7   :  { %18652 = vmatprep.subr.bf16.mxu1 %v18651_v16  ;;  %v18657_v0 = vpack.c.bf16 %v4263_v42, %v4256_v55  ;;  %v4270_v11 = vand.u32 4294901760, %v4269_v2  ;;  %v4277_v16 = vand.u32 4294901760, %v4276_v48  ;;  %v18669_v24 = vpack.c.bf16 %v23001_v60, %v22996_v17  ;;  %v29910_v55 = vld [vmem:[#allocation22_spill] sm:$0xff]  ;;  %v29911_v2 = vld [vmem:[#allocation23_spill] sm:$0xff] }
 0x1e8   :  { %v14888_v45 = vpop.f32.mrb[10].mxu1  ;;  %v18659_v50 = vpack.c.bf16 %v4389_v21, %v4382_v58  ;;  %v18671_v36 = vpack.c.bf16 %v23024_v31, %v23022_v8  ;;  %v18679_v42 = vpack.c.bf16 %v23112_v46, %v23091_v12  ;;  %v29912_v48 = vand.u32 4294901760, %v23027_v33  ;;  %v29913_v58 = vld [vmem:[#allocation18_spill] sm:$0xff] }
 0x1e9   :  { %v14889_v18 = vpop.f32.mrb[11].mxu1  ;;  %18630 = vmatpush3.bf16.msra.mxu0 %v23284_v38  ;;  %v18661_v29 = vpack.c.bf16 %v4277_v16, %v4270_v11  ;;  %v29909_v11 = vld [vmem:[#allocation30_spill] sm:$0xff]  ;;  %v18683_v21 = vpack.c.bf16 %v29913_v58, %v23144_v7  ;;  %v29918_v16 = vld [vmem:[#allocation25_spill] sm:$0xff]  ;;  %v29926_v43 = vand.u32 4294901760, %v22935_v53  ;;  %v29929_v53 = vand.u32 4294901760, %v22996_v17 }
 0x1ea   :  { %v14890_v49 = vadd.f32 %v14889_v18, %v14888_v45  ;;  %18654 = vmatpush3.bf16.msra.mxu1 %v18653_v52  ;;  %18664 = vmatprep.subr.bf16.mxu0 %v18663_v13  ;;  %v18673_v52 = vpack.c.bf16 %v23045_v54, %v23043_v14  ;;  %v29914_v45 = vld [vmem:[#allocation26_spill] sm:$0xff] }
 0x1eb   :  { %18656 = vmatprep.subr.bf16.mxu1 %v18655_v39  ;;  %v18681_v39 = vpack.c.bf16 %v23137_v61, %v23117_v4 }
 0x1ec   :  { %v2328_v32 = vadd.f32 %v14890_v49, %v2224_v22  ;;  %4162 = vmatmul.mubr.f32.vlgmr.msra.gmra.mrb[24].mxu0 %v4161_v44  ;;  %v18675_v22 = vpack.c.bf16 %v23068_v41, %v23064_v20  ;;  %v29915_v44 = vld [vmem:[#allocation28_spill] sm:$0xff] }
 0x1ed   :  { %18666 = vmatpush3.bf16.msra.mxu0 %v18665_v34  ;;  %4529 = vmatprep.mubr.f32.mxu0 %v23027_v33  ;;  %v18685_v18 = vpack.c.bf16 %v29915_v44, %v23157_v62  ;;  %v29916_v34 = vld [vmem:[#allocation24_spill] sm:$0xff] }
 0x1ee   :  { %18658 = vmatpush3.bf16.msra.mxu1 %v18657_v0  ;;  %18668 = vmatprep.subr.bf16.mxu0 %v18667_v35  ;;  %v29908_v0 = vld [vmem:[#allocation27_spill] sm:$0xff]  ;;  %v29917_v33 = vld [vmem:[#allocation16_spill] sm:$0xff] }
 0x1ef   :  { %18660 = vmatprep.subr.bf16.mxu1 %v18659_v50  ;;  %v18677_v13 = vpack.c.bf16 %v29909_v11, %v29908_v0  ;;  %v18687_v35 = vpack.c.bf16 %v23182_v28, %v29917_v33 }
 0x1f1   :  { %18670 = vmatpush3.bf16.msra.mxu0 %v18669_v24 }
 0x1f2   :  { %18662 = vmatpush3.bf16.msra.mxu1 %v18661_v29  ;;  %18672 = vmatprep.subr.bf16.mxu0 %v18671_v36  ;;  %v18689_v29 = vpack.c.bf16 %v23218_v37, %v23211_v26  ;;  %v29919_v36 = vld [vmem:[#allocation29_spill] sm:$0xff] }
 0x1f3   :  { %18696 = vmatprep.subr.bf16.mxu1 %v22993_v10 }
 0x1f5   :  { %4394 = vmatmul.mubr.f32.vlgmr.msra.gmra.mrb[24].mxu1 %v23208_v63  ;;  %18674 = vmatpush3.bf16.msra.mxu0 %v18673_v52  ;;  %v18691_v52 = vpack.c.bf16 %v23227_v6, %v23224_v59 }
 0x1f6   :  { %18698 = vmatpush3.bf16.msra.mxu1 %v29910_v55  ;;  %18676 = vmatprep.subr.bf16.mxu0 %v18675_v22 }
 0x1f7   :  { %18700 = vmatprep.subr.bf16.mxu1 %v29911_v2  ;;  %4636 = vmatprep.mubr.f32.mxu1 %v29912_v48  ;;  %v29921_v48 = vld [vmem:[#allocation20_spill] sm:$0xff] }
 0x1f9   :  { %18678 = vmatpush3.bf16.msra.mxu0 %v18677_v13  ;;  %v29920_v13 = vld [vmem:[#allocation19_spill] sm:$0xff] }
 0x1fa   :  { %18702 = vmatpush3.bf16.msra.mxu1 %v23015_v57  ;;  %18680 = vmatprep.subr.bf16.mxu0 %v18679_v42  ;;  %v18693_v42 = vpack.c.bf16 %v23251_v9, %v23248_v5 }
 0x1fb   :  { %18704 = vmatprep.subr.bf16.mxu1 %v29914_v45 }
 0x1fd   :  { %18682 = vmatpush3.bf16.msra.mxu0 %v18681_v39  ;;  %v29922_v39 = vand.u32 4294901760, %v22895_v30  ;;  %v29927_v30 = vand.u32 4294901760, %v22955_v1  ;;  %v29930_v1 = vand.u32 4294901760, %v23001_v60 }
 0x1fe   :  { %18706 = vmatpush3.bf16.msra.mxu1 %v29916_v34  ;;  %18684 = vmatprep.subr.bf16.mxu0 %v18683_v21  ;;  %v29923_v21 = vand.u32 4294901760, %v22899_v47  ;;  %v29928_v47 = vand.u32 4294901760, %v22958_v40  ;;  %v29931_v40 = vld [vmem:[#allocation21_spill] sm:$0xff] }
 0x1ff   :  { %v14923_v49 = vpop.f32.mrb[12].mxu0  ;;  %18708 = vmatprep.subr.bf16.mxu1 %v29918_v16 }
 0x200   :  { %v14924_v50 = vpop.f32.mrb[13].mxu0 }
 0x201   :  { %v14925_v24 = vadd.f32 %v14924_v50, %v14923_v49  ;;  %18686 = vmatpush3.bf16.msra.mxu0 %v18685_v18  ;;  %v18727_v18 = vpack.c.bf16 %v29923_v21, %v29922_v39  ;;  %v29924_v49 = vld [vmem:[#allocation17_spill] sm:$0xff]  ;;  %v18731_v39 = vpack.c.bf16 %v29928_v47, %v29927_v30  ;;  %v29937_v47 = vand.u32 4294901760, %v23068_v41 }
 0x202   :  { %18710 = vmatpush3.bf16.msra.mxu1 %v29919_v36  ;;  %18688 = vmatprep.subr.bf16.mxu0 %v18687_v35  ;;  %v23345_v35 = vld [vmem:[#allocation5 + $0x580] sm:$0xff]  ;;  %v29938_v41 = vand.u32 4294901760, %v29908_v0 }
 0x203   :  { %v2440_v22 = vadd.f32 %v14925_v24, %v2328_v32  ;;  %18712 = vmatprep.subr.bf16.mxu1 %v29920_v13  ;;  %v23347_v32 = vld [vmem:[#allocation5 + $0x588] sm:$0xff]  ;;  %v4966_v21 = vand.u32 4294901760, %v23345_v35 }
 0x205   :  { %18690 = vmatpush3.bf16.msra.mxu0 %v18689_v29  ;;  %v29925_v29 = vand.u32 4294901760, %v22923_v23  ;;  %v23364_v23 = vld [vmem:[#allocation5 + $0x500] sm:$0xff] }
 0x206   :  { %18714 = vmatpush3.bf16.msra.mxu1 %v29921_v48  ;;  %18692 = vmatprep.subr.bf16.mxu0 %v18691_v52  ;;  %v29058_v60 = vand.u32 4294901760, %v23364_v23 }
 0x207   :  { %18716 = vmatprep.subr.bf16.mxu1 %v29924_v49  ;;  %v18729_v15 = vpack.c.bf16 %v29926_v43, %v29925_v29  ;;  %v18733_v43 = vpack.c.bf16 %v29930_v1, %v29929_v53  ;;  %v23379_v29 = vsub.f32 %v23345_v35, %v4966_v21 }
 0x208   :  { %v14958_v50 = vpop.f32.mrb[12].mxu1 }
 0x209   :  { %v14959_v24 = vpop.f32.mrb[13].mxu1  ;;  %18694 = vmatpush3.bf16.msra.mxu0 %v18693_v42  ;;  %v4969_v42 = vand.u32 4294901760, %v23347_v32 }
 0x20a   :  { %v14960_v52 = vadd.f32 %v14959_v24, %v14958_v50  ;;  %18718 = vmatpush3.bf16.msra.mxu1 %v23155_v19  ;;  %18728 = vmatprep.subr.bf16.mxu0 %v18727_v18  ;;  %v23371_v18 = vld [vmem:[#allocation5 + $0x508] sm:$0xff]  ;;  %v29933_v50 = vand.u32 4294901760, %v23024_v31  ;;  %v29935_v31 = vand.u32 4294901760, %v23045_v54  ;;  %v251_v54 = vld [vmem:[#allocation5 + $0x518] sm:$0xff] }
 0x20b   :  { %18720 = vmatprep.subr.bf16.mxu1 %v23176_v3  ;;  %v23383_v17 = vsub.f32 %v23347_v32, %v4969_v42  ;;  %v4921_v30 = vand.u32 4294901760, %v23371_v18  ;;  %v29936_v32 = vand.u32 4294901760, %v23064_v20  ;;  %v29944_v20 = vand.u32 4294901760, %v23137_v61 }
 0x20c   :  { %v23361_v56 = vadd.f32 %v14960_v52, %v2440_v22  ;;  %4532 = vmatmul.mubr.f32.vlgmr.msra.gmra.mrb[26].mxu0 %v23231_v51  ;;  %v29932_v22 = vand.u32 4294901760, %v23022_v8  ;;  %v23388_v52 = vld [vmem:[#allocation5 + $0x598] sm:$0xff]  ;;  %v29934_v8 = vand.u32 4294901760, %v23043_v14  ;;  %v23407_v14 = vsub.f32 %v23364_v23, %v29058_v60 }
 0x20d   :  { %18730 = vmatpush3.bf16.msra.mxu0 %v18729_v15  ;;  %4806 = vmatprep.mubr.f32.mxu0 %v29931_v40  ;;  %v23386_v15 = vld [vmem:[#allocation5 + $0x590] sm:$0xff]  ;;  %v4975_v1 = vand.u32 4294901760, %v23388_v52  ;;  %v29943_v60 = vand.u32 4294901760, %v23117_v4 }
 0x20e   :  { %18722 = vmatpush3.bf16.msra.mxu1 %v23234_v25  ;;  %18732 = vmatprep.subr.bf16.mxu0 %v18731_v39  ;;  %v18735_v24 = vpack.c.bf16 %v29933_v50, %v29932_v22  ;;  %v18737_v35 = vpack.c.bf16 %v29935_v31, %v29934_v8  ;;  %v18739_v39 = vpack.c.bf16 %v29937_v47, %v29936_v32  ;;  %v4972_v53 = vand.u32 4294901760, %v23386_v15  ;;  %v250_v22 = vld [vmem:[#allocation5 + $0x510] sm:$0xff] }
 0x20f   :  { %18724 = vmatprep.subr.bf16.mxu1 %v23260_v27  ;;  %v29939_v50 = vand.u32 4294901760, %v29909_v11  ;;  %v29940_v8 = vand.u32 4294901760, %v23091_v12  ;;  %v29941_v31 = vand.u32 4294901760, %v23112_v46  ;;  %v29942_v47 = vand.u32 4294901760, %v23231_v51  ;;  %v268_v51 = vld [vmem:[#allocation5 + $0x5a0] sm:$0xff] }
 0x210   :  { %v18745_v0 = vpack.c.bf16 %v29944_v20, %v29943_v60  ;;  %v29945_v11 = vand.u32 4294901760, %v23144_v7  ;;  %v29947_v46 = vand.u32 4294901760, %v23157_v62  ;;  %v23439_v4 = vsub.f32 %v23386_v15, %v4972_v53 }
 0x211   :  { %18734 = vmatpush3.bf16.msra.mxu0 %v18733_v43  ;;  %v29063_v43 = vand.u32 4294901760, %v23379_v29  ;;  %v18743_v32 = vpack.c.bf16 %v29941_v31, %v29940_v8  ;;  %v4924_v8 = vand.u32 4294901760, %v250_v22  ;;  %v23442_v61 = vsub.f32 %v23388_v52, %v4975_v1 }
 0x212   :  { %18726 = vmatpush3.bf16.msra.mxu1 %v23284_v38  ;;  %18736 = vmatprep.subr.bf16.mxu0 %v18735_v24  ;;  %v18741_v24 = vpack.c.bf16 %v29939_v50, %v29938_v41  ;;  %v29946_v41 = vand.u32 4294901760, %v29913_v58  ;;  %v29948_v50 = vand.u32 4294901760, %v29915_v44  ;;  %v4927_v7 = vand.u32 4294901760, %v251_v54  ;;  %v269_v58 = vld [vmem:[#allocation5 + $0x5a8] sm:$0xff]  ;;  %v67_v44 = vld [vmem:[#allocation2 + $0x58] sm:$0xff] }
 0x213   :  { %18760 = vmatprep.subr.bf16.mxu1 %v22993_v10  ;;  %v23419_v10 = vsub.f32 %v23371_v18, %v4921_v30  ;;  %v5145_v62 = vsub.f32 %v23379_v29, %v29063_v43  ;;  %v29949_v60 = vand.u32 4294901760, %v29917_v33  ;;  %v29951_v15 = vand.u32 4294901760, %v23211_v26 }
 0x214   :  { %v18747_v12 = vpack.c.bf16 %v29946_v41, %v29945_v11  ;;  %v23435_v18 = vpack.c.bf16 %v29948_v50, %v29947_v46  ;;  %v29952_v52 = vand.u32 4294901760, %v23218_v37  ;;  %v29953_v20 = vand.u32 4294901760, %v23383_v17  ;;  %v253_v46 = vld [vmem:[#allocation5 + $0x528] sm:$0xff] }
 0x215   :  { %4640 = vmatmul.mubr.f32.vlgmr.msra.gmra.mrb[26].mxu1 %v29942_v47  ;;  %18738 = vmatpush3.bf16.msra.mxu0 %v18737_v35  ;;  %v29954_v33 = vand.u32 4294901760, %v23224_v59  ;;  %v29956_v26 = vand.u32 4294901760, %v23248_v5  ;;  %v29957_v37 = vand.u32 4294901760, %v23251_v9  ;;  %v23477_v41 = vpack.c.bf16 %v4969_v42, %v4966_v21 }
 0x216   :  { %18762 = vmatpush3.bf16.msra.mxu1 %v29910_v55  ;;  %18740 = vmatprep.subr.bf16.mxu0 %v18739_v39  ;;  %v29950_v55 = vand.u32 4294901760, %v23182_v28  ;;  %v23458_v39 = vpack.c.bf16 %v29952_v52, %v29951_v15  ;;  %v5152_v31 = vsub.f32 %v23383_v17, %v29953_v20  ;;  %v29955_v28 = vand.u32 4294901760, %v23227_v6 }
 0x217   :  { %18764 = vmatprep.subr.bf16.mxu1 %v29911_v2  ;;  %4910 = vmatprep.mubr.f32.mxu1 %v29931_v40  ;;  %v29062_v2 = vand.u32 4294901760, %v23407_v14  ;;  %v23475_v11 = vpack.c.bf16 %v29957_v37, %v29956_v26  ;;  %v252_v40 = vld [vmem:[#allocation5 + $0x520] sm:$0xff]  ;;  %v29061_v50 = vand.u32 4294901760, %v23419_v10  ;;  %v4978_v59 = vand.u32 4294901760, %v268_v51  ;;  %v271_v26 = vld [vmem:[#allocation5 + $0x5b8] sm:$0xff] }
 0x218   :  { %v23452_v35 = vpack.c.bf16 %v29950_v55, %v29949_v60  ;;  %v23469_v47 = vpack.c.bf16 %v29955_v28, %v29954_v33  ;;  %v23480_v60 = vsub.f32 %v250_v22, %v4924_v8  ;;  %v4981_v55 = vand.u32 4294901760, %v269_v58  ;;  %v270_v28 = vld [vmem:[#allocation5 + $0x5b0] sm:$0xff] }
 0x219   :  { %18742 = vmatpush3.bf16.msra.mxu0 %v18741_v24  ;;  %v23482_v6 = vand.u32 4294901760, %v67_v44  ;;  %v23485_v5 = vsub.f32 %v251_v54, %v4927_v7  ;;  %v5146_v9 = vand.u32 4294901760, %v5145_v62  ;;  %v29060_v21 = vand.u32 4294901760, %v23439_v4 }
 0x21a   :  { %18766 = vmatpush3.bf16.msra.mxu1 %v23015_v57  ;;  %18744 = vmatprep.subr.bf16.mxu0 %v18743_v32  ;;  %v29059_v42 = vand.u32 4294901760, %v23442_v61  ;;  %v5153_v15 = vand.u32 4294901760, %v5152_v31  ;;  %v4930_v24 = vand.u32 4294901760, %v252_v40  ;;  %v4933_v22 = vand.u32 4294901760, %v253_v46 }
 0x21b   :  { %29958 = vst [vmem:[#allocation27_spill] sm:$0xff] %v23482_v6  ;;  %18768 = vmatprep.subr.bf16.mxu1 %v29914_v45  ;;  %v5033_v52 = vsub.f32 %v23407_v14, %v29062_v2  ;;  %v29959_v20 = vand.u32 4294901760, %v23364_v23  ;;  %v23497_v54 = vpack.c.bf16 %v4975_v1, %v4972_v53  ;;  %v23499_v32 = vpack.c.bf16 %v4927_v7, %v4924_v8  ;;  %v254_v1 = vld [vmem:[#allocation5 + $0x530] sm:$0xff] }
 0x21c   :  { %v5040_v62 = vsub.f32 %v23419_v10, %v29061_v50  ;;  %v23504_v45 = vpack.c.bf16 %v4981_v55, %v4978_v59  ;;  %v23506_v31 = vsub.f32 %v268_v51, %v4978_v59  ;;  %v23508_v33 = vsub.f32 %v269_v58, %v4981_v55  ;;  %v273_v50 = vld [vmem:[#allocation5 + $0x5c8] sm:$0xff] }
 0x21d   :  { %v23495_v57 = vpack.c.bf16 %v4921_v30, %v29959_v20  ;;  %29961 = vst [vmem:[#allocation22_spill] sm:$0xff] %v23497_v54  ;;  %18746 = vmatpush3.bf16.msra.mxu0 %v18745_v0  ;;  %v23511_v23 = vsub.f32 %v67_v44, %v23482_v6  ;;  %v5159_v30 = vsub.f32 %v23439_v4, %v29060_v21  ;;  %v255_v0 = vld [vmem:[#allocation5 + $0x538] sm:$0xff]  ;;  %v29065_v8 = vand.u32 4294901760, %v23480_v60  ;;  %v272_v21 = vld [vmem:[#allocation5 + $0x5c0] sm:$0xff] }
 0x21e   :  { %29962 = vst [vmem:[#allocation23_spill] sm:$0xff] %v23504_v45  ;;  %18770 = vmatpush3.bf16.msra.mxu1 %v29916_v34  ;;  %18748 = vmatprep.subr.bf16.mxu0 %v18747_v12  ;;  %v5166_v53 = vsub.f32 %v23442_v61, %v29059_v42  ;;  %v29064_v7 = vand.u32 4294901760, %v23485_v5  ;;  %v23523_v58 = vpack.c.bf16 %v5153_v15, %v5146_v9  ;;  %v5034_v44 = vand.u32 4294901760, %v5033_v52 }
 0x21f   :  { %29960 = vst [vmem:[#allocation30_spill] sm:$0xff] %v23495_v57  ;;  %v14993_v51 = vpop.f32.mrb[14].mxu0  ;;  %18772 = vmatprep.subr.bf16.mxu1 %v29918_v16  ;;  %v23525_v34 = vpack.c.bf16 %v4933_v22, %v4930_v24  ;;  %v23527_v12 = vsub.f32 %v252_v40, %v4930_v24  ;;  %v23529_v59 = vsub.f32 %v253_v46, %v4933_v22  ;;  %v5041_v55 = vand.u32 4294901760, %v5040_v62 }
 0x220   :  { %v14994_v37 = vpop.f32.mrb[15].mxu0  ;;  %v4984_v20 = vand.u32 4294901760, %v270_v28  ;;  %v4987_v42 = vand.u32 4294901760, %v271_v26  ;;  %v4936_v43 = vand.u32 4294901760, %v254_v1  ;;  %v4939_v16 = vand.u32 4294901760, %v255_v0 }
 0x221   :  { %29963 = vst [vmem:[#allocation18_spill] sm:$0xff] %v23525_v34  ;;  %v14995_v2 = vadd.f32 %v14994_v37, %v14993_v51  ;;  %18750 = vmatpush3.bf16.msra.mxu0 %v23435_v18  ;;  %v29069_v9 = vand.u32 4294901760, %v23511_v23  ;;  %v5160_v40 = vand.u32 4294901760, %v5159_v30  ;;  %v5167_v15 = vand.u32 4294901760, %v5166_v53 }
 0x222   :  { %18774 = vmatpush3.bf16.msra.mxu1 %v29919_v36  ;;  %18752 = vmatprep.subr.bf16.mxu0 %v23452_v35  ;;  %v5047_v46 = vsub.f32 %v23480_v60, %v29065_v8  ;;  %v5054_v24 = vsub.f32 %v23485_v5, %v29064_v7  ;;  %v4990_v22 = vand.u32 4294901760, %v272_v21  ;;  %v4993_v52 = vand.u32 4294901760, %v273_v50 }
 0x223   :  { %v2810_v18 = vadd.f32 %v14995_v2, %v23361_v56  ;;  %18776 = vmatprep.subr.bf16.mxu1 %v29920_v13  ;;  %v29067_v36 = vand.u32 4294901760, %v23506_v31  ;;  %v23544_v62 = vpack.c.bf16 %v5041_v55, %v5034_v44  ;;  %v23546_v35 = vpack.c.bf16 %v4987_v42, %v4984_v20  ;;  %v256_v56 = vld [vmem:[#allocation5 + $0x540] sm:$0xff]  ;;  %v257_v13 = vld [vmem:[#allocation5 + $0x548] sm:$0xff] }
 0x224   :  { %v23548_v30 = vsub.f32 %v270_v28, %v4984_v20  ;;  %v29066_v53 = vand.u32 4294901760, %v23508_v33  ;;  %v23552_v51 = vsub.f32 %v271_v26, %v4987_v42  ;;  %v23554_v37 = vpack.c.bf16 %v4939_v16, %v4936_v43 }
 0x225   :  { %29964 = vst [vmem:[#allocation26_spill] sm:$0xff] %v23546_v35  ;;  %18754 = vmatpush3.bf16.msra.mxu0 %v23458_v39  ;;  %v29068_v2 = vand.u32 4294901760, %v23527_v12  ;;  %v5016_v44 = vsub.f32 %v23511_v23, %v29069_v9  ;;  %v23562_v28 = vsub.f32 %v254_v1, %v4936_v43  ;;  %v23564_v55 = vsub.f32 %v255_v0, %v4939_v16  ;;  %v274_v16 = vld [vmem:[#allocation5 + $0x5d0] sm:$0xff] }
 0x226   :  { %29965 = vst [vmem:[#allocation28_spill] sm:$0xff] %v23554_v37  ;;  %18778 = vmatpush3.bf16.msra.mxu1 %v29921_v48  ;;  %18756 = vmatprep.subr.bf16.mxu0 %v23469_v47  ;;  %v5048_v39 = vand.u32 4294901760, %v5047_v46  ;;  %v29070_v42 = vand.u32 4294901760, %v23529_v59  ;;  %v23568_v26 = vpack.c.bf16 %v5167_v15, %v5160_v40  ;;  %v5055_v20 = vand.u32 4294901760, %v5054_v24  ;;  %v275_v15 = vld [vmem:[#allocation5 + $0x5d8] sm:$0xff]  ;;  %v258_v46 = vld [vmem:[#allocation5 + $0x550] sm:$0xff] }
 0x227   :  { %29966 = vst [vmem:[#allocation24_spill] sm:$0xff] %v23562_v28  ;;  %29967 = vst [vmem:[#allocation16_spill] sm:$0xff] %v23564_v55  ;;  %18780 = vmatprep.subr.bf16.mxu1 %v29924_v49  ;;  %v23570_v7 = vpack.c.bf16 %v4993_v52, %v4990_v22  ;;  %v5173_v48 = vsub.f32 %v23506_v31, %v29067_v36  ;;  %v23575_v47 = vsub.f32 %v272_v21, %v4990_v22 }
 0x228   :  { %v15028_v8 = vpop.f32.mrb[14].mxu1  ;;  %v5180_v43 = vsub.f32 %v23508_v33, %v29066_v53  ;;  %v4942_v1 = vand.u32 4294901760, %v256_v56  ;;  %v4945_v0 = vand.u32 4294901760, %v257_v13  ;;  %v5061_v40 = vsub.f32 %v23527_v12, %v29068_v2 }
 0x229   :  { %29968 = vst [vmem:[#allocation25_spill] sm:$0xff] %v23570_v7  ;;  %v15029_v49 = vpop.f32.mrb[15].mxu1  ;;  %18758 = vmatpush3.bf16.msra.mxu0 %v23475_v11  ;;  %v5017_v24 = vand.u32 4294901760, %v5016_v44  ;;  %v5068_v53 = vsub.f32 %v23529_v59, %v29070_v42  ;;  %v23594_v2 = vpack.c.bf16 %v5055_v20, %v5048_v39  ;;  %v23596_v9 = vsub.f32 %v273_v50, %v4993_v52  ;;  %v259_v11 = vld [vmem:[#allocation5 + $0x558] sm:$0xff] }
 0x22a   :  { %v15030_v22 = vadd.f32 %v15029_v49, %v15028_v8  ;;  %18782 = vmatpush3.bf16.msra.mxu1 %v23155_v19  ;;  %18792 = vmatprep.subr.bf16.mxu0 %v23477_v41  ;;  %v5174_v44 = vand.u32 4294901760, %v5173_v48  ;;  %v4996_v8 = vand.u32 4294901760, %v274_v16  ;;  %v5181_v19 = vand.u32 4294901760, %v5180_v43 }
 0x22b   :  { %18784 = vmatprep.subr.bf16.mxu1 %v23176_v3  ;;  %v23601_v21 = vsub.f32 %v256_v56, %v4942_v1  ;;  %v4999_v42 = vand.u32 4294901760, %v275_v15  ;;  %v23604_v36 = vpack.c.bf16 %v4945_v0, %v4942_v1  ;;  %v29970_v3 = vand.u32 4294901760, %v23548_v30 }
 0x22c   :  { %v23598_v49 = vadd.f32 %v15030_v22, %v2810_v18  ;;  %4808 = vmatmul.mubr.f32.vlgmr.msra.gmra.mrb[28].mxu0 %v23208_v63  ;;  %v29971_v52 = vand.u32 4294901760, %v23552_v51  ;;  %v5062_v56 = vand.u32 4294901760, %v5061_v40  ;;  %v5069_v39 = vand.u32 4294901760, %v5068_v53  ;;  %v276_v22 = vld [vmem:[#allocation5 + $0x5e0] sm:$0xff] }
 0x22d   :  { %18794 = vmatpush3.bf16.msra.mxu0 %v23495_v57  ;;  %29969 = vst [vmem:[#allocation29_spill] sm:$0xff] %v23604_v36  ;;  %v5187_v50 = vsub.f32 %v23548_v30, %v29970_v3  ;;  %5018 = vmatprep.mubr.f32.mxu0 %v5017_v24  ;;  %v29972_v20 = vand.u32 4294901760, %v23562_v28  ;;  %v29973_v43 = vand.u32 4294901760, %v23564_v55  ;;  %v277_v3 = vld [vmem:[#allocation5 + $0x5e8] sm:$0xff]  ;;  %v4948_v24 = vand.u32 4294901760, %v258_v46 }
 0x22e   :  { %v5194_v18 = vsub.f32 %v23552_v51, %v29971_v52  ;;  %18786 = vmatpush3.bf16.msra.mxu1 %v23234_v25  ;;  %18796 = vmatprep.subr.bf16.mxu0 %v23497_v54  ;;  %v23621_v52 = vsub.f32 %v257_v13, %v4945_v0  ;;  %v4951_v25 = vand.u32 4294901760, %v259_v11  ;;  %v29079_v54 = vand.u32 4294901760, %v23575_v47 }
 0x22f   :  { %v5075_v48 = vsub.f32 %v23562_v28, %v29972_v20  ;;  %v5082_v1 = vsub.f32 %v23564_v55, %v29973_v43  ;;  %18788 = vmatprep.subr.bf16.mxu1 %v23260_v27  ;;  %v23624_v40 = vpack.c.bf16 %v5181_v19, %v5174_v44  ;;  %v23626_v53 = vpack.c.bf16 %v4999_v42, %v4996_v8 }
 0x230   :  { %v23628_v57 = vsub.f32 %v274_v16, %v4996_v8  ;;  %v23630_v20 = vsub.f32 %v275_v15, %v4999_v42  ;;  %v5188_v43 = vand.u32 4294901760, %v5187_v50  ;;  %v5195_v55 = vand.u32 4294901760, %v5194_v18  ;;  %v260_v16 = vld [vmem:[#allocation5 + $0x560] sm:$0xff] }
 0x231   :  { %29974 = vst [vmem:[#allocation19_spill] sm:$0xff] %v23626_v53  ;;  %18798 = vmatpush3.bf16.msra.mxu0 %v23499_v32  ;;  %v5002_v28 = vand.u32 4294901760, %v276_v22  ;;  %v5005_v27 = vand.u32 4294901760, %v277_v3  ;;  %v23635_v13 = vpack.c.bf16 %v5069_v39, %v5062_v56  ;;  %v5076_v0 = vand.u32 4294901760, %v5075_v48  ;;  %v23652_v39 = vld [vmem:[#allocation5 + $0x5f0] sm:$0xff]  ;;  %v23654_v48 = vld [vmem:[#allocation5 + $0x5f8] sm:$0xff] }
 0x232   :  { %29975 = vst [vmem:[#allocation20_spill] sm:$0xff] %v23630_v20  ;;  %18790 = vmatpush3.bf16.msra.mxu1 %v23284_v38  ;;  %18800 = vmatprep.subr.bf16.mxu0 %v23504_v45  ;;  %v5083_v44 = vand.u32 4294901760, %v5082_v1  ;;  %v29080_v19 = vand.u32 4294901760, %v23596_v9  ;;  %v23639_v42 = vpack.c.bf16 %v4951_v25, %v4948_v24  ;;  %v23641_v15 = vsub.f32 %v258_v46, %v4948_v24  ;;  %v261_v38 = vld [vmem:[#allocation5 + $0x568] sm:$0xff] }
 0x233   :  { %18824 = vmatprep.subr.bf16.mxu1 %v23523_v58  ;;  %v23646_v8 = vsub.f32 %v23575_v47, %v29079_v54  ;;  %v23649_v18 = vsub.f32 %v259_v11, %v4951_v25  ;;  %v29087_v58 = vand.u32 4294901760, %v23628_v57  ;;  %v18835_v1 = vpack.c.bf16 %v5195_v55, %v5188_v43  ;;  %v66_v25 = vld [vmem:[#allocation2 + $0x50] sm:$0xff] }
 0x234   :  { %v23660_v24 = vpack.c.bf16 %v5005_v27, %v5002_v28  ;;  %v23662_v54 = vsub.f32 %v276_v22, %v5002_v28  ;;  %v4954_v11 = vand.u32 4294901760, %v260_v16  ;;  %v18837_v56 = vpack.c.bf16 %v5083_v44, %v5076_v0  ;;  %v23678_v0 = vld [vmem:[#allocation5 + $0x570] sm:$0xff] }
 0x235   :  { %29976 = vst [vmem:[#allocation17_spill] sm:$0xff] %v23649_v18  ;;  %4912 = vmatmul.mubr.f32.vlgmr.msra.gmra.mrb[28].mxu1 %v23208_v63  ;;  %18802 = vmatpush3.bf16.msra.mxu0 %v23525_v34  ;;  %v23666_v50 = vsub.f32 %v277_v3, %v5005_v27  ;;  %v5208_v63 = vsub.f32 %v23596_v9, %v29080_v19  ;;  %v4957_v46 = vand.u32 4294901760, %v261_v38  ;;  %v5202_v55 = vand.u32 4294901760, %v23646_v8  ;;  %v23680_v3 = vld [vmem:[#allocation5 + $0x578] sm:$0xff] }
 0x236   :  { %29977 = vst [vmem:[#allocation21_spill] sm:$0xff] %v23662_v54  ;;  %18826 = vmatpush3.bf16.msra.mxu1 %v23544_v62  ;;  %18804 = vmatprep.subr.bf16.mxu0 %v23546_v35  ;;  %v29978_v28 = vand.u32 4294901760, %v23601_v21  ;;  %v5008_v62 = vand.u32 4294901760, %v23652_v39  ;;  %v5011_v43 = vand.u32 4294901760, %v23654_v48  ;;  %v29979_v27 = vand.u32 4294901760, %v23621_v52 }
 0x237   :  { %18828 = vmatprep.subr.bf16.mxu1 %v23568_v26  ;;  %5254 = vmatprep.mubr.f32.mxu1 %v23482_v6  ;;  %v5215_v44 = vsub.f32 %v23628_v57, %v29087_v58  ;;  %v29980_v8 = vand.u32 4294901760, %v23630_v20  ;;  %v23692_v19 = vand.u32 4294901760, %v66_v25  ;;  %v23695_v35 = vsub.f32 %v260_v16, %v4954_v11 }
 0x238   :  { %v5089_v22 = vsub.f32 %v23601_v21, %v29978_v28  ;;  %v5096_v26 = vsub.f32 %v23621_v52, %v29979_v27  ;;  %v5209_v58 = vand.u32 4294901760, %v5208_v63  ;;  %v23702_v45 = vsub.f32 %v261_v38, %v4957_v46 }
 0x239   :  { %v5222_v28 = vsub.f32 %v23630_v20, %v29980_v8  ;;  %18806 = vmatpush3.bf16.msra.mxu0 %v23554_v37  ;;  %v4960_v8 = vand.u32 4294901760, %v23678_v0  ;;  %v4963_v20 = vand.u32 4294901760, %v23680_v3  ;;  %v23708_v6 = vsub.f32 %v23652_v39, %v5008_v62 }
 0x23a   :  { %18830 = vmatpush3.bf16.msra.mxu1 %v23594_v2  ;;  %18808 = vmatprep.subr.bf16.mxu0 %v23570_v7  ;;  %v5090_v16 = vand.u32 4294901760, %v5089_v22  ;;  %v23711_v34 = vsub.f32 %v23654_v48, %v5011_v43  ;;  %v5097_v27 = vand.u32 4294901760, %v5096_v26  ;;  %v5216_v7 = vand.u32 4294901760, %v5215_v44 }
 0x23b   :  { %18832 = vmatprep.subr.bf16.mxu1 %v23624_v40  ;;  %v5223_v63 = vand.u32 4294901760, %v5222_v28  ;;  %v23715_v38 = vsub.f32 %v66_v25, %v23692_v19  ;;  %v23718_v37 = vpack.c.bf16 %v4957_v46, %v4954_v11  ;;  %v29981_v40 = vand.u32 4294901760, %v23641_v15 }
 0x23c   :  { %v29982_v22 = vand.u32 4294901760, %v23649_v18  ;;  %v29983_v2 = vand.u32 4294901760, %v23662_v54  ;;  %v23732_v25 = vsub.f32 %v23678_v0, %v4960_v8  ;;  %v23735_v46 = vsub.f32 %v23680_v3, %v4963_v20 }
 0x23d   :  { %18810 = vmatpush3.bf16.msra.mxu0 %v23604_v36  ;;  %v5103_v39 = vsub.f32 %v23641_v15, %v29981_v40  ;;  %v29107_v44 = vand.u32 4294901760, %v23702_v45  ;;  %v18839_v40 = vpack.c.bf16 %v5209_v58, %v5202_v55  ;;  %v18841_v36 = vpack.c.bf16 %v5097_v27, %v5090_v16 }
 0x23e   :  { %v5110_v48 = vsub.f32 %v23649_v18, %v29982_v22  ;;  %v5229_v26 = vsub.f32 %v23662_v54, %v29983_v2  ;;  %18834 = vmatpush3.bf16.msra.mxu1 %v23635_v13  ;;  %18812 = vmatprep.subr.bf16.mxu0 %v23626_v53  ;;  %v29984_v22 = vand.u32 4294901760, %v23666_v50  ;;  %v29106_v13 = vand.u32 4294901760, %v23708_v6 }
 0x23f   :  { %v15063_v28 = vpop.f32.mrb[16].mxu0  ;;  %18836 = vmatprep.subr.bf16.mxu1 %v18835_v1  ;;  %v23744_v54 = vpack.c.bf16 %v5011_v43, %v5008_v62  ;;  %v18843_v3 = vpack.c.bf16 %v5223_v63, %v5216_v7  ;;  %v29108_v11 = vand.u32 4294901760, %v23715_v38  ;;  %v5104_v1 = vand.u32 4294901760, %v5103_v39 }
 0x240   :  { %v5236_v2 = vsub.f32 %v23666_v50, %v29984_v22  ;;  %v15064_v0 = vpop.f32.mrb[17].mxu0  ;;  %v5111_v58 = vand.u32 4294901760, %v5110_v48  ;;  %v5230_v55 = vand.u32 4294901760, %v5229_v26  ;;  %v29985_v22 = vand.u32 4294901760, %v23695_v35 }
 0x241   :  { %v15065_v18 = vadd.f32 %v15064_v0, %v15063_v28  ;;  %18814 = vmatpush3.bf16.msra.mxu0 %v23639_v42  ;;  %v5124_v62 = vsub.f32 %v23702_v45, %v29107_v44  ;;  %v29104_v7 = vand.u32 4294901760, %v23732_v25  ;;  %v29105_v43 = vand.u32 4294901760, %v23735_v46 }
 0x242   :  { %18838 = vmatpush3.bf16.msra.mxu1 %v18837_v56  ;;  %18816 = vmatprep.subr.bf16.mxu0 %v23660_v24  ;;  %v5117_v53 = vsub.f32 %v23695_v35, %v29985_v22  ;;  %v5237_v16 = vand.u32 4294901760, %v5236_v2  ;;  %v5243_v56 = vsub.f32 %v23708_v6, %v29106_v13  ;;  %v29986_v63 = vand.u32 4294901760, %v23711_v34 }
 0x243   :  { %v3086_v27 = vadd.f32 %v15065_v18, %v23598_v49  ;;  %18840 = vmatprep.subr.bf16.mxu1 %v18839_v40  ;;  %v5022_v48 = vsub.f32 %v23715_v38, %v29108_v11  ;;  %v23768_v26 = vpack.c.bf16 %v4963_v20, %v4960_v8  ;;  %v18845_v28 = vpack.c.bf16 %v5111_v58, %v5104_v1 }
 0x244   :  { %v5250_v39 = vsub.f32 %v23711_v34, %v29986_v63  ;;  %v18855_v49 = vpack.c.bf16 %v23383_v17, %v23379_v29  ;;  %v5118_v18 = vand.u32 4294901760, %v5117_v53  ;;  %v5125_v40 = vand.u32 4294901760, %v5124_v62 }
 0x245   :  { %18818 = vmatpush3.bf16.msra.mxu0 %v23718_v37  ;;  %v5131_v2 = vsub.f32 %v23732_v25, %v29104_v7  ;;  %v5138_v0 = vsub.f32 %v23735_v46, %v29105_v43  ;;  %v18847_v20 = vpack.c.bf16 %v5237_v16, %v5230_v55  ;;  %v5244_v8 = vand.u32 4294901760, %v5243_v56 }
 0x246   :  { %18842 = vmatpush3.bf16.msra.mxu1 %v18841_v36  ;;  %18820 = vmatprep.subr.bf16.mxu0 %v23744_v54  ;;  %v5251_v1 = vand.u32 4294901760, %v5250_v39  ;;  %v5023_v22 = vand.u32 4294901760, %v5022_v48  ;;  %v18857_v36 = vpack.c.bf16 %v23419_v10, %v23407_v14  ;;  %v18859_v53 = vpack.c.bf16 %v23442_v61, %v23439_v4 }
 0x247   :  { %18844 = vmatprep.subr.bf16.mxu1 %v18843_v3  ;;  %v18849_v7 = vpack.c.bf16 %v5125_v40, %v5118_v18  ;;  %v5132_v43 = vand.u32 4294901760, %v5131_v2  ;;  %v5139_v3 = vand.u32 4294901760, %v5138_v0  ;;  %v18861_v56 = vpack.c.bf16 %v23485_v5, %v23480_v60  ;;  %v29989_v18 = vld [vmem:[#allocation30_spill] sm:$0xff] }
 0x248   :  { %v15098_v58 = vpop.f32.mrb[16].mxu1  ;;  %v18851_v55 = vpack.c.bf16 %v5251_v1, %v5244_v8  ;;  %v18863_v48 = vpack.c.bf16 %v23508_v33, %v23506_v31  ;;  %v18871_v40 = vpack.c.bf16 %v23596_v9, %v23575_v47  ;;  %v29990_v2 = vld [vmem:[#allocation22_spill] sm:$0xff]  ;;  %v29991_v0 = vand.u32 4294901760, %v23511_v23  ;;  %v29992_v8 = vld [vmem:[#allocation20_spill] sm:$0xff] }
 0x249   :  { %v15099_v63 = vpop.f32.mrb[17].mxu1  ;;  %18822 = vmatpush3.bf16.msra.mxu0 %v23768_v26  ;;  %v18853_v39 = vpack.c.bf16 %v5139_v3, %v5132_v43  ;;  %v29988_v43 = vld [vmem:[#allocation16_spill] sm:$0xff]  ;;  %v18875_v1 = vpack.c.bf16 %v29992_v8, %v23628_v57  ;;  %v29997_v3 = vld [vmem:[#allocation26_spill] sm:$0xff]  ;;  %v30005_v13 = vand.u32 4294901760, %v23419_v10  ;;  %v30008_v10 = vand.u32 4294901760, %v23480_v60 }
 0x24a   :  { %v15100_v62 = vadd.f32 %v15099_v63, %v15098_v58  ;;  %18846 = vmatpush3.bf16.msra.mxu1 %v18845_v28  ;;  %18856 = vmatprep.subr.bf16.mxu0 %v18855_v49  ;;  %v18865_v28 = vpack.c.bf16 %v23529_v59, %v23527_v12  ;;  %v29993_v58 = vld [vmem:[#allocation23_spill] sm:$0xff] }
 0x24b   :  { %18848 = vmatprep.subr.bf16.mxu1 %v18847_v20  ;;  %v18873_v20 = vpack.c.bf16 %v23621_v52, %v23601_v21 }
 0x24c   :  { %v3190_v16 = vadd.f32 %v15100_v62, %v3086_v27  ;;  %5024 = vmatmul.mubr.f32.vlgmr.msra.gmra.mrb[30].mxu0 %v5023_v22  ;;  %v18867_v27 = vpack.c.bf16 %v23552_v51, %v23548_v30  ;;  %v29994_v22 = vld [vmem:[#allocation17_spill] sm:$0xff] }
 0x24d   :  { %18858 = vmatpush3.bf16.msra.mxu0 %v18857_v36  ;;  %5391 = vmatprep.mubr.f32.mxu0 %v23511_v23  ;;  %v18877_v63 = vpack.c.bf16 %v29994_v22, %v23641_v15  ;;  %v29995_v36 = vld [vmem:[#allocation18_spill] sm:$0xff]  ;;  %v29996_v23 = vld [vmem:[#allocation21_spill] sm:$0xff] }
 0x24e   :  { %18850 = vmatpush3.bf16.msra.mxu1 %v18849_v7  ;;  %18860 = vmatprep.subr.bf16.mxu0 %v18859_v53  ;;  %v29987_v7 = vld [vmem:[#allocation24_spill] sm:$0xff]  ;;  %v18879_v53 = vpack.c.bf16 %v23666_v50, %v29996_v23 }
 0x24f   :  { %18852 = vmatprep.subr.bf16.mxu1 %v18851_v55  ;;  %v18869_v49 = vpack.c.bf16 %v29988_v43, %v29987_v7 }
 0x251   :  { %18862 = vmatpush3.bf16.msra.mxu0 %v18861_v56 }
 0x252   :  { %18854 = vmatpush3.bf16.msra.mxu1 %v18853_v39  ;;  %18864 = vmatprep.subr.bf16.mxu0 %v18863_v48  ;;  %v18881_v39 = vpack.c.bf16 %v23702_v45, %v23695_v35  ;;  %v29998_v48 = vld [vmem:[#allocation28_spill] sm:$0xff] }
 0x253   :  { %18888 = vmatprep.subr.bf16.mxu1 %v23477_v41 }
 0x255   :  { %5256 = vmatmul.mubr.f32.vlgmr.msra.gmra.mrb[30].mxu1 %v23692_v19  ;;  %18866 = vmatpush3.bf16.msra.mxu0 %v18865_v28  ;;  %v18883_v28 = vpack.c.bf16 %v23711_v34, %v23708_v6 }
 0x256   :  { %18890 = vmatpush3.bf16.msra.mxu1 %v29989_v18  ;;  %18868 = vmatprep.subr.bf16.mxu0 %v18867_v27 }
 0x257   :  { %18892 = vmatprep.subr.bf16.mxu1 %v29990_v2  ;;  %5498 = vmatprep.mubr.f32.mxu1 %v29991_v0  ;;  %v30000_v0 = vld [vmem:[#allocation29_spill] sm:$0xff] }
 0x259   :  { %18870 = vmatpush3.bf16.msra.mxu0 %v18869_v49  ;;  %v29999_v49 = vld [vmem:[#allocation25_spill] sm:$0xff] }
 0x25a   :  { %18894 = vmatpush3.bf16.msra.mxu1 %v23499_v32  ;;  %18872 = vmatprep.subr.bf16.mxu0 %v18871_v40  ;;  %v18885_v40 = vpack.c.bf16 %v23735_v46, %v23732_v25 }
 0x25b   :  { %18896 = vmatprep.subr.bf16.mxu1 %v29993_v58 }
 0x25d   :  { %18874 = vmatpush3.bf16.msra.mxu0 %v18873_v20  ;;  %v30001_v20 = vand.u32 4294901760, %v23379_v29  ;;  %v30006_v29 = vand.u32 4294901760, %v23439_v4  ;;  %v30009_v4 = vand.u32 4294901760, %v23485_v5 }
 0x25e   :  { %18898 = vmatpush3.bf16.msra.mxu1 %v29995_v36  ;;  %18876 = vmatprep.subr.bf16.mxu0 %v18875_v1  ;;  %v30002_v1 = vand.u32 4294901760, %v23383_v17  ;;  %v30007_v17 = vand.u32 4294901760, %v23442_v61  ;;  %v30010_v61 = vld [vmem:[#allocation27_spill] sm:$0xff] }
 0x25f   :  { %v15133_v62 = vpop.f32.mrb[18].mxu0  ;;  %18900 = vmatprep.subr.bf16.mxu1 %v29997_v3 }
 0x260   :  { %v15134_v55 = vpop.f32.mrb[19].mxu0 }
 0x261   :  { %v15135_v56 = vadd.f32 %v15134_v55, %v15133_v62  ;;  %18878 = vmatpush3.bf16.msra.mxu0 %v18877_v63  ;;  %v18919_v63 = vpack.c.bf16 %v30002_v1, %v30001_v20  ;;  %v30003_v62 = vld [vmem:[#allocation19_spill] sm:$0xff]  ;;  %v18923_v20 = vpack.c.bf16 %v30007_v17, %v30006_v29  ;;  %v30016_v17 = vand.u32 4294901760, %v23552_v51 }
 0x262   :  { %18902 = vmatpush3.bf16.msra.mxu1 %v29998_v48  ;;  %18880 = vmatprep.subr.bf16.mxu0 %v18879_v53  ;;  %v23829_v53 = vld [vmem:[#allocation5 + $0x680] sm:$0xff]  ;;  %v30017_v51 = vand.u32 4294901760, %v29987_v7 }
 0x263   :  { %v3302_v27 = vadd.f32 %v15135_v56, %v3190_v16  ;;  %18904 = vmatprep.subr.bf16.mxu1 %v29999_v49  ;;  %v23831_v16 = vld [vmem:[#allocation5 + $0x688] sm:$0xff]  ;;  %v5828_v1 = vand.u32 4294901760, %v23829_v53 }
 0x265   :  { %18882 = vmatpush3.bf16.msra.mxu0 %v18881_v39  ;;  %v30004_v39 = vand.u32 4294901760, %v23407_v14  ;;  %v23848_v14 = vld [vmem:[#allocation5 + $0x600] sm:$0xff] }
 0x266   :  { %18906 = vmatpush3.bf16.msra.mxu1 %v30000_v0  ;;  %18884 = vmatprep.subr.bf16.mxu0 %v18883_v28  ;;  %v29109_v5 = vand.u32 4294901760, %v23848_v14 }
 0x267   :  { %18908 = vmatprep.subr.bf16.mxu1 %v30003_v62  ;;  %v18921_v44 = vpack.c.bf16 %v30005_v13, %v30004_v39  ;;  %v18925_v13 = vpack.c.bf16 %v30009_v4, %v30008_v10  ;;  %v23863_v39 = vsub.f32 %v23829_v53, %v5828_v1 }
 0x268   :  { %v15168_v55 = vpop.f32.mrb[18].mxu1 }
 0x269   :  { %v15169_v56 = vpop.f32.mrb[19].mxu1  ;;  %18886 = vmatpush3.bf16.msra.mxu0 %v18885_v40  ;;  %v5831_v40 = vand.u32 4294901760, %v23831_v16 }
 0x26a   :  { %v15170_v28 = vadd.f32 %v15169_v56, %v15168_v55  ;;  %18910 = vmatpush3.bf16.msra.mxu1 %v23639_v42  ;;  %18920 = vmatprep.subr.bf16.mxu0 %v18919_v63  ;;  %v23855_v63 = vld [vmem:[#allocation5 + $0x608] sm:$0xff]  ;;  %v30012_v55 = vand.u32 4294901760, %v23508_v33  ;;  %v30014_v33 = vand.u32 4294901760, %v23529_v59  ;;  %v283_v59 = vld [vmem:[#allocation5 + $0x618] sm:$0xff] }
 0x26b   :  { %18912 = vmatprep.subr.bf16.mxu1 %v23660_v24  ;;  %v23867_v60 = vsub.f32 %v23831_v16, %v5831_v40  ;;  %v5783_v29 = vand.u32 4294901760, %v23855_v63  ;;  %v30015_v16 = vand.u32 4294901760, %v23548_v30  ;;  %v30023_v30 = vand.u32 4294901760, %v23621_v52 }
 0x26c   :  { %v23845_v11 = vadd.f32 %v15170_v28, %v3302_v27  ;;  %5394 = vmatmul.mubr.f32.vlgmr.msra.gmra.mrb[32].mxu0 %v23715_v38  ;;  %v30011_v27 = vand.u32 4294901760, %v23506_v31  ;;  %v23872_v28 = vld [vmem:[#allocation5 + $0x698] sm:$0xff]  ;;  %v30013_v31 = vand.u32 4294901760, %v23527_v12  ;;  %v23891_v12 = vsub.f32 %v23848_v14, %v29109_v5 }
 0x26d   :  { %18922 = vmatpush3.bf16.msra.mxu0 %v18921_v44  ;;  %5668 = vmatprep.mubr.f32.mxu0 %v30010_v61  ;;  %v23870_v44 = vld [vmem:[#allocation5 + $0x690] sm:$0xff]  ;;  %v5837_v4 = vand.u32 4294901760, %v23872_v28  ;;  %v30022_v5 = vand.u32 4294901760, %v23601_v21 }
 0x26e   :  { %18914 = vmatpush3.bf16.msra.mxu1 %v23718_v37  ;;  %18924 = vmatprep.subr.bf16.mxu0 %v18923_v20  ;;  %v18927_v56 = vpack.c.bf16 %v30012_v55, %v30011_v27  ;;  %v18929_v53 = vpack.c.bf16 %v30014_v33, %v30013_v31  ;;  %v18931_v20 = vpack.c.bf16 %v30016_v17, %v30015_v16  ;;  %v5834_v10 = vand.u32 4294901760, %v23870_v44  ;;  %v282_v27 = vld [vmem:[#allocation5 + $0x610] sm:$0xff] }
 0x26f   :  { %18916 = vmatprep.subr.bf16.mxu1 %v23744_v54  ;;  %v30018_v55 = vand.u32 4294901760, %v29988_v43  ;;  %v30019_v31 = vand.u32 4294901760, %v23575_v47  ;;  %v30020_v33 = vand.u32 4294901760, %v23596_v9  ;;  %v30021_v17 = vand.u32 4294901760, %v23715_v38  ;;  %v300_v38 = vld [vmem:[#allocation5 + $0x6a0] sm:$0xff] }
 0x270   :  { %v18937_v7 = vpack.c.bf16 %v30023_v30, %v30022_v5  ;;  %v30024_v43 = vand.u32 4294901760, %v23628_v57  ;;  %v30026_v9 = vand.u32 4294901760, %v23641_v15  ;;  %v23923_v21 = vsub.f32 %v23870_v44, %v5834_v10 }
 0x271   :  { %18926 = vmatpush3.bf16.msra.mxu0 %v18925_v13  ;;  %v29114_v13 = vand.u32 4294901760, %v23863_v39  ;;  %v18935_v16 = vpack.c.bf16 %v30020_v33, %v30019_v31  ;;  %v5786_v31 = vand.u32 4294901760, %v282_v27  ;;  %v23926_v52 = vsub.f32 %v23872_v28, %v5837_v4 }
 0x272   :  { %18918 = vmatpush3.bf16.msra.mxu1 %v23768_v26  ;;  %18928 = vmatprep.subr.bf16.mxu0 %v18927_v56  ;;  %v18933_v56 = vpack.c.bf16 %v30018_v55, %v30017_v51  ;;  %v30025_v51 = vand.u32 4294901760, %v29992_v8  ;;  %v30027_v55 = vand.u32 4294901760, %v29994_v22  ;;  %v5789_v57 = vand.u32 4294901760, %v283_v59  ;;  %v301_v8 = vld [vmem:[#allocation5 + $0x6a8] sm:$0xff] }
 0x273   :  { %18952 = vmatprep.subr.bf16.mxu1 %v23477_v41  ;;  %v23903_v41 = vsub.f32 %v23855_v63, %v5783_v29  ;;  %v6007_v15 = vsub.f32 %v23863_v39, %v29114_v13  ;;  %v69_v22 = vld [vmem:[#allocation2 + $0x68] sm:$0xff]  ;;  %v30028_v5 = vand.u32 4294901760, %v29996_v23  ;;  %v30030_v44 = vand.u32 4294901760, %v23695_v35 }
 0x274   :  { %v18939_v47 = vpack.c.bf16 %v30025_v51, %v30024_v43  ;;  %v23919_v63 = vpack.c.bf16 %v30027_v55, %v30026_v9  ;;  %v30031_v28 = vand.u32 4294901760, %v23702_v45  ;;  %v30032_v30 = vand.u32 4294901760, %v23867_v60  ;;  %v285_v9 = vld [vmem:[#allocation5 + $0x628] sm:$0xff] }
 0x275   :  { %5502 = vmatmul.mubr.f32.vlgmr.msra.gmra.mrb[32].mxu1 %v30021_v17  ;;  %18930 = vmatpush3.bf16.msra.mxu0 %v18929_v53  ;;  %v30033_v23 = vand.u32 4294901760, %v23708_v6  ;;  %v30035_v35 = vand.u32 4294901760, %v23732_v25  ;;  %v30036_v45 = vand.u32 4294901760, %v23735_v46  ;;  %v23961_v51 = vpack.c.bf16 %v5831_v40, %v5828_v1 }
 0x276   :  { %18954 = vmatpush3.bf16.msra.mxu1 %v29989_v18  ;;  %18932 = vmatprep.subr.bf16.mxu0 %v18931_v20  ;;  %v30029_v18 = vand.u32 4294901760, %v23666_v50  ;;  %v23942_v20 = vpack.c.bf16 %v30031_v28, %v30030_v44  ;;  %v6014_v33 = vsub.f32 %v23867_v60, %v30032_v30  ;;  %v30034_v50 = vand.u32 4294901760, %v23711_v34 }
 0x277   :  { %18956 = vmatprep.subr.bf16.mxu1 %v29990_v2  ;;  %5772 = vmatprep.mubr.f32.mxu1 %v30010_v61  ;;  %v29113_v2 = vand.u32 4294901760, %v23891_v12  ;;  %v23959_v43 = vpack.c.bf16 %v30036_v45, %v30035_v35  ;;  %v284_v61 = vld [vmem:[#allocation5 + $0x620] sm:$0xff]  ;;  %v29112_v55 = vand.u32 4294901760, %v23903_v41  ;;  %v5840_v6 = vand.u32 4294901760, %v300_v38  ;;  %v303_v35 = vld [vmem:[#allocation5 + $0x6b8] sm:$0xff] }
 0x278   :  { %v23936_v53 = vpack.c.bf16 %v30029_v18, %v30028_v5  ;;  %v23953_v17 = vpack.c.bf16 %v30034_v50, %v30033_v23  ;;  %v23964_v5 = vsub.f32 %v282_v27, %v5786_v31  ;;  %v5843_v18 = vand.u32 4294901760, %v301_v8  ;;  %v302_v50 = vld [vmem:[#allocation5 + $0x6b0] sm:$0xff] }
 0x279   :  { %18934 = vmatpush3.bf16.msra.mxu0 %v18933_v56  ;;  %v23966_v34 = vand.u32 4294901760, %v69_v22  ;;  %v23969_v25 = vsub.f32 %v283_v59, %v5789_v57  ;;  %v6008_v46 = vand.u32 4294901760, %v6007_v15  ;;  %v29111_v1 = vand.u32 4294901760, %v23923_v21 }
 0x27a   :  { %18958 = vmatpush3.bf16.msra.mxu1 %v23499_v32  ;;  %18936 = vmatprep.subr.bf16.mxu0 %v18935_v16  ;;  %v29110_v40 = vand.u32 4294901760, %v23926_v52  ;;  %v6015_v44 = vand.u32 4294901760, %v6014_v33  ;;  %v5792_v56 = vand.u32 4294901760, %v284_v61  ;;  %v5795_v27 = vand.u32 4294901760, %v285_v9 }
 0x27b   :  { %30037 = vst [vmem:[#allocation24_spill] sm:$0xff] %v23966_v34  ;;  %18960 = vmatprep.subr.bf16.mxu1 %v29993_v58  ;;  %v5895_v28 = vsub.f32 %v23891_v12, %v29113_v2  ;;  %v30038_v30 = vand.u32 4294901760, %v23848_v14  ;;  %v23981_v59 = vpack.c.bf16 %v5837_v4, %v5834_v10  ;;  %v23983_v16 = vpack.c.bf16 %v5789_v57, %v5786_v31  ;;  %v286_v4 = vld [vmem:[#allocation5 + $0x630] sm:$0xff] }
 0x27c   :  { %v5902_v15 = vsub.f32 %v23903_v41, %v29112_v55  ;;  %v23988_v58 = vpack.c.bf16 %v5843_v18, %v5840_v6  ;;  %v23990_v33 = vsub.f32 %v300_v38, %v5840_v6  ;;  %v23992_v23 = vsub.f32 %v301_v8, %v5843_v18  ;;  %v305_v55 = vld [vmem:[#allocation5 + $0x6c8] sm:$0xff] }
 0x27d   :  { %v23979_v32 = vpack.c.bf16 %v5783_v29, %v30038_v30  ;;  %30040 = vst [vmem:[#allocation30_spill] sm:$0xff] %v23981_v59  ;;  %18938 = vmatpush3.bf16.msra.mxu0 %v18937_v7  ;;  %v23995_v14 = vsub.f32 %v69_v22, %v23966_v34  ;;  %v6021_v29 = vsub.f32 %v23923_v21, %v29111_v1  ;;  %v287_v7 = vld [vmem:[#allocation5 + $0x638] sm:$0xff]  ;;  %v29116_v31 = vand.u32 4294901760, %v23964_v5  ;;  %v304_v1 = vld [vmem:[#allocation5 + $0x6c0] sm:$0xff] }
 0x27e   :  { %30041 = vst [vmem:[#allocation22_spill] sm:$0xff] %v23988_v58  ;;  %18962 = vmatpush3.bf16.msra.mxu1 %v29995_v36  ;;  %18940 = vmatprep.subr.bf16.mxu0 %v18939_v47  ;;  %v6028_v10 = vsub.f32 %v23926_v52, %v29110_v40  ;;  %v29115_v57 = vand.u32 4294901760, %v23969_v25  ;;  %v24007_v8 = vpack.c.bf16 %v6015_v44, %v6008_v46  ;;  %v5896_v22 = vand.u32 4294901760, %v5895_v28 }
 0x27f   :  { %30039 = vst [vmem:[#allocation16_spill] sm:$0xff] %v23979_v32  ;;  %v15203_v38 = vpop.f32.mrb[20].mxu0  ;;  %18964 = vmatprep.subr.bf16.mxu1 %v29997_v3  ;;  %v24009_v36 = vpack.c.bf16 %v5795_v27, %v5792_v56  ;;  %v24011_v47 = vsub.f32 %v284_v61, %v5792_v56  ;;  %v24013_v6 = vsub.f32 %v285_v9, %v5795_v27  ;;  %v5903_v18 = vand.u32 4294901760, %v5902_v15 }
 0x280   :  { %v15204_v45 = vpop.f32.mrb[21].mxu0  ;;  %v5846_v30 = vand.u32 4294901760, %v302_v50  ;;  %v5849_v40 = vand.u32 4294901760, %v303_v35  ;;  %v5798_v13 = vand.u32 4294901760, %v286_v4  ;;  %v5801_v3 = vand.u32 4294901760, %v287_v7 }
 0x281   :  { %30042 = vst [vmem:[#allocation20_spill] sm:$0xff] %v24009_v36  ;;  %v15205_v2 = vadd.f32 %v15204_v45, %v15203_v38  ;;  %18942 = vmatpush3.bf16.msra.mxu0 %v23919_v63  ;;  %v29120_v46 = vand.u32 4294901760, %v23995_v14  ;;  %v6022_v61 = vand.u32 4294901760, %v6021_v29  ;;  %v6029_v44 = vand.u32 4294901760, %v6028_v10 }
 0x282   :  { %18966 = vmatpush3.bf16.msra.mxu1 %v29998_v48  ;;  %18944 = vmatprep.subr.bf16.mxu0 %v23936_v53  ;;  %v5909_v9 = vsub.f32 %v23964_v5, %v29116_v31  ;;  %v5916_v56 = vsub.f32 %v23969_v25, %v29115_v57  ;;  %v5852_v27 = vand.u32 4294901760, %v304_v1  ;;  %v5855_v28 = vand.u32 4294901760, %v305_v55 }
 0x283   :  { %v3672_v63 = vadd.f32 %v15205_v2, %v23845_v11  ;;  %18968 = vmatprep.subr.bf16.mxu1 %v29999_v49  ;;  %v29118_v48 = vand.u32 4294901760, %v23990_v33  ;;  %v24028_v15 = vpack.c.bf16 %v5903_v18, %v5896_v22  ;;  %v24030_v53 = vpack.c.bf16 %v5849_v40, %v5846_v30  ;;  %v288_v11 = vld [vmem:[#allocation5 + $0x640] sm:$0xff]  ;;  %v289_v49 = vld [vmem:[#allocation5 + $0x648] sm:$0xff] }
 0x284   :  { %v24032_v29 = vsub.f32 %v302_v50, %v5846_v30  ;;  %v29117_v10 = vand.u32 4294901760, %v23992_v23  ;;  %v24036_v38 = vsub.f32 %v303_v35, %v5849_v40  ;;  %v24038_v45 = vpack.c.bf16 %v5801_v3, %v5798_v13 }
 0x285   :  { %30043 = vst [vmem:[#allocation23_spill] sm:$0xff] %v24030_v53  ;;  %18946 = vmatpush3.bf16.msra.mxu0 %v23942_v20  ;;  %v29119_v2 = vand.u32 4294901760, %v24011_v47  ;;  %v5878_v22 = vsub.f32 %v23995_v14, %v29120_v46  ;;  %v24046_v50 = vsub.f32 %v286_v4, %v5798_v13  ;;  %v24048_v18 = vsub.f32 %v287_v7, %v5801_v3  ;;  %v306_v3 = vld [vmem:[#allocation5 + $0x6d0] sm:$0xff] }
 0x286   :  { %30044 = vst [vmem:[#allocation17_spill] sm:$0xff] %v24038_v45  ;;  %18970 = vmatpush3.bf16.msra.mxu1 %v30000_v0  ;;  %18948 = vmatprep.subr.bf16.mxu0 %v23953_v17  ;;  %v5910_v20 = vand.u32 4294901760, %v5909_v9  ;;  %v29121_v40 = vand.u32 4294901760, %v24013_v6  ;;  %v24052_v35 = vpack.c.bf16 %v6029_v44, %v6022_v61  ;;  %v5917_v30 = vand.u32 4294901760, %v5916_v56  ;;  %v307_v44 = vld [vmem:[#allocation5 + $0x6d8] sm:$0xff]  ;;  %v290_v9 = vld [vmem:[#allocation5 + $0x650] sm:$0xff] }
 0x287   :  { %30045 = vst [vmem:[#allocation18_spill] sm:$0xff] %v24046_v50  ;;  %30046 = vst [vmem:[#allocation21_spill] sm:$0xff] %v24048_v18  ;;  %18972 = vmatprep.subr.bf16.mxu1 %v30003_v62  ;;  %v24054_v57 = vpack.c.bf16 %v5855_v28, %v5852_v27  ;;  %v6035_v0 = vsub.f32 %v23990_v33, %v29118_v48  ;;  %v24059_v17 = vsub.f32 %v304_v1, %v5852_v27 }
 0x288   :  { %v15238_v31 = vpop.f32.mrb[20].mxu1  ;;  %v6042_v13 = vsub.f32 %v23992_v23, %v29117_v10  ;;  %v5804_v4 = vand.u32 4294901760, %v288_v11  ;;  %v5807_v7 = vand.u32 4294901760, %v289_v49  ;;  %v5923_v61 = vsub.f32 %v24011_v47, %v29119_v2 }
 0x289   :  { %30047 = vst [vmem:[#allocation26_spill] sm:$0xff] %v24054_v57  ;;  %v15239_v62 = vpop.f32.mrb[21].mxu1  ;;  %18950 = vmatpush3.bf16.msra.mxu0 %v23959_v43  ;;  %v5879_v56 = vand.u32 4294901760, %v5878_v22  ;;  %v5930_v10 = vsub.f32 %v24013_v6, %v29121_v40  ;;  %v24078_v2 = vpack.c.bf16 %v5917_v30, %v5910_v20  ;;  %v24080_v46 = vsub.f32 %v305_v55, %v5855_v28  ;;  %v291_v43 = vld [vmem:[#allocation5 + $0x658] sm:$0xff] }
 0x28a   :  { %v15240_v27 = vadd.f32 %v15239_v62, %v15238_v31  ;;  %18974 = vmatpush3.bf16.msra.mxu1 %v23639_v42  ;;  %18984 = vmatprep.subr.bf16.mxu0 %v23961_v51  ;;  %v6036_v22 = vand.u32 4294901760, %v6035_v0  ;;  %v5858_v31 = vand.u32 4294901760, %v306_v3  ;;  %v6043_v42 = vand.u32 4294901760, %v6042_v13 }
 0x28b   :  { %18976 = vmatprep.subr.bf16.mxu1 %v23660_v24  ;;  %v24085_v1 = vsub.f32 %v288_v11, %v5804_v4  ;;  %v5861_v40 = vand.u32 4294901760, %v307_v44  ;;  %v24088_v48 = vpack.c.bf16 %v5807_v7, %v5804_v4  ;;  %v30049_v24 = vand.u32 4294901760, %v24032_v29 }
 0x28c   :  { %v24082_v62 = vadd.f32 %v15240_v27, %v3672_v63  ;;  %5670 = vmatmul.mubr.f32.vlgmr.msra.gmra.mrb[34].mxu0 %v23692_v19  ;;  %v30050_v28 = vand.u32 4294901760, %v24036_v38  ;;  %v5924_v11 = vand.u32 4294901760, %v5923_v61  ;;  %v5931_v20 = vand.u32 4294901760, %v5930_v10  ;;  %v308_v27 = vld [vmem:[#allocation5 + $0x6e0] sm:$0xff] }
 0x28d   :  { %18986 = vmatpush3.bf16.msra.mxu0 %v23979_v32  ;;  %30048 = vst [vmem:[#allocation28_spill] sm:$0xff] %v24088_v48  ;;  %v6049_v55 = vsub.f32 %v24032_v29, %v30049_v24  ;;  %5880 = vmatprep.mubr.f32.mxu0 %v5879_v56  ;;  %v30051_v30 = vand.u32 4294901760, %v24046_v50  ;;  %v30052_v13 = vand.u32 4294901760, %v24048_v18  ;;  %v309_v24 = vld [vmem:[#allocation5 + $0x6e8] sm:$0xff]  ;;  %v5810_v56 = vand.u32 4294901760, %v290_v9 }
 0x28e   :  { %v6056_v63 = vsub.f32 %v24036_v38, %v30050_v28  ;;  %18978 = vmatpush3.bf16.msra.mxu1 %v23718_v37  ;;  %18988 = vmatprep.subr.bf16.mxu0 %v23981_v59  ;;  %v24105_v28 = vsub.f32 %v289_v49, %v5807_v7  ;;  %v5813_v37 = vand.u32 4294901760, %v291_v43  ;;  %v29130_v59 = vand.u32 4294901760, %v24059_v17 }
 0x28f   :  { %v5937_v0 = vsub.f32 %v24046_v50, %v30051_v30  ;;  %v5944_v4 = vsub.f32 %v24048_v18, %v30052_v13  ;;  %18980 = vmatprep.subr.bf16.mxu1 %v23744_v54  ;;  %v24108_v61 = vpack.c.bf16 %v6043_v42, %v6036_v22  ;;  %v24110_v10 = vpack.c.bf16 %v5861_v40, %v5858_v31 }
 0x290   :  { %v24112_v32 = vsub.f32 %v306_v3, %v5858_v31  ;;  %v24114_v30 = vsub.f32 %v307_v44, %v5861_v40  ;;  %v6050_v13 = vand.u32 4294901760, %v6049_v55  ;;  %v6057_v18 = vand.u32 4294901760, %v6056_v63  ;;  %v292_v3 = vld [vmem:[#allocation5 + $0x660] sm:$0xff] }
 0x291   :  { %30053 = vst [vmem:[#allocation25_spill] sm:$0xff] %v24110_v10  ;;  %18990 = vmatpush3.bf16.msra.mxu0 %v23983_v16  ;;  %v5864_v50 = vand.u32 4294901760, %v308_v27  ;;  %v5867_v54 = vand.u32 4294901760, %v309_v24  ;;  %v24119_v49 = vpack.c.bf16 %v5931_v20, %v5924_v11  ;;  %v5938_v7 = vand.u32 4294901760, %v5937_v0  ;;  %v24136_v20 = vld [vmem:[#allocation5 + $0x6f0] sm:$0xff]  ;;  %v24138_v0 = vld [vmem:[#allocation5 + $0x6f8] sm:$0xff] }
 0x292   :  { %30054 = vst [vmem:[#allocation29_spill] sm:$0xff] %v24114_v30  ;;  %18982 = vmatpush3.bf16.msra.mxu1 %v23768_v26  ;;  %18992 = vmatprep.subr.bf16.mxu0 %v23988_v58  ;;  %v5945_v22 = vand.u32 4294901760, %v5944_v4  ;;  %v29131_v42 = vand.u32 4294901760, %v24080_v46  ;;  %v24123_v40 = vpack.c.bf16 %v5813_v37, %v5810_v56  ;;  %v24125_v44 = vsub.f32 %v290_v9, %v5810_v56  ;;  %v293_v26 = vld [vmem:[#allocation5 + $0x668] sm:$0xff] }
 0x293   :  { %19016 = vmatprep.subr.bf16.mxu1 %v24007_v8  ;;  %v24130_v31 = vsub.f32 %v24059_v17, %v29130_v59  ;;  %v24133_v63 = vsub.f32 %v291_v43, %v5813_v37  ;;  %v29138_v8 = vand.u32 4294901760, %v24112_v32  ;;  %v19027_v4 = vpack.c.bf16 %v6057_v18, %v6050_v13  ;;  %v68_v37 = vld [vmem:[#allocation2 + $0x60] sm:$0xff] }
 0x294   :  { %v24144_v56 = vpack.c.bf16 %v5867_v54, %v5864_v50  ;;  %v24146_v59 = vsub.f32 %v308_v27, %v5864_v50  ;;  %v5816_v43 = vand.u32 4294901760, %v292_v3  ;;  %v19029_v11 = vpack.c.bf16 %v5945_v22, %v5938_v7  ;;  %v24162_v7 = vld [vmem:[#allocation5 + $0x670] sm:$0xff] }
 0x295   :  { %30055 = vst [vmem:[#allocation19_spill] sm:$0xff] %v24133_v63  ;;  %5774 = vmatmul.mubr.f32.vlgmr.msra.gmra.mrb[34].mxu1 %v23692_v19  ;;  %18994 = vmatpush3.bf16.msra.mxu0 %v24009_v36  ;;  %v24150_v55 = vsub.f32 %v309_v24, %v5867_v54  ;;  %v6070_v19 = vsub.f32 %v24080_v46, %v29131_v42  ;;  %v5819_v9 = vand.u32 4294901760, %v293_v26  ;;  %v6064_v18 = vand.u32 4294901760, %v24130_v31  ;;  %v24164_v24 = vld [vmem:[#allocation5 + $0x678] sm:$0xff] }
 0x296   :  { %30056 = vst [vmem:[#allocation27_spill] sm:$0xff] %v24146_v59  ;;  %19018 = vmatpush3.bf16.msra.mxu1 %v24028_v15  ;;  %18996 = vmatprep.subr.bf16.mxu0 %v24030_v53  ;;  %v30057_v50 = vand.u32 4294901760, %v24085_v1  ;;  %v5870_v15 = vand.u32 4294901760, %v24136_v20  ;;  %v5873_v13 = vand.u32 4294901760, %v24138_v0  ;;  %v30058_v54 = vand.u32 4294901760, %v24105_v28 }
 0x297   :  { %19020 = vmatprep.subr.bf16.mxu1 %v24052_v35  ;;  %6116 = vmatprep.mubr.f32.mxu1 %v23966_v34  ;;  %v6077_v22 = vsub.f32 %v24112_v32, %v29138_v8  ;;  %v30059_v31 = vand.u32 4294901760, %v24114_v30  ;;  %v24176_v42 = vand.u32 4294901760, %v68_v37  ;;  %v24179_v53 = vsub.f32 %v292_v3, %v5816_v43 }
 0x298   :  { %v5951_v27 = vsub.f32 %v24085_v1, %v30057_v50  ;;  %v5958_v35 = vsub.f32 %v24105_v28, %v30058_v54  ;;  %v6071_v8 = vand.u32 4294901760, %v6070_v19  ;;  %v24186_v58 = vsub.f32 %v293_v26, %v5819_v9 }
 0x299   :  { %v6084_v50 = vsub.f32 %v24114_v30, %v30059_v31  ;;  %18998 = vmatpush3.bf16.msra.mxu0 %v24038_v45  ;;  %v5822_v31 = vand.u32 4294901760, %v24162_v7  ;;  %v5825_v30 = vand.u32 4294901760, %v24164_v24  ;;  %v24192_v34 = vsub.f32 %v24136_v20, %v5870_v15 }
 0x29a   :  { %19022 = vmatpush3.bf16.msra.mxu1 %v24078_v2  ;;  %19000 = vmatprep.subr.bf16.mxu0 %v24054_v57  ;;  %v5952_v3 = vand.u32 4294901760, %v5951_v27  ;;  %v24195_v36 = vsub.f32 %v24138_v0, %v5873_v13  ;;  %v5959_v54 = vand.u32 4294901760, %v5958_v35  ;;  %v6078_v57 = vand.u32 4294901760, %v6077_v22 }
 0x29b   :  { %19024 = vmatprep.subr.bf16.mxu1 %v24108_v61  ;;  %v6085_v19 = vand.u32 4294901760, %v6084_v50  ;;  %v24199_v26 = vsub.f32 %v68_v37, %v24176_v42  ;;  %v24202_v45 = vpack.c.bf16 %v5819_v9, %v5816_v43  ;;  %v30060_v61 = vand.u32 4294901760, %v24125_v44 }
 0x29c   :  { %v30061_v27 = vand.u32 4294901760, %v24133_v63  ;;  %v30062_v2 = vand.u32 4294901760, %v24146_v59  ;;  %v24216_v37 = vsub.f32 %v24162_v7, %v5822_v31  ;;  %v24219_v9 = vsub.f32 %v24164_v24, %v5825_v30 }
 0x29d   :  { %19002 = vmatpush3.bf16.msra.mxu0 %v24088_v48  ;;  %v5965_v20 = vsub.f32 %v24125_v44, %v30060_v61  ;;  %v29158_v22 = vand.u32 4294901760, %v24186_v58  ;;  %v19031_v61 = vpack.c.bf16 %v6071_v8, %v6064_v18  ;;  %v19033_v48 = vpack.c.bf16 %v5959_v54, %v5952_v3 }
 0x29e   :  { %v5972_v0 = vsub.f32 %v24133_v63, %v30061_v27  ;;  %v6091_v35 = vsub.f32 %v24146_v59, %v30062_v2  ;;  %19026 = vmatpush3.bf16.msra.mxu1 %v24119_v49  ;;  %19004 = vmatprep.subr.bf16.mxu0 %v24110_v10  ;;  %v30063_v27 = vand.u32 4294901760, %v24150_v55  ;;  %v29157_v49 = vand.u32 4294901760, %v24192_v34 }
 0x29f   :  { %v15273_v50 = vpop.f32.mrb[22].mxu0  ;;  %19028 = vmatprep.subr.bf16.mxu1 %v19027_v4  ;;  %v24228_v59 = vpack.c.bf16 %v5873_v13, %v5870_v15  ;;  %v19035_v24 = vpack.c.bf16 %v6085_v19, %v6078_v57  ;;  %v29159_v43 = vand.u32 4294901760, %v24199_v26  ;;  %v5966_v4 = vand.u32 4294901760, %v5965_v20 }
 0x2a0   :  { %v6098_v2 = vsub.f32 %v24150_v55, %v30063_v27  ;;  %v15274_v7 = vpop.f32.mrb[23].mxu0  ;;  %v5973_v8 = vand.u32 4294901760, %v5972_v0  ;;  %v6092_v18 = vand.u32 4294901760, %v6091_v35  ;;  %v30064_v27 = vand.u32 4294901760, %v24179_v53 }
 0x2a1   :  { %v15275_v63 = vadd.f32 %v15274_v7, %v15273_v50  ;;  %19006 = vmatpush3.bf16.msra.mxu0 %v24123_v40  ;;  %v5986_v15 = vsub.f32 %v24186_v58, %v29158_v22  ;;  %v29155_v57 = vand.u32 4294901760, %v24216_v37  ;;  %v29156_v13 = vand.u32 4294901760, %v24219_v9 }
 0x2a2   :  { %19030 = vmatpush3.bf16.msra.mxu1 %v19029_v11  ;;  %19008 = vmatprep.subr.bf16.mxu0 %v24144_v56  ;;  %v5979_v10 = vsub.f32 %v24179_v53, %v30064_v27  ;;  %v6099_v3 = vand.u32 4294901760, %v6098_v2  ;;  %v6105_v11 = vsub.f32 %v24192_v34, %v29157_v49  ;;  %v30065_v19 = vand.u32 4294901760, %v24195_v36 }
 0x2a3   :  { %v3948_v54 = vadd.f32 %v15275_v63, %v24082_v62  ;;  %19032 = vmatprep.subr.bf16.mxu1 %v19031_v61  ;;  %v5884_v0 = vsub.f32 %v24199_v26, %v29159_v43  ;;  %v24252_v35 = vpack.c.bf16 %v5825_v30, %v5822_v31  ;;  %v19037_v50 = vpack.c.bf16 %v5973_v8, %v5966_v4 }
 0x2a4   :  { %v6112_v20 = vsub.f32 %v24195_v36, %v30065_v19  ;;  %v19047_v62 = vpack.c.bf16 %v23867_v60, %v23863_v39  ;;  %v5980_v63 = vand.u32 4294901760, %v5979_v10  ;;  %v5987_v61 = vand.u32 4294901760, %v5986_v15 }
 0x2a5   :  { %19010 = vmatpush3.bf16.msra.mxu0 %v24202_v45  ;;  %v5993_v2 = vsub.f32 %v24216_v37, %v29155_v57  ;;  %v6000_v7 = vsub.f32 %v24219_v9, %v29156_v13  ;;  %v19039_v30 = vpack.c.bf16 %v6099_v3, %v6092_v18  ;;  %v6106_v31 = vand.u32 4294901760, %v6105_v11 }
 0x2a6   :  { %19034 = vmatpush3.bf16.msra.mxu1 %v19033_v48  ;;  %19012 = vmatprep.subr.bf16.mxu0 %v24228_v59  ;;  %v6113_v4 = vand.u32 4294901760, %v6112_v20  ;;  %v5885_v27 = vand.u32 4294901760, %v5884_v0  ;;  %v19049_v48 = vpack.c.bf16 %v23903_v41, %v23891_v12  ;;  %v19051_v10 = vpack.c.bf16 %v23926_v52, %v23923_v21 }
 0x2a7   :  { %19036 = vmatprep.subr.bf16.mxu1 %v19035_v24  ;;  %v19041_v57 = vpack.c.bf16 %v5987_v61, %v5980_v63  ;;  %v5994_v13 = vand.u32 4294901760, %v5993_v2  ;;  %v6001_v24 = vand.u32 4294901760, %v6000_v7  ;;  %v19053_v11 = vpack.c.bf16 %v23969_v25, %v23964_v5  ;;  %v30068_v63 = vld [vmem:[#allocation16_spill] sm:$0xff]  ;;  %v30069_v2 = vld [vmem:[#allocation30_spill] sm:$0xff] }
 0x2a8   :  { %v15308_v8 = vpop.f32.mrb[22].mxu1  ;;  %v19043_v18 = vpack.c.bf16 %v6113_v4, %v6106_v31  ;;  %v19055_v0 = vpack.c.bf16 %v23992_v23, %v23990_v33  ;;  %v19063_v61 = vpack.c.bf16 %v24080_v46, %v24059_v17  ;;  %v30070_v7 = vand.u32 4294901760, %v23995_v14  ;;  %v30071_v31 = vld [vmem:[#allocation29_spill] sm:$0xff] }
 0x2a9   :  { %v15309_v19 = vpop.f32.mrb[23].mxu1  ;;  %19014 = vmatpush3.bf16.msra.mxu0 %v24252_v35  ;;  %v19045_v20 = vpack.c.bf16 %v6001_v24, %v5994_v13  ;;  %v30067_v13 = vld [vmem:[#allocation21_spill] sm:$0xff]  ;;  %v19067_v4 = vpack.c.bf16 %v30071_v31, %v24112_v32  ;;  %v30076_v24 = vld [vmem:[#allocation23_spill] sm:$0xff]  ;;  %v30084_v49 = vand.u32 4294901760, %v23903_v41  ;;  %v30087_v41 = vand.u32 4294901760, %v23964_v5 }
 0x2aa   :  { %v15310_v15 = vadd.f32 %v15309_v19, %v15308_v8  ;;  %19038 = vmatpush3.bf16.msra.mxu1 %v19037_v50  ;;  %19048 = vmatprep.subr.bf16.mxu0 %v19047_v62  ;;  %v19057_v50 = vpack.c.bf16 %v24013_v6, %v24011_v47  ;;  %v30072_v8 = vld [vmem:[#allocation22_spill] sm:$0xff] }
 0x2ab   :  { %19040 = vmatprep.subr.bf16.mxu1 %v19039_v30  ;;  %v19065_v30 = vpack.c.bf16 %v24105_v28, %v24085_v1 }
 0x2ac   :  { %v4052_v3 = vadd.f32 %v15310_v15, %v3948_v54  ;;  %5886 = vmatmul.mubr.f32.vlgmr.msra.gmra.mrb[36].mxu0 %v5885_v27  ;;  %v19059_v54 = vpack.c.bf16 %v24036_v38, %v24032_v29  ;;  %v30073_v27 = vld [vmem:[#allocation19_spill] sm:$0xff] }
 0x2ad   :  { %19050 = vmatpush3.bf16.msra.mxu0 %v19049_v48  ;;  %6253 = vmatprep.mubr.f32.mxu0 %v23995_v14  ;;  %v19069_v19 = vpack.c.bf16 %v30073_v27, %v24125_v44  ;;  %v30074_v48 = vld [vmem:[#allocation20_spill] sm:$0xff]  ;;  %v30075_v14 = vld [vmem:[#allocation27_spill] sm:$0xff] }
 0x2ae   :  { %19042 = vmatpush3.bf16.msra.mxu1 %v19041_v57  ;;  %19052 = vmatprep.subr.bf16.mxu0 %v19051_v10  ;;  %v30066_v57 = vld [vmem:[#allocation18_spill] sm:$0xff]  ;;  %v19071_v10 = vpack.c.bf16 %v24150_v55, %v30075_v14 }
 0x2af   :  { %19044 = vmatprep.subr.bf16.mxu1 %v19043_v18  ;;  %v19061_v62 = vpack.c.bf16 %v30067_v13, %v30066_v57 }
 0x2b1   :  { %19054 = vmatpush3.bf16.msra.mxu0 %v19053_v11 }
 0x2b2   :  { %19046 = vmatpush3.bf16.msra.mxu1 %v19045_v20  ;;  %19056 = vmatprep.subr.bf16.mxu0 %v19055_v0  ;;  %v19073_v20 = vpack.c.bf16 %v24186_v58, %v24179_v53  ;;  %v30077_v0 = vld [vmem:[#allocation17_spill] sm:$0xff] }
 0x2b3   :  { %19080 = vmatprep.subr.bf16.mxu1 %v23961_v51 }
 0x2b5   :  { %6118 = vmatmul.mubr.f32.vlgmr.msra.gmra.mrb[36].mxu1 %v24176_v42  ;;  %19058 = vmatpush3.bf16.msra.mxu0 %v19057_v50  ;;  %v19075_v50 = vpack.c.bf16 %v24195_v36, %v24192_v34 }
 0x2b6   :  { %19082 = vmatpush3.bf16.msra.mxu1 %v30068_v63  ;;  %19060 = vmatprep.subr.bf16.mxu0 %v19059_v54 }
 0x2b7   :  { %19084 = vmatprep.subr.bf16.mxu1 %v30069_v2  ;;  %6360 = vmatprep.mubr.f32.mxu1 %v30070_v7  ;;  %v30079_v7 = vld [vmem:[#allocation28_spill] sm:$0xff] }
 0x2b9   :  { %19062 = vmatpush3.bf16.msra.mxu0 %v19061_v62  ;;  %v30078_v62 = vld [vmem:[#allocation26_spill] sm:$0xff] }
 0x2ba   :  { %19086 = vmatpush3.bf16.msra.mxu1 %v23983_v16  ;;  %19064 = vmatprep.subr.bf16.mxu0 %v19063_v61  ;;  %v19077_v61 = vpack.c.bf16 %v24219_v9, %v24216_v37 }
 0x2bb   :  { %19088 = vmatprep.subr.bf16.mxu1 %v30072_v8 }
 0x2bd   :  { %19066 = vmatpush3.bf16.msra.mxu0 %v19065_v30  ;;  %v30080_v30 = vand.u32 4294901760, %v23863_v39  ;;  %v30085_v39 = vand.u32 4294901760, %v23923_v21  ;;  %v30088_v21 = vand.u32 4294901760, %v23969_v25 }
 0x2be   :  { %19090 = vmatpush3.bf16.msra.mxu1 %v30074_v48  ;;  %19068 = vmatprep.subr.bf16.mxu0 %v19067_v4  ;;  %v30081_v4 = vand.u32 4294901760, %v23867_v60  ;;  %v30086_v60 = vand.u32 4294901760, %v23926_v52  ;;  %v30089_v52 = vld [vmem:[#allocation24_spill] sm:$0xff] }
 0x2bf   :  { %v15343_v15 = vpop.f32.mrb[24].mxu0  ;;  %19092 = vmatprep.subr.bf16.mxu1 %v30076_v24 }
 0x2c0   :  { %v15344_v18 = vpop.f32.mrb[25].mxu0 }
 0x2c1   :  { %v15345_v11 = vadd.f32 %v15344_v18, %v15343_v15  ;;  %19070 = vmatpush3.bf16.msra.mxu0 %v19069_v19  ;;  %v19111_v19 = vpack.c.bf16 %v30081_v4, %v30080_v30  ;;  %v30082_v15 = vld [vmem:[#allocation25_spill] sm:$0xff]  ;;  %v19115_v30 = vpack.c.bf16 %v30086_v60, %v30085_v39  ;;  %v30095_v60 = vand.u32 4294901760, %v24036_v38 }
 0x2c2   :  { %19094 = vmatpush3.bf16.msra.mxu1 %v30077_v0  ;;  %19072 = vmatprep.subr.bf16.mxu0 %v19071_v10  ;;  %v24313_v10 = vld [vmem:[#allocation5 + $0x780] sm:$0xff]  ;;  %v30096_v38 = vand.u32 4294901760, %v30066_v57 }
 0x2c3   :  { %v4164_v54 = vadd.f32 %v15345_v11, %v4052_v3  ;;  %19096 = vmatprep.subr.bf16.mxu1 %v30078_v62  ;;  %v24315_v3 = vld [vmem:[#allocation5 + $0x788] sm:$0xff]  ;;  %v6690_v4 = vand.u32 4294901760, %v24313_v10 }
 0x2c5   :  { %19074 = vmatpush3.bf16.msra.mxu0 %v19073_v20  ;;  %v30083_v20 = vand.u32 4294901760, %v23891_v12  ;;  %v24332_v12 = vld [vmem:[#allocation5 + $0x700] sm:$0xff] }
 0x2c6   :  { %19098 = vmatpush3.bf16.msra.mxu1 %v30079_v7  ;;  %19076 = vmatprep.subr.bf16.mxu0 %v19075_v50  ;;  %v29160_v25 = vand.u32 4294901760, %v24332_v12 }
 0x2c7   :  { %19100 = vmatprep.subr.bf16.mxu1 %v30082_v15  ;;  %v19113_v22 = vpack.c.bf16 %v30084_v49, %v30083_v20  ;;  %v19117_v49 = vpack.c.bf16 %v30088_v21, %v30087_v41  ;;  %v24347_v20 = vsub.f32 %v24313_v10, %v6690_v4 }
 0x2c8   :  { %v15378_v18 = vpop.f32.mrb[24].mxu1 }
 0x2c9   :  { %v15379_v11 = vpop.f32.mrb[25].mxu1  ;;  %19078 = vmatpush3.bf16.msra.mxu0 %v19077_v61  ;;  %v6693_v61 = vand.u32 4294901760, %v24315_v3 }
 0x2ca   :  { %v15380_v50 = vadd.f32 %v15379_v11, %v15378_v18  ;;  %19102 = vmatpush3.bf16.msra.mxu1 %v24123_v40  ;;  %19112 = vmatprep.subr.bf16.mxu0 %v19111_v19  ;;  %v24339_v19 = vld [vmem:[#allocation5 + $0x708] sm:$0xff]  ;;  %v30091_v18 = vand.u32 4294901760, %v23992_v23  ;;  %v30093_v23 = vand.u32 4294901760, %v24013_v6  ;;  %v315_v6 = vld [vmem:[#allocation5 + $0x718] sm:$0xff] }
 0x2cb   :  { %19104 = vmatprep.subr.bf16.mxu1 %v24144_v56  ;;  %v24351_v5 = vsub.f32 %v24315_v3, %v6693_v61  ;;  %v6645_v39 = vand.u32 4294901760, %v24339_v19  ;;  %v30094_v3 = vand.u32 4294901760, %v24032_v29  ;;  %v30102_v29 = vand.u32 4294901760, %v24105_v28 }
 0x2cc   :  { %v24329_v43 = vadd.f32 %v15380_v50, %v4164_v54  ;;  %6256 = vmatmul.mubr.f32.vlgmr.msra.gmra.mrb[38].mxu0 %v24199_v26  ;;  %v30090_v54 = vand.u32 4294901760, %v23990_v33  ;;  %v24356_v50 = vld [vmem:[#allocation5 + $0x798] sm:$0xff]  ;;  %v30092_v33 = vand.u32 4294901760, %v24011_v47  ;;  %v24375_v47 = vsub.f32 %v24332_v12, %v29160_v25 }
 0x2cd   :  { %19114 = vmatpush3.bf16.msra.mxu0 %v19113_v22  ;;  %6530 = vmatprep.mubr.f32.mxu0 %v30089_v52  ;;  %v24354_v22 = vld [vmem:[#allocation5 + $0x790] sm:$0xff]  ;;  %v6699_v21 = vand.u32 4294901760, %v24356_v50  ;;  %v30101_v25 = vand.u32 4294901760, %v24085_v1 }
 0x2ce   :  { %19106 = vmatpush3.bf16.msra.mxu1 %v24202_v45  ;;  %19116 = vmatprep.subr.bf16.mxu0 %v19115_v30  ;;  %v19119_v11 = vpack.c.bf16 %v30091_v18, %v30090_v54  ;;  %v19121_v10 = vpack.c.bf16 %v30093_v23, %v30092_v33  ;;  %v19123_v30 = vpack.c.bf16 %v30095_v60, %v30094_v3  ;;  %v6696_v41 = vand.u32 4294901760, %v24354_v22  ;;  %v314_v54 = vld [vmem:[#allocation5 + $0x710] sm:$0xff] }
 0x2cf   :  { %19108 = vmatprep.subr.bf16.mxu1 %v24228_v59  ;;  %v30097_v18 = vand.u32 4294901760, %v30067_v13  ;;  %v30098_v33 = vand.u32 4294901760, %v24059_v17  ;;  %v30099_v23 = vand.u32 4294901760, %v24080_v46  ;;  %v30100_v60 = vand.u32 4294901760, %v24199_v26  ;;  %v332_v26 = vld [vmem:[#allocation5 + $0x7a0] sm:$0xff] }
 0x2d0   :  { %v19129_v57 = vpack.c.bf16 %v30102_v29, %v30101_v25  ;;  %v30103_v13 = vand.u32 4294901760, %v24112_v32  ;;  %v30105_v46 = vand.u32 4294901760, %v24125_v44  ;;  %v24407_v1 = vsub.f32 %v24354_v22, %v6696_v41 }
 0x2d1   :  { %19118 = vmatpush3.bf16.msra.mxu0 %v19117_v49  ;;  %v29165_v49 = vand.u32 4294901760, %v24347_v20  ;;  %v19127_v3 = vpack.c.bf16 %v30099_v23, %v30098_v33  ;;  %v6648_v33 = vand.u32 4294901760, %v314_v54  ;;  %v24410_v28 = vsub.f32 %v24356_v50, %v6699_v21 }
 0x2d2   :  { %19110 = vmatpush3.bf16.msra.mxu1 %v24252_v35  ;;  %19120 = vmatprep.subr.bf16.mxu0 %v19119_v11  ;;  %v19125_v11 = vpack.c.bf16 %v30097_v18, %v30096_v38  ;;  %v30104_v38 = vand.u32 4294901760, %v30071_v31  ;;  %v30106_v18 = vand.u32 4294901760, %v30073_v27  ;;  %v6651_v32 = vand.u32 4294901760, %v315_v6  ;;  %v333_v31 = vld [vmem:[#allocation5 + $0x7a8] sm:$0xff]  ;;  %v71_v27 = vld [vmem:[#allocation2 + $0x78] sm:$0xff] }
 0x2d3   :  { %19144 = vmatprep.subr.bf16.mxu1 %v23961_v51  ;;  %v24387_v51 = vsub.f32 %v24339_v19, %v6645_v39  ;;  %v6869_v44 = vsub.f32 %v24347_v20, %v29165_v49  ;;  %v30107_v25 = vand.u32 4294901760, %v30075_v14  ;;  %v30109_v22 = vand.u32 4294901760, %v24179_v53 }
 0x2d4   :  { %v19131_v17 = vpack.c.bf16 %v30104_v38, %v30103_v13  ;;  %v24403_v19 = vpack.c.bf16 %v30106_v18, %v30105_v46  ;;  %v30110_v50 = vand.u32 4294901760, %v24186_v58  ;;  %v30111_v29 = vand.u32 4294901760, %v24351_v5  ;;  %v317_v46 = vld [vmem:[#allocation5 + $0x728] sm:$0xff] }
 0x2d5   :  { %6364 = vmatmul.mubr.f32.vlgmr.msra.gmra.mrb[38].mxu1 %v30100_v60  ;;  %19122 = vmatpush3.bf16.msra.mxu0 %v19121_v10  ;;  %v30112_v14 = vand.u32 4294901760, %v24192_v34  ;;  %v30114_v53 = vand.u32 4294901760, %v24216_v37  ;;  %v30115_v58 = vand.u32 4294901760, %v24219_v9  ;;  %v24445_v38 = vpack.c.bf16 %v6693_v61, %v6690_v4 }
 0x2d6   :  { %19146 = vmatpush3.bf16.msra.mxu1 %v30068_v63  ;;  %19124 = vmatprep.subr.bf16.mxu0 %v19123_v30  ;;  %v30108_v63 = vand.u32 4294901760, %v24150_v55  ;;  %v24426_v30 = vpack.c.bf16 %v30110_v50, %v30109_v22  ;;  %v6876_v23 = vsub.f32 %v24351_v5, %v30111_v29  ;;  %v30113_v55 = vand.u32 4294901760, %v24195_v36 }
 0x2d7   :  { %19148 = vmatprep.subr.bf16.mxu1 %v30069_v2  ;;  %6634 = vmatprep.mubr.f32.mxu1 %v30089_v52  ;;  %v29164_v2 = vand.u32 4294901760, %v24375_v47  ;;  %v24443_v13 = vpack.c.bf16 %v30115_v58, %v30114_v53  ;;  %v316_v52 = vld [vmem:[#allocation5 + $0x720] sm:$0xff]  ;;  %v29163_v18 = vand.u32 4294901760, %v24387_v51  ;;  %v6702_v34 = vand.u32 4294901760, %v332_v26  ;;  %v335_v53 = vld [vmem:[#allocation5 + $0x7b8] sm:$0xff] }
 0x2d8   :  { %v24420_v10 = vpack.c.bf16 %v30108_v63, %v30107_v25  ;;  %v24437_v60 = vpack.c.bf16 %v30113_v55, %v30112_v14  ;;  %v24448_v25 = vsub.f32 %v314_v54, %v6648_v33  ;;  %v6705_v63 = vand.u32 4294901760, %v333_v31  ;;  %v334_v55 = vld [vmem:[#allocation5 + $0x7b0] sm:$0xff] }
 0x2d9   :  { %19126 = vmatpush3.bf16.msra.mxu0 %v19125_v11  ;;  %v24450_v36 = vand.u32 4294901760, %v71_v27  ;;  %v24453_v37 = vsub.f32 %v315_v6, %v6651_v32  ;;  %v6870_v9 = vand.u32 4294901760, %v6869_v44  ;;  %v29162_v4 = vand.u32 4294901760, %v24407_v1 }
 0x2da   :  { %19150 = vmatpush3.bf16.msra.mxu1 %v23983_v16  ;;  %19128 = vmatprep.subr.bf16.mxu0 %v19127_v3  ;;  %v29161_v61 = vand.u32 4294901760, %v24410_v28  ;;  %v6877_v22 = vand.u32 4294901760, %v6876_v23  ;;  %v6654_v11 = vand.u32 4294901760, %v316_v52  ;;  %v6657_v54 = vand.u32 4294901760, %v317_v46 }
 0x2db   :  { %30116 = vst [vmem:[#allocation18_spill] sm:$0xff] %v24450_v36  ;;  %19152 = vmatprep.subr.bf16.mxu1 %v30072_v8  ;;  %v6757_v50 = vsub.f32 %v24375_v47, %v29164_v2  ;;  %v30117_v29 = vand.u32 4294901760, %v24332_v12  ;;  %v24465_v6 = vpack.c.bf16 %v6699_v21, %v6696_v41  ;;  %v24467_v3 = vpack.c.bf16 %v6651_v32, %v6648_v33  ;;  %v318_v21 = vld [vmem:[#allocation5 + $0x730] sm:$0xff] }
 0x2dc   :  { %v6764_v44 = vsub.f32 %v24387_v51, %v29163_v18  ;;  %v24472_v8 = vpack.c.bf16 %v6705_v63, %v6702_v34  ;;  %v24474_v23 = vsub.f32 %v332_v26, %v6702_v34  ;;  %v24476_v14 = vsub.f32 %v333_v31, %v6705_v63  ;;  %v337_v18 = vld [vmem:[#allocation5 + $0x7c8] sm:$0xff] }
 0x2dd   :  { %v24463_v16 = vpack.c.bf16 %v6645_v39, %v30117_v29  ;;  %30119 = vst [vmem:[#allocation16_spill] sm:$0xff] %v24465_v6  ;;  %19130 = vmatpush3.bf16.msra.mxu0 %v19129_v57  ;;  %v24479_v12 = vsub.f32 %v71_v27, %v24450_v36  ;;  %v6883_v39 = vsub.f32 %v24407_v1, %v29162_v4  ;;  %v319_v57 = vld [vmem:[#allocation5 + $0x738] sm:$0xff]  ;;  %v29167_v33 = vand.u32 4294901760, %v24448_v25  ;;  %v336_v4 = vld [vmem:[#allocation5 + $0x7c0] sm:$0xff] }
 0x2de   :  { %30120 = vst [vmem:[#allocation30_spill] sm:$0xff] %v24472_v8  ;;  %19154 = vmatpush3.bf16.msra.mxu1 %v30074_v48  ;;  %19132 = vmatprep.subr.bf16.mxu0 %v19131_v17  ;;  %v6890_v41 = vsub.f32 %v24410_v28, %v29161_v61  ;;  %v29166_v32 = vand.u32 4294901760, %v24453_v37  ;;  %v24491_v31 = vpack.c.bf16 %v6877_v22, %v6870_v9  ;;  %v6758_v27 = vand.u32 4294901760, %v6757_v50 }
 0x2df   :  { %30118 = vst [vmem:[#allocation21_spill] sm:$0xff] %v24463_v16  ;;  %v15413_v26 = vpop.f32.mrb[26].mxu0  ;;  %19156 = vmatprep.subr.bf16.mxu1 %v30076_v24  ;;  %v24493_v48 = vpack.c.bf16 %v6657_v54, %v6654_v11  ;;  %v24495_v17 = vsub.f32 %v316_v52, %v6654_v11  ;;  %v24497_v34 = vsub.f32 %v317_v46, %v6657_v54  ;;  %v6765_v63 = vand.u32 4294901760, %v6764_v44 }
 0x2e0   :  { %v15414_v58 = vpop.f32.mrb[27].mxu0  ;;  %v6708_v29 = vand.u32 4294901760, %v334_v55  ;;  %v6711_v61 = vand.u32 4294901760, %v335_v53  ;;  %v6660_v49 = vand.u32 4294901760, %v318_v21  ;;  %v6663_v24 = vand.u32 4294901760, %v319_v57 }
 0x2e1   :  { %30121 = vst [vmem:[#allocation29_spill] sm:$0xff] %v24493_v48  ;;  %v15415_v2 = vadd.f32 %v15414_v58, %v15413_v26  ;;  %19134 = vmatpush3.bf16.msra.mxu0 %v24403_v19  ;;  %v29171_v9 = vand.u32 4294901760, %v24479_v12  ;;  %v6884_v52 = vand.u32 4294901760, %v6883_v39  ;;  %v6891_v22 = vand.u32 4294901760, %v6890_v41 }
 0x2e2   :  { %19158 = vmatpush3.bf16.msra.mxu1 %v30077_v0  ;;  %19136 = vmatprep.subr.bf16.mxu0 %v24420_v10  ;;  %v6771_v46 = vsub.f32 %v24448_v25, %v29167_v33  ;;  %v6778_v11 = vsub.f32 %v24453_v37, %v29166_v32  ;;  %v6714_v54 = vand.u32 4294901760, %v336_v4  ;;  %v6717_v50 = vand.u32 4294901760, %v337_v18 }
 0x2e3   :  { %v4534_v19 = vadd.f32 %v15415_v2, %v24329_v43  ;;  %19160 = vmatprep.subr.bf16.mxu1 %v30078_v62  ;;  %v29169_v0 = vand.u32 4294901760, %v24474_v23  ;;  %v24512_v44 = vpack.c.bf16 %v6765_v63, %v6758_v27  ;;  %v24514_v10 = vpack.c.bf16 %v6711_v61, %v6708_v29  ;;  %v320_v43 = vld [vmem:[#allocation5 + $0x740] sm:$0xff]  ;;  %v321_v62 = vld [vmem:[#allocation5 + $0x748] sm:$0xff] }
 0x2e4   :  { %v24516_v39 = vsub.f32 %v334_v55, %v6708_v29  ;;  %v29168_v41 = vand.u32 4294901760, %v24476_v14  ;;  %v24520_v26 = vsub.f32 %v335_v53, %v6711_v61  ;;  %v24522_v58 = vpack.c.bf16 %v6663_v24, %v6660_v49 }
 0x2e5   :  { %30122 = vst [vmem:[#allocation22_spill] sm:$0xff] %v24514_v10  ;;  %19138 = vmatpush3.bf16.msra.mxu0 %v24426_v30  ;;  %v29170_v2 = vand.u32 4294901760, %v24495_v17  ;;  %v6740_v27 = vsub.f32 %v24479_v12, %v29171_v9  ;;  %v24530_v55 = vsub.f32 %v318_v21, %v6660_v49  ;;  %v24532_v63 = vsub.f32 %v319_v57, %v6663_v24  ;;  %v338_v24 = vld [vmem:[#allocation5 + $0x7d0] sm:$0xff] }
 0x2e6   :  { %30123 = vst [vmem:[#allocation19_spill] sm:$0xff] %v24522_v58  ;;  %19162 = vmatpush3.bf16.msra.mxu1 %v30079_v7  ;;  %19140 = vmatprep.subr.bf16.mxu0 %v24437_v60  ;;  %v6772_v30 = vand.u32 4294901760, %v6771_v46  ;;  %v29172_v61 = vand.u32 4294901760, %v24497_v34  ;;  %v24536_v53 = vpack.c.bf16 %v6891_v22, %v6884_v52  ;;  %v6779_v29 = vand.u32 4294901760, %v6778_v11  ;;  %v339_v22 = vld [vmem:[#allocation5 + $0x7d8] sm:$0xff]  ;;  %v322_v46 = vld [vmem:[#allocation5 + $0x750] sm:$0xff] }
 0x2e7   :  { %30124 = vst [vmem:[#allocation20_spill] sm:$0xff] %v24530_v55  ;;  %30125 = vst [vmem:[#allocation27_spill] sm:$0xff] %v24532_v63  ;;  %19164 = vmatprep.subr.bf16.mxu1 %v30082_v15  ;;  %v24538_v32 = vpack.c.bf16 %v6717_v50, %v6714_v54  ;;  %v6897_v7 = vsub.f32 %v24474_v23, %v29169_v0  ;;  %v24543_v60 = vsub.f32 %v336_v4, %v6714_v54 }
 0x2e8   :  { %v15448_v33 = vpop.f32.mrb[26].mxu1  ;;  %v6904_v49 = vsub.f32 %v24476_v14, %v29168_v41  ;;  %v6666_v21 = vand.u32 4294901760, %v320_v43  ;;  %v6669_v57 = vand.u32 4294901760, %v321_v62  ;;  %v6785_v52 = vsub.f32 %v24495_v17, %v29170_v2 }
 0x2e9   :  { %30126 = vst [vmem:[#allocation23_spill] sm:$0xff] %v24538_v32  ;;  %v15449_v15 = vpop.f32.mrb[27].mxu1  ;;  %19142 = vmatpush3.bf16.msra.mxu0 %v24443_v13  ;;  %v6741_v11 = vand.u32 4294901760, %v6740_v27  ;;  %v6792_v41 = vsub.f32 %v24497_v34, %v29172_v61  ;;  %v24562_v2 = vpack.c.bf16 %v6779_v29, %v6772_v30  ;;  %v24564_v9 = vsub.f32 %v337_v18, %v6717_v50  ;;  %v323_v13 = vld [vmem:[#allocation5 + $0x758] sm:$0xff] }
 0x2ea   :  { %v15450_v54 = vadd.f32 %v15449_v15, %v15448_v33  ;;  %19166 = vmatpush3.bf16.msra.mxu1 %v24123_v40  ;;  %19176 = vmatprep.subr.bf16.mxu0 %v24445_v38  ;;  %v6898_v27 = vand.u32 4294901760, %v6897_v7  ;;  %v6720_v33 = vand.u32 4294901760, %v338_v24  ;;  %v6905_v40 = vand.u32 4294901760, %v6904_v49 }
 0x2eb   :  { %19168 = vmatprep.subr.bf16.mxu1 %v24144_v56  ;;  %v24569_v4 = vsub.f32 %v320_v43, %v6666_v21  ;;  %v6723_v61 = vand.u32 4294901760, %v339_v22  ;;  %v24572_v0 = vpack.c.bf16 %v6669_v57, %v6666_v21  ;;  %v30128_v56 = vand.u32 4294901760, %v24516_v39 }
 0x2ec   :  { %v24566_v15 = vadd.f32 %v15450_v54, %v4534_v19  ;;  %6532 = vmatmul.mubr.f32.vlgmr.msra.gmra.mrb[40].mxu0 %v24176_v42  ;;  %v30129_v50 = vand.u32 4294901760, %v24520_v26  ;;  %v6786_v43 = vand.u32 4294901760, %v6785_v52  ;;  %v6793_v30 = vand.u32 4294901760, %v6792_v41  ;;  %v340_v54 = vld [vmem:[#allocation5 + $0x7e0] sm:$0xff] }
 0x2ed   :  { %19178 = vmatpush3.bf16.msra.mxu0 %v24463_v16  ;;  %30127 = vst [vmem:[#allocation17_spill] sm:$0xff] %v24572_v0  ;;  %v6911_v18 = vsub.f32 %v24516_v39, %v30128_v56  ;;  %6742 = vmatprep.mubr.f32.mxu0 %v6741_v11  ;;  %v30130_v29 = vand.u32 4294901760, %v24530_v55  ;;  %v30131_v49 = vand.u32 4294901760, %v24532_v63  ;;  %v341_v56 = vld [vmem:[#allocation5 + $0x7e8] sm:$0xff]  ;;  %v6672_v11 = vand.u32 4294901760, %v322_v46 }
 0x2ee   :  { %v6918_v19 = vsub.f32 %v24520_v26, %v30129_v50  ;;  %19170 = vmatpush3.bf16.msra.mxu1 %v24202_v45  ;;  %19180 = vmatprep.subr.bf16.mxu0 %v24465_v6  ;;  %v24589_v50 = vsub.f32 %v321_v62, %v6669_v57  ;;  %v6675_v45 = vand.u32 4294901760, %v323_v13  ;;  %v29181_v6 = vand.u32 4294901760, %v24543_v60 }
 0x2ef   :  { %v6799_v7 = vsub.f32 %v24530_v55, %v30130_v29  ;;  %v6806_v21 = vsub.f32 %v24532_v63, %v30131_v49  ;;  %19172 = vmatprep.subr.bf16.mxu1 %v24228_v59  ;;  %v24592_v52 = vpack.c.bf16 %v6905_v40, %v6898_v27  ;;  %v24594_v41 = vpack.c.bf16 %v6723_v61, %v6720_v33 }
 0x2f0   :  { %v24596_v16 = vsub.f32 %v338_v24, %v6720_v33  ;;  %v24598_v29 = vsub.f32 %v339_v22, %v6723_v61  ;;  %v6912_v49 = vand.u32 4294901760, %v6911_v18  ;;  %v6919_v63 = vand.u32 4294901760, %v6918_v19  ;;  %v324_v24 = vld [vmem:[#allocation5 + $0x760] sm:$0xff] }
 0x2f1   :  { %30132 = vst [vmem:[#allocation26_spill] sm:$0xff] %v24594_v41  ;;  %19182 = vmatpush3.bf16.msra.mxu0 %v24467_v3  ;;  %v6726_v55 = vand.u32 4294901760, %v340_v54  ;;  %v6729_v59 = vand.u32 4294901760, %v341_v56  ;;  %v24603_v62 = vpack.c.bf16 %v6793_v30, %v6786_v43  ;;  %v6800_v57 = vand.u32 4294901760, %v6799_v7  ;;  %v24620_v30 = vld [vmem:[#allocation5 + $0x7f0] sm:$0xff]  ;;  %v24622_v7 = vld [vmem:[#allocation5 + $0x7f8] sm:$0xff] }
 0x2f2   :  { %30133 = vst [vmem:[#allocation28_spill] sm:$0xff] %v24598_v29  ;;  %19174 = vmatpush3.bf16.msra.mxu1 %v24252_v35  ;;  %19184 = vmatprep.subr.bf16.mxu0 %v24472_v8  ;;  %v6807_v27 = vand.u32 4294901760, %v6806_v21  ;;  %v29182_v40 = vand.u32 4294901760, %v24564_v9  ;;  %v24607_v61 = vpack.c.bf16 %v6675_v45, %v6672_v11  ;;  %v24609_v22 = vsub.f32 %v322_v46, %v6672_v11  ;;  %v325_v35 = vld [vmem:[#allocation5 + $0x768] sm:$0xff] }
 0x2f3   :  { %19208 = vmatprep.subr.bf16.mxu1 %v24491_v31  ;;  %v24614_v33 = vsub.f32 %v24543_v60, %v29181_v6  ;;  %v24617_v19 = vsub.f32 %v323_v13, %v6675_v45  ;;  %v29189_v31 = vand.u32 4294901760, %v24596_v16  ;;  %v19219_v21 = vpack.c.bf16 %v6919_v63, %v6912_v49  ;;  %v70_v45 = vld [vmem:[#allocation2 + $0x70] sm:$0xff] }
 0x2f4   :  { %v24628_v11 = vpack.c.bf16 %v6729_v59, %v6726_v55  ;;  %v24630_v6 = vsub.f32 %v340_v54, %v6726_v55  ;;  %v6678_v13 = vand.u32 4294901760, %v324_v24  ;;  %v19221_v43 = vpack.c.bf16 %v6807_v27, %v6800_v57  ;;  %v24646_v57 = vld [vmem:[#allocation5 + $0x770] sm:$0xff] }
 0x2f5   :  { %30134 = vst [vmem:[#allocation25_spill] sm:$0xff] %v24617_v19  ;;  %6636 = vmatmul.mubr.f32.vlgmr.msra.gmra.mrb[40].mxu1 %v24176_v42  ;;  %19186 = vmatpush3.bf16.msra.mxu0 %v24493_v48  ;;  %v24634_v18 = vsub.f32 %v341_v56, %v6729_v59  ;;  %v6932_v42 = vsub.f32 %v24564_v9, %v29182_v40  ;;  %v6681_v46 = vand.u32 4294901760, %v325_v35  ;;  %v6926_v63 = vand.u32 4294901760, %v24614_v33  ;;  %v24648_v56 = vld [vmem:[#allocation5 + $0x778] sm:$0xff] }
 0x2f6   :  { %30135 = vst [vmem:[#allocation24_spill] sm:$0xff] %v24630_v6  ;;  %19210 = vmatpush3.bf16.msra.mxu1 %v24512_v44  ;;  %19188 = vmatprep.subr.bf16.mxu0 %v24514_v10  ;;  %v30136_v55 = vand.u32 4294901760, %v24569_v4  ;;  %v6732_v44 = vand.u32 4294901760, %v24620_v30  ;;  %v6735_v49 = vand.u32 4294901760, %v24622_v7  ;;  %v30137_v59 = vand.u32 4294901760, %v24589_v50 }
 0x2f7   :  { %19212 = vmatprep.subr.bf16.mxu1 %v24536_v53  ;;  %6978 = vmatprep.mubr.f32.mxu1 %v24450_v36  ;;  %v6939_v27 = vsub.f32 %v24596_v16, %v29189_v31  ;;  %v30138_v33 = vand.u32 4294901760, %v24598_v29  ;;  %v24660_v40 = vand.u32 4294901760, %v70_v45  ;;  %v24663_v10 = vsub.f32 %v324_v24, %v6678_v13 }
 0x2f8   :  { %v6813_v54 = vsub.f32 %v24569_v4, %v30136_v55  ;;  %v6820_v53 = vsub.f32 %v24589_v50, %v30137_v59  ;;  %v6933_v31 = vand.u32 4294901760, %v6932_v42  ;;  %v24670_v8 = vsub.f32 %v325_v35, %v6681_v46 }
 0x2f9   :  { %v6946_v55 = vsub.f32 %v24598_v29, %v30138_v33  ;;  %19190 = vmatpush3.bf16.msra.mxu0 %v24522_v58  ;;  %v6684_v33 = vand.u32 4294901760, %v24646_v57  ;;  %v6687_v29 = vand.u32 4294901760, %v24648_v56  ;;  %v24676_v36 = vsub.f32 %v24620_v30, %v6732_v44 }
 0x2fa   :  { %19214 = vmatpush3.bf16.msra.mxu1 %v24562_v2  ;;  %19192 = vmatprep.subr.bf16.mxu0 %v24538_v32  ;;  %v6814_v24 = vand.u32 4294901760, %v6813_v54  ;;  %v24679_v48 = vsub.f32 %v24622_v7, %v6735_v49  ;;  %v6821_v59 = vand.u32 4294901760, %v6820_v53  ;;  %v6940_v32 = vand.u32 4294901760, %v6939_v27 }
 0x2fb   :  { %19216 = vmatprep.subr.bf16.mxu1 %v24592_v52  ;;  %v6947_v42 = vand.u32 4294901760, %v6946_v55  ;;  %v24683_v35 = vsub.f32 %v70_v45, %v24660_v40  ;;  %v24686_v58 = vpack.c.bf16 %v6681_v46, %v6678_v13  ;;  %v30139_v52 = vand.u32 4294901760, %v24609_v22 }
 0x2fc   :  { %v30140_v54 = vand.u32 4294901760, %v24617_v19  ;;  %v30141_v2 = vand.u32 4294901760, %v24630_v6  ;;  %v24700_v45 = vsub.f32 %v24646_v57, %v6684_v33  ;;  %v24703_v46 = vsub.f32 %v24648_v56, %v6687_v29 }
 0x2fd   :  { %19194 = vmatpush3.bf16.msra.mxu0 %v24572_v0  ;;  %v6827_v30 = vsub.f32 %v24609_v22, %v30139_v52  ;;  %v29209_v27 = vand.u32 4294901760, %v24670_v8  ;;  %v19223_v52 = vpack.c.bf16 %v6933_v31, %v6926_v63  ;;  %v19225_v0 = vpack.c.bf16 %v6821_v59, %v6814_v24 }
 0x2fe   :  { %v6834_v7 = vsub.f32 %v24617_v19, %v30140_v54  ;;  %v6953_v53 = vsub.f32 %v24630_v6, %v30141_v2  ;;  %19218 = vmatpush3.bf16.msra.mxu1 %v24603_v62  ;;  %19196 = vmatprep.subr.bf16.mxu0 %v24594_v41  ;;  %v30142_v54 = vand.u32 4294901760, %v24634_v18  ;;  %v29208_v62 = vand.u32 4294901760, %v24676_v36 }
 0x2ff   :  { %v15483_v55 = vpop.f32.mrb[28].mxu0  ;;  %19220 = vmatprep.subr.bf16.mxu1 %v19219_v21  ;;  %v24712_v6 = vpack.c.bf16 %v6735_v49, %v6732_v44  ;;  %v19227_v56 = vpack.c.bf16 %v6947_v42, %v6940_v32  ;;  %v29210_v13 = vand.u32 4294901760, %v24683_v35  ;;  %v6828_v21 = vand.u32 4294901760, %v6827_v30 }
 0x300   :  { %v6960_v2 = vsub.f32 %v24634_v18, %v30142_v54  ;;  %v15484_v57 = vpop.f32.mrb[29].mxu0  ;;  %v6835_v31 = vand.u32 4294901760, %v6834_v7  ;;  %v6954_v63 = vand.u32 4294901760, %v6953_v53  ;;  %v30143_v54 = vand.u32 4294901760, %v24663_v10 }
 0x301   :  { %v15485_v19 = vadd.f32 %v15484_v57, %v15483_v55  ;;  %19198 = vmatpush3.bf16.msra.mxu0 %v24607_v61  ;;  %v6848_v44 = vsub.f32 %v24670_v8, %v29209_v27  ;;  %v29206_v32 = vand.u32 4294901760, %v24700_v45  ;;  %v29207_v49 = vand.u32 4294901760, %v24703_v46 }
 0x302   :  { %19222 = vmatpush3.bf16.msra.mxu1 %v19221_v43  ;;  %19200 = vmatprep.subr.bf16.mxu0 %v24628_v11  ;;  %v6841_v41 = vsub.f32 %v24663_v10, %v30143_v54  ;;  %v6961_v24 = vand.u32 4294901760, %v6960_v2  ;;  %v6967_v43 = vsub.f32 %v24676_v36, %v29208_v62  ;;  %v30144_v42 = vand.u32 4294901760, %v24679_v48 }
 0x303   :  { %v4810_v59 = vadd.f32 %v15485_v19, %v24566_v15  ;;  %19224 = vmatprep.subr.bf16.mxu1 %v19223_v52  ;;  %v6746_v7 = vsub.f32 %v24683_v35, %v29210_v13  ;;  %v24736_v53 = vpack.c.bf16 %v6687_v29, %v6684_v33  ;;  %v19229_v55 = vpack.c.bf16 %v6835_v31, %v6828_v21 }
 0x304   :  { %v6974_v30 = vsub.f32 %v24679_v48, %v30144_v42  ;;  %v19239_v15 = vpack.c.bf16 %v24351_v5, %v24347_v20  ;;  %v6842_v19 = vand.u32 4294901760, %v6841_v41  ;;  %v6849_v52 = vand.u32 4294901760, %v6848_v44 }
 0x305   :  { %19202 = vmatpush3.bf16.msra.mxu0 %v24686_v58  ;;  %v6855_v2 = vsub.f32 %v24700_v45, %v29206_v32  ;;  %v6862_v57 = vsub.f32 %v24703_v46, %v29207_v49  ;;  %v19231_v29 = vpack.c.bf16 %v6961_v24, %v6954_v63  ;;  %v6968_v33 = vand.u32 4294901760, %v6967_v43 }
 0x306   :  { %19226 = vmatpush3.bf16.msra.mxu1 %v19225_v0  ;;  %19204 = vmatprep.subr.bf16.mxu0 %v24712_v6  ;;  %v6975_v21 = vand.u32 4294901760, %v6974_v30  ;;  %v6747_v54 = vand.u32 4294901760, %v6746_v7  ;;  %v19241_v0 = vpack.c.bf16 %v24387_v51, %v24375_v47  ;;  %v19243_v41 = vpack.c.bf16 %v24410_v28, %v24407_v1 }
 0x307   :  { %19228 = vmatprep.subr.bf16.mxu1 %v19227_v56  ;;  %v19233_v32 = vpack.c.bf16 %v6849_v52, %v6842_v19  ;;  %v6856_v49 = vand.u32 4294901760, %v6855_v2  ;;  %v6863_v56 = vand.u32 4294901760, %v6862_v57  ;;  %v19245_v43 = vpack.c.bf16 %v24453_v37, %v24448_v25  ;;  %v30147_v19 = vld [vmem:[#allocation21_spill] sm:$0xff]  ;;  %v30148_v2 = vld [vmem:[#allocation16_spill] sm:$0xff] }
 0x308   :  { %v15518_v31 = vpop.f32.mrb[28].mxu1  ;;  %v19235_v63 = vpack.c.bf16 %v6975_v21, %v6968_v33  ;;  %v19247_v7 = vpack.c.bf16 %v24476_v14, %v24474_v23  ;;  %v19255_v52 = vpack.c.bf16 %v24564_v9, %v24543_v60  ;;  %v30149_v57 = vand.u32 4294901760, %v24479_v12  ;;  %v30150_v33 = vld [vmem:[#allocation28_spill] sm:$0xff] }
 0x309   :  { %v15519_v42 = vpop.f32.mrb[29].mxu1  ;;  %19206 = vmatpush3.bf16.msra.mxu0 %v24736_v53  ;;  %v19237_v30 = vpack.c.bf16 %v6863_v56, %v6856_v49  ;;  %v30146_v49 = vld [vmem:[#allocation27_spill] sm:$0xff]  ;;  %v19259_v21 = vpack.c.bf16 %v30150_v33, %v24596_v16  ;;  %v30155_v56 = vld [vmem:[#allocation22_spill] sm:$0xff]  ;;  %v30163_v62 = vand.u32 4294901760, %v24387_v51  ;;  %v30166_v51 = vand.u32 4294901760, %v24448_v25 }
 0x30a   :  { %v15520_v44 = vadd.f32 %v15519_v42, %v15518_v31  ;;  %19230 = vmatpush3.bf16.msra.mxu1 %v19229_v55  ;;  %19240 = vmatprep.subr.bf16.mxu0 %v19239_v15  ;;  %v19249_v55 = vpack.c.bf16 %v24497_v34, %v24495_v17  ;;  %v30151_v31 = vld [vmem:[#allocation30_spill] sm:$0xff] }
 0x30b   :  { %19232 = vmatprep.subr.bf16.mxu1 %v19231_v29  ;;  %v19257_v29 = vpack.c.bf16 %v24589_v50, %v24569_v4 }
 0x30c   :  { %v4914_v24 = vadd.f32 %v15520_v44, %v4810_v59  ;;  %6748 = vmatmul.mubr.f32.vlgmr.msra.gmra.mrb[42].mxu0 %v6747_v54  ;;  %v19251_v59 = vpack.c.bf16 %v24520_v26, %v24516_v39  ;;  %v30152_v54 = vld [vmem:[#allocation25_spill] sm:$0xff] }
 0x30d   :  { %19242 = vmatpush3.bf16.msra.mxu0 %v19241_v0  ;;  %7115 = vmatprep.mubr.f32.mxu0 %v24479_v12  ;;  %v19261_v42 = vpack.c.bf16 %v30152_v54, %v24609_v22  ;;  %v30153_v0 = vld [vmem:[#allocation29_spill] sm:$0xff]  ;;  %v30154_v12 = vld [vmem:[#allocation24_spill] sm:$0xff] }
 0x30e   :  { %19234 = vmatpush3.bf16.msra.mxu1 %v19233_v32  ;;  %19244 = vmatprep.subr.bf16.mxu0 %v19243_v41  ;;  %v30145_v32 = vld [vmem:[#allocation20_spill] sm:$0xff]  ;;  %v19263_v41 = vpack.c.bf16 %v24634_v18, %v30154_v12 }
 0x30f   :  { %19236 = vmatprep.subr.bf16.mxu1 %v19235_v63  ;;  %v19253_v15 = vpack.c.bf16 %v30146_v49, %v30145_v32 }
 0x311   :  { %19246 = vmatpush3.bf16.msra.mxu0 %v19245_v43 }
 0x312   :  { %19238 = vmatpush3.bf16.msra.mxu1 %v19237_v30  ;;  %19248 = vmatprep.subr.bf16.mxu0 %v19247_v7  ;;  %v19265_v30 = vpack.c.bf16 %v24670_v8, %v24663_v10  ;;  %v30156_v7 = vld [vmem:[#allocation19_spill] sm:$0xff] }
 0x313   :  { %19272 = vmatprep.subr.bf16.mxu1 %v24445_v38 }
 0x315   :  { %6980 = vmatmul.mubr.f32.vlgmr.msra.gmra.mrb[42].mxu1 %v24660_v40  ;;  %19250 = vmatpush3.bf16.msra.mxu0 %v19249_v55  ;;  %v19267_v55 = vpack.c.bf16 %v24679_v48, %v24676_v36 }
 0x316   :  { %19274 = vmatpush3.bf16.msra.mxu1 %v30147_v19  ;;  %19252 = vmatprep.subr.bf16.mxu0 %v19251_v59 }
 0x317   :  { %19276 = vmatprep.subr.bf16.mxu1 %v30148_v2  ;;  %7222 = vmatprep.mubr.f32.mxu1 %v30149_v57  ;;  %v30158_v57 = vld [vmem:[#allocation17_spill] sm:$0xff] }
 0x319   :  { %19254 = vmatpush3.bf16.msra.mxu0 %v19253_v15  ;;  %v30157_v15 = vld [vmem:[#allocation23_spill] sm:$0xff] }
 0x31a   :  { %19278 = vmatpush3.bf16.msra.mxu1 %v24467_v3  ;;  %19256 = vmatprep.subr.bf16.mxu0 %v19255_v52  ;;  %v19269_v52 = vpack.c.bf16 %v24703_v46, %v24700_v45 }
 0x31b   :  { %19280 = vmatprep.subr.bf16.mxu1 %v30151_v31 }
 0x31d   :  { %19258 = vmatpush3.bf16.msra.mxu0 %v19257_v29  ;;  %v30159_v29 = vand.u32 4294901760, %v24347_v20  ;;  %v30164_v20 = vand.u32 4294901760, %v24407_v1  ;;  %v30167_v1 = vand.u32 4294901760, %v24453_v37 }
 0x31e   :  { %19282 = vmatpush3.bf16.msra.mxu1 %v30153_v0  ;;  %19260 = vmatprep.subr.bf16.mxu0 %v19259_v21  ;;  %v30160_v21 = vand.u32 4294901760, %v24351_v5  ;;  %v30165_v5 = vand.u32 4294901760, %v24410_v28  ;;  %v30168_v28 = vld [vmem:[#allocation18_spill] sm:$0xff] }
 0x31f   :  { %v15553_v44 = vpop.f32.mrb[30].mxu0  ;;  %19284 = vmatprep.subr.bf16.mxu1 %v30155_v56 }
 0x320   :  { %v15554_v63 = vpop.f32.mrb[31].mxu0 }
 0x321   :  { %v15555_v43 = vadd.f32 %v15554_v63, %v15553_v44  ;;  %19262 = vmatpush3.bf16.msra.mxu0 %v19261_v42  ;;  %v19303_v42 = vpack.c.bf16 %v30160_v21, %v30159_v29  ;;  %v30161_v44 = vld [vmem:[#allocation26_spill] sm:$0xff]  ;;  %v19307_v29 = vpack.c.bf16 %v30165_v5, %v30164_v20  ;;  %v30174_v5 = vand.u32 4294901760, %v24520_v26 }
 0x322   :  { %19286 = vmatpush3.bf16.msra.mxu1 %v30156_v7  ;;  %19264 = vmatprep.subr.bf16.mxu0 %v19263_v41  ;;  %v24797_v41 = vld [vmem:[#allocation5 + $0x880] sm:$0xff]  ;;  %v30175_v26 = vand.u32 4294901760, %v30145_v32 }
 0x323   :  { %v5026_v59 = vadd.f32 %v15555_v43, %v4914_v24  ;;  %19288 = vmatprep.subr.bf16.mxu1 %v30157_v15  ;;  %v24799_v24 = vld [vmem:[#allocation5 + $0x888] sm:$0xff]  ;;  %v7552_v21 = vand.u32 4294901760, %v24797_v41 }
 0x325   :  { %19266 = vmatpush3.bf16.msra.mxu0 %v19265_v30  ;;  %v30162_v30 = vand.u32 4294901760, %v24375_v47  ;;  %v24816_v47 = vld [vmem:[#allocation5 + $0x800] sm:$0xff] }
 0x326   :  { %19290 = vmatpush3.bf16.msra.mxu1 %v30158_v57  ;;  %19268 = vmatprep.subr.bf16.mxu0 %v19267_v55  ;;  %v29211_v37 = vand.u32 4294901760, %v24816_v47 }
 0x327   :  { %19292 = vmatprep.subr.bf16.mxu1 %v30161_v44  ;;  %v19305_v27 = vpack.c.bf16 %v30163_v62, %v30162_v30  ;;  %v19309_v62 = vpack.c.bf16 %v30167_v1, %v30166_v51  ;;  %v24831_v30 = vsub.f32 %v24797_v41, %v7552_v21 }
 0x328   :  { %v15588_v63 = vpop.f32.mrb[30].mxu1 }
 0x329   :  { %v15589_v43 = vpop.f32.mrb[31].mxu1  ;;  %19270 = vmatpush3.bf16.msra.mxu0 %v19269_v52  ;;  %v7555_v52 = vand.u32 4294901760, %v24799_v24 }
 0x32a   :  { %v15590_v55 = vadd.f32 %v15589_v43, %v15588_v63  ;;  %19294 = vmatpush3.bf16.msra.mxu1 %v24607_v61  ;;  %19304 = vmatprep.subr.bf16.mxu0 %v19303_v42  ;;  %v24823_v42 = vld [vmem:[#allocation5 + $0x808] sm:$0xff]  ;;  %v30170_v63 = vand.u32 4294901760, %v24476_v14  ;;  %v30172_v14 = vand.u32 4294901760, %v24497_v34  ;;  %v347_v34 = vld [vmem:[#allocation5 + $0x818] sm:$0xff] }
 0x32b   :  { %19296 = vmatprep.subr.bf16.mxu1 %v24628_v11  ;;  %v24835_v25 = vsub.f32 %v24799_v24, %v7555_v52  ;;  %v7507_v20 = vand.u32 4294901760, %v24823_v42  ;;  %v30173_v24 = vand.u32 4294901760, %v24516_v39  ;;  %v30181_v39 = vand.u32 4294901760, %v24589_v50 }
 0x32c   :  { %v24813_v13 = vadd.f32 %v15590_v55, %v5026_v59  ;;  %7118 = vmatmul.mubr.f32.vlgmr.msra.gmra.mrb[44].mxu0 %v24683_v35  ;;  %v30169_v59 = vand.u32 4294901760, %v24474_v23  ;;  %v24840_v55 = vld [vmem:[#allocation5 + $0x898] sm:$0xff]  ;;  %v30171_v23 = vand.u32 4294901760, %v24495_v17  ;;  %v24859_v17 = vsub.f32 %v24816_v47, %v29211_v37 }
 0x32d   :  { %19306 = vmatpush3.bf16.msra.mxu0 %v19305_v27  ;;  %7392 = vmatprep.mubr.f32.mxu0 %v30168_v28  ;;  %v24838_v27 = vld [vmem:[#allocation5 + $0x890] sm:$0xff]  ;;  %v7561_v1 = vand.u32 4294901760, %v24840_v55  ;;  %v30180_v37 = vand.u32 4294901760, %v24569_v4 }
 0x32e   :  { %19298 = vmatpush3.bf16.msra.mxu1 %v24686_v58  ;;  %19308 = vmatprep.subr.bf16.mxu0 %v19307_v29  ;;  %v19311_v43 = vpack.c.bf16 %v30170_v63, %v30169_v59  ;;  %v19313_v41 = vpack.c.bf16 %v30172_v14, %v30171_v23  ;;  %v19315_v29 = vpack.c.bf16 %v30174_v5, %v30173_v24  ;;  %v7558_v51 = vand.u32 4294901760, %v24838_v27  ;;  %v346_v59 = vld [vmem:[#allocation5 + $0x810] sm:$0xff] }
 0x32f   :  { %19300 = vmatprep.subr.bf16.mxu1 %v24712_v6  ;;  %v30176_v63 = vand.u32 4294901760, %v30146_v49  ;;  %v30177_v23 = vand.u32 4294901760, %v24543_v60  ;;  %v30178_v14 = vand.u32 4294901760, %v24564_v9  ;;  %v30179_v5 = vand.u32 4294901760, %v24683_v35  ;;  %v364_v35 = vld [vmem:[#allocation5 + $0x8a0] sm:$0xff] }
 0x330   :  { %v19321_v32 = vpack.c.bf16 %v30181_v39, %v30180_v37  ;;  %v30182_v49 = vand.u32 4294901760, %v24596_v16  ;;  %v30184_v9 = vand.u32 4294901760, %v24609_v22  ;;  %v24891_v4 = vsub.f32 %v24838_v27, %v7558_v51 }
 0x331   :  { %19310 = vmatpush3.bf16.msra.mxu0 %v19309_v62  ;;  %v29216_v62 = vand.u32 4294901760, %v24831_v30  ;;  %v19319_v24 = vpack.c.bf16 %v30178_v14, %v30177_v23  ;;  %v7510_v23 = vand.u32 4294901760, %v346_v59  ;;  %v24894_v50 = vsub.f32 %v24840_v55, %v7561_v1 }
 0x332   :  { %19302 = vmatpush3.bf16.msra.mxu1 %v24736_v53  ;;  %19312 = vmatprep.subr.bf16.mxu0 %v19311_v43  ;;  %v19317_v43 = vpack.c.bf16 %v30176_v63, %v30175_v26  ;;  %v30183_v26 = vand.u32 4294901760, %v30150_v33  ;;  %v30185_v63 = vand.u32 4294901760, %v30152_v54  ;;  %v7513_v16 = vand.u32 4294901760, %v347_v34  ;;  %v365_v33 = vld [vmem:[#allocation5 + $0x8a8] sm:$0xff] }
 0x333   :  { %19336 = vmatprep.subr.bf16.mxu1 %v24445_v38  ;;  %v24871_v38 = vsub.f32 %v24823_v42, %v7507_v20  ;;  %v7731_v22 = vsub.f32 %v24831_v30, %v29216_v62  ;;  %v73_v54 = vld [vmem:[#allocation2 + $0x88] sm:$0xff]  ;;  %v30186_v37 = vand.u32 4294901760, %v30154_v12  ;;  %v30188_v27 = vand.u32 4294901760, %v24663_v10 }
 0x334   :  { %v19323_v60 = vpack.c.bf16 %v30183_v26, %v30182_v49  ;;  %v24887_v42 = vpack.c.bf16 %v30185_v63, %v30184_v9  ;;  %v30189_v55 = vand.u32 4294901760, %v24670_v8  ;;  %v30190_v39 = vand.u32 4294901760, %v24835_v25  ;;  %v349_v9 = vld [vmem:[#allocation5 + $0x828] sm:$0xff] }
 0x335   :  { %7226 = vmatmul.mubr.f32.vlgmr.msra.gmra.mrb[44].mxu1 %v30179_v5  ;;  %19314 = vmatpush3.bf16.msra.mxu0 %v19313_v41  ;;  %v30191_v12 = vand.u32 4294901760, %v24676_v36  ;;  %v30193_v10 = vand.u32 4294901760, %v24700_v45  ;;  %v30194_v8 = vand.u32 4294901760, %v24703_v46  ;;  %v24929_v26 = vpack.c.bf16 %v7555_v52, %v7552_v21 }
 0x336   :  { %19338 = vmatpush3.bf16.msra.mxu1 %v30147_v19  ;;  %19316 = vmatprep.subr.bf16.mxu0 %v19315_v29  ;;  %v30187_v19 = vand.u32 4294901760, %v24634_v18  ;;  %v24910_v29 = vpack.c.bf16 %v30189_v55, %v30188_v27  ;;  %v7738_v14 = vsub.f32 %v24835_v25, %v30190_v39  ;;  %v30192_v18 = vand.u32 4294901760, %v24679_v48 }
 0x337   :  { %19340 = vmatprep.subr.bf16.mxu1 %v30148_v2  ;;  %7496 = vmatprep.mubr.f32.mxu1 %v30168_v28  ;;  %v29215_v2 = vand.u32 4294901760, %v24859_v17  ;;  %v24927_v49 = vpack.c.bf16 %v30194_v8, %v30193_v10  ;;  %v348_v28 = vld [vmem:[#allocation5 + $0x820] sm:$0xff]  ;;  %v29214_v63 = vand.u32 4294901760, %v24871_v38  ;;  %v7564_v36 = vand.u32 4294901760, %v364_v35  ;;  %v367_v10 = vld [vmem:[#allocation5 + $0x8b8] sm:$0xff] }
 0x338   :  { %v24904_v41 = vpack.c.bf16 %v30187_v19, %v30186_v37  ;;  %v24921_v5 = vpack.c.bf16 %v30192_v18, %v30191_v12  ;;  %v24932_v37 = vsub.f32 %v346_v59, %v7510_v23  ;;  %v7567_v19 = vand.u32 4294901760, %v365_v33  ;;  %v366_v18 = vld [vmem:[#allocation5 + $0x8b0] sm:$0xff] }
 0x339   :  { %19318 = vmatpush3.bf16.msra.mxu0 %v19317_v43  ;;  %v24934_v48 = vand.u32 4294901760, %v73_v54  ;;  %v24937_v45 = vsub.f32 %v347_v34, %v7513_v16  ;;  %v7732_v46 = vand.u32 4294901760, %v7731_v22  ;;  %v29213_v21 = vand.u32 4294901760, %v24891_v4 }
 0x33a   :  { %19342 = vmatpush3.bf16.msra.mxu1 %v24467_v3  ;;  %19320 = vmatprep.subr.bf16.mxu0 %v19319_v24  ;;  %v29212_v52 = vand.u32 4294901760, %v24894_v50  ;;  %v7739_v27 = vand.u32 4294901760, %v7738_v14  ;;  %v7516_v43 = vand.u32 4294901760, %v348_v28  ;;  %v7519_v59 = vand.u32 4294901760, %v349_v9 }
 0x33b   :  { %30195 = vst [vmem:[#allocation20_spill] sm:$0xff] %v24934_v48  ;;  %19344 = vmatprep.subr.bf16.mxu1 %v30151_v31  ;;  %v7619_v55 = vsub.f32 %v24859_v17, %v29215_v2  ;;  %v30196_v39 = vand.u32 4294901760, %v24816_v47  ;;  %v24949_v34 = vpack.c.bf16 %v7561_v1, %v7558_v51  ;;  %v24951_v24 = vpack.c.bf16 %v7513_v16, %v7510_v23  ;;  %v350_v1 = vld [vmem:[#allocation5 + $0x830] sm:$0xff] }
 0x33c   :  { %v7626_v22 = vsub.f32 %v24871_v38, %v29214_v63  ;;  %v24956_v31 = vpack.c.bf16 %v7567_v19, %v7564_v36  ;;  %v24958_v14 = vsub.f32 %v364_v35, %v7564_v36  ;;  %v24960_v12 = vsub.f32 %v365_v33, %v7567_v19  ;;  %v369_v63 = vld [vmem:[#allocation5 + $0x8c8] sm:$0xff] }
 0x33d   :  { %v24947_v3 = vpack.c.bf16 %v7507_v20, %v30196_v39  ;;  %30198 = vst [vmem:[#allocation21_spill] sm:$0xff] %v24949_v34  ;;  %19322 = vmatpush3.bf16.msra.mxu0 %v19321_v32  ;;  %v24963_v47 = vsub.f32 %v73_v54, %v24934_v48  ;;  %v7745_v20 = vsub.f32 %v24891_v4, %v29213_v21  ;;  %v351_v32 = vld [vmem:[#allocation5 + $0x838] sm:$0xff]  ;;  %v29218_v23 = vand.u32 4294901760, %v24932_v37  ;;  %v368_v21 = vld [vmem:[#allocation5 + $0x8c0] sm:$0xff] }
 0x33e   :  { %30199 = vst [vmem:[#allocation16_spill] sm:$0xff] %v24956_v31  ;;  %19346 = vmatpush3.bf16.msra.mxu1 %v30153_v0  ;;  %19324 = vmatprep.subr.bf16.mxu0 %v19323_v60  ;;  %v7752_v51 = vsub.f32 %v24894_v50, %v29212_v52  ;;  %v29217_v16 = vand.u32 4294901760, %v24937_v45  ;;  %v24975_v33 = vpack.c.bf16 %v7739_v27, %v7732_v46  ;;  %v7620_v54 = vand.u32 4294901760, %v7619_v55 }
 0x33f   :  { %30197 = vst [vmem:[#allocation27_spill] sm:$0xff] %v24947_v3  ;;  %v15623_v35 = vpop.f32.mrb[32].mxu0  ;;  %19348 = vmatprep.subr.bf16.mxu1 %v30155_v56  ;;  %v24977_v0 = vpack.c.bf16 %v7519_v59, %v7516_v43  ;;  %v24979_v60 = vsub.f32 %v348_v28, %v7516_v43  ;;  %v24981_v36 = vsub.f32 %v349_v9, %v7519_v59  ;;  %v7627_v19 = vand.u32 4294901760, %v7626_v22 }
 0x340   :  { %v15624_v8 = vpop.f32.mrb[33].mxu0  ;;  %v7570_v39 = vand.u32 4294901760, %v366_v18  ;;  %v7573_v52 = vand.u32 4294901760, %v367_v10  ;;  %v7522_v62 = vand.u32 4294901760, %v350_v1  ;;  %v7525_v56 = vand.u32 4294901760, %v351_v32 }
 0x341   :  { %30200 = vst [vmem:[#allocation28_spill] sm:$0xff] %v24977_v0  ;;  %v15625_v2 = vadd.f32 %v15624_v8, %v15623_v35  ;;  %19326 = vmatpush3.bf16.msra.mxu0 %v24887_v42  ;;  %v29222_v46 = vand.u32 4294901760, %v24963_v47  ;;  %v7746_v28 = vand.u32 4294901760, %v7745_v20  ;;  %v7753_v27 = vand.u32 4294901760, %v7752_v51 }
 0x342   :  { %19350 = vmatpush3.bf16.msra.mxu1 %v30156_v7  ;;  %19328 = vmatprep.subr.bf16.mxu0 %v24904_v41  ;;  %v7633_v9 = vsub.f32 %v24932_v37, %v29218_v23  ;;  %v7640_v43 = vsub.f32 %v24937_v45, %v29217_v16  ;;  %v7576_v59 = vand.u32 4294901760, %v368_v21  ;;  %v7579_v55 = vand.u32 4294901760, %v369_v63 }
 0x343   :  { %v5396_v42 = vadd.f32 %v15625_v2, %v24813_v13  ;;  %19352 = vmatprep.subr.bf16.mxu1 %v30157_v15  ;;  %v29220_v7 = vand.u32 4294901760, %v24958_v14  ;;  %v24996_v22 = vpack.c.bf16 %v7627_v19, %v7620_v54  ;;  %v24998_v41 = vpack.c.bf16 %v7573_v52, %v7570_v39  ;;  %v352_v13 = vld [vmem:[#allocation5 + $0x840] sm:$0xff]  ;;  %v353_v15 = vld [vmem:[#allocation5 + $0x848] sm:$0xff] }
 0x344   :  { %v25000_v20 = vsub.f32 %v366_v18, %v7570_v39  ;;  %v29219_v51 = vand.u32 4294901760, %v24960_v12  ;;  %v25004_v35 = vsub.f32 %v367_v10, %v7573_v52  ;;  %v25006_v8 = vpack.c.bf16 %v7525_v56, %v7522_v62 }
 0x345   :  { %30201 = vst [vmem:[#allocation30_spill] sm:$0xff] %v24998_v41  ;;  %19330 = vmatpush3.bf16.msra.mxu0 %v24910_v29  ;;  %v29221_v2 = vand.u32 4294901760, %v24979_v60  ;;  %v7602_v54 = vsub.f32 %v24963_v47, %v29222_v46  ;;  %v25014_v18 = vsub.f32 %v350_v1, %v7522_v62  ;;  %v25016_v19 = vsub.f32 %v351_v32, %v7525_v56  ;;  %v370_v56 = vld [vmem:[#allocation5 + $0x8d0] sm:$0xff] }
 0x346   :  { %30202 = vst [vmem:[#allocation25_spill] sm:$0xff] %v25006_v8  ;;  %19354 = vmatpush3.bf16.msra.mxu1 %v30158_v57  ;;  %19332 = vmatprep.subr.bf16.mxu0 %v24921_v5  ;;  %v7634_v29 = vand.u32 4294901760, %v7633_v9  ;;  %v29223_v52 = vand.u32 4294901760, %v24981_v36  ;;  %v25020_v10 = vpack.c.bf16 %v7753_v27, %v7746_v28  ;;  %v7641_v39 = vand.u32 4294901760, %v7640_v43  ;;  %v371_v27 = vld [vmem:[#allocation5 + $0x8d8] sm:$0xff]  ;;  %v354_v9 = vld [vmem:[#allocation5 + $0x850] sm:$0xff] }
 0x347   :  { %30203 = vst [vmem:[#allocation29_spill] sm:$0xff] %v25014_v18  ;;  %30204 = vst [vmem:[#allocation24_spill] sm:$0xff] %v25016_v19  ;;  %19356 = vmatprep.subr.bf16.mxu1 %v30161_v44  ;;  %v25022_v16 = vpack.c.bf16 %v7579_v55, %v7576_v59  ;;  %v7759_v57 = vsub.f32 %v24958_v14, %v29220_v7  ;;  %v25027_v5 = vsub.f32 %v368_v21, %v7576_v59 }
 0x348   :  { %v15658_v23 = vpop.f32.mrb[32].mxu1  ;;  %v7766_v62 = vsub.f32 %v24960_v12, %v29219_v51  ;;  %v7528_v1 = vand.u32 4294901760, %v352_v13  ;;  %v7531_v32 = vand.u32 4294901760, %v353_v15  ;;  %v7647_v28 = vsub.f32 %v24979_v60, %v29221_v2 }
 0x349   :  { %30205 = vst [vmem:[#allocation22_spill] sm:$0xff] %v25022_v16  ;;  %v15659_v44 = vpop.f32.mrb[33].mxu1  ;;  %19334 = vmatpush3.bf16.msra.mxu0 %v24927_v49  ;;  %v7603_v43 = vand.u32 4294901760, %v7602_v54  ;;  %v7654_v51 = vsub.f32 %v24981_v36, %v29223_v52  ;;  %v25046_v2 = vpack.c.bf16 %v7641_v39, %v7634_v29  ;;  %v25048_v46 = vsub.f32 %v369_v63, %v7579_v55  ;;  %v355_v49 = vld [vmem:[#allocation5 + $0x858] sm:$0xff] }
 0x34a   :  { %v15660_v59 = vadd.f32 %v15659_v44, %v15658_v23  ;;  %19358 = vmatpush3.bf16.msra.mxu1 %v24607_v61  ;;  %19368 = vmatprep.subr.bf16.mxu0 %v24929_v26  ;;  %v7760_v54 = vand.u32 4294901760, %v7759_v57  ;;  %v7582_v23 = vand.u32 4294901760, %v370_v56  ;;  %v7767_v61 = vand.u32 4294901760, %v7766_v62 }
 0x34b   :  { %19360 = vmatprep.subr.bf16.mxu1 %v24628_v11  ;;  %v25053_v21 = vsub.f32 %v352_v13, %v7528_v1  ;;  %v7585_v52 = vand.u32 4294901760, %v371_v27  ;;  %v25056_v7 = vpack.c.bf16 %v7531_v32, %v7528_v1  ;;  %v30207_v11 = vand.u32 4294901760, %v25000_v20 }
 0x34c   :  { %v25050_v44 = vadd.f32 %v15660_v59, %v5396_v42  ;;  %7394 = vmatmul.mubr.f32.vlgmr.msra.gmra.mrb[46].mxu0 %v24660_v40  ;;  %v30208_v55 = vand.u32 4294901760, %v25004_v35  ;;  %v7648_v13 = vand.u32 4294901760, %v7647_v28  ;;  %v7655_v29 = vand.u32 4294901760, %v7654_v51  ;;  %v372_v59 = vld [vmem:[#allocation5 + $0x8e0] sm:$0xff] }
 0x34d   :  { %19370 = vmatpush3.bf16.msra.mxu0 %v24947_v3  ;;  %30206 = vst [vmem:[#allocation19_spill] sm:$0xff] %v25056_v7  ;;  %v7773_v63 = vsub.f32 %v25000_v20, %v30207_v11  ;;  %7604 = vmatprep.mubr.f32.mxu0 %v7603_v43  ;;  %v30209_v39 = vand.u32 4294901760, %v25014_v18  ;;  %v30210_v62 = vand.u32 4294901760, %v25016_v19  ;;  %v373_v11 = vld [vmem:[#allocation5 + $0x8e8] sm:$0xff]  ;;  %v7534_v43 = vand.u32 4294901760, %v354_v9 }
 0x34e   :  { %v7780_v42 = vsub.f32 %v25004_v35, %v30208_v55  ;;  %19362 = vmatpush3.bf16.msra.mxu1 %v24686_v58  ;;  %19372 = vmatprep.subr.bf16.mxu0 %v24949_v34  ;;  %v25073_v55 = vsub.f32 %v353_v15, %v7531_v32  ;;  %v7537_v58 = vand.u32 4294901760, %v355_v49  ;;  %v29232_v34 = vand.u32 4294901760, %v25027_v5 }
 0x34f   :  { %v7661_v57 = vsub.f32 %v25014_v18, %v30209_v39  ;;  %v7668_v1 = vsub.f32 %v25016_v19, %v30210_v62  ;;  %19364 = vmatprep.subr.bf16.mxu1 %v24712_v6  ;;  %v25076_v28 = vpack.c.bf16 %v7767_v61, %v7760_v54  ;;  %v25078_v51 = vpack.c.bf16 %v7585_v52, %v7582_v23 }
 0x350   :  { %v25080_v3 = vsub.f32 %v370_v56, %v7582_v23  ;;  %v25082_v39 = vsub.f32 %v371_v27, %v7585_v52  ;;  %v7774_v62 = vand.u32 4294901760, %v7773_v63  ;;  %v7781_v19 = vand.u32 4294901760, %v7780_v42  ;;  %v356_v56 = vld [vmem:[#allocation5 + $0x860] sm:$0xff] }
 0x351   :  { %30211 = vst [vmem:[#allocation23_spill] sm:$0xff] %v25078_v51  ;;  %19374 = vmatpush3.bf16.msra.mxu0 %v24951_v24  ;;  %v7588_v18 = vand.u32 4294901760, %v372_v59  ;;  %v7591_v6 = vand.u32 4294901760, %v373_v11  ;;  %v25087_v15 = vpack.c.bf16 %v7655_v29, %v7648_v13  ;;  %v7662_v32 = vand.u32 4294901760, %v7661_v57  ;;  %v25104_v29 = vld [vmem:[#allocation5 + $0x8f0] sm:$0xff]  ;;  %v25106_v57 = vld [vmem:[#allocation5 + $0x8f8] sm:$0xff] }
 0x352   :  { %30212 = vst [vmem:[#allocation17_spill] sm:$0xff] %v25082_v39  ;;  %19366 = vmatpush3.bf16.msra.mxu1 %v24736_v53  ;;  %19376 = vmatprep.subr.bf16.mxu0 %v24956_v31  ;;  %v7669_v54 = vand.u32 4294901760, %v7668_v1  ;;  %v29233_v61 = vand.u32 4294901760, %v25048_v46  ;;  %v25091_v52 = vpack.c.bf16 %v7537_v58, %v7534_v43  ;;  %v25093_v27 = vsub.f32 %v354_v9, %v7534_v43  ;;  %v357_v53 = vld [vmem:[#allocation5 + $0x868] sm:$0xff] }
 0x353   :  { %19400 = vmatprep.subr.bf16.mxu1 %v24975_v33  ;;  %v25098_v23 = vsub.f32 %v25027_v5, %v29232_v34  ;;  %v25101_v42 = vsub.f32 %v355_v49, %v7537_v58  ;;  %v29240_v33 = vand.u32 4294901760, %v25080_v3  ;;  %v19411_v1 = vpack.c.bf16 %v7781_v19, %v7774_v62  ;;  %v72_v58 = vld [vmem:[#allocation2 + $0x80] sm:$0xff] }
 0x354   :  { %v25112_v43 = vpack.c.bf16 %v7591_v6, %v7588_v18  ;;  %v25114_v34 = vsub.f32 %v372_v59, %v7588_v18  ;;  %v7540_v49 = vand.u32 4294901760, %v356_v56  ;;  %v19413_v13 = vpack.c.bf16 %v7669_v54, %v7662_v32  ;;  %v25130_v32 = vld [vmem:[#allocation5 + $0x870] sm:$0xff] }
 0x355   :  { %30213 = vst [vmem:[#allocation26_spill] sm:$0xff] %v25101_v42  ;;  %7498 = vmatmul.mubr.f32.vlgmr.msra.gmra.mrb[46].mxu1 %v24660_v40  ;;  %19378 = vmatpush3.bf16.msra.mxu0 %v24977_v0  ;;  %v25118_v63 = vsub.f32 %v373_v11, %v7591_v6  ;;  %v7794_v40 = vsub.f32 %v25048_v46, %v29233_v61  ;;  %v7543_v9 = vand.u32 4294901760, %v357_v53  ;;  %v7788_v19 = vand.u32 4294901760, %v25098_v23  ;;  %v25132_v11 = vld [vmem:[#allocation5 + $0x878] sm:$0xff] }
 0x356   :  { %30214 = vst [vmem:[#allocation18_spill] sm:$0xff] %v25114_v34  ;;  %19402 = vmatpush3.bf16.msra.mxu1 %v24996_v22  ;;  %19380 = vmatprep.subr.bf16.mxu0 %v24998_v41  ;;  %v30215_v18 = vand.u32 4294901760, %v25053_v21  ;;  %v7594_v22 = vand.u32 4294901760, %v25104_v29  ;;  %v7597_v62 = vand.u32 4294901760, %v25106_v57  ;;  %v30216_v6 = vand.u32 4294901760, %v25073_v55 }
 0x357   :  { %19404 = vmatprep.subr.bf16.mxu1 %v25020_v10  ;;  %7840 = vmatprep.mubr.f32.mxu1 %v24934_v48  ;;  %v7801_v54 = vsub.f32 %v25080_v3, %v29240_v33  ;;  %v30217_v23 = vand.u32 4294901760, %v25082_v39  ;;  %v25144_v61 = vand.u32 4294901760, %v72_v58  ;;  %v25147_v41 = vsub.f32 %v356_v56, %v7540_v49 }
 0x358   :  { %v7675_v59 = vsub.f32 %v25053_v21, %v30215_v18  ;;  %v7682_v10 = vsub.f32 %v25073_v55, %v30216_v6  ;;  %v7795_v33 = vand.u32 4294901760, %v7794_v40  ;;  %v25154_v31 = vsub.f32 %v357_v53, %v7543_v9 }
 0x359   :  { %v7808_v18 = vsub.f32 %v25082_v39, %v30217_v23  ;;  %19382 = vmatpush3.bf16.msra.mxu0 %v25006_v8  ;;  %v7546_v23 = vand.u32 4294901760, %v25130_v32  ;;  %v7549_v39 = vand.u32 4294901760, %v25132_v11  ;;  %v25160_v48 = vsub.f32 %v25104_v29, %v7594_v22 }
 0x35a   :  { %19406 = vmatpush3.bf16.msra.mxu1 %v25046_v2  ;;  %19384 = vmatprep.subr.bf16.mxu0 %v25022_v16  ;;  %v7676_v56 = vand.u32 4294901760, %v7675_v59  ;;  %v25163_v0 = vsub.f32 %v25106_v57, %v7597_v62  ;;  %v7683_v6 = vand.u32 4294901760, %v7682_v10  ;;  %v7802_v16 = vand.u32 4294901760, %v7801_v54 }
 0x35b   :  { %19408 = vmatprep.subr.bf16.mxu1 %v25076_v28  ;;  %v7809_v40 = vand.u32 4294901760, %v7808_v18  ;;  %v25167_v53 = vsub.f32 %v72_v58, %v25144_v61  ;;  %v25170_v8 = vpack.c.bf16 %v7543_v9, %v7540_v49  ;;  %v30218_v28 = vand.u32 4294901760, %v25093_v27 }
 0x35c   :  { %v30219_v59 = vand.u32 4294901760, %v25101_v42  ;;  %v30220_v2 = vand.u32 4294901760, %v25114_v34  ;;  %v25184_v58 = vsub.f32 %v25130_v32, %v7546_v23  ;;  %v25187_v9 = vsub.f32 %v25132_v11, %v7549_v39 }
 0x35d   :  { %19386 = vmatpush3.bf16.msra.mxu0 %v25056_v7  ;;  %v7689_v29 = vsub.f32 %v25093_v27, %v30218_v28  ;;  %v29260_v54 = vand.u32 4294901760, %v25154_v31  ;;  %v19415_v28 = vpack.c.bf16 %v7795_v33, %v7788_v19  ;;  %v19417_v7 = vpack.c.bf16 %v7683_v6, %v7676_v56 }
 0x35e   :  { %v7696_v57 = vsub.f32 %v25101_v42, %v30219_v59  ;;  %v7815_v10 = vsub.f32 %v25114_v34, %v30220_v2  ;;  %19410 = vmatpush3.bf16.msra.mxu1 %v25087_v15  ;;  %19388 = vmatprep.subr.bf16.mxu0 %v25078_v51  ;;  %v30221_v59 = vand.u32 4294901760, %v25118_v63  ;;  %v29259_v15 = vand.u32 4294901760, %v25160_v48 }
 0x35f   :  { %v15693_v18 = vpop.f32.mrb[34].mxu0  ;;  %19412 = vmatprep.subr.bf16.mxu1 %v19411_v1  ;;  %v25196_v34 = vpack.c.bf16 %v7597_v62, %v7594_v22  ;;  %v19419_v11 = vpack.c.bf16 %v7809_v40, %v7802_v16  ;;  %v29261_v49 = vand.u32 4294901760, %v25167_v53  ;;  %v7690_v1 = vand.u32 4294901760, %v7689_v29 }
 0x360   :  { %v7822_v2 = vsub.f32 %v25118_v63, %v30221_v59  ;;  %v15694_v32 = vpop.f32.mrb[35].mxu0  ;;  %v7697_v33 = vand.u32 4294901760, %v7696_v57  ;;  %v7816_v19 = vand.u32 4294901760, %v7815_v10  ;;  %v30222_v59 = vand.u32 4294901760, %v25147_v41 }
 0x361   :  { %v15695_v42 = vadd.f32 %v15694_v32, %v15693_v18  ;;  %19390 = vmatpush3.bf16.msra.mxu0 %v25091_v52  ;;  %v7710_v22 = vsub.f32 %v25154_v31, %v29260_v54  ;;  %v29257_v16 = vand.u32 4294901760, %v25184_v58  ;;  %v29258_v62 = vand.u32 4294901760, %v25187_v9 }
 0x362   :  { %19414 = vmatpush3.bf16.msra.mxu1 %v19413_v13  ;;  %19392 = vmatprep.subr.bf16.mxu0 %v25112_v43  ;;  %v7703_v51 = vsub.f32 %v25147_v41, %v30222_v59  ;;  %v7823_v56 = vand.u32 4294901760, %v7822_v2  ;;  %v7829_v13 = vsub.f32 %v25160_v48, %v29259_v15  ;;  %v30223_v40 = vand.u32 4294901760, %v25163_v0 }
 0x363   :  { %v5672_v6 = vadd.f32 %v15695_v42, %v25050_v44  ;;  %19416 = vmatprep.subr.bf16.mxu1 %v19415_v28  ;;  %v7608_v57 = vsub.f32 %v25167_v53, %v29261_v49  ;;  %v25220_v10 = vpack.c.bf16 %v7549_v39, %v7546_v23  ;;  %v19421_v18 = vpack.c.bf16 %v7697_v33, %v7690_v1 }
 0x364   :  { %v7836_v29 = vsub.f32 %v25163_v0, %v30223_v40  ;;  %v19431_v44 = vpack.c.bf16 %v24835_v25, %v24831_v30  ;;  %v7704_v42 = vand.u32 4294901760, %v7703_v51  ;;  %v7711_v28 = vand.u32 4294901760, %v7710_v22 }
 0x365   :  { %19394 = vmatpush3.bf16.msra.mxu0 %v25170_v8  ;;  %v7717_v2 = vsub.f32 %v25184_v58, %v29257_v16  ;;  %v7724_v32 = vsub.f32 %v25187_v9, %v29258_v62  ;;  %v19423_v39 = vpack.c.bf16 %v7823_v56, %v7816_v19  ;;  %v7830_v23 = vand.u32 4294901760, %v7829_v13 }
 0x366   :  { %19418 = vmatpush3.bf16.msra.mxu1 %v19417_v7  ;;  %19396 = vmatprep.subr.bf16.mxu0 %v25196_v34  ;;  %v7837_v1 = vand.u32 4294901760, %v7836_v29  ;;  %v7609_v59 = vand.u32 4294901760, %v7608_v57  ;;  %v19433_v7 = vpack.c.bf16 %v24871_v38, %v24859_v17  ;;  %v19435_v51 = vpack.c.bf16 %v24894_v50, %v24891_v4 }
 0x367   :  { %19420 = vmatprep.subr.bf16.mxu1 %v19419_v11  ;;  %v19425_v16 = vpack.c.bf16 %v7711_v28, %v7704_v42  ;;  %v7718_v62 = vand.u32 4294901760, %v7717_v2  ;;  %v7725_v11 = vand.u32 4294901760, %v7724_v32  ;;  %v19437_v13 = vpack.c.bf16 %v24937_v45, %v24932_v37  ;;  %v30226_v42 = vld [vmem:[#allocation27_spill] sm:$0xff]  ;;  %v30227_v2 = vld [vmem:[#allocation21_spill] sm:$0xff] }
 0x368   :  { %v15728_v33 = vpop.f32.mrb[34].mxu1  ;;  %v19427_v19 = vpack.c.bf16 %v7837_v1, %v7830_v23  ;;  %v19439_v57 = vpack.c.bf16 %v24960_v12, %v24958_v14  ;;  %v19447_v28 = vpack.c.bf16 %v25048_v46, %v25027_v5  ;;  %v30228_v32 = vand.u32 4294901760, %v24963_v47  ;;  %v30229_v23 = vld [vmem:[#allocation17_spill] sm:$0xff] }
 0x369   :  { %v15729_v40 = vpop.f32.mrb[35].mxu1  ;;  %19398 = vmatpush3.bf16.msra.mxu0 %v25220_v10  ;;  %v19429_v29 = vpack.c.bf16 %v7725_v11, %v7718_v62  ;;  %v30225_v62 = vld [vmem:[#allocation24_spill] sm:$0xff]  ;;  %v19451_v1 = vpack.c.bf16 %v30229_v23, %v25080_v3  ;;  %v30234_v11 = vld [vmem:[#allocation30_spill] sm:$0xff]  ;;  %v30242_v15 = vand.u32 4294901760, %v24871_v38  ;;  %v30245_v38 = vand.u32 4294901760, %v24932_v37 }
 0x36a   :  { %v15730_v22 = vadd.f32 %v15729_v40, %v15728_v33  ;;  %19422 = vmatpush3.bf16.msra.mxu1 %v19421_v18  ;;  %19432 = vmatprep.subr.bf16.mxu0 %v19431_v44  ;;  %v19441_v18 = vpack.c.bf16 %v24981_v36, %v24979_v60  ;;  %v30230_v33 = vld [vmem:[#allocation16_spill] sm:$0xff] }
 0x36b   :  { %19424 = vmatprep.subr.bf16.mxu1 %v19423_v39  ;;  %v19449_v39 = vpack.c.bf16 %v25073_v55, %v25053_v21 }
 0x36c   :  { %v5776_v56 = vadd.f32 %v15730_v22, %v5672_v6  ;;  %7610 = vmatmul.mubr.f32.vlgmr.msra.gmra.mrb[48].mxu0 %v7609_v59  ;;  %v19443_v6 = vpack.c.bf16 %v25004_v35, %v25000_v20  ;;  %v30231_v59 = vld [vmem:[#allocation26_spill] sm:$0xff] }
 0x36d   :  { %19434 = vmatpush3.bf16.msra.mxu0 %v19433_v7  ;;  %7977 = vmatprep.mubr.f32.mxu0 %v24963_v47  ;;  %v19453_v40 = vpack.c.bf16 %v30231_v59, %v25093_v27  ;;  %v30232_v7 = vld [vmem:[#allocation28_spill] sm:$0xff]  ;;  %v30233_v47 = vld [vmem:[#allocation18_spill] sm:$0xff] }
 0x36e   :  { %19426 = vmatpush3.bf16.msra.mxu1 %v19425_v16  ;;  %19436 = vmatprep.subr.bf16.mxu0 %v19435_v51  ;;  %v30224_v16 = vld [vmem:[#allocation29_spill] sm:$0xff]  ;;  %v19455_v51 = vpack.c.bf16 %v25118_v63, %v30233_v47 }
 0x36f   :  { %19428 = vmatprep.subr.bf16.mxu1 %v19427_v19  ;;  %v19445_v44 = vpack.c.bf16 %v30225_v62, %v30224_v16 }
 0x371   :  { %19438 = vmatpush3.bf16.msra.mxu0 %v19437_v13 }
 0x372   :  { %19430 = vmatpush3.bf16.msra.mxu1 %v19429_v29  ;;  %19440 = vmatprep.subr.bf16.mxu0 %v19439_v57  ;;  %v19457_v29 = vpack.c.bf16 %v25154_v31, %v25147_v41  ;;  %v30235_v57 = vld [vmem:[#allocation25_spill] sm:$0xff] }
 0x373   :  { %19464 = vmatprep.subr.bf16.mxu1 %v24929_v26 }
 0x375   :  { %7842 = vmatmul.mubr.f32.vlgmr.msra.gmra.mrb[48].mxu1 %v25144_v61  ;;  %19442 = vmatpush3.bf16.msra.mxu0 %v19441_v18  ;;  %v19459_v18 = vpack.c.bf16 %v25163_v0, %v25160_v48 }
 0x376   :  { %19466 = vmatpush3.bf16.msra.mxu1 %v30226_v42  ;;  %19444 = vmatprep.subr.bf16.mxu0 %v19443_v6 }
 0x377   :  { %19468 = vmatprep.subr.bf16.mxu1 %v30227_v2  ;;  %8084 = vmatprep.mubr.f32.mxu1 %v30228_v32  ;;  %v30237_v32 = vld [vmem:[#allocation19_spill] sm:$0xff] }
 0x379   :  { %19446 = vmatpush3.bf16.msra.mxu0 %v19445_v44  ;;  %v30236_v44 = vld [vmem:[#allocation22_spill] sm:$0xff] }
 0x37a   :  { %19470 = vmatpush3.bf16.msra.mxu1 %v24951_v24  ;;  %19448 = vmatprep.subr.bf16.mxu0 %v19447_v28  ;;  %v19461_v28 = vpack.c.bf16 %v25187_v9, %v25184_v58 }
 0x37b   :  { %19472 = vmatprep.subr.bf16.mxu1 %v30230_v33 }
 0x37d   :  { %19450 = vmatpush3.bf16.msra.mxu0 %v19449_v39  ;;  %v30238_v39 = vand.u32 4294901760, %v24831_v30  ;;  %v30243_v30 = vand.u32 4294901760, %v24891_v4  ;;  %v30246_v4 = vand.u32 4294901760, %v24937_v45 }
 0x37e   :  { %19474 = vmatpush3.bf16.msra.mxu1 %v30232_v7  ;;  %19452 = vmatprep.subr.bf16.mxu0 %v19451_v1  ;;  %v30239_v1 = vand.u32 4294901760, %v24835_v25  ;;  %v30244_v25 = vand.u32 4294901760, %v24894_v50  ;;  %v30247_v50 = vld [vmem:[#allocation20_spill] sm:$0xff] }
 0x37f   :  { %v15763_v22 = vpop.f32.mrb[36].mxu0  ;;  %19476 = vmatprep.subr.bf16.mxu1 %v30234_v11 }
 0x380   :  { %v15764_v19 = vpop.f32.mrb[37].mxu0 }
 0x381   :  { %v15765_v13 = vadd.f32 %v15764_v19, %v15763_v22  ;;  %19454 = vmatpush3.bf16.msra.mxu0 %v19453_v40  ;;  %v19495_v40 = vpack.c.bf16 %v30239_v1, %v30238_v39  ;;  %v30240_v22 = vld [vmem:[#allocation23_spill] sm:$0xff]  ;;  %v19499_v39 = vpack.c.bf16 %v30244_v25, %v30243_v30  ;;  %v30253_v25 = vand.u32 4294901760, %v25004_v35 }
 0x382   :  { %19478 = vmatpush3.bf16.msra.mxu1 %v30235_v57  ;;  %19456 = vmatprep.subr.bf16.mxu0 %v19455_v51  ;;  %v25281_v51 = vld [vmem:[#allocation5 + $0x980] sm:$0xff]  ;;  %v30254_v35 = vand.u32 4294901760, %v30224_v16 }
 0x383   :  { %v5888_v6 = vadd.f32 %v15765_v13, %v5776_v56  ;;  %19480 = vmatprep.subr.bf16.mxu1 %v30236_v44  ;;  %v25283_v56 = vld [vmem:[#allocation5 + $0x988] sm:$0xff]  ;;  %v8414_v1 = vand.u32 4294901760, %v25281_v51 }
 0x385   :  { %19458 = vmatpush3.bf16.msra.mxu0 %v19457_v29  ;;  %v30241_v29 = vand.u32 4294901760, %v24859_v17  ;;  %v25300_v17 = vld [vmem:[#allocation5 + $0x900] sm:$0xff] }
 0x386   :  { %19482 = vmatpush3.bf16.msra.mxu1 %v30237_v32  ;;  %19460 = vmatprep.subr.bf16.mxu0 %v19459_v18  ;;  %v29262_v45 = vand.u32 4294901760, %v25300_v17 }
 0x387   :  { %19484 = vmatprep.subr.bf16.mxu1 %v30240_v22  ;;  %v19497_v54 = vpack.c.bf16 %v30242_v15, %v30241_v29  ;;  %v19501_v15 = vpack.c.bf16 %v30246_v4, %v30245_v38  ;;  %v25315_v29 = vsub.f32 %v25281_v51, %v8414_v1 }
 0x388   :  { %v15798_v19 = vpop.f32.mrb[36].mxu1 }
 0x389   :  { %v15799_v13 = vpop.f32.mrb[37].mxu1  ;;  %19462 = vmatpush3.bf16.msra.mxu0 %v19461_v28  ;;  %v8417_v28 = vand.u32 4294901760, %v25283_v56 }
 0x38a   :  { %v15800_v18 = vadd.f32 %v15799_v13, %v15798_v19  ;;  %19486 = vmatpush3.bf16.msra.mxu1 %v25091_v52  ;;  %19496 = vmatprep.subr.bf16.mxu0 %v19495_v40  ;;  %v25307_v40 = vld [vmem:[#allocation5 + $0x908] sm:$0xff]  ;;  %v30249_v19 = vand.u32 4294901760, %v24960_v12  ;;  %v30251_v12 = vand.u32 4294901760, %v24981_v36  ;;  %v379_v36 = vld [vmem:[#allocation5 + $0x918] sm:$0xff] }
 0x38b   :  { %19488 = vmatprep.subr.bf16.mxu1 %v25112_v43  ;;  %v25319_v37 = vsub.f32 %v25283_v56, %v8417_v28  ;;  %v8369_v30 = vand.u32 4294901760, %v25307_v40  ;;  %v30252_v56 = vand.u32 4294901760, %v25000_v20  ;;  %v30260_v20 = vand.u32 4294901760, %v25073_v55 }
 0x38c   :  { %v25297_v49 = vadd.f32 %v15800_v18, %v5888_v6  ;;  %7980 = vmatmul.mubr.f32.vlgmr.msra.gmra.mrb[50].mxu0 %v25167_v53  ;;  %v30248_v6 = vand.u32 4294901760, %v24958_v14  ;;  %v25324_v18 = vld [vmem:[#allocation5 + $0x998] sm:$0xff]  ;;  %v30250_v14 = vand.u32 4294901760, %v24979_v60  ;;  %v25343_v60 = vsub.f32 %v25300_v17, %v29262_v45 }
 0x38d   :  { %19498 = vmatpush3.bf16.msra.mxu0 %v19497_v54  ;;  %8254 = vmatprep.mubr.f32.mxu0 %v30247_v50  ;;  %v25322_v54 = vld [vmem:[#allocation5 + $0x990] sm:$0xff]  ;;  %v8423_v4 = vand.u32 4294901760, %v25324_v18  ;;  %v30259_v45 = vand.u32 4294901760, %v25053_v21 }
 0x38e   :  { %19490 = vmatpush3.bf16.msra.mxu1 %v25170_v8  ;;  %19500 = vmatprep.subr.bf16.mxu0 %v19499_v39  ;;  %v19503_v13 = vpack.c.bf16 %v30249_v19, %v30248_v6  ;;  %v19505_v51 = vpack.c.bf16 %v30251_v12, %v30250_v14  ;;  %v19507_v39 = vpack.c.bf16 %v30253_v25, %v30252_v56  ;;  %v8420_v38 = vand.u32 4294901760, %v25322_v54  ;;  %v378_v6 = vld [vmem:[#allocation5 + $0x910] sm:$0xff] }
 0x38f   :  { %19492 = vmatprep.subr.bf16.mxu1 %v25196_v34  ;;  %v30255_v19 = vand.u32 4294901760, %v30225_v62  ;;  %v30256_v14 = vand.u32 4294901760, %v25027_v5  ;;  %v30257_v12 = vand.u32 4294901760, %v25048_v46  ;;  %v30258_v25 = vand.u32 4294901760, %v25167_v53  ;;  %v396_v53 = vld [vmem:[#allocation5 + $0x9a0] sm:$0xff] }
 0x390   :  { %v19513_v16 = vpack.c.bf16 %v30260_v20, %v30259_v45  ;;  %v30261_v62 = vand.u32 4294901760, %v25080_v3  ;;  %v30263_v46 = vand.u32 4294901760, %v25093_v27  ;;  %v25375_v21 = vsub.f32 %v25322_v54, %v8420_v38 }
 0x391   :  { %19502 = vmatpush3.bf16.msra.mxu0 %v19501_v15  ;;  %v29267_v15 = vand.u32 4294901760, %v25315_v29  ;;  %v19511_v56 = vpack.c.bf16 %v30257_v12, %v30256_v14  ;;  %v8372_v14 = vand.u32 4294901760, %v378_v6  ;;  %v25378_v55 = vsub.f32 %v25324_v18, %v8423_v4 }
 0x392   :  { %19494 = vmatpush3.bf16.msra.mxu1 %v25220_v10  ;;  %19504 = vmatprep.subr.bf16.mxu0 %v19503_v13  ;;  %v19509_v13 = vpack.c.bf16 %v30255_v19, %v30254_v35  ;;  %v30262_v35 = vand.u32 4294901760, %v30229_v23  ;;  %v30264_v19 = vand.u32 4294901760, %v30231_v59  ;;  %v8375_v3 = vand.u32 4294901760, %v379_v36  ;;  %v397_v23 = vld [vmem:[#allocation5 + $0x9a8] sm:$0xff]  ;;  %v75_v59 = vld [vmem:[#allocation2 + $0x98] sm:$0xff] }
 0x393   :  { %19528 = vmatprep.subr.bf16.mxu1 %v24929_v26  ;;  %v25355_v26 = vsub.f32 %v25307_v40, %v8369_v30  ;;  %v8593_v27 = vsub.f32 %v25315_v29, %v29267_v15  ;;  %v30265_v45 = vand.u32 4294901760, %v30233_v47  ;;  %v30267_v54 = vand.u32 4294901760, %v25147_v41 }
 0x394   :  { %v19515_v5 = vpack.c.bf16 %v30262_v35, %v30261_v62  ;;  %v25371_v40 = vpack.c.bf16 %v30264_v19, %v30263_v46  ;;  %v30268_v18 = vand.u32 4294901760, %v25154_v31  ;;  %v30269_v20 = vand.u32 4294901760, %v25319_v37  ;;  %v381_v46 = vld [vmem:[#allocation5 + $0x928] sm:$0xff] }
 0x395   :  { %8088 = vmatmul.mubr.f32.vlgmr.msra.gmra.mrb[50].mxu1 %v30258_v25  ;;  %19506 = vmatpush3.bf16.msra.mxu0 %v19505_v51  ;;  %v30270_v47 = vand.u32 4294901760, %v25160_v48  ;;  %v30272_v41 = vand.u32 4294901760, %v25184_v58  ;;  %v30273_v31 = vand.u32 4294901760, %v25187_v9  ;;  %v25413_v35 = vpack.c.bf16 %v8417_v28, %v8414_v1 }
 0x396   :  { %19530 = vmatpush3.bf16.msra.mxu1 %v30226_v42  ;;  %19508 = vmatprep.subr.bf16.mxu0 %v19507_v39  ;;  %v30266_v42 = vand.u32 4294901760, %v25118_v63  ;;  %v25394_v39 = vpack.c.bf16 %v30268_v18, %v30267_v54  ;;  %v8600_v12 = vsub.f32 %v25319_v37, %v30269_v20  ;;  %v30271_v63 = vand.u32 4294901760, %v25163_v0 }
 0x397   :  { %19532 = vmatprep.subr.bf16.mxu1 %v30227_v2  ;;  %8358 = vmatprep.mubr.f32.mxu1 %v30247_v50  ;;  %v29266_v2 = vand.u32 4294901760, %v25343_v60  ;;  %v25411_v62 = vpack.c.bf16 %v30273_v31, %v30272_v41  ;;  %v380_v50 = vld [vmem:[#allocation5 + $0x920] sm:$0xff]  ;;  %v29265_v19 = vand.u32 4294901760, %v25355_v26  ;;  %v8426_v48 = vand.u32 4294901760, %v396_v53  ;;  %v399_v41 = vld [vmem:[#allocation5 + $0x9b8] sm:$0xff] }
 0x398   :  { %v25388_v51 = vpack.c.bf16 %v30266_v42, %v30265_v45  ;;  %v25405_v25 = vpack.c.bf16 %v30271_v63, %v30270_v47  ;;  %v25416_v45 = vsub.f32 %v378_v6, %v8372_v14  ;;  %v8429_v42 = vand.u32 4294901760, %v397_v23  ;;  %v398_v63 = vld [vmem:[#allocation5 + $0x9b0] sm:$0xff] }
 0x399   :  { %19510 = vmatpush3.bf16.msra.mxu0 %v19509_v13  ;;  %v25418_v0 = vand.u32 4294901760, %v75_v59  ;;  %v25421_v58 = vsub.f32 %v379_v36, %v8375_v3  ;;  %v8594_v9 = vand.u32 4294901760, %v8593_v27  ;;  %v29264_v1 = vand.u32 4294901760, %v25375_v21 }
 0x39a   :  { %19534 = vmatpush3.bf16.msra.mxu1 %v24951_v24  ;;  %19512 = vmatprep.subr.bf16.mxu0 %v19511_v56  ;;  %v29263_v28 = vand.u32 4294901760, %v25378_v55  ;;  %v8601_v54 = vand.u32 4294901760, %v8600_v12  ;;  %v8378_v13 = vand.u32 4294901760, %v380_v50  ;;  %v8381_v6 = vand.u32 4294901760, %v381_v46 }
 0x39b   :  { %30274 = vst [vmem:[#allocation29_spill] sm:$0xff] %v25418_v0  ;;  %19536 = vmatprep.subr.bf16.mxu1 %v30230_v33  ;;  %v8481_v18 = vsub.f32 %v25343_v60, %v29266_v2  ;;  %v30275_v20 = vand.u32 4294901760, %v25300_v17  ;;  %v25433_v36 = vpack.c.bf16 %v8423_v4, %v8420_v38  ;;  %v25435_v56 = vpack.c.bf16 %v8375_v3, %v8372_v14  ;;  %v382_v4 = vld [vmem:[#allocation5 + $0x930] sm:$0xff] }
 0x39c   :  { %v8488_v27 = vsub.f32 %v25355_v26, %v29265_v19  ;;  %v25440_v33 = vpack.c.bf16 %v8429_v42, %v8426_v48  ;;  %v25442_v12 = vsub.f32 %v396_v53, %v8426_v48  ;;  %v25444_v47 = vsub.f32 %v397_v23, %v8429_v42  ;;  %v401_v19 = vld [vmem:[#allocation5 + $0x9c8] sm:$0xff] }
 0x39d   :  { %v25431_v24 = vpack.c.bf16 %v8369_v30, %v30275_v20  ;;  %30277 = vst [vmem:[#allocation27_spill] sm:$0xff] %v25433_v36  ;;  %19514 = vmatpush3.bf16.msra.mxu0 %v19513_v16  ;;  %v25447_v17 = vsub.f32 %v75_v59, %v25418_v0  ;;  %v8607_v30 = vsub.f32 %v25375_v21, %v29264_v1  ;;  %v383_v16 = vld [vmem:[#allocation5 + $0x938] sm:$0xff]  ;;  %v29269_v14 = vand.u32 4294901760, %v25416_v45  ;;  %v400_v1 = vld [vmem:[#allocation5 + $0x9c0] sm:$0xff] }
 0x39e   :  { %30278 = vst [vmem:[#allocation21_spill] sm:$0xff] %v25440_v33  ;;  %19538 = vmatpush3.bf16.msra.mxu1 %v30232_v7  ;;  %19516 = vmatprep.subr.bf16.mxu0 %v19515_v5  ;;  %v8614_v38 = vsub.f32 %v25378_v55, %v29263_v28  ;;  %v29268_v3 = vand.u32 4294901760, %v25421_v58  ;;  %v25459_v23 = vpack.c.bf16 %v8601_v54, %v8594_v9  ;;  %v8482_v59 = vand.u32 4294901760, %v8481_v18 }
 0x39f   :  { %30276 = vst [vmem:[#allocation24_spill] sm:$0xff] %v25431_v24  ;;  %v15833_v53 = vpop.f32.mrb[38].mxu0  ;;  %19540 = vmatprep.subr.bf16.mxu1 %v30234_v11  ;;  %v25461_v7 = vpack.c.bf16 %v8381_v6, %v8378_v13  ;;  %v25463_v5 = vsub.f32 %v380_v50, %v8378_v13  ;;  %v25465_v48 = vsub.f32 %v381_v46, %v8381_v6  ;;  %v8489_v42 = vand.u32 4294901760, %v8488_v27 }
 0x3a0   :  { %v15834_v31 = vpop.f32.mrb[39].mxu0  ;;  %v8432_v20 = vand.u32 4294901760, %v398_v63  ;;  %v8435_v28 = vand.u32 4294901760, %v399_v41  ;;  %v8384_v15 = vand.u32 4294901760, %v382_v4  ;;  %v8387_v11 = vand.u32 4294901760, %v383_v16 }
 0x3a1   :  { %30279 = vst [vmem:[#allocation17_spill] sm:$0xff] %v25461_v7  ;;  %v15835_v2 = vadd.f32 %v15834_v31, %v15833_v53  ;;  %19518 = vmatpush3.bf16.msra.mxu0 %v25371_v40  ;;  %v29273_v9 = vand.u32 4294901760, %v25447_v17  ;;  %v8608_v50 = vand.u32 4294901760, %v8607_v30  ;;  %v8615_v54 = vand.u32 4294901760, %v8614_v38 }
 0x3a2   :  { %19542 = vmatpush3.bf16.msra.mxu1 %v30235_v57  ;;  %19520 = vmatprep.subr.bf16.mxu0 %v25388_v51  ;;  %v8495_v46 = vsub.f32 %v25416_v45, %v29269_v14  ;;  %v8502_v13 = vsub.f32 %v25421_v58, %v29268_v3  ;;  %v8438_v6 = vand.u32 4294901760, %v400_v1  ;;  %v8441_v18 = vand.u32 4294901760, %v401_v19 }
 0x3a3   :  { %v6258_v40 = vadd.f32 %v15835_v2, %v25297_v49  ;;  %19544 = vmatprep.subr.bf16.mxu1 %v30236_v44  ;;  %v29271_v57 = vand.u32 4294901760, %v25442_v12  ;;  %v25480_v27 = vpack.c.bf16 %v8489_v42, %v8482_v59  ;;  %v25482_v51 = vpack.c.bf16 %v8435_v28, %v8432_v20  ;;  %v384_v49 = vld [vmem:[#allocation5 + $0x940] sm:$0xff]  ;;  %v385_v44 = vld [vmem:[#allocation5 + $0x948] sm:$0xff] }
 0x3a4   :  { %v25484_v30 = vsub.f32 %v398_v63, %v8432_v20  ;;  %v29270_v38 = vand.u32 4294901760, %v25444_v47  ;;  %v25488_v53 = vsub.f32 %v399_v41, %v8435_v28  ;;  %v25490_v31 = vpack.c.bf16 %v8387_v11, %v8384_v15 }
 0x3a5   :  { %30280 = vst [vmem:[#allocation16_spill] sm:$0xff] %v25482_v51  ;;  %19522 = vmatpush3.bf16.msra.mxu0 %v25394_v39  ;;  %v29272_v2 = vand.u32 4294901760, %v25463_v5  ;;  %v8464_v59 = vsub.f32 %v25447_v17, %v29273_v9  ;;  %v25498_v63 = vsub.f32 %v382_v4, %v8384_v15  ;;  %v25500_v42 = vsub.f32 %v383_v16, %v8387_v11  ;;  %v402_v11 = vld [vmem:[#allocation5 + $0x9d0] sm:$0xff] }
 0x3a6   :  { %30281 = vst [vmem:[#allocation26_spill] sm:$0xff] %v25490_v31  ;;  %19546 = vmatpush3.bf16.msra.mxu1 %v30237_v32  ;;  %19524 = vmatprep.subr.bf16.mxu0 %v25405_v25  ;;  %v8496_v39 = vand.u32 4294901760, %v8495_v46  ;;  %v29274_v28 = vand.u32 4294901760, %v25465_v48  ;;  %v25504_v41 = vpack.c.bf16 %v8615_v54, %v8608_v50  ;;  %v8503_v20 = vand.u32 4294901760, %v8502_v13  ;;  %v403_v54 = vld [vmem:[#allocation5 + $0x9d8] sm:$0xff]  ;;  %v386_v46 = vld [vmem:[#allocation5 + $0x950] sm:$0xff] }
 0x3a7   :  { %30282 = vst [vmem:[#allocation28_spill] sm:$0xff] %v25498_v63  ;;  %30283 = vst [vmem:[#allocation18_spill] sm:$0xff] %v25500_v42  ;;  %19548 = vmatprep.subr.bf16.mxu1 %v30240_v22  ;;  %v25506_v3 = vpack.c.bf16 %v8441_v18, %v8438_v6  ;;  %v8621_v32 = vsub.f32 %v25442_v12, %v29271_v57  ;;  %v25511_v25 = vsub.f32 %v400_v1, %v8438_v6 }
 0x3a8   :  { %v15868_v14 = vpop.f32.mrb[38].mxu1  ;;  %v8628_v15 = vsub.f32 %v25444_v47, %v29270_v38  ;;  %v8390_v4 = vand.u32 4294901760, %v384_v49  ;;  %v8393_v16 = vand.u32 4294901760, %v385_v44  ;;  %v8509_v50 = vsub.f32 %v25463_v5, %v29272_v2 }
 0x3a9   :  { %30284 = vst [vmem:[#allocation30_spill] sm:$0xff] %v25506_v3  ;;  %v15869_v22 = vpop.f32.mrb[39].mxu1  ;;  %19526 = vmatpush3.bf16.msra.mxu0 %v25411_v62  ;;  %v8465_v13 = vand.u32 4294901760, %v8464_v59  ;;  %v8516_v38 = vsub.f32 %v25465_v48, %v29274_v28  ;;  %v25530_v2 = vpack.c.bf16 %v8503_v20, %v8496_v39  ;;  %v25532_v9 = vsub.f32 %v401_v19, %v8441_v18  ;;  %v387_v62 = vld [vmem:[#allocation5 + $0x958] sm:$0xff] }
 0x3aa   :  { %v15870_v6 = vadd.f32 %v15869_v22, %v15868_v14  ;;  %19550 = vmatpush3.bf16.msra.mxu1 %v25091_v52  ;;  %19560 = vmatprep.subr.bf16.mxu0 %v25413_v35  ;;  %v8622_v59 = vand.u32 4294901760, %v8621_v32  ;;  %v8444_v14 = vand.u32 4294901760, %v402_v11  ;;  %v8629_v52 = vand.u32 4294901760, %v8628_v15 }
 0x3ab   :  { %19552 = vmatprep.subr.bf16.mxu1 %v25112_v43  ;;  %v25537_v1 = vsub.f32 %v384_v49, %v8390_v4  ;;  %v8447_v28 = vand.u32 4294901760, %v403_v54  ;;  %v25540_v57 = vpack.c.bf16 %v8393_v16, %v8390_v4  ;;  %v30286_v43 = vand.u32 4294901760, %v25484_v30 }
 0x3ac   :  { %v25534_v22 = vadd.f32 %v15870_v6, %v6258_v40  ;;  %8256 = vmatmul.mubr.f32.vlgmr.msra.gmra.mrb[52].mxu0 %v25144_v61  ;;  %v30287_v18 = vand.u32 4294901760, %v25488_v53  ;;  %v8510_v49 = vand.u32 4294901760, %v8509_v50  ;;  %v8517_v39 = vand.u32 4294901760, %v8516_v38  ;;  %v404_v6 = vld [vmem:[#allocation5 + $0x9e0] sm:$0xff] }
 0x3ad   :  { %19562 = vmatpush3.bf16.msra.mxu0 %v25431_v24  ;;  %30285 = vst [vmem:[#allocation25_spill] sm:$0xff] %v25540_v57  ;;  %v8635_v19 = vsub.f32 %v25484_v30, %v30286_v43  ;;  %8466 = vmatprep.mubr.f32.mxu0 %v8465_v13  ;;  %v30288_v20 = vand.u32 4294901760, %v25498_v63  ;;  %v30289_v15 = vand.u32 4294901760, %v25500_v42  ;;  %v405_v43 = vld [vmem:[#allocation5 + $0x9e8] sm:$0xff]  ;;  %v8396_v13 = vand.u32 4294901760, %v386_v46 }
 0x3ae   :  { %v8642_v40 = vsub.f32 %v25488_v53, %v30287_v18  ;;  %19554 = vmatpush3.bf16.msra.mxu1 %v25170_v8  ;;  %19564 = vmatprep.subr.bf16.mxu0 %v25433_v36  ;;  %v25557_v18 = vsub.f32 %v385_v44, %v8393_v16  ;;  %v8399_v8 = vand.u32 4294901760, %v387_v62  ;;  %v29283_v36 = vand.u32 4294901760, %v25511_v25 }
 0x3af   :  { %v8523_v32 = vsub.f32 %v25498_v63, %v30288_v20  ;;  %v8530_v4 = vsub.f32 %v25500_v42, %v30289_v15  ;;  %19556 = vmatprep.subr.bf16.mxu1 %v25196_v34  ;;  %v25560_v50 = vpack.c.bf16 %v8629_v52, %v8622_v59  ;;  %v25562_v38 = vpack.c.bf16 %v8447_v28, %v8444_v14 }
 0x3b0   :  { %v25564_v24 = vsub.f32 %v402_v11, %v8444_v14  ;;  %v25566_v20 = vsub.f32 %v403_v54, %v8447_v28  ;;  %v8636_v15 = vand.u32 4294901760, %v8635_v19  ;;  %v8643_v42 = vand.u32 4294901760, %v8642_v40  ;;  %v388_v11 = vld [vmem:[#allocation5 + $0x960] sm:$0xff] }
 0x3b1   :  { %30290 = vst [vmem:[#allocation22_spill] sm:$0xff] %v25562_v38  ;;  %19566 = vmatpush3.bf16.msra.mxu0 %v25435_v56  ;;  %v8450_v63 = vand.u32 4294901760, %v404_v6  ;;  %v8453_v34 = vand.u32 4294901760, %v405_v43  ;;  %v25571_v44 = vpack.c.bf16 %v8517_v39, %v8510_v49  ;;  %v8524_v16 = vand.u32 4294901760, %v8523_v32  ;;  %v25588_v39 = vld [vmem:[#allocation5 + $0x9f0] sm:$0xff]  ;;  %v25590_v32 = vld [vmem:[#allocation5 + $0x9f8] sm:$0xff] }
 0x3b2   :  { %30291 = vst [vmem:[#allocation19_spill] sm:$0xff] %v25566_v20  ;;  %19558 = vmatpush3.bf16.msra.mxu1 %v25220_v10  ;;  %19568 = vmatprep.subr.bf16.mxu0 %v25440_v33  ;;  %v8531_v59 = vand.u32 4294901760, %v8530_v4  ;;  %v29284_v52 = vand.u32 4294901760, %v25532_v9  ;;  %v25575_v28 = vpack.c.bf16 %v8399_v8, %v8396_v13  ;;  %v25577_v54 = vsub.f32 %v386_v46, %v8396_v13  ;;  %v389_v10 = vld [vmem:[#allocation5 + $0x968] sm:$0xff] }
 0x3b3   :  { %19592 = vmatprep.subr.bf16.mxu1 %v25459_v23  ;;  %v25582_v14 = vsub.f32 %v25511_v25, %v29283_v36  ;;  %v25585_v40 = vsub.f32 %v387_v62, %v8399_v8  ;;  %v29291_v23 = vand.u32 4294901760, %v25564_v24  ;;  %v19603_v4 = vpack.c.bf16 %v8643_v42, %v8636_v15  ;;  %v74_v8 = vld [vmem:[#allocation2 + $0x90] sm:$0xff] }
 0x3b4   :  { %v25596_v13 = vpack.c.bf16 %v8453_v34, %v8450_v63  ;;  %v25598_v36 = vsub.f32 %v404_v6, %v8450_v63  ;;  %v8402_v62 = vand.u32 4294901760, %v388_v11  ;;  %v19605_v49 = vpack.c.bf16 %v8531_v59, %v8524_v16  ;;  %v25614_v16 = vld [vmem:[#allocation5 + $0x970] sm:$0xff] }
 0x3b5   :  { %30292 = vst [vmem:[#allocation23_spill] sm:$0xff] %v25585_v40  ;;  %8360 = vmatmul.mubr.f32.vlgmr.msra.gmra.mrb[52].mxu1 %v25144_v61  ;;  %19570 = vmatpush3.bf16.msra.mxu0 %v25461_v7  ;;  %v25602_v19 = vsub.f32 %v405_v43, %v8453_v34  ;;  %v8656_v61 = vsub.f32 %v25532_v9, %v29284_v52  ;;  %v8405_v46 = vand.u32 4294901760, %v389_v10  ;;  %v8650_v42 = vand.u32 4294901760, %v25582_v14  ;;  %v25616_v43 = vld [vmem:[#allocation5 + $0x978] sm:$0xff] }
 0x3b6   :  { %30293 = vst [vmem:[#allocation20_spill] sm:$0xff] %v25598_v36  ;;  %19594 = vmatpush3.bf16.msra.mxu1 %v25480_v27  ;;  %19572 = vmatprep.subr.bf16.mxu0 %v25482_v51  ;;  %v30294_v63 = vand.u32 4294901760, %v25537_v1  ;;  %v8456_v27 = vand.u32 4294901760, %v25588_v39  ;;  %v8459_v15 = vand.u32 4294901760, %v25590_v32  ;;  %v30295_v34 = vand.u32 4294901760, %v25557_v18 }
 0x3b7   :  { %19596 = vmatprep.subr.bf16.mxu1 %v25504_v41  ;;  %8702 = vmatprep.mubr.f32.mxu1 %v25418_v0  ;;  %v8663_v59 = vsub.f32 %v25564_v24, %v29291_v23  ;;  %v30296_v14 = vand.u32 4294901760, %v25566_v20  ;;  %v25628_v52 = vand.u32 4294901760, %v74_v8  ;;  %v25631_v51 = vsub.f32 %v388_v11, %v8402_v62 }
 0x3b8   :  { %v8537_v6 = vsub.f32 %v25537_v1, %v30294_v63  ;;  %v8544_v41 = vsub.f32 %v25557_v18, %v30295_v34  ;;  %v8657_v23 = vand.u32 4294901760, %v8656_v61  ;;  %v25638_v33 = vsub.f32 %v389_v10, %v8405_v46 }
 0x3b9   :  { %v8670_v63 = vsub.f32 %v25566_v20, %v30296_v14  ;;  %19574 = vmatpush3.bf16.msra.mxu0 %v25490_v31  ;;  %v8408_v14 = vand.u32 4294901760, %v25614_v16  ;;  %v8411_v20 = vand.u32 4294901760, %v25616_v43  ;;  %v25644_v0 = vsub.f32 %v25588_v39, %v8456_v27 }
 0x3ba   :  { %19598 = vmatpush3.bf16.msra.mxu1 %v25530_v2  ;;  %19576 = vmatprep.subr.bf16.mxu0 %v25506_v3  ;;  %v8538_v11 = vand.u32 4294901760, %v8537_v6  ;;  %v25647_v7 = vsub.f32 %v25590_v32, %v8459_v15  ;;  %v8545_v34 = vand.u32 4294901760, %v8544_v41  ;;  %v8664_v3 = vand.u32 4294901760, %v8663_v59 }
 0x3bb   :  { %19600 = vmatprep.subr.bf16.mxu1 %v25560_v50  ;;  %v8671_v61 = vand.u32 4294901760, %v8670_v63  ;;  %v25651_v10 = vsub.f32 %v74_v8, %v25628_v52  ;;  %v25654_v31 = vpack.c.bf16 %v8405_v46, %v8402_v62  ;;  %v30297_v50 = vand.u32 4294901760, %v25577_v54 }
 0x3bc   :  { %v30298_v6 = vand.u32 4294901760, %v25585_v40  ;;  %v30299_v2 = vand.u32 4294901760, %v25598_v36  ;;  %v25668_v8 = vsub.f32 %v25614_v16, %v8408_v14  ;;  %v25671_v46 = vsub.f32 %v25616_v43, %v8411_v20 }
 0x3bd   :  { %19578 = vmatpush3.bf16.msra.mxu0 %v25540_v57  ;;  %v8551_v39 = vsub.f32 %v25577_v54, %v30297_v50  ;;  %v29311_v59 = vand.u32 4294901760, %v25638_v33  ;;  %v19607_v50 = vpack.c.bf16 %v8657_v23, %v8650_v42  ;;  %v19609_v57 = vpack.c.bf16 %v8545_v34, %v8538_v11 }
 0x3be   :  { %v8558_v32 = vsub.f32 %v25585_v40, %v30298_v6  ;;  %v8677_v41 = vsub.f32 %v25598_v36, %v30299_v2  ;;  %19602 = vmatpush3.bf16.msra.mxu1 %v25571_v44  ;;  %19580 = vmatprep.subr.bf16.mxu0 %v25562_v38  ;;  %v30300_v6 = vand.u32 4294901760, %v25602_v19  ;;  %v29310_v44 = vand.u32 4294901760, %v25644_v0 }
 0x3bf   :  { %v15903_v63 = vpop.f32.mrb[40].mxu0  ;;  %19604 = vmatprep.subr.bf16.mxu1 %v19603_v4  ;;  %v25680_v36 = vpack.c.bf16 %v8459_v15, %v8456_v27  ;;  %v19611_v43 = vpack.c.bf16 %v8671_v61, %v8664_v3  ;;  %v29312_v62 = vand.u32 4294901760, %v25651_v10  ;;  %v8552_v4 = vand.u32 4294901760, %v8551_v39 }
 0x3c0   :  { %v8684_v2 = vsub.f32 %v25602_v19, %v30300_v6  ;;  %v15904_v16 = vpop.f32.mrb[41].mxu0  ;;  %v8559_v23 = vand.u32 4294901760, %v8558_v32  ;;  %v8678_v42 = vand.u32 4294901760, %v8677_v41  ;;  %v30301_v6 = vand.u32 4294901760, %v25631_v51 }
 0x3c1   :  { %v15905_v40 = vadd.f32 %v15904_v16, %v15903_v63  ;;  %19582 = vmatpush3.bf16.msra.mxu0 %v25575_v28  ;;  %v8572_v27 = vsub.f32 %v25638_v33, %v29311_v59  ;;  %v29308_v3 = vand.u32 4294901760, %v25668_v8  ;;  %v29309_v15 = vand.u32 4294901760, %v25671_v46 }
 0x3c2   :  { %19606 = vmatpush3.bf16.msra.mxu1 %v19605_v49  ;;  %19584 = vmatprep.subr.bf16.mxu0 %v25596_v13  ;;  %v8565_v38 = vsub.f32 %v25631_v51, %v30301_v6  ;;  %v8685_v11 = vand.u32 4294901760, %v8684_v2  ;;  %v8691_v49 = vsub.f32 %v25644_v0, %v29310_v44  ;;  %v30302_v61 = vand.u32 4294901760, %v25647_v7 }
 0x3c3   :  { %v6534_v34 = vadd.f32 %v15905_v40, %v25534_v22  ;;  %19608 = vmatprep.subr.bf16.mxu1 %v19607_v50  ;;  %v8470_v32 = vsub.f32 %v25651_v10, %v29312_v62  ;;  %v25704_v41 = vpack.c.bf16 %v8411_v20, %v8408_v14  ;;  %v19613_v63 = vpack.c.bf16 %v8559_v23, %v8552_v4 }
 0x3c4   :  { %v8698_v39 = vsub.f32 %v25647_v7, %v30302_v61  ;;  %v19623_v22 = vpack.c.bf16 %v25319_v37, %v25315_v29  ;;  %v8566_v40 = vand.u32 4294901760, %v8565_v38  ;;  %v8573_v50 = vand.u32 4294901760, %v8572_v27 }
 0x3c5   :  { %19586 = vmatpush3.bf16.msra.mxu0 %v25654_v31  ;;  %v8579_v2 = vsub.f32 %v25668_v8, %v29308_v3  ;;  %v8586_v16 = vsub.f32 %v25671_v46, %v29309_v15  ;;  %v19615_v20 = vpack.c.bf16 %v8685_v11, %v8678_v42  ;;  %v8692_v14 = vand.u32 4294901760, %v8691_v49 }
 0x3c6   :  { %19610 = vmatpush3.bf16.msra.mxu1 %v19609_v57  ;;  %19588 = vmatprep.subr.bf16.mxu0 %v25680_v36  ;;  %v8699_v4 = vand.u32 4294901760, %v8698_v39  ;;  %v8471_v6 = vand.u32 4294901760, %v8470_v32  ;;  %v19625_v57 = vpack.c.bf16 %v25355_v26, %v25343_v60  ;;  %v19627_v38 = vpack.c.bf16 %v25378_v55, %v25375_v21 }
 0x3c7   :  { %19612 = vmatprep.subr.bf16.mxu1 %v19611_v43  ;;  %v19617_v3 = vpack.c.bf16 %v8573_v50, %v8566_v40  ;;  %v8580_v15 = vand.u32 4294901760, %v8579_v2  ;;  %v8587_v43 = vand.u32 4294901760, %v8586_v16  ;;  %v19629_v49 = vpack.c.bf16 %v25421_v58, %v25416_v45  ;;  %v30305_v40 = vld [vmem:[#allocation24_spill] sm:$0xff]  ;;  %v30306_v2 = vld [vmem:[#allocation27_spill] sm:$0xff] }
 0x3c8   :  { %v15938_v23 = vpop.f32.mrb[40].mxu1  ;;  %v19619_v42 = vpack.c.bf16 %v8699_v4, %v8692_v14  ;;  %v19631_v32 = vpack.c.bf16 %v25444_v47, %v25442_v12  ;;  %v19639_v50 = vpack.c.bf16 %v25532_v9, %v25511_v25  ;;  %v30307_v16 = vand.u32 4294901760, %v25447_v17  ;;  %v30308_v14 = vld [vmem:[#allocation19_spill] sm:$0xff] }
 0x3c9   :  { %v15939_v61 = vpop.f32.mrb[41].mxu1  ;;  %19590 = vmatpush3.bf16.msra.mxu0 %v25704_v41  ;;  %v19621_v39 = vpack.c.bf16 %v8587_v43, %v8580_v15  ;;  %v30304_v15 = vld [vmem:[#allocation18_spill] sm:$0xff]  ;;  %v19643_v4 = vpack.c.bf16 %v30308_v14, %v25564_v24  ;;  %v30313_v43 = vld [vmem:[#allocation16_spill] sm:$0xff]  ;;  %v30321_v44 = vand.u32 4294901760, %v25355_v26  ;;  %v30324_v26 = vand.u32 4294901760, %v25416_v45 }
 0x3ca   :  { %v15940_v27 = vadd.f32 %v15939_v61, %v15938_v23  ;;  %19614 = vmatpush3.bf16.msra.mxu1 %v19613_v63  ;;  %19624 = vmatprep.subr.bf16.mxu0 %v19623_v22  ;;  %v19633_v63 = vpack.c.bf16 %v25465_v48, %v25463_v5  ;;  %v30309_v23 = vld [vmem:[#allocation21_spill] sm:$0xff] }
 0x3cb   :  { %19616 = vmatprep.subr.bf16.mxu1 %v19615_v20  ;;  %v19641_v20 = vpack.c.bf16 %v25557_v18, %v25537_v1 }
 0x3cc   :  { %v6638_v11 = vadd.f32 %v15940_v27, %v6534_v34  ;;  %8472 = vmatmul.mubr.f32.vlgmr.msra.gmra.mrb[54].mxu0 %v8471_v6  ;;  %v19635_v34 = vpack.c.bf16 %v25488_v53, %v25484_v30  ;;  %v30310_v6 = vld [vmem:[#allocation23_spill] sm:$0xff] }
 0x3cd   :  { %19626 = vmatpush3.bf16.msra.mxu0 %v19625_v57  ;;  %8839 = vmatprep.mubr.f32.mxu0 %v25447_v17  ;;  %v19645_v61 = vpack.c.bf16 %v30310_v6, %v25577_v54  ;;  %v30311_v57 = vld [vmem:[#allocation17_spill] sm:$0xff]  ;;  %v30312_v17 = vld [vmem:[#allocation20_spill] sm:$0xff] }
 0x3ce   :  { %19618 = vmatpush3.bf16.msra.mxu1 %v19617_v3  ;;  %19628 = vmatprep.subr.bf16.mxu0 %v19627_v38  ;;  %v30303_v3 = vld [vmem:[#allocation28_spill] sm:$0xff]  ;;  %v19647_v38 = vpack.c.bf16 %v25602_v19, %v30312_v17 }
 0x3cf   :  { %19620 = vmatprep.subr.bf16.mxu1 %v19619_v42  ;;  %v19637_v22 = vpack.c.bf16 %v30304_v15, %v30303_v3 }
 0x3d1   :  { %19630 = vmatpush3.bf16.msra.mxu0 %v19629_v49 }
 0x3d2   :  { %19622 = vmatpush3.bf16.msra.mxu1 %v19621_v39  ;;  %19632 = vmatprep.subr.bf16.mxu0 %v19631_v32  ;;  %v19649_v39 = vpack.c.bf16 %v25638_v33, %v25631_v51  ;;  %v30314_v32 = vld [vmem:[#allocation26_spill] sm:$0xff] }
 0x3d3   :  { %19656 = vmatprep.subr.bf16.mxu1 %v25413_v35 }
 0x3d5   :  { %8704 = vmatmul.mubr.f32.vlgmr.msra.gmra.mrb[54].mxu1 %v25628_v52  ;;  %19634 = vmatpush3.bf16.msra.mxu0 %v19633_v63  ;;  %v19651_v63 = vpack.c.bf16 %v25647_v7, %v25644_v0 }
 0x3d6   :  { %19658 = vmatpush3.bf16.msra.mxu1 %v30305_v40  ;;  %19636 = vmatprep.subr.bf16.mxu0 %v19635_v34 }
 0x3d7   :  { %19660 = vmatprep.subr.bf16.mxu1 %v30306_v2  ;;  %8946 = vmatprep.mubr.f32.mxu1 %v30307_v16  ;;  %v30316_v16 = vld [vmem:[#allocation25_spill] sm:$0xff] }
 0x3d9   :  { %19638 = vmatpush3.bf16.msra.mxu0 %v19637_v22  ;;  %v30315_v22 = vld [vmem:[#allocation30_spill] sm:$0xff] }
 0x3da   :  { %19662 = vmatpush3.bf16.msra.mxu1 %v25435_v56  ;;  %19640 = vmatprep.subr.bf16.mxu0 %v19639_v50  ;;  %v19653_v50 = vpack.c.bf16 %v25671_v46, %v25668_v8 }
 0x3db   :  { %19664 = vmatprep.subr.bf16.mxu1 %v30309_v23 }
 0x3dd   :  { %19642 = vmatpush3.bf16.msra.mxu0 %v19641_v20  ;;  %v30317_v20 = vand.u32 4294901760, %v25315_v29  ;;  %v30322_v29 = vand.u32 4294901760, %v25375_v21  ;;  %v30325_v21 = vand.u32 4294901760, %v25421_v58 }
 0x3de   :  { %19666 = vmatpush3.bf16.msra.mxu1 %v30311_v57  ;;  %19644 = vmatprep.subr.bf16.mxu0 %v19643_v4  ;;  %v30318_v4 = vand.u32 4294901760, %v25319_v37  ;;  %v30323_v37 = vand.u32 4294901760, %v25378_v55  ;;  %v30326_v55 = vld [vmem:[#allocation29_spill] sm:$0xff] }
 0x3df   :  { %v15973_v27 = vpop.f32.mrb[42].mxu0  ;;  %19668 = vmatprep.subr.bf16.mxu1 %v30313_v43 }
 0x3e0   :  { %v15974_v42 = vpop.f32.mrb[43].mxu0 }
 0x3e1   :  { %v15975_v49 = vadd.f32 %v15974_v42, %v15973_v27  ;;  %19646 = vmatpush3.bf16.msra.mxu0 %v19645_v61  ;;  %v19687_v61 = vpack.c.bf16 %v30318_v4, %v30317_v20  ;;  %v30319_v27 = vld [vmem:[#allocation22_spill] sm:$0xff]  ;;  %v19691_v20 = vpack.c.bf16 %v30323_v37, %v30322_v29  ;;  %v30332_v37 = vand.u32 4294901760, %v25488_v53 }
 0x3e2   :  { %19670 = vmatpush3.bf16.msra.mxu1 %v30314_v32  ;;  %19648 = vmatprep.subr.bf16.mxu0 %v19647_v38  ;;  %v25765_v38 = vld [vmem:[#allocation5 + $0xa80] sm:$0xff]  ;;  %v30333_v53 = vand.u32 4294901760, %v30303_v3 }
 0x3e3   :  { %v6750_v34 = vadd.f32 %v15975_v49, %v6638_v11  ;;  %19672 = vmatprep.subr.bf16.mxu1 %v30315_v22  ;;  %v25767_v11 = vld [vmem:[#allocation5 + $0xa88] sm:$0xff]  ;;  %v9276_v4 = vand.u32 4294901760, %v25765_v38 }
 0x3e5   :  { %19650 = vmatpush3.bf16.msra.mxu0 %v19649_v39  ;;  %v30320_v39 = vand.u32 4294901760, %v25343_v60  ;;  %v25784_v60 = vld [vmem:[#allocation5 + $0xa00] sm:$0xff] }
 0x3e6   :  { %19674 = vmatpush3.bf16.msra.mxu1 %v30316_v16  ;;  %19652 = vmatprep.subr.bf16.mxu0 %v19651_v63  ;;  %v29313_v58 = vand.u32 4294901760, %v25784_v60 }
 0x3e7   :  { %19676 = vmatprep.subr.bf16.mxu1 %v30319_v27  ;;  %v19689_v59 = vpack.c.bf16 %v30321_v44, %v30320_v39  ;;  %v19693_v44 = vpack.c.bf16 %v30325_v21, %v30324_v26  ;;  %v25799_v39 = vsub.f32 %v25765_v38, %v9276_v4 }
 0x3e8   :  { %v16008_v42 = vpop.f32.mrb[42].mxu1 }
 0x3e9   :  { %v16009_v49 = vpop.f32.mrb[43].mxu1  ;;  %19654 = vmatpush3.bf16.msra.mxu0 %v19653_v50  ;;  %v9279_v50 = vand.u32 4294901760, %v25767_v11 }
 0x3ea   :  { %v16010_v63 = vadd.f32 %v16009_v49, %v16008_v42  ;;  %19678 = vmatpush3.bf16.msra.mxu1 %v25575_v28  ;;  %19688 = vmatprep.subr.bf16.mxu0 %v19687_v61  ;;  %v25791_v61 = vld [vmem:[#allocation5 + $0xa08] sm:$0xff]  ;;  %v30328_v42 = vand.u32 4294901760, %v25444_v47  ;;  %v30330_v47 = vand.u32 4294901760, %v25465_v48  ;;  %v411_v48 = vld [vmem:[#allocation5 + $0xa18] sm:$0xff] }
 0x3eb   :  { %19680 = vmatprep.subr.bf16.mxu1 %v25596_v13  ;;  %v25803_v45 = vsub.f32 %v25767_v11, %v9279_v50  ;;  %v9231_v29 = vand.u32 4294901760, %v25791_v61  ;;  %v30331_v11 = vand.u32 4294901760, %v25484_v30  ;;  %v30339_v30 = vand.u32 4294901760, %v25557_v18 }
 0x3ec   :  { %v25781_v62 = vadd.f32 %v16010_v63, %v6750_v34  ;;  %8842 = vmatmul.mubr.f32.vlgmr.msra.gmra.mrb[56].mxu0 %v25651_v10  ;;  %v30327_v34 = vand.u32 4294901760, %v25442_v12  ;;  %v25808_v63 = vld [vmem:[#allocation5 + $0xa98] sm:$0xff]  ;;  %v30329_v12 = vand.u32 4294901760, %v25463_v5  ;;  %v25827_v5 = vsub.f32 %v25784_v60, %v29313_v58 }
 0x3ed   :  { %19690 = vmatpush3.bf16.msra.mxu0 %v19689_v59  ;;  %9116 = vmatprep.mubr.f32.mxu0 %v30326_v55  ;;  %v25806_v59 = vld [vmem:[#allocation5 + $0xa90] sm:$0xff]  ;;  %v9285_v21 = vand.u32 4294901760, %v25808_v63  ;;  %v30338_v58 = vand.u32 4294901760, %v25537_v1 }
 0x3ee   :  { %19682 = vmatpush3.bf16.msra.mxu1 %v25654_v31  ;;  %19692 = vmatprep.subr.bf16.mxu0 %v19691_v20  ;;  %v19695_v49 = vpack.c.bf16 %v30328_v42, %v30327_v34  ;;  %v19697_v38 = vpack.c.bf16 %v30330_v47, %v30329_v12  ;;  %v19699_v20 = vpack.c.bf16 %v30332_v37, %v30331_v11  ;;  %v9282_v26 = vand.u32 4294901760, %v25806_v59  ;;  %v410_v34 = vld [vmem:[#allocation5 + $0xa10] sm:$0xff] }
 0x3ef   :  { %19684 = vmatprep.subr.bf16.mxu1 %v25680_v36  ;;  %v30334_v42 = vand.u32 4294901760, %v30304_v15  ;;  %v30335_v12 = vand.u32 4294901760, %v25511_v25  ;;  %v30336_v47 = vand.u32 4294901760, %v25532_v9  ;;  %v30337_v37 = vand.u32 4294901760, %v25651_v10  ;;  %v428_v10 = vld [vmem:[#allocation5 + $0xaa0] sm:$0xff] }
 0x3f0   :  { %v19705_v3 = vpack.c.bf16 %v30339_v30, %v30338_v58  ;;  %v30340_v15 = vand.u32 4294901760, %v25564_v24  ;;  %v30342_v9 = vand.u32 4294901760, %v25577_v54  ;;  %v25859_v1 = vsub.f32 %v25806_v59, %v9282_v26 }
 0x3f1   :  { %19694 = vmatpush3.bf16.msra.mxu0 %v19693_v44  ;;  %v29318_v44 = vand.u32 4294901760, %v25799_v39  ;;  %v19703_v11 = vpack.c.bf16 %v30336_v47, %v30335_v12  ;;  %v9234_v12 = vand.u32 4294901760, %v410_v34  ;;  %v25862_v18 = vsub.f32 %v25808_v63, %v9285_v21 }
 0x3f2   :  { %19686 = vmatpush3.bf16.msra.mxu1 %v25704_v41  ;;  %19696 = vmatprep.subr.bf16.mxu0 %v19695_v49  ;;  %v19701_v49 = vpack.c.bf16 %v30334_v42, %v30333_v53  ;;  %v30341_v53 = vand.u32 4294901760, %v30308_v14  ;;  %v30343_v42 = vand.u32 4294901760, %v30310_v6  ;;  %v9237_v24 = vand.u32 4294901760, %v411_v48  ;;  %v429_v14 = vld [vmem:[#allocation5 + $0xaa8] sm:$0xff] }
 0x3f3   :  { %19720 = vmatprep.subr.bf16.mxu1 %v25413_v35  ;;  %v25839_v35 = vsub.f32 %v25791_v61, %v9231_v29  ;;  %v9455_v54 = vsub.f32 %v25799_v39, %v29318_v44  ;;  %v77_v6 = vld [vmem:[#allocation2 + $0xa8] sm:$0xff]  ;;  %v30344_v58 = vand.u32 4294901760, %v30312_v17  ;;  %v30346_v59 = vand.u32 4294901760, %v25631_v51 }
 0x3f4   :  { %v19707_v25 = vpack.c.bf16 %v30341_v53, %v30340_v15  ;;  %v25855_v61 = vpack.c.bf16 %v30343_v42, %v30342_v9  ;;  %v30347_v63 = vand.u32 4294901760, %v25638_v33  ;;  %v30348_v30 = vand.u32 4294901760, %v25803_v45  ;;  %v413_v9 = vld [vmem:[#allocation5 + $0xa28] sm:$0xff] }
 0x3f5   :  { %8950 = vmatmul.mubr.f32.vlgmr.msra.gmra.mrb[56].mxu1 %v30337_v37  ;;  %19698 = vmatpush3.bf16.msra.mxu0 %v19697_v38  ;;  %v30349_v17 = vand.u32 4294901760, %v25644_v0  ;;  %v30351_v51 = vand.u32 4294901760, %v25668_v8  ;;  %v30352_v33 = vand.u32 4294901760, %v25671_v46  ;;  %v25897_v53 = vpack.c.bf16 %v9279_v50, %v9276_v4 }
 0x3f6   :  { %19722 = vmatpush3.bf16.msra.mxu1 %v30305_v40  ;;  %19700 = vmatprep.subr.bf16.mxu0 %v19699_v20  ;;  %v30345_v40 = vand.u32 4294901760, %v25602_v19  ;;  %v25878_v20 = vpack.c.bf16 %v30347_v63, %v30346_v59  ;;  %v9462_v47 = vsub.f32 %v25803_v45, %v30348_v30  ;;  %v30350_v19 = vand.u32 4294901760, %v25647_v7 }
 0x3f7   :  { %19724 = vmatprep.subr.bf16.mxu1 %v30306_v2  ;;  %9220 = vmatprep.mubr.f32.mxu1 %v30326_v55  ;;  %v29317_v2 = vand.u32 4294901760, %v25827_v5  ;;  %v25895_v15 = vpack.c.bf16 %v30352_v33, %v30351_v51  ;;  %v412_v55 = vld [vmem:[#allocation5 + $0xa20] sm:$0xff]  ;;  %v29316_v42 = vand.u32 4294901760, %v25839_v35  ;;  %v9288_v0 = vand.u32 4294901760, %v428_v10  ;;  %v431_v51 = vld [vmem:[#allocation5 + $0xab8] sm:$0xff] }
 0x3f8   :  { %v25872_v38 = vpack.c.bf16 %v30345_v40, %v30344_v58  ;;  %v25889_v37 = vpack.c.bf16 %v30350_v19, %v30349_v17  ;;  %v25900_v58 = vsub.f32 %v410_v34, %v9234_v12  ;;  %v9291_v40 = vand.u32 4294901760, %v429_v14  ;;  %v430_v19 = vld [vmem:[#allocation5 + $0xab0] sm:$0xff] }
 0x3f9   :  { %19702 = vmatpush3.bf16.msra.mxu0 %v19701_v49  ;;  %v25902_v7 = vand.u32 4294901760, %v77_v6  ;;  %v25905_v8 = vsub.f32 %v411_v48, %v9237_v24  ;;  %v9456_v46 = vand.u32 4294901760, %v9455_v54  ;;  %v29315_v4 = vand.u32 4294901760, %v25859_v1 }
 0x3fa   :  { %19726 = vmatpush3.bf16.msra.mxu1 %v25435_v56  ;;  %19704 = vmatprep.subr.bf16.mxu0 %v19703_v11  ;;  %v29314_v50 = vand.u32 4294901760, %v25862_v18  ;;  %v9463_v59 = vand.u32 4294901760, %v9462_v47  ;;  %v9240_v49 = vand.u32 4294901760, %v412_v55  ;;  %v9243_v34 = vand.u32 4294901760, %v413_v9 }
 0x3fb   :  { %30353 = vst [vmem:[#allocation28_spill] sm:$0xff] %v25902_v7  ;;  %19728 = vmatprep.subr.bf16.mxu1 %v30309_v23  ;;  %v9343_v63 = vsub.f32 %v25827_v5, %v29317_v2  ;;  %v30354_v30 = vand.u32 4294901760, %v25784_v60  ;;  %v25917_v48 = vpack.c.bf16 %v9285_v21, %v9282_v26  ;;  %v25919_v11 = vpack.c.bf16 %v9237_v24, %v9234_v12  ;;  %v414_v21 = vld [vmem:[#allocation5 + $0xa30] sm:$0xff] }
 0x3fc   :  { %v9350_v54 = vsub.f32 %v25839_v35, %v29316_v42  ;;  %v25924_v23 = vpack.c.bf16 %v9291_v40, %v9288_v0  ;;  %v25926_v47 = vsub.f32 %v428_v10, %v9288_v0  ;;  %v25928_v17 = vsub.f32 %v429_v14, %v9291_v40  ;;  %v433_v42 = vld [vmem:[#allocation5 + $0xac8] sm:$0xff] }
 0x3fd   :  { %v25915_v56 = vpack.c.bf16 %v9231_v29, %v30354_v30  ;;  %30356 = vst [vmem:[#allocation24_spill] sm:$0xff] %v25917_v48  ;;  %19706 = vmatpush3.bf16.msra.mxu0 %v19705_v3  ;;  %v25931_v60 = vsub.f32 %v77_v6, %v25902_v7  ;;  %v9469_v29 = vsub.f32 %v25859_v1, %v29315_v4  ;;  %v415_v3 = vld [vmem:[#allocation5 + $0xa38] sm:$0xff]  ;;  %v29320_v12 = vand.u32 4294901760, %v25900_v58  ;;  %v432_v4 = vld [vmem:[#allocation5 + $0xac0] sm:$0xff] }
 0x3fe   :  { %30357 = vst [vmem:[#allocation27_spill] sm:$0xff] %v25924_v23  ;;  %19730 = vmatpush3.bf16.msra.mxu1 %v30311_v57  ;;  %19708 = vmatprep.subr.bf16.mxu0 %v19707_v25  ;;  %v9476_v26 = vsub.f32 %v25862_v18, %v29314_v50  ;;  %v29319_v24 = vand.u32 4294901760, %v25905_v8  ;;  %v25943_v14 = vpack.c.bf16 %v9463_v59, %v9456_v46  ;;  %v9344_v6 = vand.u32 4294901760, %v9343_v63 }
 0x3ff   :  { %30355 = vst [vmem:[#allocation18_spill] sm:$0xff] %v25915_v56  ;;  %v16043_v10 = vpop.f32.mrb[44].mxu0  ;;  %19732 = vmatprep.subr.bf16.mxu1 %v30313_v43  ;;  %v25945_v57 = vpack.c.bf16 %v9243_v34, %v9240_v49  ;;  %v25947_v25 = vsub.f32 %v412_v55, %v9240_v49  ;;  %v25949_v0 = vsub.f32 %v413_v9, %v9243_v34  ;;  %v9351_v40 = vand.u32 4294901760, %v9350_v54 }
 0x400   :  { %v16044_v33 = vpop.f32.mrb[45].mxu0  ;;  %v9294_v30 = vand.u32 4294901760, %v430_v19  ;;  %v9297_v50 = vand.u32 4294901760, %v431_v51  ;;  %v9246_v44 = vand.u32 4294901760, %v414_v21  ;;  %v9249_v43 = vand.u32 4294901760, %v415_v3 }
 0x401   :  { %30358 = vst [vmem:[#allocation19_spill] sm:$0xff] %v25945_v57  ;;  %v16045_v2 = vadd.f32 %v16044_v33, %v16043_v10  ;;  %19710 = vmatpush3.bf16.msra.mxu0 %v25855_v61  ;;  %v29324_v46 = vand.u32 4294901760, %v25931_v60  ;;  %v9470_v55 = vand.u32 4294901760, %v9469_v29  ;;  %v9477_v59 = vand.u32 4294901760, %v9476_v26 }
 0x402   :  { %19734 = vmatpush3.bf16.msra.mxu1 %v30314_v32  ;;  %19712 = vmatprep.subr.bf16.mxu0 %v25872_v38  ;;  %v9357_v9 = vsub.f32 %v25900_v58, %v29320_v12  ;;  %v9364_v49 = vsub.f32 %v25905_v8, %v29319_v24  ;;  %v9300_v34 = vand.u32 4294901760, %v432_v4  ;;  %v9303_v63 = vand.u32 4294901760, %v433_v42 }
 0x403   :  { %v7120_v61 = vadd.f32 %v16045_v2, %v25781_v62  ;;  %19736 = vmatprep.subr.bf16.mxu1 %v30315_v22  ;;  %v29322_v32 = vand.u32 4294901760, %v25926_v47  ;;  %v25964_v54 = vpack.c.bf16 %v9351_v40, %v9344_v6  ;;  %v25966_v38 = vpack.c.bf16 %v9297_v50, %v9294_v30  ;;  %v416_v62 = vld [vmem:[#allocation5 + $0xa40] sm:$0xff]  ;;  %v417_v22 = vld [vmem:[#allocation5 + $0xa48] sm:$0xff] }
 0x404   :  { %v25968_v29 = vsub.f32 %v430_v19, %v9294_v30  ;;  %v29321_v26 = vand.u32 4294901760, %v25928_v17  ;;  %v25972_v10 = vsub.f32 %v431_v51, %v9297_v50  ;;  %v25974_v33 = vpack.c.bf16 %v9249_v43, %v9246_v44 }
 0x405   :  { %30359 = vst [vmem:[#allocation21_spill] sm:$0xff] %v25966_v38  ;;  %19714 = vmatpush3.bf16.msra.mxu0 %v25878_v20  ;;  %v29323_v2 = vand.u32 4294901760, %v25947_v25  ;;  %v9326_v6 = vsub.f32 %v25931_v60, %v29324_v46  ;;  %v25982_v19 = vsub.f32 %v414_v21, %v9246_v44  ;;  %v25984_v40 = vsub.f32 %v415_v3, %v9249_v43  ;;  %v434_v43 = vld [vmem:[#allocation5 + $0xad0] sm:$0xff] }
 0x406   :  { %30360 = vst [vmem:[#allocation23_spill] sm:$0xff] %v25974_v33  ;;  %19738 = vmatpush3.bf16.msra.mxu1 %v30316_v16  ;;  %19716 = vmatprep.subr.bf16.mxu0 %v25889_v37  ;;  %v9358_v20 = vand.u32 4294901760, %v9357_v9  ;;  %v29325_v50 = vand.u32 4294901760, %v25949_v0  ;;  %v25988_v51 = vpack.c.bf16 %v9477_v59, %v9470_v55  ;;  %v9365_v30 = vand.u32 4294901760, %v9364_v49  ;;  %v435_v59 = vld [vmem:[#allocation5 + $0xad8] sm:$0xff]  ;;  %v418_v9 = vld [vmem:[#allocation5 + $0xa50] sm:$0xff] }
 0x407   :  { %30361 = vst [vmem:[#allocation17_spill] sm:$0xff] %v25982_v19  ;;  %30362 = vst [vmem:[#allocation20_spill] sm:$0xff] %v25984_v40  ;;  %19740 = vmatprep.subr.bf16.mxu1 %v30319_v27  ;;  %v25990_v24 = vpack.c.bf16 %v9303_v63, %v9300_v34  ;;  %v9483_v16 = vsub.f32 %v25926_v47, %v29322_v32  ;;  %v25995_v37 = vsub.f32 %v432_v4, %v9300_v34 }
 0x408   :  { %v16078_v12 = vpop.f32.mrb[44].mxu1  ;;  %v9490_v44 = vsub.f32 %v25928_v17, %v29321_v26  ;;  %v9252_v21 = vand.u32 4294901760, %v416_v62  ;;  %v9255_v3 = vand.u32 4294901760, %v417_v22  ;;  %v9371_v55 = vsub.f32 %v25947_v25, %v29323_v2 }
 0x409   :  { %30363 = vst [vmem:[#allocation16_spill] sm:$0xff] %v25990_v24  ;;  %v16079_v27 = vpop.f32.mrb[45].mxu1  ;;  %19718 = vmatpush3.bf16.msra.mxu0 %v25895_v15  ;;  %v9327_v49 = vand.u32 4294901760, %v9326_v6  ;;  %v9378_v26 = vsub.f32 %v25949_v0, %v29325_v50  ;;  %v26014_v2 = vpack.c.bf16 %v9365_v30, %v9358_v20  ;;  %v26016_v46 = vsub.f32 %v433_v42, %v9303_v63  ;;  %v419_v15 = vld [vmem:[#allocation5 + $0xa58] sm:$0xff] }
 0x40a   :  { %v16080_v34 = vadd.f32 %v16079_v27, %v16078_v12  ;;  %19742 = vmatpush3.bf16.msra.mxu1 %v25575_v28  ;;  %19752 = vmatprep.subr.bf16.mxu0 %v25897_v53  ;;  %v9484_v6 = vand.u32 4294901760, %v9483_v16  ;;  %v9306_v12 = vand.u32 4294901760, %v434_v43  ;;  %v9491_v28 = vand.u32 4294901760, %v9490_v44 }
 0x40b   :  { %19744 = vmatprep.subr.bf16.mxu1 %v25596_v13  ;;  %v26021_v4 = vsub.f32 %v416_v62, %v9252_v21  ;;  %v9309_v50 = vand.u32 4294901760, %v435_v59  ;;  %v26024_v32 = vpack.c.bf16 %v9255_v3, %v9252_v21  ;;  %v30365_v13 = vand.u32 4294901760, %v25968_v29 }
 0x40c   :  { %v26018_v27 = vadd.f32 %v16080_v34, %v7120_v61  ;;  %9118 = vmatmul.mubr.f32.vlgmr.msra.gmra.mrb[58].mxu0 %v25628_v52  ;;  %v30366_v63 = vand.u32 4294901760, %v25972_v10  ;;  %v9372_v62 = vand.u32 4294901760, %v9371_v55  ;;  %v9379_v20 = vand.u32 4294901760, %v9378_v26  ;;  %v436_v34 = vld [vmem:[#allocation5 + $0xae0] sm:$0xff] }
 0x40d   :  { %19754 = vmatpush3.bf16.msra.mxu0 %v25915_v56  ;;  %30364 = vst [vmem:[#allocation26_spill] sm:$0xff] %v26024_v32  ;;  %v9497_v42 = vsub.f32 %v25968_v29, %v30365_v13  ;;  %9328 = vmatprep.mubr.f32.mxu0 %v9327_v49  ;;  %v30367_v30 = vand.u32 4294901760, %v25982_v19  ;;  %v30368_v44 = vand.u32 4294901760, %v25984_v40  ;;  %v437_v13 = vld [vmem:[#allocation5 + $0xae8] sm:$0xff]  ;;  %v9258_v49 = vand.u32 4294901760, %v418_v9 }
 0x40e   :  { %v9504_v61 = vsub.f32 %v25972_v10, %v30366_v63  ;;  %19746 = vmatpush3.bf16.msra.mxu1 %v25654_v31  ;;  %19756 = vmatprep.subr.bf16.mxu0 %v25917_v48  ;;  %v26041_v63 = vsub.f32 %v417_v22, %v9255_v3  ;;  %v9261_v31 = vand.u32 4294901760, %v419_v15  ;;  %v29334_v48 = vand.u32 4294901760, %v25995_v37 }
 0x40f   :  { %v9385_v16 = vsub.f32 %v25982_v19, %v30367_v30  ;;  %v9392_v21 = vsub.f32 %v25984_v40, %v30368_v44  ;;  %19748 = vmatprep.subr.bf16.mxu1 %v25680_v36  ;;  %v26044_v55 = vpack.c.bf16 %v9491_v28, %v9484_v6  ;;  %v26046_v26 = vpack.c.bf16 %v9309_v50, %v9306_v12 }
 0x410   :  { %v26048_v56 = vsub.f32 %v434_v43, %v9306_v12  ;;  %v26050_v30 = vsub.f32 %v435_v59, %v9309_v50  ;;  %v9498_v44 = vand.u32 4294901760, %v9497_v42  ;;  %v9505_v40 = vand.u32 4294901760, %v9504_v61  ;;  %v420_v43 = vld [vmem:[#allocation5 + $0xa60] sm:$0xff] }
 0x411   :  { %30369 = vst [vmem:[#allocation30_spill] sm:$0xff] %v26046_v26  ;;  %19758 = vmatpush3.bf16.msra.mxu0 %v25919_v11  ;;  %v9312_v19 = vand.u32 4294901760, %v436_v34  ;;  %v9315_v36 = vand.u32 4294901760, %v437_v13  ;;  %v26055_v22 = vpack.c.bf16 %v9379_v20, %v9372_v62  ;;  %v9386_v3 = vand.u32 4294901760, %v9385_v16  ;;  %v26072_v20 = vld [vmem:[#allocation5 + $0xaf0] sm:$0xff]  ;;  %v26074_v16 = vld [vmem:[#allocation5 + $0xaf8] sm:$0xff] }
 0x412   :  { %30370 = vst [vmem:[#allocation25_spill] sm:$0xff] %v26050_v30  ;;  %19750 = vmatpush3.bf16.msra.mxu1 %v25704_v41  ;;  %19760 = vmatprep.subr.bf16.mxu0 %v25924_v23  ;;  %v9393_v6 = vand.u32 4294901760, %v9392_v21  ;;  %v29335_v28 = vand.u32 4294901760, %v26016_v46  ;;  %v26059_v50 = vpack.c.bf16 %v9261_v31, %v9258_v49  ;;  %v26061_v59 = vsub.f32 %v418_v9, %v9258_v49  ;;  %v421_v41 = vld [vmem:[#allocation5 + $0xa68] sm:$0xff] }
 0x413   :  { %19784 = vmatprep.subr.bf16.mxu1 %v25943_v14  ;;  %v26066_v12 = vsub.f32 %v25995_v37, %v29334_v48  ;;  %v26069_v61 = vsub.f32 %v419_v15, %v9261_v31  ;;  %v29342_v14 = vand.u32 4294901760, %v26048_v56  ;;  %v19795_v21 = vpack.c.bf16 %v9505_v40, %v9498_v44  ;;  %v76_v31 = vld [vmem:[#allocation2 + $0xa0] sm:$0xff] }
 0x414   :  { %v26080_v49 = vpack.c.bf16 %v9315_v36, %v9312_v19  ;;  %v26082_v48 = vsub.f32 %v436_v34, %v9312_v19  ;;  %v9264_v15 = vand.u32 4294901760, %v420_v43  ;;  %v19797_v62 = vpack.c.bf16 %v9393_v6, %v9386_v3  ;;  %v26098_v3 = vld [vmem:[#allocation5 + $0xa70] sm:$0xff] }
 0x415   :  { %30371 = vst [vmem:[#allocation22_spill] sm:$0xff] %v26069_v61  ;;  %9222 = vmatmul.mubr.f32.vlgmr.msra.gmra.mrb[58].mxu1 %v25628_v52  ;;  %19762 = vmatpush3.bf16.msra.mxu0 %v25945_v57  ;;  %v26086_v42 = vsub.f32 %v437_v13, %v9315_v36  ;;  %v9518_v52 = vsub.f32 %v26016_v46, %v29335_v28  ;;  %v9267_v9 = vand.u32 4294901760, %v421_v41  ;;  %v9512_v40 = vand.u32 4294901760, %v26066_v12  ;;  %v26100_v13 = vld [vmem:[#allocation5 + $0xa78] sm:$0xff] }
 0x416   :  { %30372 = vst [vmem:[#allocation29_spill] sm:$0xff] %v26082_v48  ;;  %19786 = vmatpush3.bf16.msra.mxu1 %v25964_v54  ;;  %19764 = vmatprep.subr.bf16.mxu0 %v25966_v38  ;;  %v30373_v19 = vand.u32 4294901760, %v26021_v4  ;;  %v9318_v54 = vand.u32 4294901760, %v26072_v20  ;;  %v9321_v44 = vand.u32 4294901760, %v26074_v16  ;;  %v30374_v36 = vand.u32 4294901760, %v26041_v63 }
 0x417   :  { %19788 = vmatprep.subr.bf16.mxu1 %v25988_v51  ;;  %9564 = vmatprep.mubr.f32.mxu1 %v25902_v7  ;;  %v9525_v6 = vsub.f32 %v26048_v56, %v29342_v14  ;;  %v30375_v12 = vand.u32 4294901760, %v26050_v30  ;;  %v26112_v28 = vand.u32 4294901760, %v76_v31  ;;  %v26115_v38 = vsub.f32 %v420_v43, %v9264_v15 }
 0x418   :  { %v9399_v34 = vsub.f32 %v26021_v4, %v30373_v19  ;;  %v9406_v51 = vsub.f32 %v26041_v63, %v30374_v36  ;;  %v9519_v14 = vand.u32 4294901760, %v9518_v52  ;;  %v26122_v23 = vsub.f32 %v421_v41, %v9267_v9 }
 0x419   :  { %v9532_v19 = vsub.f32 %v26050_v30, %v30375_v12  ;;  %19766 = vmatpush3.bf16.msra.mxu0 %v25974_v33  ;;  %v9270_v12 = vand.u32 4294901760, %v26098_v3  ;;  %v9273_v30 = vand.u32 4294901760, %v26100_v13  ;;  %v26128_v7 = vsub.f32 %v26072_v20, %v9318_v54 }
 0x41a   :  { %19790 = vmatpush3.bf16.msra.mxu1 %v26014_v2  ;;  %19768 = vmatprep.subr.bf16.mxu0 %v25990_v24  ;;  %v9400_v43 = vand.u32 4294901760, %v9399_v34  ;;  %v26131_v57 = vsub.f32 %v26074_v16, %v9321_v44  ;;  %v9407_v36 = vand.u32 4294901760, %v9406_v51  ;;  %v9526_v24 = vand.u32 4294901760, %v9525_v6 }
 0x41b   :  { %19792 = vmatprep.subr.bf16.mxu1 %v26044_v55  ;;  %v9533_v52 = vand.u32 4294901760, %v9532_v19  ;;  %v26135_v41 = vsub.f32 %v76_v31, %v26112_v28  ;;  %v26138_v33 = vpack.c.bf16 %v9267_v9, %v9264_v15  ;;  %v30376_v55 = vand.u32 4294901760, %v26061_v59 }
 0x41c   :  { %v30377_v34 = vand.u32 4294901760, %v26069_v61  ;;  %v30378_v2 = vand.u32 4294901760, %v26082_v48  ;;  %v26152_v31 = vsub.f32 %v26098_v3, %v9270_v12  ;;  %v26155_v9 = vsub.f32 %v26100_v13, %v9273_v30 }
 0x41d   :  { %19770 = vmatpush3.bf16.msra.mxu0 %v26024_v32  ;;  %v9413_v20 = vsub.f32 %v26061_v59, %v30376_v55  ;;  %v29362_v6 = vand.u32 4294901760, %v26122_v23  ;;  %v19799_v55 = vpack.c.bf16 %v9519_v14, %v9512_v40  ;;  %v19801_v32 = vpack.c.bf16 %v9407_v36, %v9400_v43 }
 0x41e   :  { %v9420_v16 = vsub.f32 %v26069_v61, %v30377_v34  ;;  %v9539_v51 = vsub.f32 %v26082_v48, %v30378_v2  ;;  %19794 = vmatpush3.bf16.msra.mxu1 %v26055_v22  ;;  %19772 = vmatprep.subr.bf16.mxu0 %v26046_v26  ;;  %v30379_v34 = vand.u32 4294901760, %v26086_v42  ;;  %v29361_v22 = vand.u32 4294901760, %v26128_v7 }
 0x41f   :  { %v16113_v19 = vpop.f32.mrb[46].mxu0  ;;  %19796 = vmatprep.subr.bf16.mxu1 %v19795_v21  ;;  %v26164_v48 = vpack.c.bf16 %v9321_v44, %v9318_v54  ;;  %v19803_v13 = vpack.c.bf16 %v9533_v52, %v9526_v24  ;;  %v29363_v15 = vand.u32 4294901760, %v26135_v41  ;;  %v9414_v21 = vand.u32 4294901760, %v9413_v20 }
 0x420   :  { %v9546_v2 = vsub.f32 %v26086_v42, %v30379_v34  ;;  %v16114_v3 = vpop.f32.mrb[47].mxu0  ;;  %v9421_v14 = vand.u32 4294901760, %v9420_v16  ;;  %v9540_v40 = vand.u32 4294901760, %v9539_v51  ;;  %v30380_v34 = vand.u32 4294901760, %v26115_v38 }
 0x421   :  { %v16115_v61 = vadd.f32 %v16114_v3, %v16113_v19  ;;  %19774 = vmatpush3.bf16.msra.mxu0 %v26059_v50  ;;  %v9434_v54 = vsub.f32 %v26122_v23, %v29362_v6  ;;  %v29359_v24 = vand.u32 4294901760, %v26152_v31  ;;  %v29360_v44 = vand.u32 4294901760, %v26155_v9 }
 0x422   :  { %19798 = vmatpush3.bf16.msra.mxu1 %v19797_v62  ;;  %19776 = vmatprep.subr.bf16.mxu0 %v26080_v49  ;;  %v9427_v26 = vsub.f32 %v26115_v38, %v30380_v34  ;;  %v9547_v43 = vand.u32 4294901760, %v9546_v2  ;;  %v9553_v62 = vsub.f32 %v26128_v7, %v29361_v22  ;;  %v30381_v52 = vand.u32 4294901760, %v26131_v57 }
 0x423   :  { %v7396_v36 = vadd.f32 %v16115_v61, %v26018_v27  ;;  %19800 = vmatprep.subr.bf16.mxu1 %v19799_v55  ;;  %v9332_v16 = vsub.f32 %v26135_v41, %v29363_v15  ;;  %v26188_v51 = vpack.c.bf16 %v9273_v30, %v9270_v12  ;;  %v19805_v19 = vpack.c.bf16 %v9421_v14, %v9414_v21 }
 0x424   :  { %v9560_v20 = vsub.f32 %v26131_v57, %v30381_v52  ;;  %v19815_v27 = vpack.c.bf16 %v25803_v45, %v25799_v39  ;;  %v9428_v61 = vand.u32 4294901760, %v9427_v26  ;;  %v9435_v55 = vand.u32 4294901760, %v9434_v54 }
 0x425   :  { %19778 = vmatpush3.bf16.msra.mxu0 %v26138_v33  ;;  %v9441_v2 = vsub.f32 %v26152_v31, %v29359_v24  ;;  %v9448_v3 = vsub.f32 %v26155_v9, %v29360_v44  ;;  %v19807_v30 = vpack.c.bf16 %v9547_v43, %v9540_v40  ;;  %v9554_v12 = vand.u32 4294901760, %v9553_v62 }
 0x426   :  { %19802 = vmatpush3.bf16.msra.mxu1 %v19801_v32  ;;  %19780 = vmatprep.subr.bf16.mxu0 %v26164_v48  ;;  %v9561_v21 = vand.u32 4294901760, %v9560_v20  ;;  %v9333_v34 = vand.u32 4294901760, %v9332_v16  ;;  %v19817_v32 = vpack.c.bf16 %v25839_v35, %v25827_v5  ;;  %v19819_v26 = vpack.c.bf16 %v25862_v18, %v25859_v1 }
 0x427   :  { %19804 = vmatprep.subr.bf16.mxu1 %v19803_v13  ;;  %v19809_v24 = vpack.c.bf16 %v9435_v55, %v9428_v61  ;;  %v9442_v44 = vand.u32 4294901760, %v9441_v2  ;;  %v9449_v13 = vand.u32 4294901760, %v9448_v3  ;;  %v19821_v62 = vpack.c.bf16 %v25905_v8, %v25900_v58  ;;  %v30384_v61 = vld [vmem:[#allocation18_spill] sm:$0xff]  ;;  %v30385_v2 = vld [vmem:[#allocation24_spill] sm:$0xff] }
 0x428   :  { %v16148_v14 = vpop.f32.mrb[46].mxu1  ;;  %v19811_v40 = vpack.c.bf16 %v9561_v21, %v9554_v12  ;;  %v19823_v16 = vpack.c.bf16 %v25928_v17, %v25926_v47  ;;  %v19831_v55 = vpack.c.bf16 %v26016_v46, %v25995_v37  ;;  %v30386_v3 = vand.u32 4294901760, %v25931_v60  ;;  %v30387_v12 = vld [vmem:[#allocation25_spill] sm:$0xff] }
 0x429   :  { %v16149_v52 = vpop.f32.mrb[47].mxu1  ;;  %19782 = vmatpush3.bf16.msra.mxu0 %v26188_v51  ;;  %v19813_v20 = vpack.c.bf16 %v9449_v13, %v9442_v44  ;;  %v30383_v44 = vld [vmem:[#allocation20_spill] sm:$0xff]  ;;  %v19835_v21 = vpack.c.bf16 %v30387_v12, %v26048_v56  ;;  %v30392_v13 = vld [vmem:[#allocation21_spill] sm:$0xff]  ;;  %v30400_v22 = vand.u32 4294901760, %v25839_v35  ;;  %v30403_v35 = vand.u32 4294901760, %v25900_v58 }
 0x42a   :  { %v16150_v54 = vadd.f32 %v16149_v52, %v16148_v14  ;;  %19806 = vmatpush3.bf16.msra.mxu1 %v19805_v19  ;;  %19816 = vmatprep.subr.bf16.mxu0 %v19815_v27  ;;  %v19825_v19 = vpack.c.bf16 %v25949_v0, %v25947_v25  ;;  %v30388_v14 = vld [vmem:[#allocation27_spill] sm:$0xff] }
 0x42b   :  { %19808 = vmatprep.subr.bf16.mxu1 %v19807_v30  ;;  %v19833_v30 = vpack.c.bf16 %v26041_v63, %v26021_v4 }
 0x42c   :  { %v7500_v43 = vadd.f32 %v16150_v54, %v7396_v36  ;;  %9334 = vmatmul.mubr.f32.vlgmr.msra.gmra.mrb[60].mxu0 %v9333_v34  ;;  %v19827_v36 = vpack.c.bf16 %v25972_v10, %v25968_v29  ;;  %v30389_v34 = vld [vmem:[#allocation22_spill] sm:$0xff] }
 0x42d   :  { %19818 = vmatpush3.bf16.msra.mxu0 %v19817_v32  ;;  %9701 = vmatprep.mubr.f32.mxu0 %v25931_v60  ;;  %v19837_v52 = vpack.c.bf16 %v30389_v34, %v26061_v59  ;;  %v30390_v32 = vld [vmem:[#allocation19_spill] sm:$0xff]  ;;  %v30391_v60 = vld [vmem:[#allocation29_spill] sm:$0xff] }
 0x42e   :  { %19810 = vmatpush3.bf16.msra.mxu1 %v19809_v24  ;;  %19820 = vmatprep.subr.bf16.mxu0 %v19819_v26  ;;  %v30382_v24 = vld [vmem:[#allocation17_spill] sm:$0xff]  ;;  %v19839_v26 = vpack.c.bf16 %v26086_v42, %v30391_v60 }
 0x42f   :  { %19812 = vmatprep.subr.bf16.mxu1 %v19811_v40  ;;  %v19829_v27 = vpack.c.bf16 %v30383_v44, %v30382_v24 }
 0x431   :  { %19822 = vmatpush3.bf16.msra.mxu0 %v19821_v62 }
 0x432   :  { %19814 = vmatpush3.bf16.msra.mxu1 %v19813_v20  ;;  %19824 = vmatprep.subr.bf16.mxu0 %v19823_v16  ;;  %v19841_v20 = vpack.c.bf16 %v26122_v23, %v26115_v38  ;;  %v30393_v16 = vld [vmem:[#allocation23_spill] sm:$0xff] }
 0x433   :  { %19848 = vmatprep.subr.bf16.mxu1 %v25897_v53 }
 0x435   :  { %9566 = vmatmul.mubr.f32.vlgmr.msra.gmra.mrb[60].mxu1 %v26112_v28  ;;  %19826 = vmatpush3.bf16.msra.mxu0 %v19825_v19  ;;  %v19843_v19 = vpack.c.bf16 %v26131_v57, %v26128_v7 }
 0x436   :  { %19850 = vmatpush3.bf16.msra.mxu1 %v30384_v61  ;;  %19828 = vmatprep.subr.bf16.mxu0 %v19827_v36 }
 0x437   :  { %19852 = vmatprep.subr.bf16.mxu1 %v30385_v2  ;;  %9808 = vmatprep.mubr.f32.mxu1 %v30386_v3  ;;  %v30395_v3 = vld [vmem:[#allocation26_spill] sm:$0xff] }
 0x439   :  { %19830 = vmatpush3.bf16.msra.mxu0 %v19829_v27  ;;  %v30394_v27 = vld [vmem:[#allocation16_spill] sm:$0xff] }
 0x43a   :  { %19854 = vmatpush3.bf16.msra.mxu1 %v25919_v11  ;;  %19832 = vmatprep.subr.bf16.mxu0 %v19831_v55  ;;  %v19845_v55 = vpack.c.bf16 %v26155_v9, %v26152_v31 }
 0x43b   :  { %19856 = vmatprep.subr.bf16.mxu1 %v30388_v14 }
 0x43d   :  { %19834 = vmatpush3.bf16.msra.mxu0 %v19833_v30  ;;  %v30396_v30 = vand.u32 4294901760, %v25799_v39  ;;  %v30401_v39 = vand.u32 4294901760, %v25859_v1  ;;  %v30404_v1 = vand.u32 4294901760, %v25905_v8 }
 0x43e   :  { %19858 = vmatpush3.bf16.msra.mxu1 %v30390_v32  ;;  %19836 = vmatprep.subr.bf16.mxu0 %v19835_v21  ;;  %v30397_v21 = vand.u32 4294901760, %v25803_v45  ;;  %v30402_v45 = vand.u32 4294901760, %v25862_v18  ;;  %v30405_v18 = vld [vmem:[#allocation28_spill] sm:$0xff] }
 0x43f   :  { %v16183_v54 = vpop.f32.mrb[48].mxu0  ;;  %19860 = vmatprep.subr.bf16.mxu1 %v30392_v13 }
 0x440   :  { %v16184_v40 = vpop.f32.mrb[49].mxu0 }
 0x441   :  { %v16185_v62 = vadd.f32 %v16184_v40, %v16183_v54  ;;  %19838 = vmatpush3.bf16.msra.mxu0 %v19837_v52  ;;  %v19879_v52 = vpack.c.bf16 %v30397_v21, %v30396_v30  ;;  %v30398_v54 = vld [vmem:[#allocation30_spill] sm:$0xff]  ;;  %v19883_v30 = vpack.c.bf16 %v30402_v45, %v30401_v39  ;;  %v30411_v45 = vand.u32 4294901760, %v25972_v10 }
 0x442   :  { %19862 = vmatpush3.bf16.msra.mxu1 %v30393_v16  ;;  %19840 = vmatprep.subr.bf16.mxu0 %v19839_v26  ;;  %v26249_v26 = vld [vmem:[#allocation5 + $0xb80] sm:$0xff]  ;;  %v30412_v10 = vand.u32 4294901760, %v30382_v24 }
 0x443   :  { %v7612_v36 = vadd.f32 %v16185_v62, %v7500_v43  ;;  %19864 = vmatprep.subr.bf16.mxu1 %v30394_v27  ;;  %v26251_v43 = vld [vmem:[#allocation5 + $0xb88] sm:$0xff]  ;;  %v10138_v21 = vand.u32 4294901760, %v26249_v26 }
 0x445   :  { %19842 = vmatpush3.bf16.msra.mxu0 %v19841_v20  ;;  %v30399_v20 = vand.u32 4294901760, %v25827_v5  ;;  %v26268_v5 = vld [vmem:[#allocation5 + $0xb00] sm:$0xff] }
 0x446   :  { %19866 = vmatpush3.bf16.msra.mxu1 %v30395_v3  ;;  %19844 = vmatprep.subr.bf16.mxu0 %v19843_v19  ;;  %v29364_v8 = vand.u32 4294901760, %v26268_v5 }
 0x447   :  { %19868 = vmatprep.subr.bf16.mxu1 %v30398_v54  ;;  %v19881_v6 = vpack.c.bf16 %v30400_v22, %v30399_v20  ;;  %v19885_v22 = vpack.c.bf16 %v30404_v1, %v30403_v35  ;;  %v26283_v20 = vsub.f32 %v26249_v26, %v10138_v21 }
 0x448   :  { %v16218_v40 = vpop.f32.mrb[48].mxu1 }
 0x449   :  { %v16219_v62 = vpop.f32.mrb[49].mxu1  ;;  %19846 = vmatpush3.bf16.msra.mxu0 %v19845_v55  ;;  %v10141_v55 = vand.u32 4294901760, %v26251_v43 }
 0x44a   :  { %v16220_v19 = vadd.f32 %v16219_v62, %v16218_v40  ;;  %19870 = vmatpush3.bf16.msra.mxu1 %v26059_v50  ;;  %19880 = vmatprep.subr.bf16.mxu0 %v19879_v52  ;;  %v26275_v52 = vld [vmem:[#allocation5 + $0xb08] sm:$0xff]  ;;  %v30407_v40 = vand.u32 4294901760, %v25928_v17  ;;  %v30409_v17 = vand.u32 4294901760, %v25949_v0  ;;  %v443_v0 = vld [vmem:[#allocation5 + $0xb18] sm:$0xff] }
 0x44b   :  { %19872 = vmatprep.subr.bf16.mxu1 %v26080_v49  ;;  %v26287_v58 = vsub.f32 %v26251_v43, %v10141_v55  ;;  %v10093_v39 = vand.u32 4294901760, %v26275_v52  ;;  %v30410_v43 = vand.u32 4294901760, %v25968_v29  ;;  %v30418_v29 = vand.u32 4294901760, %v26041_v63 }
 0x44c   :  { %v26265_v15 = vadd.f32 %v16220_v19, %v7612_v36  ;;  %9704 = vmatmul.mubr.f32.vlgmr.msra.gmra.mrb[62].mxu0 %v26135_v41  ;;  %v30406_v36 = vand.u32 4294901760, %v25926_v47  ;;  %v26292_v19 = vld [vmem:[#allocation5 + $0xb98] sm:$0xff]  ;;  %v30408_v47 = vand.u32 4294901760, %v25947_v25  ;;  %v26311_v25 = vsub.f32 %v26268_v5, %v29364_v8 }
 0x44d   :  { %19882 = vmatpush3.bf16.msra.mxu0 %v19881_v6  ;;  %9978 = vmatprep.mubr.f32.mxu0 %v30405_v18  ;;  %v26290_v6 = vld [vmem:[#allocation5 + $0xb90] sm:$0xff]  ;;  %v10147_v1 = vand.u32 4294901760, %v26292_v19  ;;  %v30417_v8 = vand.u32 4294901760, %v26021_v4 }
 0x44e   :  { %19874 = vmatpush3.bf16.msra.mxu1 %v26138_v33  ;;  %19884 = vmatprep.subr.bf16.mxu0 %v19883_v30  ;;  %v19887_v62 = vpack.c.bf16 %v30407_v40, %v30406_v36  ;;  %v19889_v26 = vpack.c.bf16 %v30409_v17, %v30408_v47  ;;  %v19891_v30 = vpack.c.bf16 %v30411_v45, %v30410_v43  ;;  %v10144_v35 = vand.u32 4294901760, %v26290_v6  ;;  %v442_v36 = vld [vmem:[#allocation5 + $0xb10] sm:$0xff] }
 0x44f   :  { %19876 = vmatprep.subr.bf16.mxu1 %v26164_v48  ;;  %v30413_v40 = vand.u32 4294901760, %v30383_v44  ;;  %v30414_v47 = vand.u32 4294901760, %v25995_v37  ;;  %v30415_v17 = vand.u32 4294901760, %v26016_v46  ;;  %v30416_v45 = vand.u32 4294901760, %v26135_v41  ;;  %v460_v41 = vld [vmem:[#allocation5 + $0xba0] sm:$0xff] }
 0x450   :  { %v19897_v24 = vpack.c.bf16 %v30418_v29, %v30417_v8  ;;  %v30419_v44 = vand.u32 4294901760, %v26048_v56  ;;  %v30421_v46 = vand.u32 4294901760, %v26061_v59  ;;  %v26343_v4 = vsub.f32 %v26290_v6, %v10144_v35 }
 0x451   :  { %19886 = vmatpush3.bf16.msra.mxu0 %v19885_v22  ;;  %v29369_v22 = vand.u32 4294901760, %v26283_v20  ;;  %v19895_v43 = vpack.c.bf16 %v30415_v17, %v30414_v47  ;;  %v10096_v47 = vand.u32 4294901760, %v442_v36  ;;  %v26346_v63 = vsub.f32 %v26292_v19, %v10147_v1 }
 0x452   :  { %19878 = vmatpush3.bf16.msra.mxu1 %v26188_v51  ;;  %19888 = vmatprep.subr.bf16.mxu0 %v19887_v62  ;;  %v19893_v62 = vpack.c.bf16 %v30413_v40, %v30412_v10  ;;  %v30420_v10 = vand.u32 4294901760, %v30387_v12  ;;  %v30422_v40 = vand.u32 4294901760, %v30389_v34  ;;  %v10099_v56 = vand.u32 4294901760, %v443_v0  ;;  %v461_v12 = vld [vmem:[#allocation5 + $0xba8] sm:$0xff]  ;;  %v79_v34 = vld [vmem:[#allocation2 + $0xb8] sm:$0xff] }
 0x453   :  { %19912 = vmatprep.subr.bf16.mxu1 %v25897_v53  ;;  %v26323_v53 = vsub.f32 %v26275_v52, %v10093_v39  ;;  %v10317_v59 = vsub.f32 %v26283_v20, %v29369_v22  ;;  %v30423_v8 = vand.u32 4294901760, %v30391_v60  ;;  %v30425_v6 = vand.u32 4294901760, %v26115_v38 }
 0x454   :  { %v19899_v37 = vpack.c.bf16 %v30420_v10, %v30419_v44  ;;  %v26339_v52 = vpack.c.bf16 %v30422_v40, %v30421_v46  ;;  %v30426_v19 = vand.u32 4294901760, %v26122_v23  ;;  %v30427_v29 = vand.u32 4294901760, %v26287_v58  ;;  %v445_v46 = vld [vmem:[#allocation5 + $0xb28] sm:$0xff] }
 0x455   :  { %9812 = vmatmul.mubr.f32.vlgmr.msra.gmra.mrb[62].mxu1 %v30416_v45  ;;  %19890 = vmatpush3.bf16.msra.mxu0 %v19889_v26  ;;  %v30428_v60 = vand.u32 4294901760, %v26128_v7  ;;  %v30430_v38 = vand.u32 4294901760, %v26152_v31  ;;  %v30431_v23 = vand.u32 4294901760, %v26155_v9  ;;  %v26381_v10 = vpack.c.bf16 %v10141_v55, %v10138_v21 }
 0x456   :  { %19914 = vmatpush3.bf16.msra.mxu1 %v30384_v61  ;;  %19892 = vmatprep.subr.bf16.mxu0 %v19891_v30  ;;  %v30424_v61 = vand.u32 4294901760, %v26086_v42  ;;  %v26362_v30 = vpack.c.bf16 %v30426_v19, %v30425_v6  ;;  %v10324_v17 = vsub.f32 %v26287_v58, %v30427_v29  ;;  %v30429_v42 = vand.u32 4294901760, %v26131_v57 }
 0x457   :  { %19916 = vmatprep.subr.bf16.mxu1 %v30385_v2  ;;  %10082 = vmatprep.mubr.f32.mxu1 %v30405_v18  ;;  %v29368_v2 = vand.u32 4294901760, %v26311_v25  ;;  %v26379_v44 = vpack.c.bf16 %v30431_v23, %v30430_v38  ;;  %v444_v18 = vld [vmem:[#allocation5 + $0xb20] sm:$0xff]  ;;  %v29367_v40 = vand.u32 4294901760, %v26323_v53  ;;  %v10150_v7 = vand.u32 4294901760, %v460_v41  ;;  %v463_v38 = vld [vmem:[#allocation5 + $0xbb8] sm:$0xff] }
 0x458   :  { %v26356_v26 = vpack.c.bf16 %v30424_v61, %v30423_v8  ;;  %v26373_v45 = vpack.c.bf16 %v30429_v42, %v30428_v60  ;;  %v26384_v8 = vsub.f32 %v442_v36, %v10096_v47  ;;  %v10153_v61 = vand.u32 4294901760, %v461_v12  ;;  %v462_v42 = vld [vmem:[#allocation5 + $0xbb0] sm:$0xff] }
 0x459   :  { %19894 = vmatpush3.bf16.msra.mxu0 %v19893_v62  ;;  %v26386_v57 = vand.u32 4294901760, %v79_v34  ;;  %v26389_v31 = vsub.f32 %v443_v0, %v10099_v56  ;;  %v10318_v9 = vand.u32 4294901760, %v10317_v59  ;;  %v29366_v21 = vand.u32 4294901760, %v26343_v4 }
 0x45a   :  { %19918 = vmatpush3.bf16.msra.mxu1 %v25919_v11  ;;  %19896 = vmatprep.subr.bf16.mxu0 %v19895_v43  ;;  %v29365_v55 = vand.u32 4294901760, %v26346_v63  ;;  %v10325_v6 = vand.u32 4294901760, %v10324_v17  ;;  %v10102_v62 = vand.u32 4294901760, %v444_v18  ;;  %v10105_v36 = vand.u32 4294901760, %v445_v46 }
 0x45b   :  { %30432 = vst [vmem:[#allocation17_spill] sm:$0xff] %v26386_v57  ;;  %19920 = vmatprep.subr.bf16.mxu1 %v30388_v14  ;;  %v10205_v19 = vsub.f32 %v26311_v25, %v29368_v2  ;;  %v30433_v29 = vand.u32 4294901760, %v26268_v5  ;;  %v26401_v0 = vpack.c.bf16 %v10147_v1, %v10144_v35  ;;  %v26403_v43 = vpack.c.bf16 %v10099_v56, %v10096_v47  ;;  %v446_v1 = vld [vmem:[#allocation5 + $0xb30] sm:$0xff] }
 0x45c   :  { %v10212_v59 = vsub.f32 %v26323_v53, %v29367_v40  ;;  %v26408_v14 = vpack.c.bf16 %v10153_v61, %v10150_v7  ;;  %v26410_v17 = vsub.f32 %v460_v41, %v10150_v7  ;;  %v26412_v60 = vsub.f32 %v461_v12, %v10153_v61  ;;  %v465_v40 = vld [vmem:[#allocation5 + $0xbc8] sm:$0xff] }
 0x45d   :  { %v26399_v11 = vpack.c.bf16 %v10093_v39, %v30433_v29  ;;  %30435 = vst [vmem:[#allocation18_spill] sm:$0xff] %v26401_v0  ;;  %19898 = vmatpush3.bf16.msra.mxu0 %v19897_v24  ;;  %v26415_v5 = vsub.f32 %v79_v34, %v26386_v57  ;;  %v10331_v39 = vsub.f32 %v26343_v4, %v29366_v21  ;;  %v447_v24 = vld [vmem:[#allocation5 + $0xb38] sm:$0xff]  ;;  %v29371_v47 = vand.u32 4294901760, %v26384_v8  ;;  %v464_v21 = vld [vmem:[#allocation5 + $0xbc0] sm:$0xff] }
 0x45e   :  { %30436 = vst [vmem:[#allocation24_spill] sm:$0xff] %v26408_v14  ;;  %19922 = vmatpush3.bf16.msra.mxu1 %v30390_v32  ;;  %19900 = vmatprep.subr.bf16.mxu0 %v19899_v37  ;;  %v10338_v35 = vsub.f32 %v26346_v63, %v29365_v55  ;;  %v29370_v56 = vand.u32 4294901760, %v26389_v31  ;;  %v26427_v12 = vpack.c.bf16 %v10325_v6, %v10318_v9  ;;  %v10206_v34 = vand.u32 4294901760, %v10205_v19 }
 0x45f   :  { %30434 = vst [vmem:[#allocation20_spill] sm:$0xff] %v26399_v11  ;;  %v16253_v41 = vpop.f32.mrb[50].mxu0  ;;  %19924 = vmatprep.subr.bf16.mxu1 %v30392_v13  ;;  %v26429_v32 = vpack.c.bf16 %v10105_v36, %v10102_v62  ;;  %v26431_v37 = vsub.f32 %v444_v18, %v10102_v62  ;;  %v26433_v7 = vsub.f32 %v445_v46, %v10105_v36  ;;  %v10213_v61 = vand.u32 4294901760, %v10212_v59 }
 0x460   :  { %v16254_v23 = vpop.f32.mrb[51].mxu0  ;;  %v10156_v29 = vand.u32 4294901760, %v462_v42  ;;  %v10159_v55 = vand.u32 4294901760, %v463_v38  ;;  %v10108_v22 = vand.u32 4294901760, %v446_v1  ;;  %v10111_v13 = vand.u32 4294901760, %v447_v24 }
 0x461   :  { %30437 = vst [vmem:[#allocation25_spill] sm:$0xff] %v26429_v32  ;;  %v16255_v2 = vadd.f32 %v16254_v23, %v16253_v41  ;;  %19902 = vmatpush3.bf16.msra.mxu0 %v26339_v52  ;;  %v29375_v9 = vand.u32 4294901760, %v26415_v5  ;;  %v10332_v18 = vand.u32 4294901760, %v10331_v39  ;;  %v10339_v6 = vand.u32 4294901760, %v10338_v35 }
 0x462   :  { %19926 = vmatpush3.bf16.msra.mxu1 %v30393_v16  ;;  %19904 = vmatprep.subr.bf16.mxu0 %v26356_v26  ;;  %v10219_v46 = vsub.f32 %v26384_v8, %v29371_v47  ;;  %v10226_v62 = vsub.f32 %v26389_v31, %v29370_v56  ;;  %v10162_v36 = vand.u32 4294901760, %v464_v21  ;;  %v10165_v19 = vand.u32 4294901760, %v465_v40 }
 0x463   :  { %v7982_v52 = vadd.f32 %v16255_v2, %v26265_v15  ;;  %19928 = vmatprep.subr.bf16.mxu1 %v30394_v27  ;;  %v29373_v16 = vand.u32 4294901760, %v26410_v17  ;;  %v26448_v59 = vpack.c.bf16 %v10213_v61, %v10206_v34  ;;  %v26450_v26 = vpack.c.bf16 %v10159_v55, %v10156_v29  ;;  %v448_v15 = vld [vmem:[#allocation5 + $0xb40] sm:$0xff]  ;;  %v449_v27 = vld [vmem:[#allocation5 + $0xb48] sm:$0xff] }
 0x464   :  { %v26452_v39 = vsub.f32 %v462_v42, %v10156_v29  ;;  %v29372_v35 = vand.u32 4294901760, %v26412_v60  ;;  %v26456_v41 = vsub.f32 %v463_v38, %v10159_v55  ;;  %v26458_v23 = vpack.c.bf16 %v10111_v13, %v10108_v22 }
 0x465   :  { %30438 = vst [vmem:[#allocation27_spill] sm:$0xff] %v26450_v26  ;;  %19906 = vmatpush3.bf16.msra.mxu0 %v26362_v30  ;;  %v29374_v2 = vand.u32 4294901760, %v26431_v37  ;;  %v10188_v34 = vsub.f32 %v26415_v5, %v29375_v9  ;;  %v26466_v42 = vsub.f32 %v446_v1, %v10108_v22  ;;  %v26468_v61 = vsub.f32 %v447_v24, %v10111_v13  ;;  %v466_v13 = vld [vmem:[#allocation5 + $0xbd0] sm:$0xff] }
 0x466   :  { %30439 = vst [vmem:[#allocation22_spill] sm:$0xff] %v26458_v23  ;;  %19930 = vmatpush3.bf16.msra.mxu1 %v30395_v3  ;;  %19908 = vmatprep.subr.bf16.mxu0 %v26373_v45  ;;  %v10220_v30 = vand.u32 4294901760, %v10219_v46  ;;  %v29376_v55 = vand.u32 4294901760, %v26433_v7  ;;  %v26472_v38 = vpack.c.bf16 %v10339_v6, %v10332_v18  ;;  %v10227_v29 = vand.u32 4294901760, %v10226_v62  ;;  %v467_v6 = vld [vmem:[#allocation5 + $0xbd8] sm:$0xff]  ;;  %v450_v46 = vld [vmem:[#allocation5 + $0xb50] sm:$0xff] }
 0x467   :  { %30440 = vst [vmem:[#allocation19_spill] sm:$0xff] %v26466_v42  ;;  %30441 = vst [vmem:[#allocation29_spill] sm:$0xff] %v26468_v61  ;;  %19932 = vmatprep.subr.bf16.mxu1 %v30398_v54  ;;  %v26474_v56 = vpack.c.bf16 %v10165_v19, %v10162_v36  ;;  %v10345_v3 = vsub.f32 %v26410_v17, %v29373_v16  ;;  %v26479_v45 = vsub.f32 %v464_v21, %v10162_v36 }
 0x468   :  { %v16288_v47 = vpop.f32.mrb[50].mxu1  ;;  %v10352_v22 = vsub.f32 %v26412_v60, %v29372_v35  ;;  %v10114_v1 = vand.u32 4294901760, %v448_v15  ;;  %v10117_v24 = vand.u32 4294901760, %v449_v27  ;;  %v10233_v18 = vsub.f32 %v26431_v37, %v29374_v2 }
 0x469   :  { %30442 = vst [vmem:[#allocation21_spill] sm:$0xff] %v26474_v56  ;;  %v16289_v54 = vpop.f32.mrb[51].mxu1  ;;  %19910 = vmatpush3.bf16.msra.mxu0 %v26379_v44  ;;  %v10189_v62 = vand.u32 4294901760, %v10188_v34  ;;  %v10240_v35 = vsub.f32 %v26433_v7, %v29376_v55  ;;  %v26498_v2 = vpack.c.bf16 %v10227_v29, %v10220_v30  ;;  %v26500_v9 = vsub.f32 %v465_v40, %v10165_v19  ;;  %v451_v44 = vld [vmem:[#allocation5 + $0xb58] sm:$0xff] }
 0x46a   :  { %v16290_v36 = vadd.f32 %v16289_v54, %v16288_v47  ;;  %19934 = vmatpush3.bf16.msra.mxu1 %v26059_v50  ;;  %19944 = vmatprep.subr.bf16.mxu0 %v26381_v10  ;;  %v10346_v34 = vand.u32 4294901760, %v10345_v3  ;;  %v10168_v47 = vand.u32 4294901760, %v466_v13  ;;  %v10353_v50 = vand.u32 4294901760, %v10352_v22 }
 0x46b   :  { %19936 = vmatprep.subr.bf16.mxu1 %v26080_v49  ;;  %v26505_v21 = vsub.f32 %v448_v15, %v10114_v1  ;;  %v10171_v55 = vand.u32 4294901760, %v467_v6  ;;  %v26508_v16 = vpack.c.bf16 %v10117_v24, %v10114_v1  ;;  %v30444_v49 = vand.u32 4294901760, %v26452_v39 }
 0x46c   :  { %v26502_v54 = vadd.f32 %v16290_v36, %v7982_v52  ;;  %9980 = vmatmul.mubr.f32.vlgmr.msra.gmra.mrb[64].mxu0 %v26112_v28  ;;  %v30445_v19 = vand.u32 4294901760, %v26456_v41  ;;  %v10234_v15 = vand.u32 4294901760, %v10233_v18  ;;  %v10241_v30 = vand.u32 4294901760, %v10240_v35  ;;  %v468_v36 = vld [vmem:[#allocation5 + $0xbe0] sm:$0xff] }
 0x46d   :  { %19946 = vmatpush3.bf16.msra.mxu0 %v26399_v11  ;;  %30443 = vst [vmem:[#allocation23_spill] sm:$0xff] %v26508_v16  ;;  %v10359_v40 = vsub.f32 %v26452_v39, %v30444_v49  ;;  %10190 = vmatprep.mubr.f32.mxu0 %v10189_v62  ;;  %v30446_v29 = vand.u32 4294901760, %v26466_v42  ;;  %v30447_v22 = vand.u32 4294901760, %v26468_v61  ;;  %v469_v49 = vld [vmem:[#allocation5 + $0xbe8] sm:$0xff]  ;;  %v10120_v62 = vand.u32 4294901760, %v450_v46 }
 0x46e   :  { %v10366_v52 = vsub.f32 %v26456_v41, %v30445_v19  ;;  %19938 = vmatpush3.bf16.msra.mxu1 %v26138_v33  ;;  %19948 = vmatprep.subr.bf16.mxu0 %v26401_v0  ;;  %v26525_v19 = vsub.f32 %v449_v27, %v10117_v24  ;;  %v10123_v33 = vand.u32 4294901760, %v451_v44  ;;  %v29385_v0 = vand.u32 4294901760, %v26479_v45 }
 0x46f   :  { %v10247_v3 = vsub.f32 %v26466_v42, %v30446_v29  ;;  %v10254_v1 = vsub.f32 %v26468_v61, %v30447_v22  ;;  %19940 = vmatprep.subr.bf16.mxu1 %v26164_v48  ;;  %v26528_v18 = vpack.c.bf16 %v10353_v50, %v10346_v34  ;;  %v26530_v35 = vpack.c.bf16 %v10171_v55, %v10168_v47 }
 0x470   :  { %v26532_v11 = vsub.f32 %v466_v13, %v10168_v47  ;;  %v26534_v29 = vsub.f32 %v467_v6, %v10171_v55  ;;  %v10360_v22 = vand.u32 4294901760, %v10359_v40  ;;  %v10367_v61 = vand.u32 4294901760, %v10366_v52  ;;  %v452_v13 = vld [vmem:[#allocation5 + $0xb60] sm:$0xff] }
 0x471   :  { %30448 = vst [vmem:[#allocation16_spill] sm:$0xff] %v26530_v35  ;;  %19950 = vmatpush3.bf16.msra.mxu0 %v26403_v43  ;;  %v10174_v42 = vand.u32 4294901760, %v468_v36  ;;  %v10177_v48 = vand.u32 4294901760, %v469_v49  ;;  %v26539_v27 = vpack.c.bf16 %v10241_v30, %v10234_v15  ;;  %v10248_v24 = vand.u32 4294901760, %v10247_v3  ;;  %v26556_v30 = vld [vmem:[#allocation5 + $0xbf0] sm:$0xff]  ;;  %v26558_v3 = vld [vmem:[#allocation5 + $0xbf8] sm:$0xff] }
 0x472   :  { %30449 = vst [vmem:[#allocation26_spill] sm:$0xff] %v26534_v29  ;;  %19942 = vmatpush3.bf16.msra.mxu1 %v26188_v51  ;;  %19952 = vmatprep.subr.bf16.mxu0 %v26408_v14  ;;  %v10255_v34 = vand.u32 4294901760, %v10254_v1  ;;  %v29386_v50 = vand.u32 4294901760, %v26500_v9  ;;  %v26543_v55 = vpack.c.bf16 %v10123_v33, %v10120_v62  ;;  %v26545_v6 = vsub.f32 %v450_v46, %v10120_v62  ;;  %v453_v51 = vld [vmem:[#allocation5 + $0xb68] sm:$0xff] }
 0x473   :  { %19976 = vmatprep.subr.bf16.mxu1 %v26427_v12  ;;  %v26550_v47 = vsub.f32 %v26479_v45, %v29385_v0  ;;  %v26553_v52 = vsub.f32 %v451_v44, %v10123_v33  ;;  %v29393_v12 = vand.u32 4294901760, %v26532_v11  ;;  %v19987_v1 = vpack.c.bf16 %v10367_v61, %v10360_v22  ;;  %v78_v33 = vld [vmem:[#allocation2 + $0xb0] sm:$0xff] }
 0x474   :  { %v26564_v62 = vpack.c.bf16 %v10177_v48, %v10174_v42  ;;  %v26566_v0 = vsub.f32 %v468_v36, %v10174_v42  ;;  %v10126_v44 = vand.u32 4294901760, %v452_v13  ;;  %v19989_v15 = vpack.c.bf16 %v10255_v34, %v10248_v24  ;;  %v26582_v24 = vld [vmem:[#allocation5 + $0xb70] sm:$0xff] }
 0x475   :  { %30450 = vst [vmem:[#allocation30_spill] sm:$0xff] %v26553_v52  ;;  %10084 = vmatmul.mubr.f32.vlgmr.msra.gmra.mrb[64].mxu1 %v26112_v28  ;;  %19954 = vmatpush3.bf16.msra.mxu0 %v26429_v32  ;;  %v26570_v40 = vsub.f32 %v469_v49, %v10177_v48  ;;  %v10380_v28 = vsub.f32 %v26500_v9, %v29386_v50  ;;  %v10129_v46 = vand.u32 4294901760, %v453_v51  ;;  %v10374_v61 = vand.u32 4294901760, %v26550_v47  ;;  %v26584_v49 = vld [vmem:[#allocation5 + $0xb78] sm:$0xff] }
 0x476   :  { %30451 = vst [vmem:[#allocation28_spill] sm:$0xff] %v26566_v0  ;;  %19978 = vmatpush3.bf16.msra.mxu1 %v26448_v59  ;;  %19956 = vmatprep.subr.bf16.mxu0 %v26450_v26  ;;  %v30452_v42 = vand.u32 4294901760, %v26505_v21  ;;  %v10180_v59 = vand.u32 4294901760, %v26556_v30  ;;  %v10183_v22 = vand.u32 4294901760, %v26558_v3  ;;  %v30453_v48 = vand.u32 4294901760, %v26525_v19 }
 0x477   :  { %19980 = vmatprep.subr.bf16.mxu1 %v26472_v38  ;;  %10426 = vmatprep.mubr.f32.mxu1 %v26386_v57  ;;  %v10387_v34 = vsub.f32 %v26532_v11, %v29393_v12  ;;  %v30454_v47 = vand.u32 4294901760, %v26534_v29  ;;  %v26596_v50 = vand.u32 4294901760, %v78_v33  ;;  %v26599_v26 = vsub.f32 %v452_v13, %v10126_v44 }
 0x478   :  { %v10261_v36 = vsub.f32 %v26505_v21, %v30452_v42  ;;  %v10268_v38 = vsub.f32 %v26525_v19, %v30453_v48  ;;  %v10381_v12 = vand.u32 4294901760, %v10380_v28  ;;  %v26606_v14 = vsub.f32 %v453_v51, %v10129_v46 }
 0x479   :  { %v10394_v42 = vsub.f32 %v26534_v29, %v30454_v47  ;;  %19958 = vmatpush3.bf16.msra.mxu0 %v26458_v23  ;;  %v10132_v47 = vand.u32 4294901760, %v26582_v24  ;;  %v10135_v29 = vand.u32 4294901760, %v26584_v49  ;;  %v26612_v57 = vsub.f32 %v26556_v30, %v10180_v59 }
 0x47a   :  { %19982 = vmatpush3.bf16.msra.mxu1 %v26498_v2  ;;  %19960 = vmatprep.subr.bf16.mxu0 %v26474_v56  ;;  %v10262_v13 = vand.u32 4294901760, %v10261_v36  ;;  %v26615_v32 = vsub.f32 %v26558_v3, %v10183_v22  ;;  %v10269_v48 = vand.u32 4294901760, %v10268_v38  ;;  %v10388_v56 = vand.u32 4294901760, %v10387_v34 }
 0x47b   :  { %19984 = vmatprep.subr.bf16.mxu1 %v26528_v18  ;;  %v10395_v28 = vand.u32 4294901760, %v10394_v42  ;;  %v26619_v51 = vsub.f32 %v78_v33, %v26596_v50  ;;  %v26622_v23 = vpack.c.bf16 %v10129_v46, %v10126_v44  ;;  %v30455_v18 = vand.u32 4294901760, %v26545_v6 }
 0x47c   :  { %v30456_v36 = vand.u32 4294901760, %v26553_v52  ;;  %v30457_v2 = vand.u32 4294901760, %v26566_v0  ;;  %v26636_v33 = vsub.f32 %v26582_v24, %v10132_v47  ;;  %v26639_v46 = vsub.f32 %v26584_v49, %v10135_v29 }
 0x47d   :  { %19962 = vmatpush3.bf16.msra.mxu0 %v26508_v16  ;;  %v10275_v30 = vsub.f32 %v26545_v6, %v30455_v18  ;;  %v29413_v34 = vand.u32 4294901760, %v26606_v14  ;;  %v19991_v18 = vpack.c.bf16 %v10381_v12, %v10374_v61  ;;  %v19993_v16 = vpack.c.bf16 %v10269_v48, %v10262_v13 }
 0x47e   :  { %v10282_v3 = vsub.f32 %v26553_v52, %v30456_v36  ;;  %v10401_v38 = vsub.f32 %v26566_v0, %v30457_v2  ;;  %19986 = vmatpush3.bf16.msra.mxu1 %v26539_v27  ;;  %19964 = vmatprep.subr.bf16.mxu0 %v26530_v35  ;;  %v30458_v36 = vand.u32 4294901760, %v26570_v40  ;;  %v29412_v27 = vand.u32 4294901760, %v26612_v57 }
 0x47f   :  { %v16323_v42 = vpop.f32.mrb[52].mxu0  ;;  %19988 = vmatprep.subr.bf16.mxu1 %v19987_v1  ;;  %v26648_v0 = vpack.c.bf16 %v10183_v22, %v10180_v59  ;;  %v19995_v49 = vpack.c.bf16 %v10395_v28, %v10388_v56  ;;  %v29414_v44 = vand.u32 4294901760, %v26619_v51  ;;  %v10276_v1 = vand.u32 4294901760, %v10275_v30 }
 0x480   :  { %v10408_v2 = vsub.f32 %v26570_v40, %v30458_v36  ;;  %v16324_v24 = vpop.f32.mrb[53].mxu0  ;;  %v10283_v12 = vand.u32 4294901760, %v10282_v3  ;;  %v10402_v61 = vand.u32 4294901760, %v10401_v38  ;;  %v30459_v36 = vand.u32 4294901760, %v26599_v26 }
 0x481   :  { %v16325_v52 = vadd.f32 %v16324_v24, %v16323_v42  ;;  %19966 = vmatpush3.bf16.msra.mxu0 %v26543_v55  ;;  %v10296_v59 = vsub.f32 %v26606_v14, %v29413_v34  ;;  %v29410_v56 = vand.u32 4294901760, %v26636_v33  ;;  %v29411_v22 = vand.u32 4294901760, %v26639_v46 }
 0x482   :  { %19990 = vmatpush3.bf16.msra.mxu1 %v19989_v15  ;;  %19968 = vmatprep.subr.bf16.mxu0 %v26564_v62  ;;  %v10289_v35 = vsub.f32 %v26599_v26, %v30459_v36  ;;  %v10409_v13 = vand.u32 4294901760, %v10408_v2  ;;  %v10415_v15 = vsub.f32 %v26612_v57, %v29412_v27  ;;  %v30460_v28 = vand.u32 4294901760, %v26615_v32 }
 0x483   :  { %v8258_v48 = vadd.f32 %v16325_v52, %v26502_v54  ;;  %19992 = vmatprep.subr.bf16.mxu1 %v19991_v18  ;;  %v10194_v3 = vsub.f32 %v26619_v51, %v29414_v44  ;;  %v26672_v38 = vpack.c.bf16 %v10135_v29, %v10132_v47  ;;  %v19997_v42 = vpack.c.bf16 %v10283_v12, %v10276_v1 }
 0x484   :  { %v10422_v30 = vsub.f32 %v26615_v32, %v30460_v28  ;;  %v20007_v54 = vpack.c.bf16 %v26287_v58, %v26283_v20  ;;  %v10290_v52 = vand.u32 4294901760, %v10289_v35  ;;  %v10297_v18 = vand.u32 4294901760, %v10296_v59 }
 0x485   :  { %19970 = vmatpush3.bf16.msra.mxu0 %v26622_v23  ;;  %v10303_v2 = vsub.f32 %v26636_v33, %v29410_v56  ;;  %v10310_v24 = vsub.f32 %v26639_v46, %v29411_v22  ;;  %v19999_v29 = vpack.c.bf16 %v10409_v13, %v10402_v61  ;;  %v10416_v47 = vand.u32 4294901760, %v10415_v15 }
 0x486   :  { %19994 = vmatpush3.bf16.msra.mxu1 %v19993_v16  ;;  %19972 = vmatprep.subr.bf16.mxu0 %v26648_v0  ;;  %v10423_v1 = vand.u32 4294901760, %v10422_v30  ;;  %v10195_v36 = vand.u32 4294901760, %v10194_v3  ;;  %v20009_v16 = vpack.c.bf16 %v26323_v53, %v26311_v25  ;;  %v20011_v35 = vpack.c.bf16 %v26346_v63, %v26343_v4 }
 0x487   :  { %19996 = vmatprep.subr.bf16.mxu1 %v19995_v49  ;;  %v20001_v56 = vpack.c.bf16 %v10297_v18, %v10290_v52  ;;  %v10304_v22 = vand.u32 4294901760, %v10303_v2  ;;  %v10311_v49 = vand.u32 4294901760, %v10310_v24  ;;  %v20013_v15 = vpack.c.bf16 %v26389_v31, %v26384_v8  ;;  %v30463_v52 = vld [vmem:[#allocation20_spill] sm:$0xff]  ;;  %v30464_v2 = vld [vmem:[#allocation18_spill] sm:$0xff] }
 0x488   :  { %v16358_v12 = vpop.f32.mrb[52].mxu1  ;;  %v20003_v61 = vpack.c.bf16 %v10423_v1, %v10416_v47  ;;  %v20015_v3 = vpack.c.bf16 %v26412_v60, %v26410_v17  ;;  %v20023_v18 = vpack.c.bf16 %v26500_v9, %v26479_v45  ;;  %v30465_v24 = vand.u32 4294901760, %v26415_v5  ;;  %v30466_v47 = vld [vmem:[#allocation26_spill] sm:$0xff] }
 0x489   :  { %v16359_v28 = vpop.f32.mrb[53].mxu1  ;;  %19974 = vmatpush3.bf16.msra.mxu0 %v26672_v38  ;;  %v20005_v30 = vpack.c.bf16 %v10311_v49, %v10304_v22  ;;  %v30462_v22 = vld [vmem:[#allocation29_spill] sm:$0xff]  ;;  %v20027_v1 = vpack.c.bf16 %v30466_v47, %v26532_v11  ;;  %v30471_v49 = vld [vmem:[#allocation27_spill] sm:$0xff]  ;;  %v30479_v27 = vand.u32 4294901760, %v26323_v53  ;;  %v30482_v53 = vand.u32 4294901760, %v26384_v8 }
 0x48a   :  { %v16360_v59 = vadd.f32 %v16359_v28, %v16358_v12  ;;  %19998 = vmatpush3.bf16.msra.mxu1 %v19997_v42  ;;  %20008 = vmatprep.subr.bf16.mxu0 %v20007_v54  ;;  %v20017_v42 = vpack.c.bf16 %v26433_v7, %v26431_v37  ;;  %v30467_v12 = vld [vmem:[#allocation24_spill] sm:$0xff] }
 0x48b   :  { %20000 = vmatprep.subr.bf16.mxu1 %v19999_v29  ;;  %v20025_v29 = vpack.c.bf16 %v26525_v19, %v26505_v21 }
 0x48c   :  { %v8362_v13 = vadd.f32 %v16360_v59, %v8258_v48  ;;  %10196 = vmatmul.mubr.f32.vlgmr.msra.gmra.mrb[66].mxu0 %v10195_v36  ;;  %v20019_v48 = vpack.c.bf16 %v26456_v41, %v26452_v39  ;;  %v30468_v36 = vld [vmem:[#allocation30_spill] sm:$0xff] }
 0x48d   :  { %20010 = vmatpush3.bf16.msra.mxu0 %v20009_v16  ;;  %10563 = vmatprep.mubr.f32.mxu0 %v26415_v5  ;;  %v20029_v28 = vpack.c.bf16 %v30468_v36, %v26545_v6  ;;  %v30469_v16 = vld [vmem:[#allocation25_spill] sm:$0xff]  ;;  %v30470_v5 = vld [vmem:[#allocation28_spill] sm:$0xff] }
 0x48e   :  { %20002 = vmatpush3.bf16.msra.mxu1 %v20001_v56  ;;  %20012 = vmatprep.subr.bf16.mxu0 %v20011_v35  ;;  %v30461_v56 = vld [vmem:[#allocation19_spill] sm:$0xff]  ;;  %v20031_v35 = vpack.c.bf16 %v26570_v40, %v30470_v5 }
 0x48f   :  { %20004 = vmatprep.subr.bf16.mxu1 %v20003_v61  ;;  %v20021_v54 = vpack.c.bf16 %v30462_v22, %v30461_v56 }
 0x491   :  { %20014 = vmatpush3.bf16.msra.mxu0 %v20013_v15 }
 0x492   :  { %20006 = vmatpush3.bf16.msra.mxu1 %v20005_v30  ;;  %20016 = vmatprep.subr.bf16.mxu0 %v20015_v3  ;;  %v20033_v30 = vpack.c.bf16 %v26606_v14, %v26599_v26  ;;  %v30472_v3 = vld [vmem:[#allocation22_spill] sm:$0xff] }
 0x493   :  { %20040 = vmatprep.subr.bf16.mxu1 %v26381_v10 }
 0x495   :  { %10428 = vmatmul.mubr.f32.vlgmr.msra.gmra.mrb[66].mxu1 %v26596_v50  ;;  %20018 = vmatpush3.bf16.msra.mxu0 %v20017_v42  ;;  %v20035_v42 = vpack.c.bf16 %v26615_v32, %v26612_v57 }
 0x496   :  { %20042 = vmatpush3.bf16.msra.mxu1 %v30463_v52  ;;  %20020 = vmatprep.subr.bf16.mxu0 %v20019_v48 }
 0x497   :  { %20044 = vmatprep.subr.bf16.mxu1 %v30464_v2  ;;  %10670 = vmatprep.mubr.f32.mxu1 %v30465_v24  ;;  %v30474_v24 = vld [vmem:[#allocation23_spill] sm:$0xff] }
 0x499   :  { %20022 = vmatpush3.bf16.msra.mxu0 %v20021_v54  ;;  %v30473_v54 = vld [vmem:[#allocation21_spill] sm:$0xff] }
 0x49a   :  { %20046 = vmatpush3.bf16.msra.mxu1 %v26403_v43  ;;  %20024 = vmatprep.subr.bf16.mxu0 %v20023_v18  ;;  %v20037_v18 = vpack.c.bf16 %v26639_v46, %v26636_v33 }
 0x49b   :  { %20048 = vmatprep.subr.bf16.mxu1 %v30467_v12 }
 0x49d   :  { %20026 = vmatpush3.bf16.msra.mxu0 %v20025_v29  ;;  %v30475_v29 = vand.u32 4294901760, %v26283_v20  ;;  %v30480_v20 = vand.u32 4294901760, %v26343_v4  ;;  %v30483_v4 = vand.u32 4294901760, %v26389_v31 }
 0x49e   :  { %20050 = vmatpush3.bf16.msra.mxu1 %v30469_v16  ;;  %20028 = vmatprep.subr.bf16.mxu0 %v20027_v1  ;;  %v30476_v1 = vand.u32 4294901760, %v26287_v58  ;;  %v30481_v58 = vand.u32 4294901760, %v26346_v63  ;;  %v30484_v63 = vld [vmem:[#allocation17_spill] sm:$0xff] }
 0x49f   :  { %v16393_v59 = vpop.f32.mrb[54].mxu0  ;;  %20052 = vmatprep.subr.bf16.mxu1 %v30471_v49 }
 0x4a0   :  { %v16394_v61 = vpop.f32.mrb[55].mxu0 }
 0x4a1   :  { %v16395_v15 = vadd.f32 %v16394_v61, %v16393_v59  ;;  %20030 = vmatpush3.bf16.msra.mxu0 %v20029_v28  ;;  %v20071_v28 = vpack.c.bf16 %v30476_v1, %v30475_v29  ;;  %v30477_v59 = vld [vmem:[#allocation16_spill] sm:$0xff]  ;;  %v20075_v29 = vpack.c.bf16 %v30481_v58, %v30480_v20  ;;  %v30490_v58 = vand.u32 4294901760, %v26456_v41 }
 0x4a2   :  { %20054 = vmatpush3.bf16.msra.mxu1 %v30472_v3  ;;  %20032 = vmatprep.subr.bf16.mxu0 %v20031_v35  ;;  %v26733_v35 = vld [vmem:[#allocation5 + $0xc80] sm:$0xff]  ;;  %v30491_v41 = vand.u32 4294901760, %v30461_v56 }
 0x4a3   :  { %v8474_v48 = vadd.f32 %v16395_v15, %v8362_v13  ;;  %20056 = vmatprep.subr.bf16.mxu1 %v30473_v54  ;;  %v26735_v13 = vld [vmem:[#allocation5 + $0xc88] sm:$0xff]  ;;  %v11000_v1 = vand.u32 4294901760, %v26733_v35 }
 0x4a5   :  { %20034 = vmatpush3.bf16.msra.mxu0 %v20033_v30  ;;  %v30478_v30 = vand.u32 4294901760, %v26311_v25  ;;  %v26752_v25 = vld [vmem:[#allocation5 + $0xc00] sm:$0xff] }
 0x4a6   :  { %20058 = vmatpush3.bf16.msra.mxu1 %v30474_v24  ;;  %20036 = vmatprep.subr.bf16.mxu0 %v20035_v42  ;;  %v29415_v31 = vand.u32 4294901760, %v26752_v25 }
 0x4a7   :  { %20060 = vmatprep.subr.bf16.mxu1 %v30477_v59  ;;  %v20073_v34 = vpack.c.bf16 %v30479_v27, %v30478_v30  ;;  %v20077_v27 = vpack.c.bf16 %v30483_v4, %v30482_v53  ;;  %v26767_v30 = vsub.f32 %v26733_v35, %v11000_v1 }
 0x4a8   :  { %v16428_v61 = vpop.f32.mrb[54].mxu1 }
 0x4a9   :  { %v16429_v15 = vpop.f32.mrb[55].mxu1  ;;  %20038 = vmatpush3.bf16.msra.mxu0 %v20037_v18  ;;  %v11003_v18 = vand.u32 4294901760, %v26735_v13 }
 0x4aa   :  { %v16430_v42 = vadd.f32 %v16429_v15, %v16428_v61  ;;  %20062 = vmatpush3.bf16.msra.mxu1 %v26543_v55  ;;  %20072 = vmatprep.subr.bf16.mxu0 %v20071_v28  ;;  %v26759_v28 = vld [vmem:[#allocation5 + $0xc08] sm:$0xff]  ;;  %v30486_v61 = vand.u32 4294901760, %v26412_v60  ;;  %v30488_v60 = vand.u32 4294901760, %v26433_v7  ;;  %v475_v7 = vld [vmem:[#allocation5 + $0xc18] sm:$0xff] }
 0x4ab   :  { %20064 = vmatprep.subr.bf16.mxu1 %v26564_v62  ;;  %v26771_v8 = vsub.f32 %v26735_v13, %v11003_v18  ;;  %v10955_v20 = vand.u32 4294901760, %v26759_v28  ;;  %v30489_v13 = vand.u32 4294901760, %v26452_v39  ;;  %v30497_v39 = vand.u32 4294901760, %v26525_v19 }
 0x4ac   :  { %v26749_v44 = vadd.f32 %v16430_v42, %v8474_v48  ;;  %10566 = vmatmul.mubr.f32.vlgmr.msra.gmra.mrb[68].mxu0 %v26619_v51  ;;  %v30485_v48 = vand.u32 4294901760, %v26410_v17  ;;  %v26776_v42 = vld [vmem:[#allocation5 + $0xc98] sm:$0xff]  ;;  %v30487_v17 = vand.u32 4294901760, %v26431_v37  ;;  %v26795_v37 = vsub.f32 %v26752_v25, %v29415_v31 }
 0x4ad   :  { %20074 = vmatpush3.bf16.msra.mxu0 %v20073_v34  ;;  %10840 = vmatprep.mubr.f32.mxu0 %v30484_v63  ;;  %v26774_v34 = vld [vmem:[#allocation5 + $0xc90] sm:$0xff]  ;;  %v11009_v4 = vand.u32 4294901760, %v26776_v42  ;;  %v30496_v31 = vand.u32 4294901760, %v26505_v21 }
 0x4ae   :  { %20066 = vmatpush3.bf16.msra.mxu1 %v26622_v23  ;;  %20076 = vmatprep.subr.bf16.mxu0 %v20075_v29  ;;  %v20079_v15 = vpack.c.bf16 %v30486_v61, %v30485_v48  ;;  %v20081_v35 = vpack.c.bf16 %v30488_v60, %v30487_v17  ;;  %v20083_v29 = vpack.c.bf16 %v30490_v58, %v30489_v13  ;;  %v11006_v53 = vand.u32 4294901760, %v26774_v34  ;;  %v474_v48 = vld [vmem:[#allocation5 + $0xc10] sm:$0xff] }
 0x4af   :  { %20068 = vmatprep.subr.bf16.mxu1 %v26648_v0  ;;  %v30492_v61 = vand.u32 4294901760, %v30462_v22  ;;  %v30493_v17 = vand.u32 4294901760, %v26479_v45  ;;  %v30494_v60 = vand.u32 4294901760, %v26500_v9  ;;  %v30495_v58 = vand.u32 4294901760, %v26619_v51  ;;  %v492_v51 = vld [vmem:[#allocation5 + $0xca0] sm:$0xff] }
 0x4b0   :  { %v20089_v56 = vpack.c.bf16 %v30497_v39, %v30496_v31  ;;  %v30498_v22 = vand.u32 4294901760, %v26532_v11  ;;  %v30500_v9 = vand.u32 4294901760, %v26545_v6  ;;  %v26827_v21 = vsub.f32 %v26774_v34, %v11006_v53 }
 0x4b1   :  { %20078 = vmatpush3.bf16.msra.mxu0 %v20077_v27  ;;  %v29420_v27 = vand.u32 4294901760, %v26767_v30  ;;  %v20087_v13 = vpack.c.bf16 %v30494_v60, %v30493_v17  ;;  %v10958_v17 = vand.u32 4294901760, %v474_v48  ;;  %v26830_v19 = vsub.f32 %v26776_v42, %v11009_v4 }
 0x4b2   :  { %20070 = vmatpush3.bf16.msra.mxu1 %v26672_v38  ;;  %20080 = vmatprep.subr.bf16.mxu0 %v20079_v15  ;;  %v20085_v15 = vpack.c.bf16 %v30492_v61, %v30491_v41  ;;  %v30499_v41 = vand.u32 4294901760, %v30466_v47  ;;  %v30501_v61 = vand.u32 4294901760, %v30468_v36  ;;  %v10961_v11 = vand.u32 4294901760, %v475_v7  ;;  %v493_v47 = vld [vmem:[#allocation5 + $0xca8] sm:$0xff] }
 0x4b3   :  { %20104 = vmatprep.subr.bf16.mxu1 %v26381_v10  ;;  %v26807_v10 = vsub.f32 %v26759_v28, %v10955_v20  ;;  %v11179_v6 = vsub.f32 %v26767_v30, %v29420_v27  ;;  %v81_v36 = vld [vmem:[#allocation2 + $0xc8] sm:$0xff]  ;;  %v30502_v31 = vand.u32 4294901760, %v30470_v5  ;;  %v30504_v34 = vand.u32 4294901760, %v26599_v26 }
 0x4b4   :  { %v20091_v45 = vpack.c.bf16 %v30499_v41, %v30498_v22  ;;  %v26823_v28 = vpack.c.bf16 %v30501_v61, %v30500_v9  ;;  %v30505_v42 = vand.u32 4294901760, %v26606_v14  ;;  %v30506_v39 = vand.u32 4294901760, %v26771_v8  ;;  %v477_v9 = vld [vmem:[#allocation5 + $0xc28] sm:$0xff] }
 0x4b5   :  { %10674 = vmatmul.mubr.f32.vlgmr.msra.gmra.mrb[68].mxu1 %v30495_v58  ;;  %20082 = vmatpush3.bf16.msra.mxu0 %v20081_v35  ;;  %v30507_v5 = vand.u32 4294901760, %v26612_v57  ;;  %v30509_v26 = vand.u32 4294901760, %v26636_v33  ;;  %v30510_v14 = vand.u32 4294901760, %v26639_v46  ;;  %v26865_v41 = vpack.c.bf16 %v11003_v18, %v11000_v1 }
 0x4b6   :  { %20106 = vmatpush3.bf16.msra.mxu1 %v30463_v52  ;;  %20084 = vmatprep.subr.bf16.mxu0 %v20083_v29  ;;  %v30503_v52 = vand.u32 4294901760, %v26570_v40  ;;  %v26846_v29 = vpack.c.bf16 %v30505_v42, %v30504_v34  ;;  %v11186_v60 = vsub.f32 %v26771_v8, %v30506_v39  ;;  %v30508_v40 = vand.u32 4294901760, %v26615_v32 }
 0x4b7   :  { %20108 = vmatprep.subr.bf16.mxu1 %v30464_v2  ;;  %10944 = vmatprep.mubr.f32.mxu1 %v30484_v63  ;;  %v29419_v2 = vand.u32 4294901760, %v26795_v37  ;;  %v26863_v22 = vpack.c.bf16 %v30510_v14, %v30509_v26  ;;  %v476_v63 = vld [vmem:[#allocation5 + $0xc20] sm:$0xff]  ;;  %v29418_v61 = vand.u32 4294901760, %v26807_v10  ;;  %v11012_v57 = vand.u32 4294901760, %v492_v51  ;;  %v495_v26 = vld [vmem:[#allocation5 + $0xcb8] sm:$0xff] }
 0x4b8   :  { %v26840_v35 = vpack.c.bf16 %v30503_v52, %v30502_v31  ;;  %v26857_v58 = vpack.c.bf16 %v30508_v40, %v30507_v5  ;;  %v26868_v31 = vsub.f32 %v474_v48, %v10958_v17  ;;  %v11015_v52 = vand.u32 4294901760, %v493_v47  ;;  %v494_v40 = vld [vmem:[#allocation5 + $0xcb0] sm:$0xff] }
 0x4b9   :  { %20086 = vmatpush3.bf16.msra.mxu0 %v20085_v15  ;;  %v26870_v32 = vand.u32 4294901760, %v81_v36  ;;  %v26873_v33 = vsub.f32 %v475_v7, %v10961_v11  ;;  %v11180_v46 = vand.u32 4294901760, %v11179_v6  ;;  %v29417_v1 = vand.u32 4294901760, %v26827_v21 }
 0x4ba   :  { %20110 = vmatpush3.bf16.msra.mxu1 %v26403_v43  ;;  %20088 = vmatprep.subr.bf16.mxu0 %v20087_v13  ;;  %v29416_v18 = vand.u32 4294901760, %v26830_v19  ;;  %v11187_v34 = vand.u32 4294901760, %v11186_v60  ;;  %v10964_v15 = vand.u32 4294901760, %v476_v63  ;;  %v10967_v48 = vand.u32 4294901760, %v477_v9 }
 0x4bb   :  { %30511 = vst [vmem:[#allocation19_spill] sm:$0xff] %v26870_v32  ;;  %20112 = vmatprep.subr.bf16.mxu1 %v30467_v12  ;;  %v11067_v42 = vsub.f32 %v26795_v37, %v29419_v2  ;;  %v30512_v39 = vand.u32 4294901760, %v26752_v25  ;;  %v26885_v7 = vpack.c.bf16 %v11009_v4, %v11006_v53  ;;  %v26887_v13 = vpack.c.bf16 %v10961_v11, %v10958_v17  ;;  %v478_v4 = vld [vmem:[#allocation5 + $0xc30] sm:$0xff] }
 0x4bc   :  { %v11074_v6 = vsub.f32 %v26807_v10, %v29418_v61  ;;  %v26892_v12 = vpack.c.bf16 %v11015_v52, %v11012_v57  ;;  %v26894_v60 = vsub.f32 %v492_v51, %v11012_v57  ;;  %v26896_v5 = vsub.f32 %v493_v47, %v11015_v52  ;;  %v497_v61 = vld [vmem:[#allocation5 + $0xcc8] sm:$0xff] }
 0x4bd   :  { %v26883_v43 = vpack.c.bf16 %v10955_v20, %v30512_v39  ;;  %30514 = vst [vmem:[#allocation20_spill] sm:$0xff] %v26885_v7  ;;  %20090 = vmatpush3.bf16.msra.mxu0 %v20089_v56  ;;  %v26899_v25 = vsub.f32 %v81_v36, %v26870_v32  ;;  %v11193_v20 = vsub.f32 %v26827_v21, %v29417_v1  ;;  %v479_v56 = vld [vmem:[#allocation5 + $0xc38] sm:$0xff]  ;;  %v29422_v17 = vand.u32 4294901760, %v26868_v31  ;;  %v496_v1 = vld [vmem:[#allocation5 + $0xcc0] sm:$0xff] }
 0x4be   :  { %30515 = vst [vmem:[#allocation18_spill] sm:$0xff] %v26892_v12  ;;  %20114 = vmatpush3.bf16.msra.mxu1 %v30469_v16  ;;  %20092 = vmatprep.subr.bf16.mxu0 %v20091_v45  ;;  %v11200_v53 = vsub.f32 %v26830_v19, %v29416_v18  ;;  %v29421_v11 = vand.u32 4294901760, %v26873_v33  ;;  %v26911_v47 = vpack.c.bf16 %v11187_v34, %v11180_v46  ;;  %v11068_v36 = vand.u32 4294901760, %v11067_v42 }
 0x4bf   :  { %30513 = vst [vmem:[#allocation29_spill] sm:$0xff] %v26883_v43  ;;  %v16463_v51 = vpop.f32.mrb[56].mxu0  ;;  %20116 = vmatprep.subr.bf16.mxu1 %v30471_v49  ;;  %v26913_v16 = vpack.c.bf16 %v10967_v48, %v10964_v15  ;;  %v26915_v45 = vsub.f32 %v476_v63, %v10964_v15  ;;  %v26917_v57 = vsub.f32 %v477_v9, %v10967_v48  ;;  %v11075_v52 = vand.u32 4294901760, %v11074_v6 }
 0x4c0   :  { %v16464_v14 = vpop.f32.mrb[57].mxu0  ;;  %v11018_v39 = vand.u32 4294901760, %v494_v40  ;;  %v11021_v18 = vand.u32 4294901760, %v495_v26  ;;  %v10970_v27 = vand.u32 4294901760, %v478_v4  ;;  %v10973_v49 = vand.u32 4294901760, %v479_v56 }
 0x4c1   :  { %30516 = vst [vmem:[#allocation26_spill] sm:$0xff] %v26913_v16  ;;  %v16465_v2 = vadd.f32 %v16464_v14, %v16463_v51  ;;  %20094 = vmatpush3.bf16.msra.mxu0 %v26823_v28  ;;  %v29426_v46 = vand.u32 4294901760, %v26899_v25  ;;  %v11194_v63 = vand.u32 4294901760, %v11193_v20  ;;  %v11201_v34 = vand.u32 4294901760, %v11200_v53 }
 0x4c2   :  { %20118 = vmatpush3.bf16.msra.mxu1 %v30472_v3  ;;  %20096 = vmatprep.subr.bf16.mxu0 %v26840_v35  ;;  %v11081_v9 = vsub.f32 %v26868_v31, %v29422_v17  ;;  %v11088_v15 = vsub.f32 %v26873_v33, %v29421_v11  ;;  %v11024_v48 = vand.u32 4294901760, %v496_v1  ;;  %v11027_v42 = vand.u32 4294901760, %v497_v61 }
 0x4c3   :  { %v8844_v28 = vadd.f32 %v16465_v2, %v26749_v44  ;;  %20120 = vmatprep.subr.bf16.mxu1 %v30473_v54  ;;  %v29424_v3 = vand.u32 4294901760, %v26894_v60  ;;  %v26932_v6 = vpack.c.bf16 %v11075_v52, %v11068_v36  ;;  %v26934_v35 = vpack.c.bf16 %v11021_v18, %v11018_v39  ;;  %v480_v44 = vld [vmem:[#allocation5 + $0xc40] sm:$0xff]  ;;  %v481_v54 = vld [vmem:[#allocation5 + $0xc48] sm:$0xff] }
 0x4c4   :  { %v26936_v20 = vsub.f32 %v494_v40, %v11018_v39  ;;  %v29423_v53 = vand.u32 4294901760, %v26896_v5  ;;  %v26940_v51 = vsub.f32 %v495_v26, %v11021_v18  ;;  %v26942_v14 = vpack.c.bf16 %v10973_v49, %v10970_v27 }
 0x4c5   :  { %30517 = vst [vmem:[#allocation24_spill] sm:$0xff] %v26934_v35  ;;  %20098 = vmatpush3.bf16.msra.mxu0 %v26846_v29  ;;  %v29425_v2 = vand.u32 4294901760, %v26915_v45  ;;  %v11050_v36 = vsub.f32 %v26899_v25, %v29426_v46  ;;  %v26950_v40 = vsub.f32 %v478_v4, %v10970_v27  ;;  %v26952_v52 = vsub.f32 %v479_v56, %v10973_v49  ;;  %v498_v49 = vld [vmem:[#allocation5 + $0xcd0] sm:$0xff] }
 0x4c6   :  { %30518 = vst [vmem:[#allocation30_spill] sm:$0xff] %v26942_v14  ;;  %20122 = vmatpush3.bf16.msra.mxu1 %v30474_v24  ;;  %20100 = vmatprep.subr.bf16.mxu0 %v26857_v58  ;;  %v11082_v29 = vand.u32 4294901760, %v11081_v9  ;;  %v29427_v18 = vand.u32 4294901760, %v26917_v57  ;;  %v26956_v26 = vpack.c.bf16 %v11201_v34, %v11194_v63  ;;  %v11089_v39 = vand.u32 4294901760, %v11088_v15  ;;  %v499_v34 = vld [vmem:[#allocation5 + $0xcd8] sm:$0xff]  ;;  %v482_v9 = vld [vmem:[#allocation5 + $0xc50] sm:$0xff] }
 0x4c7   :  { %30519 = vst [vmem:[#allocation25_spill] sm:$0xff] %v26950_v40  ;;  %30520 = vst [vmem:[#allocation28_spill] sm:$0xff] %v26952_v52  ;;  %20124 = vmatprep.subr.bf16.mxu1 %v30477_v59  ;;  %v26958_v11 = vpack.c.bf16 %v11027_v42, %v11024_v48  ;;  %v11207_v24 = vsub.f32 %v26894_v60, %v29424_v3  ;;  %v26963_v58 = vsub.f32 %v496_v1, %v11024_v48 }
 0x4c8   :  { %v16498_v17 = vpop.f32.mrb[56].mxu1  ;;  %v11214_v27 = vsub.f32 %v26896_v5, %v29423_v53  ;;  %v10976_v4 = vand.u32 4294901760, %v480_v44  ;;  %v10979_v56 = vand.u32 4294901760, %v481_v54  ;;  %v11095_v63 = vsub.f32 %v26915_v45, %v29425_v2 }
 0x4c9   :  { %30521 = vst [vmem:[#allocation27_spill] sm:$0xff] %v26958_v11  ;;  %v16499_v59 = vpop.f32.mrb[57].mxu1  ;;  %20102 = vmatpush3.bf16.msra.mxu0 %v26863_v22  ;;  %v11051_v15 = vand.u32 4294901760, %v11050_v36  ;;  %v11102_v53 = vsub.f32 %v26917_v57, %v29427_v18  ;;  %v26982_v2 = vpack.c.bf16 %v11089_v39, %v11082_v29  ;;  %v26984_v46 = vsub.f32 %v497_v61, %v11027_v42  ;;  %v483_v22 = vld [vmem:[#allocation5 + $0xc58] sm:$0xff] }
 0x4ca   :  { %v16500_v48 = vadd.f32 %v16499_v59, %v16498_v17  ;;  %20126 = vmatpush3.bf16.msra.mxu1 %v26543_v55  ;;  %20136 = vmatprep.subr.bf16.mxu0 %v26865_v41  ;;  %v11208_v36 = vand.u32 4294901760, %v11207_v24  ;;  %v11030_v17 = vand.u32 4294901760, %v498_v49  ;;  %v11215_v55 = vand.u32 4294901760, %v11214_v27 }
 0x4cb   :  { %20128 = vmatprep.subr.bf16.mxu1 %v26564_v62  ;;  %v26989_v1 = vsub.f32 %v480_v44, %v10976_v4  ;;  %v11033_v18 = vand.u32 4294901760, %v499_v34  ;;  %v26992_v3 = vpack.c.bf16 %v10979_v56, %v10976_v4  ;;  %v30523_v62 = vand.u32 4294901760, %v26936_v20 }
 0x4cc   :  { %v26986_v59 = vadd.f32 %v16500_v48, %v8844_v28  ;;  %10842 = vmatmul.mubr.f32.vlgmr.msra.gmra.mrb[70].mxu0 %v26596_v50  ;;  %v30524_v42 = vand.u32 4294901760, %v26940_v51  ;;  %v11096_v44 = vand.u32 4294901760, %v11095_v63  ;;  %v11103_v29 = vand.u32 4294901760, %v11102_v53  ;;  %v500_v48 = vld [vmem:[#allocation5 + $0xce0] sm:$0xff] }
 0x4cd   :  { %20138 = vmatpush3.bf16.msra.mxu0 %v26883_v43  ;;  %30522 = vst [vmem:[#allocation22_spill] sm:$0xff] %v26992_v3  ;;  %v11221_v61 = vsub.f32 %v26936_v20, %v30523_v62  ;;  %11052 = vmatprep.mubr.f32.mxu0 %v11051_v15  ;;  %v30525_v39 = vand.u32 4294901760, %v26950_v40  ;;  %v30526_v27 = vand.u32 4294901760, %v26952_v52  ;;  %v501_v62 = vld [vmem:[#allocation5 + $0xce8] sm:$0xff]  ;;  %v10982_v15 = vand.u32 4294901760, %v482_v9 }
 0x4ce   :  { %v11228_v28 = vsub.f32 %v26940_v51, %v30524_v42  ;;  %20130 = vmatpush3.bf16.msra.mxu1 %v26622_v23  ;;  %20140 = vmatprep.subr.bf16.mxu0 %v26885_v7  ;;  %v27009_v42 = vsub.f32 %v481_v54, %v10979_v56  ;;  %v10985_v23 = vand.u32 4294901760, %v483_v22  ;;  %v29436_v7 = vand.u32 4294901760, %v26963_v58 }
 0x4cf   :  { %v11109_v24 = vsub.f32 %v26950_v40, %v30525_v39  ;;  %v11116_v4 = vsub.f32 %v26952_v52, %v30526_v27  ;;  %20132 = vmatprep.subr.bf16.mxu1 %v26648_v0  ;;  %v27012_v63 = vpack.c.bf16 %v11215_v55, %v11208_v36  ;;  %v27014_v53 = vpack.c.bf16 %v11033_v18, %v11030_v17 }
 0x4d0   :  { %v27016_v43 = vsub.f32 %v498_v49, %v11030_v17  ;;  %v27018_v39 = vsub.f32 %v499_v34, %v11033_v18  ;;  %v11222_v27 = vand.u32 4294901760, %v11221_v61  ;;  %v11229_v52 = vand.u32 4294901760, %v11228_v28  ;;  %v484_v49 = vld [vmem:[#allocation5 + $0xc60] sm:$0xff] }
 0x4d1   :  { %30527 = vst [vmem:[#allocation21_spill] sm:$0xff] %v27014_v53  ;;  %20142 = vmatpush3.bf16.msra.mxu0 %v26887_v13  ;;  %v11036_v40 = vand.u32 4294901760, %v500_v48  ;;  %v11039_v0 = vand.u32 4294901760, %v501_v62  ;;  %v27023_v54 = vpack.c.bf16 %v11103_v29, %v11096_v44  ;;  %v11110_v56 = vand.u32 4294901760, %v11109_v24  ;;  %v27040_v29 = vld [vmem:[#allocation5 + $0xcf0] sm:$0xff]  ;;  %v27042_v24 = vld [vmem:[#allocation5 + $0xcf8] sm:$0xff] }
 0x4d2   :  { %30528 = vst [vmem:[#allocation23_spill] sm:$0xff] %v27018_v39  ;;  %20134 = vmatpush3.bf16.msra.mxu1 %v26672_v38  ;;  %20144 = vmatprep.subr.bf16.mxu0 %v26892_v12  ;;  %v11117_v36 = vand.u32 4294901760, %v11116_v4  ;;  %v29437_v55 = vand.u32 4294901760, %v26984_v46  ;;  %v27027_v18 = vpack.c.bf16 %v10985_v23, %v10982_v15  ;;  %v27029_v34 = vsub.f32 %v482_v9, %v10982_v15  ;;  %v485_v38 = vld [vmem:[#allocation5 + $0xc68] sm:$0xff] }
 0x4d3   :  { %20168 = vmatprep.subr.bf16.mxu1 %v26911_v47  ;;  %v27034_v17 = vsub.f32 %v26963_v58, %v29436_v7  ;;  %v27037_v28 = vsub.f32 %v483_v22, %v10985_v23  ;;  %v29444_v47 = vand.u32 4294901760, %v27016_v43  ;;  %v20179_v4 = vpack.c.bf16 %v11229_v52, %v11222_v27  ;;  %v80_v23 = vld [vmem:[#allocation2 + $0xc0] sm:$0xff] }
 0x4d4   :  { %v27048_v15 = vpack.c.bf16 %v11039_v0, %v11036_v40  ;;  %v27050_v7 = vsub.f32 %v500_v48, %v11036_v40  ;;  %v10988_v22 = vand.u32 4294901760, %v484_v49  ;;  %v20181_v44 = vpack.c.bf16 %v11117_v36, %v11110_v56  ;;  %v27066_v56 = vld [vmem:[#allocation5 + $0xc70] sm:$0xff] }
 0x4d5   :  { %30529 = vst [vmem:[#allocation16_spill] sm:$0xff] %v27037_v28  ;;  %10946 = vmatmul.mubr.f32.vlgmr.msra.gmra.mrb[70].mxu1 %v26596_v50  ;;  %20146 = vmatpush3.bf16.msra.mxu0 %v26913_v16  ;;  %v27054_v61 = vsub.f32 %v501_v62, %v11039_v0  ;;  %v11242_v50 = vsub.f32 %v26984_v46, %v29437_v55  ;;  %v10991_v9 = vand.u32 4294901760, %v485_v38  ;;  %v11236_v52 = vand.u32 4294901760, %v27034_v17  ;;  %v27068_v62 = vld [vmem:[#allocation5 + $0xc78] sm:$0xff] }
 0x4d6   :  { %30530 = vst [vmem:[#allocation17_spill] sm:$0xff] %v27050_v7  ;;  %20170 = vmatpush3.bf16.msra.mxu1 %v26932_v6  ;;  %20148 = vmatprep.subr.bf16.mxu0 %v26934_v35  ;;  %v30531_v40 = vand.u32 4294901760, %v26989_v1  ;;  %v11042_v6 = vand.u32 4294901760, %v27040_v29  ;;  %v11045_v27 = vand.u32 4294901760, %v27042_v24  ;;  %v30532_v0 = vand.u32 4294901760, %v27009_v42 }
 0x4d7   :  { %20172 = vmatprep.subr.bf16.mxu1 %v26956_v26  ;;  %11288 = vmatprep.mubr.f32.mxu1 %v26870_v32  ;;  %v11249_v36 = vsub.f32 %v27016_v43, %v29444_v47  ;;  %v30533_v17 = vand.u32 4294901760, %v27018_v39  ;;  %v27080_v55 = vand.u32 4294901760, %v80_v23  ;;  %v27083_v35 = vsub.f32 %v484_v49, %v10988_v22 }
 0x4d8   :  { %v11123_v48 = vsub.f32 %v26989_v1, %v30531_v40  ;;  %v11130_v26 = vsub.f32 %v27009_v42, %v30532_v0  ;;  %v11243_v47 = vand.u32 4294901760, %v11242_v50  ;;  %v27090_v12 = vsub.f32 %v485_v38, %v10991_v9 }
 0x4d9   :  { %v11256_v40 = vsub.f32 %v27018_v39, %v30533_v17  ;;  %20150 = vmatpush3.bf16.msra.mxu0 %v26942_v14  ;;  %v10994_v17 = vand.u32 4294901760, %v27066_v56  ;;  %v10997_v39 = vand.u32 4294901760, %v27068_v62  ;;  %v27096_v32 = vsub.f32 %v27040_v29, %v11042_v6 }
 0x4da   :  { %20174 = vmatpush3.bf16.msra.mxu1 %v26982_v2  ;;  %20152 = vmatprep.subr.bf16.mxu0 %v26958_v11  ;;  %v11124_v49 = vand.u32 4294901760, %v11123_v48  ;;  %v27099_v16 = vsub.f32 %v27042_v24, %v11045_v27  ;;  %v11131_v0 = vand.u32 4294901760, %v11130_v26  ;;  %v11250_v11 = vand.u32 4294901760, %v11249_v36 }
 0x4db   :  { %20176 = vmatprep.subr.bf16.mxu1 %v27012_v63  ;;  %v11257_v50 = vand.u32 4294901760, %v11256_v40  ;;  %v27103_v38 = vsub.f32 %v80_v23, %v27080_v55  ;;  %v27106_v14 = vpack.c.bf16 %v10991_v9, %v10988_v22  ;;  %v30534_v63 = vand.u32 4294901760, %v27029_v34 }
 0x4dc   :  { %v30535_v48 = vand.u32 4294901760, %v27037_v28  ;;  %v30536_v2 = vand.u32 4294901760, %v27050_v7  ;;  %v27120_v23 = vsub.f32 %v27066_v56, %v10994_v17  ;;  %v27123_v9 = vsub.f32 %v27068_v62, %v10997_v39 }
 0x4dd   :  { %20154 = vmatpush3.bf16.msra.mxu0 %v26992_v3  ;;  %v11137_v29 = vsub.f32 %v27029_v34, %v30534_v63  ;;  %v29464_v36 = vand.u32 4294901760, %v27090_v12  ;;  %v20183_v63 = vpack.c.bf16 %v11243_v47, %v11236_v52  ;;  %v20185_v3 = vpack.c.bf16 %v11131_v0, %v11124_v49 }
 0x4de   :  { %v11144_v24 = vsub.f32 %v27037_v28, %v30535_v48  ;;  %v11263_v26 = vsub.f32 %v27050_v7, %v30536_v2  ;;  %20178 = vmatpush3.bf16.msra.mxu1 %v27023_v54  ;;  %20156 = vmatprep.subr.bf16.mxu0 %v27014_v53  ;;  %v30537_v48 = vand.u32 4294901760, %v27054_v61  ;;  %v29463_v54 = vand.u32 4294901760, %v27096_v32 }
 0x4df   :  { %v16533_v40 = vpop.f32.mrb[58].mxu0  ;;  %20180 = vmatprep.subr.bf16.mxu1 %v20179_v4  ;;  %v27132_v7 = vpack.c.bf16 %v11045_v27, %v11042_v6  ;;  %v20187_v62 = vpack.c.bf16 %v11257_v50, %v11250_v11  ;;  %v29465_v22 = vand.u32 4294901760, %v27103_v38  ;;  %v11138_v4 = vand.u32 4294901760, %v11137_v29 }
 0x4e0   :  { %v11270_v2 = vsub.f32 %v27054_v61, %v30537_v48  ;;  %v16534_v56 = vpop.f32.mrb[59].mxu0  ;;  %v11145_v47 = vand.u32 4294901760, %v11144_v24  ;;  %v11264_v52 = vand.u32 4294901760, %v11263_v26  ;;  %v30538_v48 = vand.u32 4294901760, %v27083_v35 }
 0x4e1   :  { %v16535_v28 = vadd.f32 %v16534_v56, %v16533_v40  ;;  %20158 = vmatpush3.bf16.msra.mxu0 %v27027_v18  ;;  %v11158_v6 = vsub.f32 %v27090_v12, %v29464_v36  ;;  %v29461_v11 = vand.u32 4294901760, %v27120_v23  ;;  %v29462_v27 = vand.u32 4294901760, %v27123_v9 }
 0x4e2   :  { %20182 = vmatpush3.bf16.msra.mxu1 %v20181_v44  ;;  %20160 = vmatprep.subr.bf16.mxu0 %v27048_v15  ;;  %v11151_v53 = vsub.f32 %v27083_v35, %v30538_v48  ;;  %v11271_v49 = vand.u32 4294901760, %v11270_v2  ;;  %v11277_v44 = vsub.f32 %v27096_v32, %v29463_v54  ;;  %v30539_v50 = vand.u32 4294901760, %v27099_v16 }
 0x4e3   :  { %v9120_v0 = vadd.f32 %v16535_v28, %v26986_v59  ;;  %20184 = vmatprep.subr.bf16.mxu1 %v20183_v63  ;;  %v11056_v24 = vsub.f32 %v27103_v38, %v29465_v22  ;;  %v27156_v26 = vpack.c.bf16 %v10997_v39, %v10994_v17  ;;  %v20189_v40 = vpack.c.bf16 %v11145_v47, %v11138_v4 }
 0x4e4   :  { %v11284_v29 = vsub.f32 %v27099_v16, %v30539_v50  ;;  %v20199_v59 = vpack.c.bf16 %v26771_v8, %v26767_v30  ;;  %v11152_v28 = vand.u32 4294901760, %v11151_v53  ;;  %v11159_v63 = vand.u32 4294901760, %v11158_v6 }
 0x4e5   :  { %20162 = vmatpush3.bf16.msra.mxu0 %v27106_v14  ;;  %v11165_v2 = vsub.f32 %v27120_v23, %v29461_v11  ;;  %v11172_v56 = vsub.f32 %v27123_v9, %v29462_v27  ;;  %v20191_v39 = vpack.c.bf16 %v11271_v49, %v11264_v52  ;;  %v11278_v17 = vand.u32 4294901760, %v11277_v44 }
 0x4e6   :  { %20186 = vmatpush3.bf16.msra.mxu1 %v20185_v3  ;;  %20164 = vmatprep.subr.bf16.mxu0 %v27132_v7  ;;  %v11285_v4 = vand.u32 4294901760, %v11284_v29  ;;  %v11057_v48 = vand.u32 4294901760, %v11056_v24  ;;  %v20201_v3 = vpack.c.bf16 %v26807_v10, %v26795_v37  ;;  %v20203_v53 = vpack.c.bf16 %v26830_v19, %v26827_v21 }
 0x4e7   :  { %20188 = vmatprep.subr.bf16.mxu1 %v20187_v62  ;;  %v20193_v11 = vpack.c.bf16 %v11159_v63, %v11152_v28  ;;  %v11166_v27 = vand.u32 4294901760, %v11165_v2  ;;  %v11173_v62 = vand.u32 4294901760, %v11172_v56  ;;  %v20205_v44 = vpack.c.bf16 %v26873_v33, %v26868_v31  ;;  %v30542_v28 = vld [vmem:[#allocation29_spill] sm:$0xff]  ;;  %v30543_v2 = vld [vmem:[#allocation20_spill] sm:$0xff] }
 0x4e8   :  { %v16568_v47 = vpop.f32.mrb[58].mxu1  ;;  %v20195_v52 = vpack.c.bf16 %v11285_v4, %v11278_v17  ;;  %v20207_v24 = vpack.c.bf16 %v26896_v5, %v26894_v60  ;;  %v20215_v63 = vpack.c.bf16 %v26984_v46, %v26963_v58  ;;  %v30544_v56 = vand.u32 4294901760, %v26899_v25  ;;  %v30545_v17 = vld [vmem:[#allocation23_spill] sm:$0xff] }
 0x4e9   :  { %v16569_v50 = vpop.f32.mrb[59].mxu1  ;;  %20166 = vmatpush3.bf16.msra.mxu0 %v27156_v26  ;;  %v20197_v29 = vpack.c.bf16 %v11173_v62, %v11166_v27  ;;  %v30541_v27 = vld [vmem:[#allocation28_spill] sm:$0xff]  ;;  %v20219_v4 = vpack.c.bf16 %v30545_v17, %v27016_v43  ;;  %v30558_v54 = vand.u32 4294901760, %v26807_v10  ;;  %v30561_v10 = vand.u32 4294901760, %v26868_v31 }
 0x4ea   :  { %v16570_v6 = vadd.f32 %v16569_v50, %v16568_v47  ;;  %20190 = vmatpush3.bf16.msra.mxu1 %v20189_v40  ;;  %20200 = vmatprep.subr.bf16.mxu0 %v20199_v59  ;;  %v20209_v40 = vpack.c.bf16 %v26917_v57, %v26915_v45  ;;  %v30546_v47 = vld [vmem:[#allocation18_spill] sm:$0xff]  ;;  %v30550_v62 = vld [vmem:[#allocation24_spill] sm:$0xff] }
 0x4eb   :  { %20192 = vmatprep.subr.bf16.mxu1 %v20191_v39  ;;  %v20217_v39 = vpack.c.bf16 %v27009_v42, %v26989_v1 }
 0x4ec   :  { %v9224_v49 = vadd.f32 %v16570_v6, %v9120_v0  ;;  %11058 = vmatmul.mubr.f32.vlgmr.msra.gmra.mrb[72].mxu0 %v11057_v48  ;;  %v20211_v0 = vpack.c.bf16 %v26940_v51, %v26936_v20  ;;  %v30547_v48 = vld [vmem:[#allocation16_spill] sm:$0xff] }
 0x4ed   :  { %20202 = vmatpush3.bf16.msra.mxu0 %v20201_v3  ;;  %11425 = vmatprep.mubr.f32.mxu0 %v26899_v25  ;;  %v20221_v50 = vpack.c.bf16 %v30547_v48, %v27029_v34  ;;  %v30548_v3 = vld [vmem:[#allocation26_spill] sm:$0xff]  ;;  %v30549_v25 = vld [vmem:[#allocation17_spill] sm:$0xff] }
 0x4ee   :  { %20194 = vmatpush3.bf16.msra.mxu1 %v20193_v11  ;;  %20204 = vmatprep.subr.bf16.mxu0 %v20203_v53  ;;  %v30540_v11 = vld [vmem:[#allocation25_spill] sm:$0xff]  ;;  %v20223_v53 = vpack.c.bf16 %v27054_v61, %v30549_v25 }
 0x4ef   :  { %20196 = vmatprep.subr.bf16.mxu1 %v20195_v52  ;;  %v20213_v59 = vpack.c.bf16 %v30541_v27, %v30540_v11 }
 0x4f1   :  { %20206 = vmatpush3.bf16.msra.mxu0 %v20205_v44 }
 0x4f2   :  { %20198 = vmatpush3.bf16.msra.mxu1 %v20197_v29  ;;  %20208 = vmatprep.subr.bf16.mxu0 %v20207_v24  ;;  %v20225_v29 = vpack.c.bf16 %v27090_v12, %v27083_v35  ;;  %v30551_v24 = vld [vmem:[#allocation30_spill] sm:$0xff] }
 0x4f3   :  { %20232 = vmatprep.subr.bf16.mxu1 %v26865_v41 }
 0x4f5   :  { %11290 = vmatmul.mubr.f32.vlgmr.msra.gmra.mrb[72].mxu1 %v27080_v55  ;;  %20210 = vmatpush3.bf16.msra.mxu0 %v20209_v40  ;;  %v20227_v40 = vpack.c.bf16 %v27099_v16, %v27096_v32 }
 0x4f6   :  { %20234 = vmatpush3.bf16.msra.mxu1 %v30542_v28  ;;  %20212 = vmatprep.subr.bf16.mxu0 %v20211_v0 }
 0x4f7   :  { %20236 = vmatprep.subr.bf16.mxu1 %v30543_v2  ;;  %11532 = vmatprep.mubr.f32.mxu1 %v30544_v56  ;;  %v30553_v56 = vld [vmem:[#allocation22_spill] sm:$0xff] }
 0x4f9   :  { %20214 = vmatpush3.bf16.msra.mxu0 %v20213_v59  ;;  %v30552_v59 = vld [vmem:[#allocation27_spill] sm:$0xff] }
 0x4fa   :  { %20238 = vmatpush3.bf16.msra.mxu1 %v26887_v13  ;;  %20216 = vmatprep.subr.bf16.mxu0 %v20215_v63  ;;  %v20229_v63 = vpack.c.bf16 %v27123_v9, %v27120_v23 }
 0x4fb   :  { %20240 = vmatprep.subr.bf16.mxu1 %v30546_v47 }
 0x4fd   :  { %20218 = vmatpush3.bf16.msra.mxu0 %v20217_v39  ;;  %v30554_v39 = vand.u32 4294901760, %v26767_v30  ;;  %v30559_v30 = vand.u32 4294901760, %v26827_v21  ;;  %v30562_v21 = vand.u32 4294901760, %v26873_v33 }
 0x4fe   :  { %20242 = vmatpush3.bf16.msra.mxu1 %v30548_v3  ;;  %20220 = vmatprep.subr.bf16.mxu0 %v20219_v4  ;;  %v30555_v4 = vand.u32 4294901760, %v26771_v8  ;;  %v30560_v8 = vand.u32 4294901760, %v26830_v19  ;;  %v30563_v19 = vld [vmem:[#allocation19_spill] sm:$0xff] }
 0x4ff   :  { %v16603_v6 = vpop.f32.mrb[60].mxu0  ;;  %20244 = vmatprep.subr.bf16.mxu1 %v30550_v62 }
 0x500   :  { %v16604_v52 = vpop.f32.mrb[61].mxu0 }
 0x501   :  { %v16605_v44 = vadd.f32 %v16604_v52, %v16603_v6  ;;  %20222 = vmatpush3.bf16.msra.mxu0 %v20221_v50  ;;  %v20263_v50 = vpack.c.bf16 %v30555_v4, %v30554_v39  ;;  %v30556_v6 = vld [vmem:[#allocation21_spill] sm:$0xff]  ;;  %v20267_v39 = vpack.c.bf16 %v30560_v8, %v30559_v30  ;;  %v30569_v8 = vand.u32 4294901760, %v26940_v51 }
 0x502   :  { %20246 = vmatpush3.bf16.msra.mxu1 %v30551_v24  ;;  %20224 = vmatprep.subr.bf16.mxu0 %v20223_v53  ;;  %v27217_v53 = vld [vmem:[#allocation5 + $0xd80] sm:$0xff]  ;;  %v30570_v51 = vand.u32 4294901760, %v30540_v11 }
 0x503   :  { %v9336_v0 = vadd.f32 %v16605_v44, %v9224_v49  ;;  %20248 = vmatprep.subr.bf16.mxu1 %v30552_v59  ;;  %v27219_v49 = vld [vmem:[#allocation5 + $0xd88] sm:$0xff]  ;;  %v11862_v4 = vand.u32 4294901760, %v27217_v53 }
 0x505   :  { %20226 = vmatpush3.bf16.msra.mxu0 %v20225_v29  ;;  %v30557_v29 = vand.u32 4294901760, %v26795_v37  ;;  %v27236_v37 = vld [vmem:[#allocation5 + $0xd00] sm:$0xff] }
 0x506   :  { %20250 = vmatpush3.bf16.msra.mxu1 %v30553_v56  ;;  %20228 = vmatprep.subr.bf16.mxu0 %v20227_v40  ;;  %v29466_v33 = vand.u32 4294901760, %v27236_v37 }
 0x507   :  { %20252 = vmatprep.subr.bf16.mxu1 %v30556_v6  ;;  %v20265_v36 = vpack.c.bf16 %v30558_v54, %v30557_v29  ;;  %v20269_v54 = vpack.c.bf16 %v30562_v21, %v30561_v10  ;;  %v27251_v29 = vsub.f32 %v27217_v53, %v11862_v4 }
 0x508   :  { %v16638_v52 = vpop.f32.mrb[60].mxu1 }
 0x509   :  { %v16639_v44 = vpop.f32.mrb[61].mxu1  ;;  %20230 = vmatpush3.bf16.msra.mxu0 %v20229_v63  ;;  %v11865_v63 = vand.u32 4294901760, %v27219_v49 }
 0x50a   :  { %v16640_v40 = vadd.f32 %v16639_v44, %v16638_v52  ;;  %20254 = vmatpush3.bf16.msra.mxu1 %v27027_v18  ;;  %20264 = vmatprep.subr.bf16.mxu0 %v20263_v50  ;;  %v27243_v50 = vld [vmem:[#allocation5 + $0xd08] sm:$0xff]  ;;  %v30565_v52 = vand.u32 4294901760, %v26896_v5  ;;  %v30567_v5 = vand.u32 4294901760, %v26917_v57  ;;  %v507_v57 = vld [vmem:[#allocation5 + $0xd18] sm:$0xff] }
 0x50b   :  { %20256 = vmatprep.subr.bf16.mxu1 %v27048_v15  ;;  %v27255_v31 = vsub.f32 %v27219_v49, %v11865_v63  ;;  %v11817_v30 = vand.u32 4294901760, %v27243_v50  ;;  %v30568_v49 = vand.u32 4294901760, %v26936_v20  ;;  %v30576_v20 = vand.u32 4294901760, %v27009_v42 }
 0x50c   :  { %v27233_v22 = vadd.f32 %v16640_v40, %v9336_v0  ;;  %11428 = vmatmul.mubr.f32.vlgmr.msra.gmra.mrb[74].mxu0 %v27103_v38  ;;  %v30564_v0 = vand.u32 4294901760, %v26894_v60  ;;  %v27260_v40 = vld [vmem:[#allocation5 + $0xd98] sm:$0xff]  ;;  %v30566_v60 = vand.u32 4294901760, %v26915_v45  ;;  %v27279_v45 = vsub.f32 %v27236_v37, %v29466_v33 }
 0x50d   :  { %20266 = vmatpush3.bf16.msra.mxu0 %v20265_v36  ;;  %11702 = vmatprep.mubr.f32.mxu0 %v30563_v19  ;;  %v27258_v36 = vld [vmem:[#allocation5 + $0xd90] sm:$0xff]  ;;  %v11871_v21 = vand.u32 4294901760, %v27260_v40  ;;  %v30575_v33 = vand.u32 4294901760, %v26989_v1 }
 0x50e   :  { %20258 = vmatpush3.bf16.msra.mxu1 %v27106_v14  ;;  %20268 = vmatprep.subr.bf16.mxu0 %v20267_v39  ;;  %v20271_v44 = vpack.c.bf16 %v30565_v52, %v30564_v0  ;;  %v20273_v53 = vpack.c.bf16 %v30567_v5, %v30566_v60  ;;  %v20275_v39 = vpack.c.bf16 %v30569_v8, %v30568_v49  ;;  %v11868_v10 = vand.u32 4294901760, %v27258_v36  ;;  %v506_v0 = vld [vmem:[#allocation5 + $0xd10] sm:$0xff] }
 0x50f   :  { %20260 = vmatprep.subr.bf16.mxu1 %v27132_v7  ;;  %v30571_v52 = vand.u32 4294901760, %v30541_v27  ;;  %v30572_v60 = vand.u32 4294901760, %v26963_v58  ;;  %v30573_v5 = vand.u32 4294901760, %v26984_v46  ;;  %v30574_v8 = vand.u32 4294901760, %v27103_v38  ;;  %v524_v38 = vld [vmem:[#allocation5 + $0xda0] sm:$0xff] }
 0x510   :  { %v20281_v11 = vpack.c.bf16 %v30576_v20, %v30575_v33  ;;  %v30577_v27 = vand.u32 4294901760, %v27016_v43  ;;  %v30579_v46 = vand.u32 4294901760, %v27029_v34  ;;  %v27311_v1 = vsub.f32 %v27258_v36, %v11868_v10 }
 0x511   :  { %20270 = vmatpush3.bf16.msra.mxu0 %v20269_v54  ;;  %v29471_v54 = vand.u32 4294901760, %v27251_v29  ;;  %v20279_v49 = vpack.c.bf16 %v30573_v5, %v30572_v60  ;;  %v11820_v60 = vand.u32 4294901760, %v506_v0  ;;  %v27314_v42 = vsub.f32 %v27260_v40, %v11871_v21 }
 0x512   :  { %20262 = vmatpush3.bf16.msra.mxu1 %v27156_v26  ;;  %20272 = vmatprep.subr.bf16.mxu0 %v20271_v44  ;;  %v20277_v44 = vpack.c.bf16 %v30571_v52, %v30570_v51  ;;  %v30578_v51 = vand.u32 4294901760, %v30545_v17  ;;  %v30580_v52 = vand.u32 4294901760, %v30547_v48  ;;  %v11823_v43 = vand.u32 4294901760, %v507_v57  ;;  %v525_v17 = vld [vmem:[#allocation5 + $0xda8] sm:$0xff]  ;;  %v83_v48 = vld [vmem:[#allocation2 + $0xd8] sm:$0xff] }
 0x513   :  { %20296 = vmatprep.subr.bf16.mxu1 %v26865_v41  ;;  %v27291_v41 = vsub.f32 %v27243_v50, %v11817_v30  ;;  %v12041_v34 = vsub.f32 %v27251_v29, %v29471_v54  ;;  %v30581_v33 = vand.u32 4294901760, %v30549_v25  ;;  %v30583_v36 = vand.u32 4294901760, %v27083_v35 }
 0x514   :  { %v20283_v58 = vpack.c.bf16 %v30578_v51, %v30577_v27  ;;  %v27307_v50 = vpack.c.bf16 %v30580_v52, %v30579_v46  ;;  %v30584_v40 = vand.u32 4294901760, %v27090_v12  ;;  %v30585_v20 = vand.u32 4294901760, %v27255_v31  ;;  %v509_v46 = vld [vmem:[#allocation5 + $0xd28] sm:$0xff] }
 0x515   :  { %11536 = vmatmul.mubr.f32.vlgmr.msra.gmra.mrb[74].mxu1 %v30574_v8  ;;  %20274 = vmatpush3.bf16.msra.mxu0 %v20273_v53  ;;  %v30586_v25 = vand.u32 4294901760, %v27096_v32  ;;  %v30588_v35 = vand.u32 4294901760, %v27120_v23  ;;  %v30589_v12 = vand.u32 4294901760, %v27123_v9  ;;  %v27349_v51 = vpack.c.bf16 %v11865_v63, %v11862_v4 }
 0x516   :  { %20298 = vmatpush3.bf16.msra.mxu1 %v30542_v28  ;;  %20276 = vmatprep.subr.bf16.mxu0 %v20275_v39  ;;  %v30582_v28 = vand.u32 4294901760, %v27054_v61  ;;  %v27330_v39 = vpack.c.bf16 %v30584_v40, %v30583_v36  ;;  %v12048_v5 = vsub.f32 %v27255_v31, %v30585_v20  ;;  %v30587_v61 = vand.u32 4294901760, %v27099_v16 }
 0x517   :  { %20300 = vmatprep.subr.bf16.mxu1 %v30543_v2  ;;  %11806 = vmatprep.mubr.f32.mxu1 %v30563_v19  ;;  %v29470_v2 = vand.u32 4294901760, %v27279_v45  ;;  %v27347_v27 = vpack.c.bf16 %v30589_v12, %v30588_v35  ;;  %v508_v19 = vld [vmem:[#allocation5 + $0xd20] sm:$0xff]  ;;  %v29469_v52 = vand.u32 4294901760, %v27291_v41  ;;  %v11874_v32 = vand.u32 4294901760, %v524_v38  ;;  %v527_v35 = vld [vmem:[#allocation5 + $0xdb8] sm:$0xff] }
 0x518   :  { %v27324_v53 = vpack.c.bf16 %v30582_v28, %v30581_v33  ;;  %v27341_v8 = vpack.c.bf16 %v30587_v61, %v30586_v25  ;;  %v27352_v33 = vsub.f32 %v506_v0, %v11820_v60  ;;  %v11877_v28 = vand.u32 4294901760, %v525_v17  ;;  %v526_v61 = vld [vmem:[#allocation5 + $0xdb0] sm:$0xff] }
 0x519   :  { %20278 = vmatpush3.bf16.msra.mxu0 %v20277_v44  ;;  %v27354_v16 = vand.u32 4294901760, %v83_v48  ;;  %v27357_v23 = vsub.f32 %v507_v57, %v11823_v43  ;;  %v12042_v9 = vand.u32 4294901760, %v12041_v34  ;;  %v29468_v4 = vand.u32 4294901760, %v27311_v1 }
 0x51a   :  { %20302 = vmatpush3.bf16.msra.mxu1 %v26887_v13  ;;  %20280 = vmatprep.subr.bf16.mxu0 %v20279_v49  ;;  %v29467_v63 = vand.u32 4294901760, %v27314_v42  ;;  %v12049_v36 = vand.u32 4294901760, %v12048_v5  ;;  %v11826_v44 = vand.u32 4294901760, %v508_v19  ;;  %v11829_v0 = vand.u32 4294901760, %v509_v46 }
 0x51b   :  { %30590 = vst [vmem:[#allocation25_spill] sm:$0xff] %v27354_v16  ;;  %20304 = vmatprep.subr.bf16.mxu1 %v30546_v47  ;;  %v11929_v40 = vsub.f32 %v27279_v45, %v29470_v2  ;;  %v30591_v20 = vand.u32 4294901760, %v27236_v37  ;;  %v27369_v57 = vpack.c.bf16 %v11871_v21, %v11868_v10  ;;  %v27371_v49 = vpack.c.bf16 %v11823_v43, %v11820_v60  ;;  %v510_v21 = vld [vmem:[#allocation5 + $0xd30] sm:$0xff] }
 0x51c   :  { %v11936_v34 = vsub.f32 %v27291_v41, %v29469_v52  ;;  %v27376_v47 = vpack.c.bf16 %v11877_v28, %v11874_v32  ;;  %v27378_v5 = vsub.f32 %v524_v38, %v11874_v32  ;;  %v27380_v25 = vsub.f32 %v525_v17, %v11877_v28  ;;  %v529_v52 = vld [vmem:[#allocation5 + $0xdc8] sm:$0xff] }
 0x51d   :  { %v27367_v13 = vpack.c.bf16 %v11817_v30, %v30591_v20  ;;  %30593 = vst [vmem:[#allocation29_spill] sm:$0xff] %v27369_v57  ;;  %20282 = vmatpush3.bf16.msra.mxu0 %v20281_v11  ;;  %v27383_v37 = vsub.f32 %v83_v48, %v27354_v16  ;;  %v12055_v30 = vsub.f32 %v27311_v1, %v29468_v4  ;;  %v511_v11 = vld [vmem:[#allocation5 + $0xd38] sm:$0xff]  ;;  %v29473_v60 = vand.u32 4294901760, %v27352_v33  ;;  %v528_v4 = vld [vmem:[#allocation5 + $0xdc0] sm:$0xff] }
 0x51e   :  { %30594 = vst [vmem:[#allocation20_spill] sm:$0xff] %v27376_v47  ;;  %20306 = vmatpush3.bf16.msra.mxu1 %v30548_v3  ;;  %20284 = vmatprep.subr.bf16.mxu0 %v20283_v58  ;;  %v12062_v10 = vsub.f32 %v27314_v42, %v29467_v63  ;;  %v29472_v43 = vand.u32 4294901760, %v27357_v23  ;;  %v27395_v17 = vpack.c.bf16 %v12049_v36, %v12042_v9  ;;  %v11930_v48 = vand.u32 4294901760, %v11929_v40 }
 0x51f   :  { %30592 = vst [vmem:[#allocation28_spill] sm:$0xff] %v27367_v13  ;;  %v16673_v38 = vpop.f32.mrb[62].mxu0  ;;  %20308 = vmatprep.subr.bf16.mxu1 %v30550_v62  ;;  %v27397_v3 = vpack.c.bf16 %v11829_v0, %v11826_v44  ;;  %v27399_v58 = vsub.f32 %v508_v19, %v11826_v44  ;;  %v27401_v32 = vsub.f32 %v509_v46, %v11829_v0  ;;  %v11937_v28 = vand.u32 4294901760, %v11936_v34 }
 0x520   :  { %v16674_v12 = vpop.f32.mrb[63].mxu0  ;;  %v11880_v20 = vand.u32 4294901760, %v526_v61  ;;  %v11883_v63 = vand.u32 4294901760, %v527_v35  ;;  %v11832_v54 = vand.u32 4294901760, %v510_v21  ;;  %v11835_v62 = vand.u32 4294901760, %v511_v11 }
 0x521   :  { %30595 = vst [vmem:[#allocation23_spill] sm:$0xff] %v27397_v3  ;;  %v16675_v2 = vadd.f32 %v16674_v12, %v16673_v38  ;;  %20286 = vmatpush3.bf16.msra.mxu0 %v27307_v50  ;;  %v29477_v9 = vand.u32 4294901760, %v27383_v37  ;;  %v12056_v19 = vand.u32 4294901760, %v12055_v30  ;;  %v12063_v36 = vand.u32 4294901760, %v12062_v10 }
 0x522   :  { %20310 = vmatpush3.bf16.msra.mxu1 %v30551_v24  ;;  %20288 = vmatprep.subr.bf16.mxu0 %v27324_v53  ;;  %v11943_v46 = vsub.f32 %v27352_v33, %v29473_v60  ;;  %v11950_v44 = vsub.f32 %v27357_v23, %v29472_v43  ;;  %v11886_v0 = vand.u32 4294901760, %v528_v4  ;;  %v11889_v40 = vand.u32 4294901760, %v529_v52 }
 0x523   :  { %v9706_v50 = vadd.f32 %v16675_v2, %v27233_v22  ;;  %20312 = vmatprep.subr.bf16.mxu1 %v30552_v59  ;;  %v29475_v24 = vand.u32 4294901760, %v27378_v5  ;;  %v27416_v34 = vpack.c.bf16 %v11937_v28, %v11930_v48  ;;  %v27418_v53 = vpack.c.bf16 %v11883_v63, %v11880_v20  ;;  %v512_v22 = vld [vmem:[#allocation5 + $0xd40] sm:$0xff]  ;;  %v513_v59 = vld [vmem:[#allocation5 + $0xd48] sm:$0xff] }
 0x524   :  { %v27420_v30 = vsub.f32 %v526_v61, %v11880_v20  ;;  %v29474_v10 = vand.u32 4294901760, %v27380_v25  ;;  %v27424_v38 = vsub.f32 %v527_v35, %v11883_v63  ;;  %v27426_v12 = vpack.c.bf16 %v11835_v62, %v11832_v54 }
 0x525   :  { %30596 = vst [vmem:[#allocation18_spill] sm:$0xff] %v27418_v53  ;;  %20290 = vmatpush3.bf16.msra.mxu0 %v27330_v39  ;;  %v29476_v2 = vand.u32 4294901760, %v27399_v58  ;;  %v11912_v48 = vsub.f32 %v27383_v37, %v29477_v9  ;;  %v27434_v61 = vsub.f32 %v510_v21, %v11832_v54  ;;  %v27436_v28 = vsub.f32 %v511_v11, %v11835_v62  ;;  %v530_v62 = vld [vmem:[#allocation5 + $0xdd0] sm:$0xff] }
 0x526   :  { %30597 = vst [vmem:[#allocation16_spill] sm:$0xff] %v27426_v12  ;;  %20314 = vmatpush3.bf16.msra.mxu1 %v30553_v56  ;;  %20292 = vmatprep.subr.bf16.mxu0 %v27341_v8  ;;  %v11944_v39 = vand.u32 4294901760, %v11943_v46  ;;  %v29478_v63 = vand.u32 4294901760, %v27401_v32  ;;  %v27440_v35 = vpack.c.bf16 %v12063_v36, %v12056_v19  ;;  %v11951_v20 = vand.u32 4294901760, %v11950_v44  ;;  %v531_v36 = vld [vmem:[#allocation5 + $0xdd8] sm:$0xff]  ;;  %v514_v46 = vld [vmem:[#allocation5 + $0xd50] sm:$0xff] }
 0x527   :  { %30598 = vst [vmem:[#allocation26_spill] sm:$0xff] %v27434_v61  ;;  %30599 = vst [vmem:[#allocation17_spill] sm:$0xff] %v27436_v28  ;;  %20316 = vmatprep.subr.bf16.mxu1 %v30556_v6  ;;  %v27442_v43 = vpack.c.bf16 %v11889_v40, %v11886_v0  ;;  %v12069_v56 = vsub.f32 %v27378_v5, %v29475_v24  ;;  %v27447_v8 = vsub.f32 %v528_v4, %v11886_v0 }
 0x528   :  { %v16708_v60 = vpop.f32.mrb[62].mxu1  ;;  %v12076_v54 = vsub.f32 %v27380_v25, %v29474_v10  ;;  %v11838_v21 = vand.u32 4294901760, %v512_v22  ;;  %v11841_v11 = vand.u32 4294901760, %v513_v59  ;;  %v11957_v19 = vsub.f32 %v27399_v58, %v29476_v2 }
 0x529   :  { %30600 = vst [vmem:[#allocation24_spill] sm:$0xff] %v27442_v43  ;;  %v16709_v6 = vpop.f32.mrb[63].mxu1  ;;  %20294 = vmatpush3.bf16.msra.mxu0 %v27347_v27  ;;  %v11913_v44 = vand.u32 4294901760, %v11912_v48  ;;  %v11964_v10 = vsub.f32 %v27401_v32, %v29478_v63  ;;  %v27466_v2 = vpack.c.bf16 %v11951_v20, %v11944_v39  ;;  %v27468_v9 = vsub.f32 %v529_v52, %v11889_v40  ;;  %v515_v27 = vld [vmem:[#allocation5 + $0xd58] sm:$0xff] }
 0x52a   :  { %v16710_v0 = vadd.f32 %v16709_v6, %v16708_v60  ;;  %20318 = vmatpush3.bf16.msra.mxu1 %v27027_v18  ;;  %20328 = vmatprep.subr.bf16.mxu0 %v27349_v51  ;;  %v12070_v48 = vand.u32 4294901760, %v12069_v56  ;;  %v11892_v60 = vand.u32 4294901760, %v530_v62  ;;  %v12077_v18 = vand.u32 4294901760, %v12076_v54 }
 0x52b   :  { %20320 = vmatprep.subr.bf16.mxu1 %v27048_v15  ;;  %v27473_v4 = vsub.f32 %v512_v22, %v11838_v21  ;;  %v11895_v63 = vand.u32 4294901760, %v531_v36  ;;  %v27476_v24 = vpack.c.bf16 %v11841_v11, %v11838_v21  ;;  %v30602_v15 = vand.u32 4294901760, %v27420_v30 }
 0x52c   :  { %v27470_v6 = vadd.f32 %v16710_v0, %v9706_v50  ;;  %11704 = vmatmul.mubr.f32.vlgmr.msra.gmra.mrb[76].mxu0 %v27080_v55  ;;  %v30603_v40 = vand.u32 4294901760, %v27424_v38  ;;  %v11958_v22 = vand.u32 4294901760, %v11957_v19  ;;  %v11965_v39 = vand.u32 4294901760, %v11964_v10  ;;  %v532_v0 = vld [vmem:[#allocation5 + $0xde0] sm:$0xff] }
 0x52d   :  { %20330 = vmatpush3.bf16.msra.mxu0 %v27367_v13  ;;  %30601 = vst [vmem:[#allocation30_spill] sm:$0xff] %v27476_v24  ;;  %v12083_v52 = vsub.f32 %v27420_v30, %v30602_v15  ;;  %11914 = vmatprep.mubr.f32.mxu0 %v11913_v44  ;;  %v30604_v20 = vand.u32 4294901760, %v27434_v61  ;;  %v30605_v54 = vand.u32 4294901760, %v27436_v28  ;;  %v533_v15 = vld [vmem:[#allocation5 + $0xde8] sm:$0xff]  ;;  %v11844_v44 = vand.u32 4294901760, %v514_v46 }
 0x52e   :  { %v12090_v50 = vsub.f32 %v27424_v38, %v30603_v40  ;;  %20322 = vmatpush3.bf16.msra.mxu1 %v27106_v14  ;;  %20332 = vmatprep.subr.bf16.mxu0 %v27369_v57  ;;  %v27493_v40 = vsub.f32 %v513_v59, %v11841_v11  ;;  %v11847_v14 = vand.u32 4294901760, %v515_v27  ;;  %v29487_v57 = vand.u32 4294901760, %v27447_v8 }
 0x52f   :  { %v11971_v56 = vsub.f32 %v27434_v61, %v30604_v20  ;;  %v11978_v21 = vsub.f32 %v27436_v28, %v30605_v54  ;;  %20324 = vmatprep.subr.bf16.mxu1 %v27132_v7  ;;  %v27496_v19 = vpack.c.bf16 %v12077_v18, %v12070_v48  ;;  %v27498_v10 = vpack.c.bf16 %v11895_v63, %v11892_v60 }
 0x530   :  { %v27500_v13 = vsub.f32 %v530_v62, %v11892_v60  ;;  %v27502_v20 = vsub.f32 %v531_v36, %v11895_v63  ;;  %v12084_v54 = vand.u32 4294901760, %v12083_v52  ;;  %v12091_v28 = vand.u32 4294901760, %v12090_v50  ;;  %v516_v62 = vld [vmem:[#allocation5 + $0xd60] sm:$0xff] }
 0x531   :  { %30606 = vst [vmem:[#allocation27_spill] sm:$0xff] %v27498_v10  ;;  %20334 = vmatpush3.bf16.msra.mxu0 %v27371_v49  ;;  %v11898_v61 = vand.u32 4294901760, %v532_v0  ;;  %v11901_v7 = vand.u32 4294901760, %v533_v15  ;;  %v27507_v59 = vpack.c.bf16 %v11965_v39, %v11958_v22  ;;  %v11972_v11 = vand.u32 4294901760, %v11971_v56  ;;  %v27524_v39 = vld [vmem:[#allocation5 + $0xdf0] sm:$0xff]  ;;  %v27526_v56 = vld [vmem:[#allocation5 + $0xdf8] sm:$0xff] }
 0x532   :  { %30607 = vst [vmem:[#allocation22_spill] sm:$0xff] %v27502_v20  ;;  %20326 = vmatpush3.bf16.msra.mxu1 %v27156_v26  ;;  %20336 = vmatprep.subr.bf16.mxu0 %v27376_v47  ;;  %v11979_v48 = vand.u32 4294901760, %v11978_v21  ;;  %v29488_v18 = vand.u32 4294901760, %v27468_v9  ;;  %v27511_v63 = vpack.c.bf16 %v11847_v14, %v11844_v44  ;;  %v27513_v36 = vsub.f32 %v514_v46, %v11844_v44  ;;  %v517_v26 = vld [vmem:[#allocation5 + $0xd68] sm:$0xff] }
 0x533   :  { %20360 = vmatprep.subr.bf16.mxu1 %v27395_v17  ;;  %v27518_v60 = vsub.f32 %v27447_v8, %v29487_v57  ;;  %v27521_v50 = vsub.f32 %v515_v27, %v11847_v14  ;;  %v29495_v17 = vand.u32 4294901760, %v27500_v13  ;;  %v20371_v21 = vpack.c.bf16 %v12091_v28, %v12084_v54  ;;  %v82_v14 = vld [vmem:[#allocation2 + $0xd0] sm:$0xff] }
 0x534   :  { %v27532_v44 = vpack.c.bf16 %v11901_v7, %v11898_v61  ;;  %v27534_v57 = vsub.f32 %v532_v0, %v11898_v61  ;;  %v11850_v27 = vand.u32 4294901760, %v516_v62  ;;  %v20373_v22 = vpack.c.bf16 %v11979_v48, %v11972_v11  ;;  %v27550_v11 = vld [vmem:[#allocation5 + $0xd70] sm:$0xff] }
 0x535   :  { %30608 = vst [vmem:[#allocation21_spill] sm:$0xff] %v27521_v50  ;;  %11808 = vmatmul.mubr.f32.vlgmr.msra.gmra.mrb[76].mxu1 %v27080_v55  ;;  %20338 = vmatpush3.bf16.msra.mxu0 %v27397_v3  ;;  %v27538_v52 = vsub.f32 %v533_v15, %v11901_v7  ;;  %v12104_v55 = vsub.f32 %v27468_v9, %v29488_v18  ;;  %v11853_v46 = vand.u32 4294901760, %v517_v26  ;;  %v12098_v28 = vand.u32 4294901760, %v27518_v60  ;;  %v27552_v15 = vld [vmem:[#allocation5 + $0xd78] sm:$0xff] }
 0x536   :  { %30609 = vst [vmem:[#allocation19_spill] sm:$0xff] %v27534_v57  ;;  %20362 = vmatpush3.bf16.msra.mxu1 %v27416_v34  ;;  %20340 = vmatprep.subr.bf16.mxu0 %v27418_v53  ;;  %v30610_v61 = vand.u32 4294901760, %v27473_v4  ;;  %v11904_v34 = vand.u32 4294901760, %v27524_v39  ;;  %v11907_v54 = vand.u32 4294901760, %v27526_v56  ;;  %v30611_v7 = vand.u32 4294901760, %v27493_v40 }
 0x537   :  { %20364 = vmatprep.subr.bf16.mxu1 %v27440_v35  ;;  %12150 = vmatprep.mubr.f32.mxu1 %v27354_v16  ;;  %v12111_v48 = vsub.f32 %v27500_v13, %v29495_v17  ;;  %v30612_v60 = vand.u32 4294901760, %v27502_v20  ;;  %v27564_v18 = vand.u32 4294901760, %v82_v14  ;;  %v27567_v53 = vsub.f32 %v516_v62, %v11850_v27 }
 0x538   :  { %v11985_v0 = vsub.f32 %v27473_v4, %v30610_v61  ;;  %v11992_v35 = vsub.f32 %v27493_v40, %v30611_v7  ;;  %v12105_v17 = vand.u32 4294901760, %v12104_v55  ;;  %v27574_v47 = vsub.f32 %v517_v26, %v11853_v46 }
 0x539   :  { %v12118_v61 = vsub.f32 %v27502_v20, %v30612_v60  ;;  %20342 = vmatpush3.bf16.msra.mxu0 %v27426_v12  ;;  %v11856_v60 = vand.u32 4294901760, %v27550_v11  ;;  %v11859_v20 = vand.u32 4294901760, %v27552_v15  ;;  %v27580_v16 = vsub.f32 %v27524_v39, %v11904_v34 }
 0x53a   :  { %20366 = vmatpush3.bf16.msra.mxu1 %v27466_v2  ;;  %20344 = vmatprep.subr.bf16.mxu0 %v27442_v43  ;;  %v11986_v62 = vand.u32 4294901760, %v11985_v0  ;;  %v27583_v3 = vsub.f32 %v27526_v56, %v11907_v54  ;;  %v11993_v7 = vand.u32 4294901760, %v11992_v35  ;;  %v12112_v43 = vand.u32 4294901760, %v12111_v48 }
 0x53b   :  { %20368 = vmatprep.subr.bf16.mxu1 %v27496_v19  ;;  %v12119_v55 = vand.u32 4294901760, %v12118_v61  ;;  %v27587_v26 = vsub.f32 %v82_v14, %v27564_v18  ;;  %v27590_v12 = vpack.c.bf16 %v11853_v46, %v11850_v27  ;;  %v30613_v19 = vand.u32 4294901760, %v27513_v36 }
 0x53c   :  { %v30614_v0 = vand.u32 4294901760, %v27521_v50  ;;  %v30615_v2 = vand.u32 4294901760, %v27534_v57  ;;  %v27604_v14 = vsub.f32 %v27550_v11, %v11856_v60  ;;  %v27607_v46 = vsub.f32 %v27552_v15, %v11859_v20 }
 0x53d   :  { %20346 = vmatpush3.bf16.msra.mxu0 %v27476_v24  ;;  %v11999_v39 = vsub.f32 %v27513_v36, %v30613_v19  ;;  %v29515_v48 = vand.u32 4294901760, %v27574_v47  ;;  %v20375_v19 = vpack.c.bf16 %v12105_v17, %v12098_v28  ;;  %v20377_v24 = vpack.c.bf16 %v11993_v7, %v11986_v62 }
 0x53e   :  { %v12006_v56 = vsub.f32 %v27521_v50, %v30614_v0  ;;  %v12125_v35 = vsub.f32 %v27534_v57, %v30615_v2  ;;  %20370 = vmatpush3.bf16.msra.mxu1 %v27507_v59  ;;  %20348 = vmatprep.subr.bf16.mxu0 %v27498_v10  ;;  %v30616_v0 = vand.u32 4294901760, %v27538_v52  ;;  %v29514_v59 = vand.u32 4294901760, %v27580_v16 }
 0x53f   :  { %v16743_v61 = vpop.f32.mrb[64].mxu0  ;;  %20372 = vmatprep.subr.bf16.mxu1 %v20371_v21  ;;  %v27616_v57 = vpack.c.bf16 %v11907_v54, %v11904_v34  ;;  %v20379_v15 = vpack.c.bf16 %v12119_v55, %v12112_v43  ;;  %v29516_v27 = vand.u32 4294901760, %v27587_v26  ;;  %v12000_v21 = vand.u32 4294901760, %v11999_v39 }
 0x540   :  { %v12132_v2 = vsub.f32 %v27538_v52, %v30616_v0  ;;  %v16744_v11 = vpop.f32.mrb[65].mxu0  ;;  %v12007_v17 = vand.u32 4294901760, %v12006_v56  ;;  %v12126_v28 = vand.u32 4294901760, %v12125_v35  ;;  %v30617_v0 = vand.u32 4294901760, %v27567_v53 }
 0x541   :  { %v16745_v50 = vadd.f32 %v16744_v11, %v16743_v61  ;;  %20350 = vmatpush3.bf16.msra.mxu0 %v27511_v63  ;;  %v12020_v34 = vsub.f32 %v27574_v47, %v29515_v48  ;;  %v29512_v43 = vand.u32 4294901760, %v27604_v14  ;;  %v29513_v54 = vand.u32 4294901760, %v27607_v46 }
 0x542   :  { %20374 = vmatpush3.bf16.msra.mxu1 %v20373_v22  ;;  %20352 = vmatprep.subr.bf16.mxu0 %v27532_v44  ;;  %v12013_v10 = vsub.f32 %v27567_v53, %v30617_v0  ;;  %v12133_v62 = vand.u32 4294901760, %v12132_v2  ;;  %v12139_v22 = vsub.f32 %v27580_v16, %v29514_v59  ;;  %v30618_v55 = vand.u32 4294901760, %v27583_v3 }
 0x543   :  { %v9982_v7 = vadd.f32 %v16745_v50, %v27470_v6  ;;  %20376 = vmatprep.subr.bf16.mxu1 %v20375_v19  ;;  %v11918_v56 = vsub.f32 %v27587_v26, %v29516_v27  ;;  %v27640_v35 = vpack.c.bf16 %v11859_v20, %v11856_v60  ;;  %v20381_v61 = vpack.c.bf16 %v12007_v17, %v12000_v21 }
 0x544   :  { %v12146_v39 = vsub.f32 %v27583_v3, %v30618_v55  ;;  %v20391_v6 = vpack.c.bf16 %v27255_v31, %v27251_v29  ;;  %v12014_v50 = vand.u32 4294901760, %v12013_v10  ;;  %v12021_v19 = vand.u32 4294901760, %v12020_v34 }
 0x545   :  { %20354 = vmatpush3.bf16.msra.mxu0 %v27590_v12  ;;  %v12027_v2 = vsub.f32 %v27604_v14, %v29512_v43  ;;  %v12034_v11 = vsub.f32 %v27607_v46, %v29513_v54  ;;  %v20383_v20 = vpack.c.bf16 %v12133_v62, %v12126_v28  ;;  %v12140_v60 = vand.u32 4294901760, %v12139_v22 }
 0x546   :  { %20378 = vmatpush3.bf16.msra.mxu1 %v20377_v24  ;;  %20356 = vmatprep.subr.bf16.mxu0 %v27616_v57  ;;  %v12147_v21 = vand.u32 4294901760, %v12146_v39  ;;  %v11919_v0 = vand.u32 4294901760, %v11918_v56  ;;  %v20393_v24 = vpack.c.bf16 %v27291_v41, %v27279_v45  ;;  %v20395_v10 = vpack.c.bf16 %v27314_v42, %v27311_v1 }
 0x547   :  { %20380 = vmatprep.subr.bf16.mxu1 %v20379_v15  ;;  %v20385_v43 = vpack.c.bf16 %v12021_v19, %v12014_v50  ;;  %v12028_v54 = vand.u32 4294901760, %v12027_v2  ;;  %v12035_v15 = vand.u32 4294901760, %v12034_v11  ;;  %v20397_v22 = vpack.c.bf16 %v27357_v23, %v27352_v33  ;;  %v30621_v50 = vld [vmem:[#allocation28_spill] sm:$0xff]  ;;  %v30622_v2 = vld [vmem:[#allocation29_spill] sm:$0xff] }
 0x548   :  { %v16778_v17 = vpop.f32.mrb[64].mxu1  ;;  %v20387_v28 = vpack.c.bf16 %v12147_v21, %v12140_v60  ;;  %v20399_v56 = vpack.c.bf16 %v27380_v25, %v27378_v5  ;;  %v20407_v19 = vpack.c.bf16 %v27468_v9, %v27447_v8  ;;  %v30623_v11 = vand.u32 4294901760, %v27383_v37  ;;  %v30624_v60 = vld [vmem:[#allocation22_spill] sm:$0xff] }
 0x549   :  { %v16779_v55 = vpop.f32.mrb[65].mxu1  ;;  %20358 = vmatpush3.bf16.msra.mxu0 %v27640_v35  ;;  %v20389_v39 = vpack.c.bf16 %v12035_v15, %v12028_v54  ;;  %v30620_v54 = vld [vmem:[#allocation17_spill] sm:$0xff]  ;;  %v20411_v21 = vpack.c.bf16 %v30624_v60, %v27500_v13  ;;  %v30629_v15 = vld [vmem:[#allocation18_spill] sm:$0xff]  ;;  %v30637_v59 = vand.u32 4294901760, %v27291_v41  ;;  %v30640_v41 = vand.u32 4294901760, %v27352_v33 }
 0x54a   :  { %v16780_v34 = vadd.f32 %v16779_v55, %v16778_v17  ;;  %20382 = vmatpush3.bf16.msra.mxu1 %v20381_v61  ;;  %20392 = vmatprep.subr.bf16.mxu0 %v20391_v6  ;;  %v20401_v61 = vpack.c.bf16 %v27401_v32, %v27399_v58  ;;  %v30625_v17 = vld [vmem:[#allocation20_spill] sm:$0xff] }
 0x54b   :  { %20384 = vmatprep.subr.bf16.mxu1 %v20383_v20  ;;  %v20409_v20 = vpack.c.bf16 %v27493_v40, %v27473_v4 }
 0x54c   :  { %v10086_v62 = vadd.f32 %v16780_v34, %v9982_v7  ;;  %11920 = vmatmul.mubr.f32.vlgmr.msra.gmra.mrb[78].mxu0 %v11919_v0  ;;  %v20403_v7 = vpack.c.bf16 %v27424_v38, %v27420_v30  ;;  %v30626_v0 = vld [vmem:[#allocation21_spill] sm:$0xff] }
 0x54d   :  { %20394 = vmatpush3.bf16.msra.mxu0 %v20393_v24  ;;  %12287 = vmatprep.mubr.f32.mxu0 %v27383_v37  ;;  %v20413_v55 = vpack.c.bf16 %v30626_v0, %v27513_v36  ;;  %v30627_v24 = vld [vmem:[#allocation23_spill] sm:$0xff] }
 0x54e   :  { %20386 = vmatpush3.bf16.msra.mxu1 %v20385_v43  ;;  %20396 = vmatprep.subr.bf16.mxu0 %v20395_v10  ;;  %v30619_v43 = vld [vmem:[#allocation26_spill] sm:$0xff]  ;;  %v30628_v37 = vld [vmem:[#allocation19_spill] sm:$0xff] }
 0x54f   :  { %20388 = vmatprep.subr.bf16.mxu1 %v20387_v28  ;;  %v20405_v6 = vpack.c.bf16 %v30620_v54, %v30619_v43  ;;  %v20415_v10 = vpack.c.bf16 %v27538_v52, %v30628_v37 }
 0x551   :  { %20398 = vmatpush3.bf16.msra.mxu0 %v20397_v22 }
 0x552   :  { %20390 = vmatpush3.bf16.msra.mxu1 %v20389_v39  ;;  %20400 = vmatprep.subr.bf16.mxu0 %v20399_v56  ;;  %v20417_v39 = vpack.c.bf16 %v27574_v47, %v27567_v53  ;;  %v30630_v56 = vld [vmem:[#allocation16_spill] sm:$0xff] }
 0x553   :  { %20424 = vmatprep.subr.bf16.mxu1 %v27349_v51 }
 0x555   :  { %12152 = vmatmul.mubr.f32.vlgmr.msra.gmra.mrb[78].mxu1 %v27564_v18  ;;  %20402 = vmatpush3.bf16.msra.mxu0 %v20401_v61  ;;  %v20419_v61 = vpack.c.bf16 %v27583_v3, %v27580_v16 }
 0x556   :  { %20426 = vmatpush3.bf16.msra.mxu1 %v30621_v50  ;;  %20404 = vmatprep.subr.bf16.mxu0 %v20403_v7 }
 0x557   :  { %20428 = vmatprep.subr.bf16.mxu1 %v30622_v2  ;;  %12394 = vmatprep.mubr.f32.mxu1 %v30623_v11  ;;  %v30632_v11 = vld [vmem:[#allocation30_spill] sm:$0xff] }
 0x559   :  { %20406 = vmatpush3.bf16.msra.mxu0 %v20405_v6  ;;  %v30631_v6 = vld [vmem:[#allocation24_spill] sm:$0xff] }
 0x55a   :  { %20430 = vmatpush3.bf16.msra.mxu1 %v27371_v49  ;;  %20408 = vmatprep.subr.bf16.mxu0 %v20407_v19  ;;  %v20421_v19 = vpack.c.bf16 %v27607_v46, %v27604_v14 }
 0x55b   :  { %20432 = vmatprep.subr.bf16.mxu1 %v30625_v17 }
 0x55d   :  { %20410 = vmatpush3.bf16.msra.mxu0 %v20409_v20  ;;  %v30633_v20 = vand.u32 4294901760, %v27251_v29  ;;  %v30638_v29 = vand.u32 4294901760, %v27311_v1  ;;  %v30641_v1 = vand.u32 4294901760, %v27357_v23 }
 0x55e   :  { %20434 = vmatpush3.bf16.msra.mxu1 %v30627_v24  ;;  %20412 = vmatprep.subr.bf16.mxu0 %v20411_v21  ;;  %v30634_v21 = vand.u32 4294901760, %v27255_v31  ;;  %v30639_v31 = vand.u32 4294901760, %v27314_v42  ;;  %v30642_v42 = vld [vmem:[#allocation25_spill] sm:$0xff] }
 0x55f   :  { %v16813_v34 = vpop.f32.mrb[66].mxu0  ;;  %20436 = vmatprep.subr.bf16.mxu1 %v30629_v15 }
 0x560   :  { %v16814_v28 = vpop.f32.mrb[67].mxu0 }
 0x561   :  { %v16815_v22 = vadd.f32 %v16814_v28, %v16813_v34  ;;  %20414 = vmatpush3.bf16.msra.mxu0 %v20413_v55  ;;  %v20455_v55 = vpack.c.bf16 %v30634_v21, %v30633_v20  ;;  %v30635_v34 = vld [vmem:[#allocation27_spill] sm:$0xff]  ;;  %v20459_v20 = vpack.c.bf16 %v30639_v31, %v30638_v29  ;;  %v30648_v31 = vand.u32 4294901760, %v27424_v38 }
 0x562   :  { %20438 = vmatpush3.bf16.msra.mxu1 %v30630_v56  ;;  %20416 = vmatprep.subr.bf16.mxu0 %v20415_v10  ;;  %v27701_v10 = vld [vmem:[#allocation5 + $0xe80] sm:$0xff]  ;;  %v30649_v38 = vand.u32 4294901760, %v30619_v43 }
 0x563   :  { %v10198_v7 = vadd.f32 %v16815_v22, %v10086_v62  ;;  %20440 = vmatprep.subr.bf16.mxu1 %v30631_v6  ;;  %v27703_v62 = vld [vmem:[#allocation5 + $0xe88] sm:$0xff]  ;;  %v12724_v21 = vand.u32 4294901760, %v27701_v10 }
 0x565   :  { %20418 = vmatpush3.bf16.msra.mxu0 %v20417_v39  ;;  %v30636_v39 = vand.u32 4294901760, %v27279_v45  ;;  %v27720_v45 = vld [vmem:[#allocation5 + $0xe00] sm:$0xff] }
 0x566   :  { %20442 = vmatpush3.bf16.msra.mxu1 %v30632_v11  ;;  %20420 = vmatprep.subr.bf16.mxu0 %v20419_v61  ;;  %v29517_v23 = vand.u32 4294901760, %v27720_v45 }
 0x567   :  { %20444 = vmatprep.subr.bf16.mxu1 %v30635_v34  ;;  %v20457_v48 = vpack.c.bf16 %v30637_v59, %v30636_v39  ;;  %v20461_v59 = vpack.c.bf16 %v30641_v1, %v30640_v41  ;;  %v27735_v39 = vsub.f32 %v27701_v10, %v12724_v21 }
 0x568   :  { %v16848_v28 = vpop.f32.mrb[66].mxu1 }
 0x569   :  { %v16849_v22 = vpop.f32.mrb[67].mxu1  ;;  %20422 = vmatpush3.bf16.msra.mxu0 %v20421_v19  ;;  %v12727_v19 = vand.u32 4294901760, %v27703_v62 }
 0x56a   :  { %v16850_v61 = vadd.f32 %v16849_v22, %v16848_v28  ;;  %20446 = vmatpush3.bf16.msra.mxu1 %v27511_v63  ;;  %20456 = vmatprep.subr.bf16.mxu0 %v20455_v55  ;;  %v27727_v55 = vld [vmem:[#allocation5 + $0xe08] sm:$0xff]  ;;  %v30644_v28 = vand.u32 4294901760, %v27380_v25  ;;  %v30646_v25 = vand.u32 4294901760, %v27401_v32  ;;  %v539_v32 = vld [vmem:[#allocation5 + $0xe18] sm:$0xff] }
 0x56b   :  { %20448 = vmatprep.subr.bf16.mxu1 %v27532_v44  ;;  %v27739_v33 = vsub.f32 %v27703_v62, %v12727_v19  ;;  %v12679_v29 = vand.u32 4294901760, %v27727_v55  ;;  %v30647_v62 = vand.u32 4294901760, %v27420_v30  ;;  %v30655_v30 = vand.u32 4294901760, %v27493_v40 }
 0x56c   :  { %v27717_v27 = vadd.f32 %v16850_v61, %v10198_v7  ;;  %12290 = vmatmul.mubr.f32.vlgmr.msra.gmra.mrb[80].mxu0 %v27587_v26  ;;  %v30643_v7 = vand.u32 4294901760, %v27378_v5  ;;  %v27744_v61 = vld [vmem:[#allocation5 + $0xe98] sm:$0xff]  ;;  %v30645_v5 = vand.u32 4294901760, %v27399_v58  ;;  %v27763_v58 = vsub.f32 %v27720_v45, %v29517_v23 }
 0x56d   :  { %20458 = vmatpush3.bf16.msra.mxu0 %v20457_v48  ;;  %12564 = vmatprep.mubr.f32.mxu0 %v30642_v42  ;;  %v27742_v48 = vld [vmem:[#allocation5 + $0xe90] sm:$0xff]  ;;  %v12733_v1 = vand.u32 4294901760, %v27744_v61  ;;  %v30654_v23 = vand.u32 4294901760, %v27473_v4 }
 0x56e   :  { %20450 = vmatpush3.bf16.msra.mxu1 %v27590_v12  ;;  %20460 = vmatprep.subr.bf16.mxu0 %v20459_v20  ;;  %v20463_v22 = vpack.c.bf16 %v30644_v28, %v30643_v7  ;;  %v20465_v10 = vpack.c.bf16 %v30646_v25, %v30645_v5  ;;  %v20467_v20 = vpack.c.bf16 %v30648_v31, %v30647_v62  ;;  %v12730_v41 = vand.u32 4294901760, %v27742_v48  ;;  %v538_v7 = vld [vmem:[#allocation5 + $0xe10] sm:$0xff] }
 0x56f   :  { %20452 = vmatprep.subr.bf16.mxu1 %v27616_v57  ;;  %v30650_v28 = vand.u32 4294901760, %v30620_v54  ;;  %v30651_v5 = vand.u32 4294901760, %v27447_v8  ;;  %v30652_v25 = vand.u32 4294901760, %v27468_v9  ;;  %v30653_v31 = vand.u32 4294901760, %v27587_v26  ;;  %v556_v26 = vld [vmem:[#allocation5 + $0xea0] sm:$0xff] }
 0x570   :  { %v20473_v43 = vpack.c.bf16 %v30655_v30, %v30654_v23  ;;  %v30656_v54 = vand.u32 4294901760, %v27500_v13  ;;  %v30658_v9 = vand.u32 4294901760, %v27513_v36  ;;  %v27795_v4 = vsub.f32 %v27742_v48, %v12730_v41 }
 0x571   :  { %20462 = vmatpush3.bf16.msra.mxu0 %v20461_v59  ;;  %v29522_v59 = vand.u32 4294901760, %v27735_v39  ;;  %v20471_v62 = vpack.c.bf16 %v30652_v25, %v30651_v5  ;;  %v12682_v5 = vand.u32 4294901760, %v538_v7  ;;  %v27798_v40 = vsub.f32 %v27744_v61, %v12733_v1 }
 0x572   :  { %20454 = vmatpush3.bf16.msra.mxu1 %v27640_v35  ;;  %20464 = vmatprep.subr.bf16.mxu0 %v20463_v22  ;;  %v20469_v22 = vpack.c.bf16 %v30650_v28, %v30649_v38  ;;  %v30657_v38 = vand.u32 4294901760, %v30624_v60  ;;  %v30659_v28 = vand.u32 4294901760, %v30626_v0  ;;  %v12685_v13 = vand.u32 4294901760, %v539_v32  ;;  %v557_v60 = vld [vmem:[#allocation5 + $0xea8] sm:$0xff] }
 0x573   :  { %20488 = vmatprep.subr.bf16.mxu1 %v27349_v51  ;;  %v27775_v51 = vsub.f32 %v27727_v55, %v12679_v29  ;;  %v12903_v36 = vsub.f32 %v27735_v39, %v29522_v59  ;;  %v85_v0 = vld [vmem:[#allocation2 + $0xe8] sm:$0xff]  ;;  %v30660_v23 = vand.u32 4294901760, %v30628_v37  ;;  %v30662_v48 = vand.u32 4294901760, %v27567_v53 }
 0x574   :  { %v20475_v8 = vpack.c.bf16 %v30657_v38, %v30656_v54  ;;  %v27791_v55 = vpack.c.bf16 %v30659_v28, %v30658_v9  ;;  %v30663_v61 = vand.u32 4294901760, %v27574_v47  ;;  %v30664_v30 = vand.u32 4294901760, %v27739_v33  ;;  %v541_v9 = vld [vmem:[#allocation5 + $0xe28] sm:$0xff] }
 0x575   :  { %12398 = vmatmul.mubr.f32.vlgmr.msra.gmra.mrb[80].mxu1 %v30653_v31  ;;  %20466 = vmatpush3.bf16.msra.mxu0 %v20465_v10  ;;  %v30665_v37 = vand.u32 4294901760, %v27580_v16  ;;  %v30667_v53 = vand.u32 4294901760, %v27604_v14  ;;  %v30668_v47 = vand.u32 4294901760, %v27607_v46  ;;  %v27833_v38 = vpack.c.bf16 %v12727_v19, %v12724_v21 }
 0x576   :  { %20490 = vmatpush3.bf16.msra.mxu1 %v30621_v50  ;;  %20468 = vmatprep.subr.bf16.mxu0 %v20467_v20  ;;  %v30661_v50 = vand.u32 4294901760, %v27538_v52  ;;  %v27814_v20 = vpack.c.bf16 %v30663_v61, %v30662_v48  ;;  %v12910_v25 = vsub.f32 %v27739_v33, %v30664_v30  ;;  %v30666_v52 = vand.u32 4294901760, %v27583_v3 }
 0x577   :  { %20492 = vmatprep.subr.bf16.mxu1 %v30622_v2  ;;  %12668 = vmatprep.mubr.f32.mxu1 %v30642_v42  ;;  %v29521_v2 = vand.u32 4294901760, %v27763_v58  ;;  %v27831_v54 = vpack.c.bf16 %v30668_v47, %v30667_v53  ;;  %v540_v42 = vld [vmem:[#allocation5 + $0xe20] sm:$0xff]  ;;  %v29520_v28 = vand.u32 4294901760, %v27775_v51  ;;  %v12736_v16 = vand.u32 4294901760, %v556_v26  ;;  %v559_v53 = vld [vmem:[#allocation5 + $0xeb8] sm:$0xff] }
 0x578   :  { %v27808_v10 = vpack.c.bf16 %v30661_v50, %v30660_v23  ;;  %v27825_v31 = vpack.c.bf16 %v30666_v52, %v30665_v37  ;;  %v27836_v23 = vsub.f32 %v538_v7, %v12682_v5  ;;  %v12739_v50 = vand.u32 4294901760, %v557_v60  ;;  %v558_v52 = vld [vmem:[#allocation5 + $0xeb0] sm:$0xff] }
 0x579   :  { %20470 = vmatpush3.bf16.msra.mxu0 %v20469_v22  ;;  %v27838_v3 = vand.u32 4294901760, %v85_v0  ;;  %v27841_v14 = vsub.f32 %v539_v32, %v12685_v13  ;;  %v12904_v46 = vand.u32 4294901760, %v12903_v36  ;;  %v29519_v21 = vand.u32 4294901760, %v27795_v4 }
 0x57a   :  { %20494 = vmatpush3.bf16.msra.mxu1 %v27371_v49  ;;  %20472 = vmatprep.subr.bf16.mxu0 %v20471_v62  ;;  %v29518_v19 = vand.u32 4294901760, %v27798_v40  ;;  %v12911_v48 = vand.u32 4294901760, %v12910_v25  ;;  %v12688_v22 = vand.u32 4294901760, %v540_v42  ;;  %v12691_v7 = vand.u32 4294901760, %v541_v9 }
 0x57b   :  { %30669 = vst [vmem:[#allocation26_spill] sm:$0xff] %v27838_v3  ;;  %20496 = vmatprep.subr.bf16.mxu1 %v30625_v17  ;;  %v12791_v61 = vsub.f32 %v27763_v58, %v29521_v2  ;;  %v30670_v30 = vand.u32 4294901760, %v27720_v45  ;;  %v27853_v32 = vpack.c.bf16 %v12733_v1, %v12730_v41  ;;  %v27855_v62 = vpack.c.bf16 %v12685_v13, %v12682_v5  ;;  %v542_v1 = vld [vmem:[#allocation5 + $0xe30] sm:$0xff] }
 0x57c   :  { %v12798_v36 = vsub.f32 %v27775_v51, %v29520_v28  ;;  %v27860_v17 = vpack.c.bf16 %v12739_v50, %v12736_v16  ;;  %v27862_v25 = vsub.f32 %v556_v26, %v12736_v16  ;;  %v27864_v37 = vsub.f32 %v557_v60, %v12739_v50  ;;  %v561_v28 = vld [vmem:[#allocation5 + $0xec8] sm:$0xff] }
 0x57d   :  { %v27851_v49 = vpack.c.bf16 %v12679_v29, %v30670_v30  ;;  %30672 = vst [vmem:[#allocation28_spill] sm:$0xff] %v27853_v32  ;;  %20474 = vmatpush3.bf16.msra.mxu0 %v20473_v43  ;;  %v27867_v45 = vsub.f32 %v85_v0, %v27838_v3  ;;  %v12917_v29 = vsub.f32 %v27795_v4, %v29519_v21  ;;  %v543_v43 = vld [vmem:[#allocation5 + $0xe38] sm:$0xff]  ;;  %v29524_v5 = vand.u32 4294901760, %v27836_v23  ;;  %v560_v21 = vld [vmem:[#allocation5 + $0xec0] sm:$0xff] }
 0x57e   :  { %30673 = vst [vmem:[#allocation29_spill] sm:$0xff] %v27860_v17  ;;  %20498 = vmatpush3.bf16.msra.mxu1 %v30627_v24  ;;  %20476 = vmatprep.subr.bf16.mxu0 %v20475_v8  ;;  %v12924_v41 = vsub.f32 %v27798_v40, %v29518_v19  ;;  %v29523_v13 = vand.u32 4294901760, %v27841_v14  ;;  %v27879_v60 = vpack.c.bf16 %v12911_v48, %v12904_v46  ;;  %v12792_v0 = vand.u32 4294901760, %v12791_v61 }
 0x57f   :  { %30671 = vst [vmem:[#allocation17_spill] sm:$0xff] %v27851_v49  ;;  %v16883_v26 = vpop.f32.mrb[68].mxu0  ;;  %20500 = vmatprep.subr.bf16.mxu1 %v30629_v15  ;;  %v27881_v24 = vpack.c.bf16 %v12691_v7, %v12688_v22  ;;  %v27883_v8 = vsub.f32 %v540_v42, %v12688_v22  ;;  %v27885_v16 = vsub.f32 %v541_v9, %v12691_v7  ;;  %v12799_v50 = vand.u32 4294901760, %v12798_v36 }
 0x580   :  { %v16884_v47 = vpop.f32.mrb[69].mxu0  ;;  %v12742_v30 = vand.u32 4294901760, %v558_v52  ;;  %v12745_v19 = vand.u32 4294901760, %v559_v53  ;;  %v12694_v59 = vand.u32 4294901760, %v542_v1  ;;  %v12697_v15 = vand.u32 4294901760, %v543_v43 }
 0x581   :  { %30674 = vst [vmem:[#allocation22_spill] sm:$0xff] %v27881_v24  ;;  %v16885_v2 = vadd.f32 %v16884_v47, %v16883_v26  ;;  %20478 = vmatpush3.bf16.msra.mxu0 %v27791_v55  ;;  %v29528_v46 = vand.u32 4294901760, %v27867_v45  ;;  %v12918_v42 = vand.u32 4294901760, %v12917_v29  ;;  %v12925_v48 = vand.u32 4294901760, %v12924_v41 }
 0x582   :  { %20502 = vmatpush3.bf16.msra.mxu1 %v30630_v56  ;;  %20480 = vmatprep.subr.bf16.mxu0 %v27808_v10  ;;  %v12805_v9 = vsub.f32 %v27836_v23, %v29524_v5  ;;  %v12812_v22 = vsub.f32 %v27841_v14, %v29523_v13  ;;  %v12748_v7 = vand.u32 4294901760, %v560_v21  ;;  %v12751_v61 = vand.u32 4294901760, %v561_v28 }
 0x583   :  { %v10568_v55 = vadd.f32 %v16885_v2, %v27717_v27  ;;  %20504 = vmatprep.subr.bf16.mxu1 %v30631_v6  ;;  %v29526_v56 = vand.u32 4294901760, %v27862_v25  ;;  %v27900_v36 = vpack.c.bf16 %v12799_v50, %v12792_v0  ;;  %v27902_v10 = vpack.c.bf16 %v12745_v19, %v12742_v30  ;;  %v544_v27 = vld [vmem:[#allocation5 + $0xe40] sm:$0xff]  ;;  %v545_v6 = vld [vmem:[#allocation5 + $0xe48] sm:$0xff] }
 0x584   :  { %v27904_v29 = vsub.f32 %v558_v52, %v12742_v30  ;;  %v29525_v41 = vand.u32 4294901760, %v27864_v37  ;;  %v27908_v26 = vsub.f32 %v559_v53, %v12745_v19  ;;  %v27910_v47 = vpack.c.bf16 %v12697_v15, %v12694_v59 }
 0x585   :  { %30675 = vst [vmem:[#allocation20_spill] sm:$0xff] %v27902_v10  ;;  %20482 = vmatpush3.bf16.msra.mxu0 %v27814_v20  ;;  %v29527_v2 = vand.u32 4294901760, %v27883_v8  ;;  %v12774_v0 = vsub.f32 %v27867_v45, %v29528_v46  ;;  %v27918_v52 = vsub.f32 %v542_v1, %v12694_v59  ;;  %v27920_v50 = vsub.f32 %v543_v43, %v12697_v15  ;;  %v562_v15 = vld [vmem:[#allocation5 + $0xed0] sm:$0xff] }
 0x586   :  { %30676 = vst [vmem:[#allocation21_spill] sm:$0xff] %v27910_v47  ;;  %20506 = vmatpush3.bf16.msra.mxu1 %v30632_v11  ;;  %20484 = vmatprep.subr.bf16.mxu0 %v27825_v31  ;;  %v12806_v20 = vand.u32 4294901760, %v12805_v9  ;;  %v29529_v19 = vand.u32 4294901760, %v27885_v16  ;;  %v27924_v53 = vpack.c.bf16 %v12925_v48, %v12918_v42  ;;  %v12813_v30 = vand.u32 4294901760, %v12812_v22  ;;  %v563_v48 = vld [vmem:[#allocation5 + $0xed8] sm:$0xff]  ;;  %v546_v9 = vld [vmem:[#allocation5 + $0xe50] sm:$0xff] }
 0x587   :  { %30677 = vst [vmem:[#allocation23_spill] sm:$0xff] %v27918_v52  ;;  %30678 = vst [vmem:[#allocation19_spill] sm:$0xff] %v27920_v50  ;;  %20508 = vmatprep.subr.bf16.mxu1 %v30635_v34  ;;  %v27926_v13 = vpack.c.bf16 %v12751_v61, %v12748_v7  ;;  %v12931_v11 = vsub.f32 %v27862_v25, %v29526_v56  ;;  %v27931_v31 = vsub.f32 %v560_v21, %v12748_v7 }
 0x588   :  { %v16918_v5 = vpop.f32.mrb[68].mxu1  ;;  %v12938_v59 = vsub.f32 %v27864_v37, %v29525_v41  ;;  %v12700_v1 = vand.u32 4294901760, %v544_v27  ;;  %v12703_v43 = vand.u32 4294901760, %v545_v6  ;;  %v12819_v42 = vsub.f32 %v27883_v8, %v29527_v2 }
 0x589   :  { %30679 = vst [vmem:[#allocation18_spill] sm:$0xff] %v27926_v13  ;;  %v16919_v34 = vpop.f32.mrb[69].mxu1  ;;  %20486 = vmatpush3.bf16.msra.mxu0 %v27831_v54  ;;  %v12775_v22 = vand.u32 4294901760, %v12774_v0  ;;  %v12826_v41 = vsub.f32 %v27885_v16, %v29529_v19  ;;  %v27950_v2 = vpack.c.bf16 %v12813_v30, %v12806_v20  ;;  %v27952_v46 = vsub.f32 %v561_v28, %v12751_v61  ;;  %v547_v54 = vld [vmem:[#allocation5 + $0xe58] sm:$0xff] }
 0x58a   :  { %v16920_v7 = vadd.f32 %v16919_v34, %v16918_v5  ;;  %20510 = vmatpush3.bf16.msra.mxu1 %v27511_v63  ;;  %20520 = vmatprep.subr.bf16.mxu0 %v27833_v38  ;;  %v12932_v0 = vand.u32 4294901760, %v12931_v11  ;;  %v12754_v5 = vand.u32 4294901760, %v562_v15  ;;  %v12939_v63 = vand.u32 4294901760, %v12938_v59 }
 0x58b   :  { %20512 = vmatprep.subr.bf16.mxu1 %v27532_v44  ;;  %v27957_v21 = vsub.f32 %v544_v27, %v12700_v1  ;;  %v12757_v19 = vand.u32 4294901760, %v563_v48  ;;  %v27960_v56 = vpack.c.bf16 %v12703_v43, %v12700_v1  ;;  %v30681_v44 = vand.u32 4294901760, %v27904_v29 }
 0x58c   :  { %v27954_v34 = vadd.f32 %v16920_v7, %v10568_v55  ;;  %12566 = vmatmul.mubr.f32.vlgmr.msra.gmra.mrb[82].mxu0 %v27564_v18  ;;  %v30682_v61 = vand.u32 4294901760, %v27908_v26  ;;  %v12820_v27 = vand.u32 4294901760, %v12819_v42  ;;  %v12827_v20 = vand.u32 4294901760, %v12826_v41  ;;  %v564_v7 = vld [vmem:[#allocation5 + $0xee0] sm:$0xff] }
 0x58d   :  { %20522 = vmatpush3.bf16.msra.mxu0 %v27851_v49  ;;  %30680 = vst [vmem:[#allocation16_spill] sm:$0xff] %v27960_v56  ;;  %v12945_v28 = vsub.f32 %v27904_v29, %v30681_v44  ;;  %12776 = vmatprep.mubr.f32.mxu0 %v12775_v22  ;;  %v30683_v30 = vand.u32 4294901760, %v27918_v52  ;;  %v30684_v59 = vand.u32 4294901760, %v27920_v50  ;;  %v565_v44 = vld [vmem:[#allocation5 + $0xee8] sm:$0xff]  ;;  %v12706_v22 = vand.u32 4294901760, %v546_v9 }
 0x58e   :  { %v12952_v55 = vsub.f32 %v27908_v26, %v30682_v61  ;;  %20514 = vmatpush3.bf16.msra.mxu1 %v27590_v12  ;;  %20524 = vmatprep.subr.bf16.mxu0 %v27853_v32  ;;  %v27977_v61 = vsub.f32 %v545_v6, %v12703_v43  ;;  %v12709_v12 = vand.u32 4294901760, %v547_v54  ;;  %v29538_v32 = vand.u32 4294901760, %v27931_v31 }
 0x58f   :  { %v12833_v11 = vsub.f32 %v27918_v52, %v30683_v30  ;;  %v12840_v1 = vsub.f32 %v27920_v50, %v30684_v59  ;;  %20516 = vmatprep.subr.bf16.mxu1 %v27616_v57  ;;  %v27980_v42 = vpack.c.bf16 %v12939_v63, %v12932_v0  ;;  %v27982_v41 = vpack.c.bf16 %v12757_v19, %v12754_v5 }
 0x590   :  { %v27984_v49 = vsub.f32 %v562_v15, %v12754_v5  ;;  %v27986_v30 = vsub.f32 %v563_v48, %v12757_v19  ;;  %v12946_v59 = vand.u32 4294901760, %v12945_v28  ;;  %v12953_v50 = vand.u32 4294901760, %v12952_v55  ;;  %v548_v15 = vld [vmem:[#allocation5 + $0xe60] sm:$0xff] }
 0x591   :  { %30685 = vst [vmem:[#allocation24_spill] sm:$0xff] %v27982_v41  ;;  %20526 = vmatpush3.bf16.msra.mxu0 %v27855_v62  ;;  %v12760_v52 = vand.u32 4294901760, %v564_v7  ;;  %v12763_v57 = vand.u32 4294901760, %v565_v44  ;;  %v27991_v6 = vpack.c.bf16 %v12827_v20, %v12820_v27  ;;  %v12834_v43 = vand.u32 4294901760, %v12833_v11  ;;  %v28008_v20 = vld [vmem:[#allocation5 + $0xef0] sm:$0xff]  ;;  %v28010_v11 = vld [vmem:[#allocation5 + $0xef8] sm:$0xff] }
 0x592   :  { %30686 = vst [vmem:[#allocation30_spill] sm:$0xff] %v27986_v30  ;;  %20518 = vmatpush3.bf16.msra.mxu1 %v27640_v35  ;;  %20528 = vmatprep.subr.bf16.mxu0 %v27860_v17  ;;  %v12841_v0 = vand.u32 4294901760, %v12840_v1  ;;  %v29539_v63 = vand.u32 4294901760, %v27952_v46  ;;  %v27995_v19 = vpack.c.bf16 %v12709_v12, %v12706_v22  ;;  %v27997_v48 = vsub.f32 %v546_v9, %v12706_v22  ;;  %v549_v35 = vld [vmem:[#allocation5 + $0xe68] sm:$0xff] }
 0x593   :  { %20552 = vmatprep.subr.bf16.mxu1 %v27879_v60  ;;  %v28002_v5 = vsub.f32 %v27931_v31, %v29538_v32  ;;  %v28005_v55 = vsub.f32 %v547_v54, %v12709_v12  ;;  %v29546_v60 = vand.u32 4294901760, %v27984_v49  ;;  %v20563_v1 = vpack.c.bf16 %v12953_v50, %v12946_v59  ;;  %v84_v12 = vld [vmem:[#allocation2 + $0xe0] sm:$0xff] }
 0x594   :  { %v28016_v22 = vpack.c.bf16 %v12763_v57, %v12760_v52  ;;  %v28018_v32 = vsub.f32 %v564_v7, %v12760_v52  ;;  %v12712_v54 = vand.u32 4294901760, %v548_v15  ;;  %v20565_v27 = vpack.c.bf16 %v12841_v0, %v12834_v43  ;;  %v28034_v43 = vld [vmem:[#allocation5 + $0xe70] sm:$0xff] }
 0x595   :  { %30687 = vst [vmem:[#allocation27_spill] sm:$0xff] %v28005_v55  ;;  %12670 = vmatmul.mubr.f32.vlgmr.msra.gmra.mrb[82].mxu1 %v27564_v18  ;;  %20530 = vmatpush3.bf16.msra.mxu0 %v27881_v24  ;;  %v28022_v28 = vsub.f32 %v565_v44, %v12763_v57  ;;  %v12966_v18 = vsub.f32 %v27952_v46, %v29539_v63  ;;  %v12715_v9 = vand.u32 4294901760, %v549_v35  ;;  %v12960_v50 = vand.u32 4294901760, %v28002_v5  ;;  %v28036_v44 = vld [vmem:[#allocation5 + $0xe78] sm:$0xff] }
 0x596   :  { %30688 = vst [vmem:[#allocation25_spill] sm:$0xff] %v28018_v32  ;;  %20554 = vmatpush3.bf16.msra.mxu1 %v27900_v36  ;;  %20532 = vmatprep.subr.bf16.mxu0 %v27902_v10  ;;  %v30689_v52 = vand.u32 4294901760, %v27957_v21  ;;  %v12766_v36 = vand.u32 4294901760, %v28008_v20  ;;  %v12769_v59 = vand.u32 4294901760, %v28010_v11  ;;  %v30690_v57 = vand.u32 4294901760, %v27977_v61 }
 0x597   :  { %20556 = vmatprep.subr.bf16.mxu1 %v27924_v53  ;;  %13012 = vmatprep.mubr.f32.mxu1 %v27838_v3  ;;  %v12973_v0 = vsub.f32 %v27984_v49, %v29546_v60  ;;  %v30691_v5 = vand.u32 4294901760, %v27986_v30  ;;  %v28048_v63 = vand.u32 4294901760, %v84_v12  ;;  %v28051_v10 = vsub.f32 %v548_v15, %v12712_v54 }
 0x598   :  { %v12847_v7 = vsub.f32 %v27957_v21, %v30689_v52  ;;  %v12854_v53 = vsub.f32 %v27977_v61, %v30690_v57  ;;  %v12967_v60 = vand.u32 4294901760, %v12966_v18  ;;  %v28058_v17 = vsub.f32 %v549_v35, %v12715_v9 }
 0x599   :  { %v12980_v52 = vsub.f32 %v27986_v30, %v30691_v5  ;;  %20534 = vmatpush3.bf16.msra.mxu0 %v27910_v47  ;;  %v12718_v5 = vand.u32 4294901760, %v28034_v43  ;;  %v12721_v30 = vand.u32 4294901760, %v28036_v44  ;;  %v28064_v3 = vsub.f32 %v28008_v20, %v12766_v36 }
 0x59a   :  { %20558 = vmatpush3.bf16.msra.mxu1 %v27950_v2  ;;  %20536 = vmatprep.subr.bf16.mxu0 %v27926_v13  ;;  %v12848_v15 = vand.u32 4294901760, %v12847_v7  ;;  %v28067_v24 = vsub.f32 %v28010_v11, %v12769_v59  ;;  %v12855_v57 = vand.u32 4294901760, %v12854_v53  ;;  %v12974_v13 = vand.u32 4294901760, %v12973_v0 }
 0x59b   :  { %20560 = vmatprep.subr.bf16.mxu1 %v27980_v42  ;;  %v12981_v18 = vand.u32 4294901760, %v12980_v52  ;;  %v28071_v35 = vsub.f32 %v84_v12, %v28048_v63  ;;  %v28074_v47 = vpack.c.bf16 %v12715_v9, %v12712_v54  ;;  %v30692_v42 = vand.u32 4294901760, %v27997_v48 }
 0x59c   :  { %v30693_v7 = vand.u32 4294901760, %v28005_v55  ;;  %v30694_v2 = vand.u32 4294901760, %v28018_v32  ;;  %v28088_v12 = vsub.f32 %v28034_v43, %v12718_v5  ;;  %v28091_v9 = vsub.f32 %v28036_v44, %v12721_v30 }
 0x59d   :  { %20538 = vmatpush3.bf16.msra.mxu0 %v27960_v56  ;;  %v12861_v20 = vsub.f32 %v27997_v48, %v30692_v42  ;;  %v29566_v0 = vand.u32 4294901760, %v28058_v17  ;;  %v20567_v42 = vpack.c.bf16 %v12967_v60, %v12960_v50  ;;  %v20569_v56 = vpack.c.bf16 %v12855_v57, %v12848_v15 }
 0x59e   :  { %v12868_v11 = vsub.f32 %v28005_v55, %v30693_v7  ;;  %v12987_v53 = vsub.f32 %v28018_v32, %v30694_v2  ;;  %20562 = vmatpush3.bf16.msra.mxu1 %v27991_v6  ;;  %20540 = vmatprep.subr.bf16.mxu0 %v27982_v41  ;;  %v30695_v7 = vand.u32 4294901760, %v28022_v28  ;;  %v29565_v6 = vand.u32 4294901760, %v28064_v3 }
 0x59f   :  { %v16953_v52 = vpop.f32.mrb[70].mxu0  ;;  %20564 = vmatprep.subr.bf16.mxu1 %v20563_v1  ;;  %v28100_v32 = vpack.c.bf16 %v12769_v59, %v12766_v36  ;;  %v20571_v44 = vpack.c.bf16 %v12981_v18, %v12974_v13  ;;  %v29567_v54 = vand.u32 4294901760, %v28071_v35  ;;  %v12862_v1 = vand.u32 4294901760, %v12861_v20 }
 0x5a0   :  { %v12994_v2 = vsub.f32 %v28022_v28, %v30695_v7  ;;  %v16954_v43 = vpop.f32.mrb[71].mxu0  ;;  %v12869_v60 = vand.u32 4294901760, %v12868_v11  ;;  %v12988_v50 = vand.u32 4294901760, %v12987_v53  ;;  %v30696_v7 = vand.u32 4294901760, %v28051_v10 }
 0x5a1   :  { %v16955_v55 = vadd.f32 %v16954_v43, %v16953_v52  ;;  %20542 = vmatpush3.bf16.msra.mxu0 %v27995_v19  ;;  %v12882_v36 = vsub.f32 %v28058_v17, %v29566_v0  ;;  %v29563_v13 = vand.u32 4294901760, %v28088_v12  ;;  %v29564_v59 = vand.u32 4294901760, %v28091_v9 }
 0x5a2   :  { %20566 = vmatpush3.bf16.msra.mxu1 %v20565_v27  ;;  %20544 = vmatprep.subr.bf16.mxu0 %v28016_v22  ;;  %v12875_v41 = vsub.f32 %v28051_v10, %v30696_v7  ;;  %v12995_v15 = vand.u32 4294901760, %v12994_v2  ;;  %v13001_v27 = vsub.f32 %v28064_v3, %v29565_v6  ;;  %v30697_v18 = vand.u32 4294901760, %v28067_v24 }
 0x5a3   :  { %v10844_v57 = vadd.f32 %v16955_v55, %v27954_v34  ;;  %20568 = vmatprep.subr.bf16.mxu1 %v20567_v42  ;;  %v12780_v11 = vsub.f32 %v28071_v35, %v29567_v54  ;;  %v28124_v53 = vpack.c.bf16 %v12721_v30, %v12718_v5  ;;  %v20573_v52 = vpack.c.bf16 %v12869_v60, %v12862_v1 }
 0x5a4   :  { %v13008_v20 = vsub.f32 %v28067_v24, %v30697_v18  ;;  %v20583_v34 = vpack.c.bf16 %v27739_v33, %v27735_v39  ;;  %v12876_v55 = vand.u32 4294901760, %v12875_v41  ;;  %v12883_v42 = vand.u32 4294901760, %v12882_v36 }
 0x5a5   :  { %20546 = vmatpush3.bf16.msra.mxu0 %v28074_v47  ;;  %v12889_v2 = vsub.f32 %v28088_v12, %v29563_v13  ;;  %v12896_v43 = vsub.f32 %v28091_v9, %v29564_v59  ;;  %v20575_v30 = vpack.c.bf16 %v12995_v15, %v12988_v50  ;;  %v13002_v5 = vand.u32 4294901760, %v13001_v27 }
 0x5a6   :  { %20570 = vmatpush3.bf16.msra.mxu1 %v20569_v56  ;;  %20548 = vmatprep.subr.bf16.mxu0 %v28100_v32  ;;  %v13009_v1 = vand.u32 4294901760, %v13008_v20  ;;  %v12781_v7 = vand.u32 4294901760, %v12780_v11  ;;  %v20585_v56 = vpack.c.bf16 %v27775_v51, %v27763_v58  ;;  %v20587_v41 = vpack.c.bf16 %v27798_v40, %v27795_v4 }
 0x5a7   :  { %20572 = vmatprep.subr.bf16.mxu1 %v20571_v44  ;;  %v20577_v13 = vpack.c.bf16 %v12883_v42, %v12876_v55  ;;  %v12890_v59 = vand.u32 4294901760, %v12889_v2  ;;  %v12897_v44 = vand.u32 4294901760, %v12896_v43  ;;  %v20589_v27 = vpack.c.bf16 %v27841_v14, %v27836_v23  ;;  %v30700_v55 = vld [vmem:[#allocation17_spill] sm:$0xff]  ;;  %v30701_v2 = vld [vmem:[#allocation28_spill] sm:$0xff] }
 0x5a8   :  { %v16988_v60 = vpop.f32.mrb[70].mxu1  ;;  %v20579_v50 = vpack.c.bf16 %v13009_v1, %v13002_v5  ;;  %v20591_v11 = vpack.c.bf16 %v27864_v37, %v27862_v25  ;;  %v20599_v42 = vpack.c.bf16 %v27952_v46, %v27931_v31  ;;  %v30702_v43 = vand.u32 4294901760, %v27867_v45  ;;  %v30703_v5 = vld [vmem:[#allocation30_spill] sm:$0xff] }
 0x5a9   :  { %v16989_v18 = vpop.f32.mrb[71].mxu1  ;;  %20550 = vmatpush3.bf16.msra.mxu0 %v28124_v53  ;;  %v20581_v20 = vpack.c.bf16 %v12897_v44, %v12890_v59  ;;  %v30699_v59 = vld [vmem:[#allocation19_spill] sm:$0xff]  ;;  %v20603_v1 = vpack.c.bf16 %v30703_v5, %v27984_v49  ;;  %v30708_v44 = vld [vmem:[#allocation20_spill] sm:$0xff]  ;;  %v30716_v6 = vand.u32 4294901760, %v27775_v51  ;;  %v30719_v51 = vand.u32 4294901760, %v27836_v23 }
 0x5aa   :  { %v16990_v36 = vadd.f32 %v16989_v18, %v16988_v60  ;;  %20574 = vmatpush3.bf16.msra.mxu1 %v20573_v52  ;;  %20584 = vmatprep.subr.bf16.mxu0 %v20583_v34  ;;  %v20593_v52 = vpack.c.bf16 %v27885_v16, %v27883_v8  ;;  %v30704_v60 = vld [vmem:[#allocation29_spill] sm:$0xff] }
 0x5ab   :  { %20576 = vmatprep.subr.bf16.mxu1 %v20575_v30  ;;  %v20601_v30 = vpack.c.bf16 %v27977_v61, %v27957_v21 }
 0x5ac   :  { %v10948_v15 = vadd.f32 %v16990_v36, %v10844_v57  ;;  %12782 = vmatmul.mubr.f32.vlgmr.msra.gmra.mrb[84].mxu0 %v12781_v7  ;;  %v20595_v57 = vpack.c.bf16 %v27908_v26, %v27904_v29  ;;  %v30705_v7 = vld [vmem:[#allocation27_spill] sm:$0xff] }
 0x5ad   :  { %20586 = vmatpush3.bf16.msra.mxu0 %v20585_v56  ;;  %13149 = vmatprep.mubr.f32.mxu0 %v27867_v45  ;;  %v20605_v18 = vpack.c.bf16 %v30705_v7, %v27997_v48  ;;  %v30706_v56 = vld [vmem:[#allocation22_spill] sm:$0xff]  ;;  %v30707_v45 = vld [vmem:[#allocation25_spill] sm:$0xff] }
 0x5ae   :  { %20578 = vmatpush3.bf16.msra.mxu1 %v20577_v13  ;;  %20588 = vmatprep.subr.bf16.mxu0 %v20587_v41  ;;  %v30698_v13 = vld [vmem:[#allocation23_spill] sm:$0xff]  ;;  %v20607_v41 = vpack.c.bf16 %v28022_v28, %v30707_v45 }
 0x5af   :  { %20580 = vmatprep.subr.bf16.mxu1 %v20579_v50  ;;  %v20597_v34 = vpack.c.bf16 %v30699_v59, %v30698_v13 }
 0x5b1   :  { %20590 = vmatpush3.bf16.msra.mxu0 %v20589_v27 }
 0x5b2   :  { %20582 = vmatpush3.bf16.msra.mxu1 %v20581_v20  ;;  %20592 = vmatprep.subr.bf16.mxu0 %v20591_v11  ;;  %v20609_v20 = vpack.c.bf16 %v28058_v17, %v28051_v10  ;;  %v30709_v11 = vld [vmem:[#allocation21_spill] sm:$0xff] }
 0x5b3   :  { %20616 = vmatprep.subr.bf16.mxu1 %v27833_v38 }
 0x5b5   :  { %13014 = vmatmul.mubr.f32.vlgmr.msra.gmra.mrb[84].mxu1 %v28048_v63  ;;  %20594 = vmatpush3.bf16.msra.mxu0 %v20593_v52  ;;  %v20611_v52 = vpack.c.bf16 %v28067_v24, %v28064_v3 }
 0x5b6   :  { %20618 = vmatpush3.bf16.msra.mxu1 %v30700_v55  ;;  %20596 = vmatprep.subr.bf16.mxu0 %v20595_v57 }
 0x5b7   :  { %20620 = vmatprep.subr.bf16.mxu1 %v30701_v2  ;;  %13256 = vmatprep.mubr.f32.mxu1 %v30702_v43  ;;  %v30711_v43 = vld [vmem:[#allocation16_spill] sm:$0xff] }
 0x5b9   :  { %20598 = vmatpush3.bf16.msra.mxu0 %v20597_v34  ;;  %v30710_v34 = vld [vmem:[#allocation18_spill] sm:$0xff] }
 0x5ba   :  { %20622 = vmatpush3.bf16.msra.mxu1 %v27855_v62  ;;  %20600 = vmatprep.subr.bf16.mxu0 %v20599_v42  ;;  %v20613_v42 = vpack.c.bf16 %v28091_v9, %v28088_v12 }
 0x5bb   :  { %20624 = vmatprep.subr.bf16.mxu1 %v30704_v60 }
 0x5bd   :  { %20602 = vmatpush3.bf16.msra.mxu0 %v20601_v30  ;;  %v30712_v30 = vand.u32 4294901760, %v27735_v39  ;;  %v30717_v39 = vand.u32 4294901760, %v27795_v4  ;;  %v30720_v4 = vand.u32 4294901760, %v27841_v14 }
 0x5be   :  { %20626 = vmatpush3.bf16.msra.mxu1 %v30706_v56  ;;  %20604 = vmatprep.subr.bf16.mxu0 %v20603_v1  ;;  %v30713_v1 = vand.u32 4294901760, %v27739_v33  ;;  %v30718_v33 = vand.u32 4294901760, %v27798_v40  ;;  %v30721_v40 = vld [vmem:[#allocation26_spill] sm:$0xff] }
 0x5bf   :  { %v17023_v36 = vpop.f32.mrb[72].mxu0  ;;  %20628 = vmatprep.subr.bf16.mxu1 %v30708_v44 }
 0x5c0   :  { %v17024_v50 = vpop.f32.mrb[73].mxu0 }
 0x5c1   :  { %v17025_v27 = vadd.f32 %v17024_v50, %v17023_v36  ;;  %20606 = vmatpush3.bf16.msra.mxu0 %v20605_v18  ;;  %v20647_v18 = vpack.c.bf16 %v30713_v1, %v30712_v30  ;;  %v30714_v36 = vld [vmem:[#allocation24_spill] sm:$0xff]  ;;  %v20651_v30 = vpack.c.bf16 %v30718_v33, %v30717_v39  ;;  %v30727_v33 = vand.u32 4294901760, %v27908_v26 }
 0x5c2   :  { %20630 = vmatpush3.bf16.msra.mxu1 %v30709_v11  ;;  %20608 = vmatprep.subr.bf16.mxu0 %v20607_v41  ;;  %v28185_v41 = vld [vmem:[#allocation5 + $0xf80] sm:$0xff]  ;;  %v30728_v26 = vand.u32 4294901760, %v30698_v13 }
 0x5c3   :  { %v11060_v57 = vadd.f32 %v17025_v27, %v10948_v15  ;;  %20632 = vmatprep.subr.bf16.mxu1 %v30710_v34  ;;  %v28187_v15 = vld [vmem:[#allocation5 + $0xf88] sm:$0xff]  ;;  %v13586_v1 = vand.u32 4294901760, %v28185_v41 }
 0x5c5   :  { %20610 = vmatpush3.bf16.msra.mxu0 %v20609_v20  ;;  %v30715_v20 = vand.u32 4294901760, %v27763_v58  ;;  %v28204_v58 = vld [vmem:[#allocation5 + $0xf00] sm:$0xff] }
 0x5c6   :  { %20634 = vmatpush3.bf16.msra.mxu1 %v30711_v43  ;;  %20612 = vmatprep.subr.bf16.mxu0 %v20611_v52  ;;  %v29568_v14 = vand.u32 4294901760, %v28204_v58 }
 0x5c7   :  { %20636 = vmatprep.subr.bf16.mxu1 %v30714_v36  ;;  %v20649_v0 = vpack.c.bf16 %v30716_v6, %v30715_v20  ;;  %v20653_v6 = vpack.c.bf16 %v30720_v4, %v30719_v51  ;;  %v28219_v20 = vsub.f32 %v28185_v41, %v13586_v1 }
 0x5c8   :  { %v17058_v50 = vpop.f32.mrb[72].mxu1 }
 0x5c9   :  { %v17059_v27 = vpop.f32.mrb[73].mxu1  ;;  %20614 = vmatpush3.bf16.msra.mxu0 %v20613_v42  ;;  %v13589_v42 = vand.u32 4294901760, %v28187_v15 }
 0x5ca   :  { %v17060_v52 = vadd.f32 %v17059_v27, %v17058_v50  ;;  %20638 = vmatpush3.bf16.msra.mxu1 %v27995_v19  ;;  %20648 = vmatprep.subr.bf16.mxu0 %v20647_v18  ;;  %v28211_v18 = vld [vmem:[#allocation5 + $0xf08] sm:$0xff]  ;;  %v30723_v50 = vand.u32 4294901760, %v27864_v37  ;;  %v30725_v37 = vand.u32 4294901760, %v27885_v16  ;;  %v571_v16 = vld [vmem:[#allocation5 + $0xf18] sm:$0xff] }
 0x5cb   :  { %20640 = vmatprep.subr.bf16.mxu1 %v28016_v22  ;;  %v28223_v23 = vsub.f32 %v28187_v15, %v13589_v42  ;;  %v13541_v39 = vand.u32 4294901760, %v28211_v18  ;;  %v30726_v15 = vand.u32 4294901760, %v27904_v29  ;;  %v30734_v29 = vand.u32 4294901760, %v27977_v61 }
 0x5cc   :  { %v28201_v54 = vadd.f32 %v17060_v52, %v11060_v57  ;;  %13152 = vmatmul.mubr.f32.vlgmr.msra.gmra.mrb[86].mxu0 %v28071_v35  ;;  %v30722_v57 = vand.u32 4294901760, %v27862_v25  ;;  %v28228_v52 = vld [vmem:[#allocation5 + $0xf98] sm:$0xff]  ;;  %v30724_v25 = vand.u32 4294901760, %v27883_v8  ;;  %v28247_v8 = vsub.f32 %v28204_v58, %v29568_v14 }
 0x5cd   :  { %20650 = vmatpush3.bf16.msra.mxu0 %v20649_v0  ;;  %13426 = vmatprep.mubr.f32.mxu0 %v30721_v40  ;;  %v28226_v0 = vld [vmem:[#allocation5 + $0xf90] sm:$0xff]  ;;  %v13595_v4 = vand.u32 4294901760, %v28228_v52  ;;  %v30733_v14 = vand.u32 4294901760, %v27957_v21 }
 0x5ce   :  { %20642 = vmatpush3.bf16.msra.mxu1 %v28074_v47  ;;  %20652 = vmatprep.subr.bf16.mxu0 %v20651_v30  ;;  %v20655_v27 = vpack.c.bf16 %v30723_v50, %v30722_v57  ;;  %v20657_v41 = vpack.c.bf16 %v30725_v37, %v30724_v25  ;;  %v20659_v30 = vpack.c.bf16 %v30727_v33, %v30726_v15  ;;  %v13592_v51 = vand.u32 4294901760, %v28226_v0  ;;  %v570_v57 = vld [vmem:[#allocation5 + $0xf10] sm:$0xff] }
 0x5cf   :  { %20644 = vmatprep.subr.bf16.mxu1 %v28100_v32  ;;  %v30729_v50 = vand.u32 4294901760, %v30699_v59  ;;  %v30730_v25 = vand.u32 4294901760, %v27931_v31  ;;  %v30731_v37 = vand.u32 4294901760, %v27952_v46  ;;  %v30732_v33 = vand.u32 4294901760, %v28071_v35  ;;  %v588_v35 = vld [vmem:[#allocation5 + $0xfa0] sm:$0xff] }
 0x5d0   :  { %v20665_v13 = vpack.c.bf16 %v30734_v29, %v30733_v14  ;;  %v30735_v59 = vand.u32 4294901760, %v27984_v49  ;;  %v30737_v46 = vand.u32 4294901760, %v27997_v48  ;;  %v28279_v21 = vsub.f32 %v28226_v0, %v13592_v51 }
 0x5d1   :  { %20654 = vmatpush3.bf16.msra.mxu0 %v20653_v6  ;;  %v29573_v6 = vand.u32 4294901760, %v28219_v20  ;;  %v20663_v15 = vpack.c.bf16 %v30731_v37, %v30730_v25  ;;  %v13544_v25 = vand.u32 4294901760, %v570_v57  ;;  %v28282_v61 = vsub.f32 %v28228_v52, %v13595_v4 }
 0x5d2   :  { %20646 = vmatpush3.bf16.msra.mxu1 %v28124_v53  ;;  %20656 = vmatprep.subr.bf16.mxu0 %v20655_v27  ;;  %v20661_v27 = vpack.c.bf16 %v30729_v50, %v30728_v26  ;;  %v30736_v26 = vand.u32 4294901760, %v30703_v5  ;;  %v30738_v50 = vand.u32 4294901760, %v30705_v7  ;;  %v13547_v49 = vand.u32 4294901760, %v571_v16  ;;  %v589_v5 = vld [vmem:[#allocation5 + $0xfa8] sm:$0xff]  ;;  %v87_v7 = vld [vmem:[#allocation2 + $0xf8] sm:$0xff] }
 0x5d3   :  { %20680 = vmatprep.subr.bf16.mxu1 %v27833_v38  ;;  %v28259_v38 = vsub.f32 %v28211_v18, %v13541_v39  ;;  %v13765_v48 = vsub.f32 %v28219_v20, %v29573_v6  ;;  %v30739_v14 = vand.u32 4294901760, %v30707_v45  ;;  %v30741_v0 = vand.u32 4294901760, %v28051_v10 }
 0x5d4   :  { %v20667_v31 = vpack.c.bf16 %v30736_v26, %v30735_v59  ;;  %v28275_v18 = vpack.c.bf16 %v30738_v50, %v30737_v46  ;;  %v30742_v52 = vand.u32 4294901760, %v28058_v17  ;;  %v30743_v29 = vand.u32 4294901760, %v28223_v23  ;;  %v573_v46 = vld [vmem:[#allocation5 + $0xf28] sm:$0xff] }
 0x5d5   :  { %13260 = vmatmul.mubr.f32.vlgmr.msra.gmra.mrb[86].mxu1 %v30732_v33  ;;  %20658 = vmatpush3.bf16.msra.mxu0 %v20657_v41  ;;  %v30744_v45 = vand.u32 4294901760, %v28064_v3  ;;  %v30746_v10 = vand.u32 4294901760, %v28088_v12  ;;  %v30747_v17 = vand.u32 4294901760, %v28091_v9  ;;  %v28317_v26 = vpack.c.bf16 %v13589_v42, %v13586_v1 }
 0x5d6   :  { %20682 = vmatpush3.bf16.msra.mxu1 %v30700_v55  ;;  %20660 = vmatprep.subr.bf16.mxu0 %v20659_v30  ;;  %v30740_v55 = vand.u32 4294901760, %v28022_v28  ;;  %v28298_v30 = vpack.c.bf16 %v30742_v52, %v30741_v0  ;;  %v13772_v37 = vsub.f32 %v28223_v23, %v30743_v29  ;;  %v30745_v28 = vand.u32 4294901760, %v28067_v24 }
 0x5d7   :  { %20684 = vmatprep.subr.bf16.mxu1 %v30701_v2  ;;  %13530 = vmatprep.mubr.f32.mxu1 %v30721_v40  ;;  %v29572_v2 = vand.u32 4294901760, %v28247_v8  ;;  %v28315_v59 = vpack.c.bf16 %v30747_v17, %v30746_v10  ;;  %v572_v40 = vld [vmem:[#allocation5 + $0xf20] sm:$0xff]  ;;  %v29571_v50 = vand.u32 4294901760, %v28259_v38  ;;  %v13598_v3 = vand.u32 4294901760, %v588_v35  ;;  %v591_v10 = vld [vmem:[#allocation5 + $0xfb8] sm:$0xff] }
 0x5d8   :  { %v28292_v41 = vpack.c.bf16 %v30740_v55, %v30739_v14  ;;  %v28309_v33 = vpack.c.bf16 %v30745_v28, %v30744_v45  ;;  %v28320_v14 = vsub.f32 %v570_v57, %v13544_v25  ;;  %v13601_v55 = vand.u32 4294901760, %v589_v5  ;;  %v590_v28 = vld [vmem:[#allocation5 + $0xfb0] sm:$0xff] }
 0x5d9   :  { %20662 = vmatpush3.bf16.msra.mxu0 %v20661_v27  ;;  %v28322_v24 = vand.u32 4294901760, %v87_v7  ;;  %v28325_v12 = vsub.f32 %v571_v16, %v13547_v49  ;;  %v13766_v9 = vand.u32 4294901760, %v13765_v48  ;;  %v29570_v1 = vand.u32 4294901760, %v28279_v21 }
 0x5da   :  { %20686 = vmatpush3.bf16.msra.mxu1 %v27855_v62  ;;  %20664 = vmatprep.subr.bf16.mxu0 %v20663_v15  ;;  %v29569_v42 = vand.u32 4294901760, %v28282_v61  ;;  %v13773_v0 = vand.u32 4294901760, %v13772_v37  ;;  %v13550_v27 = vand.u32 4294901760, %v572_v40  ;;  %v13553_v57 = vand.u32 4294901760, %v573_v46 }
 0x5db   :  { %30748 = vst [vmem:[#allocation23_spill] sm:$0xff] %v28322_v24  ;;  %20688 = vmatprep.subr.bf16.mxu1 %v30704_v60  ;;  %v13653_v52 = vsub.f32 %v28247_v8, %v29572_v2  ;;  %v30749_v29 = vand.u32 4294901760, %v28204_v58  ;;  %v28337_v16 = vpack.c.bf16 %v13595_v4, %v13592_v51  ;;  %v28339_v15 = vpack.c.bf16 %v13547_v49, %v13544_v25  ;;  %v574_v4 = vld [vmem:[#allocation5 + $0xf30] sm:$0xff] }
 0x5dc   :  { %v13660_v48 = vsub.f32 %v28259_v38, %v29571_v50  ;;  %v28344_v60 = vpack.c.bf16 %v13601_v55, %v13598_v3  ;;  %v28346_v37 = vsub.f32 %v588_v35, %v13598_v3  ;;  %v28348_v45 = vsub.f32 %v589_v5, %v13601_v55  ;;  %v593_v50 = vld [vmem:[#allocation5 + $0xfc8] sm:$0xff] }
 0x5dd   :  { %v28335_v62 = vpack.c.bf16 %v13541_v39, %v30749_v29  ;;  %30751 = vst [vmem:[#allocation17_spill] sm:$0xff] %v28337_v16  ;;  %20666 = vmatpush3.bf16.msra.mxu0 %v20665_v13  ;;  %v28351_v58 = vsub.f32 %v87_v7, %v28322_v24  ;;  %v13779_v39 = vsub.f32 %v28279_v21, %v29570_v1  ;;  %v575_v13 = vld [vmem:[#allocation5 + $0xf38] sm:$0xff]  ;;  %v29575_v25 = vand.u32 4294901760, %v28320_v14  ;;  %v592_v1 = vld [vmem:[#allocation5 + $0xfc0] sm:$0xff] }
 0x5de   :  { %30752 = vst [vmem:[#allocation28_spill] sm:$0xff] %v28344_v60  ;;  %20690 = vmatpush3.bf16.msra.mxu1 %v30706_v56  ;;  %20668 = vmatprep.subr.bf16.mxu0 %v20667_v31  ;;  %v13786_v51 = vsub.f32 %v28282_v61, %v29569_v42  ;;  %v29574_v49 = vand.u32 4294901760, %v28325_v12  ;;  %v28363_v5 = vpack.c.bf16 %v13773_v0, %v13766_v9  ;;  %v13654_v7 = vand.u32 4294901760, %v13653_v52 }
 0x5df   :  { %30750 = vst [vmem:[#allocation19_spill] sm:$0xff] %v28335_v62  ;;  %v17093_v35 = vpop.f32.mrb[74].mxu0  ;;  %20692 = vmatprep.subr.bf16.mxu1 %v30708_v44  ;;  %v28365_v56 = vpack.c.bf16 %v13553_v57, %v13550_v27  ;;  %v28367_v31 = vsub.f32 %v572_v40, %v13550_v27  ;;  %v28369_v3 = vsub.f32 %v573_v46, %v13553_v57  ;;  %v13661_v55 = vand.u32 4294901760, %v13660_v48 }
 0x5e0   :  { %v17094_v17 = vpop.f32.mrb[75].mxu0  ;;  %v13604_v29 = vand.u32 4294901760, %v590_v28  ;;  %v13607_v42 = vand.u32 4294901760, %v591_v10  ;;  %v13556_v6 = vand.u32 4294901760, %v574_v4  ;;  %v13559_v44 = vand.u32 4294901760, %v575_v13 }
 0x5e1   :  { %30753 = vst [vmem:[#allocation30_spill] sm:$0xff] %v28365_v56  ;;  %v17095_v2 = vadd.f32 %v17094_v17, %v17093_v35  ;;  %20670 = vmatpush3.bf16.msra.mxu0 %v28275_v18  ;;  %v29579_v9 = vand.u32 4294901760, %v28351_v58  ;;  %v13780_v40 = vand.u32 4294901760, %v13779_v39  ;;  %v13787_v0 = vand.u32 4294901760, %v13786_v51 }
 0x5e2   :  { %20694 = vmatpush3.bf16.msra.mxu1 %v30709_v11  ;;  %20672 = vmatprep.subr.bf16.mxu0 %v28292_v41  ;;  %v13667_v46 = vsub.f32 %v28320_v14, %v29575_v25  ;;  %v13674_v27 = vsub.f32 %v28325_v12, %v29574_v49  ;;  %v13610_v57 = vand.u32 4294901760, %v592_v1  ;;  %v13613_v52 = vand.u32 4294901760, %v593_v50 }
 0x5e3   :  { %v11430_v18 = vadd.f32 %v17095_v2, %v28201_v54  ;;  %20696 = vmatprep.subr.bf16.mxu1 %v30710_v34  ;;  %v29577_v11 = vand.u32 4294901760, %v28346_v37  ;;  %v28384_v48 = vpack.c.bf16 %v13661_v55, %v13654_v7  ;;  %v28386_v41 = vpack.c.bf16 %v13607_v42, %v13604_v29  ;;  %v576_v54 = vld [vmem:[#allocation5 + $0xf40] sm:$0xff]  ;;  %v577_v34 = vld [vmem:[#allocation5 + $0xf48] sm:$0xff] }
 0x5e4   :  { %v28388_v39 = vsub.f32 %v590_v28, %v13604_v29  ;;  %v29576_v51 = vand.u32 4294901760, %v28348_v45  ;;  %v28392_v35 = vsub.f32 %v591_v10, %v13607_v42  ;;  %v28394_v17 = vpack.c.bf16 %v13559_v44, %v13556_v6 }
 0x5e5   :  { %30754 = vst [vmem:[#allocation29_spill] sm:$0xff] %v28386_v41  ;;  %20674 = vmatpush3.bf16.msra.mxu0 %v28298_v30  ;;  %v29578_v2 = vand.u32 4294901760, %v28367_v31  ;;  %v13636_v7 = vsub.f32 %v28351_v58, %v29579_v9  ;;  %v28402_v28 = vsub.f32 %v574_v4, %v13556_v6  ;;  %v28404_v55 = vsub.f32 %v575_v13, %v13559_v44  ;;  %v594_v44 = vld [vmem:[#allocation5 + $0xfd0] sm:$0xff] }
 0x5e6   :  { %30755 = vst [vmem:[#allocation27_spill] sm:$0xff] %v28394_v17  ;;  %20698 = vmatpush3.bf16.msra.mxu1 %v30711_v43  ;;  %20676 = vmatprep.subr.bf16.mxu0 %v28309_v33  ;;  %v13668_v30 = vand.u32 4294901760, %v13667_v46  ;;  %v29580_v42 = vand.u32 4294901760, %v28369_v3  ;;  %v28408_v10 = vpack.c.bf16 %v13787_v0, %v13780_v40  ;;  %v13675_v29 = vand.u32 4294901760, %v13674_v27  ;;  %v595_v0 = vld [vmem:[#allocation5 + $0xfd8] sm:$0xff]  ;;  %v578_v46 = vld [vmem:[#allocation5 + $0xf50] sm:$0xff] }
 0x5e7   :  { %30756 = vst [vmem:[#allocation22_spill] sm:$0xff] %v28402_v28  ;;  %30757 = vst [vmem:[#allocation25_spill] sm:$0xff] %v28404_v55  ;;  %20700 = vmatprep.subr.bf16.mxu1 %v30714_v36  ;;  %v28410_v49 = vpack.c.bf16 %v13613_v52, %v13610_v57  ;;  %v13793_v43 = vsub.f32 %v28346_v37, %v29577_v11  ;;  %v28415_v33 = vsub.f32 %v592_v1, %v13610_v57 }
 0x5e8   :  { %v17128_v25 = vpop.f32.mrb[74].mxu1  ;;  %v13800_v6 = vsub.f32 %v28348_v45, %v29576_v51  ;;  %v13562_v4 = vand.u32 4294901760, %v576_v54  ;;  %v13565_v13 = vand.u32 4294901760, %v577_v34  ;;  %v13681_v40 = vsub.f32 %v28367_v31, %v29578_v2 }
 0x5e9   :  { %30758 = vst [vmem:[#allocation20_spill] sm:$0xff] %v28410_v49  ;;  %v17129_v36 = vpop.f32.mrb[75].mxu1  ;;  %20678 = vmatpush3.bf16.msra.mxu0 %v28315_v59  ;;  %v13637_v27 = vand.u32 4294901760, %v13636_v7  ;;  %v13688_v51 = vsub.f32 %v28369_v3, %v29580_v42  ;;  %v28434_v2 = vpack.c.bf16 %v13675_v29, %v13668_v30  ;;  %v28436_v9 = vsub.f32 %v593_v50, %v13613_v52  ;;  %v579_v59 = vld [vmem:[#allocation5 + $0xf58] sm:$0xff] }
 0x5ea   :  { %v17130_v57 = vadd.f32 %v17129_v36, %v17128_v25  ;;  %20702 = vmatpush3.bf16.msra.mxu1 %v27995_v19  ;;  %20712 = vmatprep.subr.bf16.mxu0 %v28317_v26  ;;  %v13794_v7 = vand.u32 4294901760, %v13793_v43  ;;  %v13616_v25 = vand.u32 4294901760, %v594_v44  ;;  %v13801_v19 = vand.u32 4294901760, %v13800_v6 }
 0x5eb   :  { %20704 = vmatprep.subr.bf16.mxu1 %v28016_v22  ;;  %v28441_v1 = vsub.f32 %v576_v54, %v13562_v4  ;;  %v13619_v42 = vand.u32 4294901760, %v595_v0  ;;  %v28444_v11 = vpack.c.bf16 %v13565_v13, %v13562_v4  ;;  %v30760_v22 = vand.u32 4294901760, %v28388_v39 }
 0x5ec   :  { %v28438_v36 = vadd.f32 %v17130_v57, %v11430_v18  ;;  %13428 = vmatmul.mubr.f32.vlgmr.msra.gmra.mrb[88].mxu0 %v28048_v63  ;;  %v30761_v52 = vand.u32 4294901760, %v28392_v35  ;;  %v13682_v54 = vand.u32 4294901760, %v13681_v40  ;;  %v13689_v30 = vand.u32 4294901760, %v13688_v51  ;;  %v596_v57 = vld [vmem:[#allocation5 + $0xfe0] sm:$0xff] }
 0x5ed   :  { %20714 = vmatpush3.bf16.msra.mxu0 %v28335_v62  ;;  %30759 = vst [vmem:[#allocation21_spill] sm:$0xff] %v28444_v11  ;;  %v13807_v50 = vsub.f32 %v28388_v39, %v30760_v22  ;;  %13638 = vmatprep.mubr.f32.mxu0 %v13637_v27  ;;  %v30762_v29 = vand.u32 4294901760, %v28402_v28  ;;  %v30763_v6 = vand.u32 4294901760, %v28404_v55  ;;  %v597_v22 = vld [vmem:[#allocation5 + $0xfe8] sm:$0xff]  ;;  %v13568_v27 = vand.u32 4294901760, %v578_v46 }
 0x5ee   :  { %v13814_v18 = vsub.f32 %v28392_v35, %v30761_v52  ;;  %20706 = vmatpush3.bf16.msra.mxu1 %v28074_v47  ;;  %20716 = vmatprep.subr.bf16.mxu0 %v28337_v16  ;;  %v28461_v52 = vsub.f32 %v577_v34, %v13565_v13  ;;  %v13571_v47 = vand.u32 4294901760, %v579_v59  ;;  %v29589_v16 = vand.u32 4294901760, %v28415_v33 }
 0x5ef   :  { %v13695_v43 = vsub.f32 %v28402_v28, %v30762_v29  ;;  %v13702_v4 = vsub.f32 %v28404_v55, %v30763_v6  ;;  %20708 = vmatprep.subr.bf16.mxu1 %v28100_v32  ;;  %v28464_v40 = vpack.c.bf16 %v13801_v19, %v13794_v7  ;;  %v28466_v51 = vpack.c.bf16 %v13619_v42, %v13616_v25 }
 0x5f0   :  { %v28468_v62 = vsub.f32 %v594_v44, %v13616_v25  ;;  %v28470_v29 = vsub.f32 %v595_v0, %v13619_v42  ;;  %v13808_v6 = vand.u32 4294901760, %v13807_v50  ;;  %v13815_v55 = vand.u32 4294901760, %v13814_v18  ;;  %v580_v44 = vld [vmem:[#allocation5 + $0xf60] sm:$0xff] }
 0x5f1   :  { %30764 = vst [vmem:[#allocation18_spill] sm:$0xff] %v28466_v51  ;;  %20718 = vmatpush3.bf16.msra.mxu0 %v28339_v15  ;;  %v13622_v28 = vand.u32 4294901760, %v596_v57  ;;  %v13625_v32 = vand.u32 4294901760, %v597_v22  ;;  %v28475_v34 = vpack.c.bf16 %v13689_v30, %v13682_v54  ;;  %v13696_v13 = vand.u32 4294901760, %v13695_v43  ;;  %v28492_v30 = vld [vmem:[#allocation5 + $0xff0] sm:$0xff]  ;;  %v28494_v43 = vld [vmem:[#allocation5 + $0xff8] sm:$0xff] }
 0x5f2   :  { %30765 = vst [vmem:[#allocation16_spill] sm:$0xff] %v28470_v29  ;;  %20710 = vmatpush3.bf16.msra.mxu1 %v28124_v53  ;;  %20720 = vmatprep.subr.bf16.mxu0 %v28344_v60  ;;  %v13703_v7 = vand.u32 4294901760, %v13702_v4  ;;  %v29590_v19 = vand.u32 4294901760, %v28436_v9  ;;  %v28479_v42 = vpack.c.bf16 %v13571_v47, %v13568_v27  ;;  %v28481_v0 = vsub.f32 %v578_v46, %v13568_v27  ;;  %v581_v53 = vld [vmem:[#allocation5 + $0xf68] sm:$0xff] }
 0x5f3   :  { %20744 = vmatprep.subr.bf16.mxu1 %v28363_v5  ;;  %v28486_v25 = vsub.f32 %v28415_v33, %v29589_v16  ;;  %v28489_v18 = vsub.f32 %v579_v59, %v13571_v47  ;;  %v29597_v5 = vand.u32 4294901760, %v28468_v62  ;;  %v20755_v4 = vpack.c.bf16 %v13815_v55, %v13808_v6  ;;  %v86_v47 = vld [vmem:[#allocation2 + $0xf0] sm:$0xff] }
 0x5f4   :  { %v28500_v27 = vpack.c.bf16 %v13625_v32, %v13622_v28  ;;  %v28502_v16 = vsub.f32 %v596_v57, %v13622_v28  ;;  %v13574_v59 = vand.u32 4294901760, %v580_v44  ;;  %v20757_v54 = vpack.c.bf16 %v13703_v7, %v13696_v13  ;;  %v28518_v13 = vld [vmem:[#allocation5 + $0xf70] sm:$0xff] }
 0x5f5   :  { %30766 = vst [vmem:[#allocation24_spill] sm:$0xff] %v28489_v18  ;;  %13532 = vmatmul.mubr.f32.vlgmr.msra.gmra.mrb[88].mxu1 %v28048_v63  ;;  %20722 = vmatpush3.bf16.msra.mxu0 %v28365_v56  ;;  %v28506_v50 = vsub.f32 %v597_v22, %v13625_v32  ;;  %v13828_v63 = vsub.f32 %v28436_v9, %v29590_v19  ;;  %v13577_v46 = vand.u32 4294901760, %v581_v53  ;;  %v13822_v55 = vand.u32 4294901760, %v28486_v25  ;;  %v28520_v22 = vld [vmem:[#allocation5 + $0xf78] sm:$0xff] }
 0x5f6   :  { %30767 = vst [vmem:[#allocation26_spill] sm:$0xff] %v28502_v16  ;;  %20746 = vmatpush3.bf16.msra.mxu1 %v28384_v48  ;;  %20724 = vmatprep.subr.bf16.mxu0 %v28386_v41  ;;  %v30768_v28 = vand.u32 4294901760, %v28441_v1  ;;  %v13628_v48 = vand.u32 4294901760, %v28492_v30  ;;  %v13631_v6 = vand.u32 4294901760, %v28494_v43  ;;  %v30769_v32 = vand.u32 4294901760, %v28461_v52 }
 0x5f7   :  { %20748 = vmatprep.subr.bf16.mxu1 %v28408_v10  ;;  %13874 = vmatprep.mubr.f32.mxu1 %v28322_v24  ;;  %v13835_v7 = vsub.f32 %v28468_v62, %v29597_v5  ;;  %v30770_v25 = vand.u32 4294901760, %v28470_v29  ;;  %v28532_v19 = vand.u32 4294901760, %v86_v47  ;;  %v28535_v41 = vsub.f32 %v580_v44, %v13574_v59 }
 0x5f8   :  { %v13709_v57 = vsub.f32 %v28441_v1, %v30768_v28  ;;  %v13716_v10 = vsub.f32 %v28461_v52, %v30769_v32  ;;  %v13829_v5 = vand.u32 4294901760, %v13828_v63  ;;  %v28542_v60 = vsub.f32 %v581_v53, %v13577_v46 }
 0x5f9   :  { %v13842_v28 = vsub.f32 %v28470_v29, %v30770_v25  ;;  %20726 = vmatpush3.bf16.msra.mxu0 %v28394_v17  ;;  %v13580_v25 = vand.u32 4294901760, %v28518_v13  ;;  %v13583_v29 = vand.u32 4294901760, %v28520_v22  ;;  %v28548_v24 = vsub.f32 %v28492_v30, %v13628_v48 }
 0x5fa   :  { %20750 = vmatpush3.bf16.msra.mxu1 %v28434_v2  ;;  %20728 = vmatprep.subr.bf16.mxu0 %v28410_v49  ;;  %v13710_v44 = vand.u32 4294901760, %v13709_v57  ;;  %v28551_v56 = vsub.f32 %v28494_v43, %v13631_v6  ;;  %v13717_v32 = vand.u32 4294901760, %v13716_v10  ;;  %v13836_v49 = vand.u32 4294901760, %v13835_v7 }
 0x5fb   :  { %20752 = vmatprep.subr.bf16.mxu1 %v28464_v40  ;;  %v13843_v63 = vand.u32 4294901760, %v13842_v28  ;;  %v28555_v53 = vsub.f32 %v86_v47, %v28532_v19  ;;  %v28558_v17 = vpack.c.bf16 %v13577_v46, %v13574_v59  ;;  %v30771_v40 = vand.u32 4294901760, %v28481_v0 }
 0x5fc   :  { %v30772_v57 = vand.u32 4294901760, %v28489_v18  ;;  %v30773_v2 = vand.u32 4294901760, %v28502_v16  ;;  %v28572_v47 = vsub.f32 %v28518_v13, %v13580_v25  ;;  %v28575_v46 = vsub.f32 %v28520_v22, %v13583_v29 }
 0x5fd   :  { %20730 = vmatpush3.bf16.msra.mxu0 %v28444_v11  ;;  %v13723_v30 = vsub.f32 %v28481_v0, %v30771_v40  ;;  %v13743_v7 = vand.u32 4294901760, %v28542_v60  ;;  %v20759_v40 = vpack.c.bf16 %v13829_v5, %v13822_v55  ;;  %v20761_v11 = vpack.c.bf16 %v13717_v32, %v13710_v44 }
 0x5fe   :  { %v13730_v43 = vsub.f32 %v28489_v18, %v30772_v57  ;;  %v13849_v10 = vsub.f32 %v28502_v16, %v30773_v2  ;;  %20754 = vmatpush3.bf16.msra.mxu1 %v28475_v34  ;;  %20732 = vmatprep.subr.bf16.mxu0 %v28466_v51  ;;  %v30774_v57 = vand.u32 4294901760, %v28506_v50  ;;  %v29616_v34 = vand.u32 4294901760, %v28548_v24 }
 0x5ff   :  { %v17163_v28 = vpop.f32.mrb[76].mxu0  ;;  %20756 = vmatprep.subr.bf16.mxu1 %v20755_v4  ;;  %v28584_v16 = vpack.c.bf16 %v13631_v6, %v13628_v48  ;;  %v20763_v22 = vpack.c.bf16 %v13843_v63, %v13836_v49  ;;  %v13641_v59 = vand.u32 4294901760, %v28555_v53  ;;  %v13724_v4 = vand.u32 4294901760, %v13723_v30 }
 0x600   :  { %v13856_v2 = vsub.f32 %v28506_v50, %v30774_v57  ;;  %v17164_v13 = vpop.f32.mrb[77].mxu0  ;;  %v13731_v5 = vand.u32 4294901760, %v13730_v43  ;;  %v13850_v55 = vand.u32 4294901760, %v13849_v10  ;;  %v30775_v57 = vand.u32 4294901760, %v28535_v41 }
 0x601   :  { %v17165_v18 = vadd.f32 %v17164_v13, %v17163_v28  ;;  %20734 = vmatpush3.bf16.msra.mxu0 %v28479_v42  ;;  %v13744_v48 = vsub.f32 %v28542_v60, %v13743_v7  ;;  %v29614_v49 = vand.u32 4294901760, %v28572_v47  ;;  %v29615_v6 = vand.u32 4294901760, %v28575_v46 }
 0x602   :  { %20758 = vmatpush3.bf16.msra.mxu1 %v20757_v54  ;;  %20736 = vmatprep.subr.bf16.mxu0 %v28500_v27  ;;  %v13737_v51 = vsub.f32 %v28535_v41, %v30775_v57  ;;  %v13857_v44 = vand.u32 4294901760, %v13856_v2  ;;  %v13863_v54 = vsub.f32 %v28548_v24, %v29616_v34  ;;  %v30776_v63 = vand.u32 4294901760, %v28551_v56 }
 0x603   :  { %v11706_v32 = vadd.f32 %v17165_v18, %v28438_v36  ;;  %20760 = vmatprep.subr.bf16.mxu1 %v20759_v40  ;;  %v13642_v43 = vsub.f32 %v28555_v53, %v13641_v59  ;;  %v28608_v10 = vpack.c.bf16 %v13583_v29, %v13580_v25  ;;  %v20765_v28 = vpack.c.bf16 %v13731_v5, %v13724_v4 }
 0x604   :  { %v13870_v30 = vsub.f32 %v28551_v56, %v30776_v63  ;;  %v20775_v36 = vpack.c.bf16 %v28223_v23, %v28219_v20  ;;  %v13738_v18 = vand.u32 4294901760, %v13737_v51  ;;  %v13745_v40 = vand.u32 4294901760, %v13744_v48 }
 0x605   :  { %20738 = vmatpush3.bf16.msra.mxu0 %v28558_v17  ;;  %v13751_v2 = vsub.f32 %v28572_v47, %v29614_v49  ;;  %v13758_v13 = vsub.f32 %v28575_v46, %v29615_v6  ;;  %v20767_v29 = vpack.c.bf16 %v13857_v44, %v13850_v55  ;;  %v13864_v25 = vand.u32 4294901760, %v13863_v54 }
 0x606   :  { %20762 = vmatpush3.bf16.msra.mxu1 %v20761_v11  ;;  %20740 = vmatprep.subr.bf16.mxu0 %v28584_v16  ;;  %v13871_v4 = vand.u32 4294901760, %v13870_v30  ;;  %v13643_v57 = vand.u32 4294901760, %v13642_v43  ;;  %v20777_v11 = vpack.c.bf16 %v28259_v38, %v28247_v8  ;;  %v20779_v51 = vpack.c.bf16 %v28282_v61, %v28279_v21 }
 0x607   :  { %20764 = vmatprep.subr.bf16.mxu1 %v20763_v22  ;;  %v20769_v49 = vpack.c.bf16 %v13745_v40, %v13738_v18  ;;  %v13752_v6 = vand.u32 4294901760, %v13751_v2  ;;  %v13759_v22 = vand.u32 4294901760, %v13758_v13  ;;  %v20781_v54 = vpack.c.bf16 %v28325_v12, %v28320_v14  ;;  %v30779_v18 = vld [vmem:[#allocation19_spill] sm:$0xff]  ;;  %v30780_v2 = vld [vmem:[#allocation17_spill] sm:$0xff] }
 0x608   :  { %v17198_v5 = vpop.f32.mrb[76].mxu1  ;;  %v20771_v55 = vpack.c.bf16 %v13871_v4, %v13864_v25  ;;  %v20783_v43 = vpack.c.bf16 %v28348_v45, %v28346_v37  ;;  %v20791_v40 = vpack.c.bf16 %v28436_v9, %v28415_v33  ;;  %v30781_v13 = vand.u32 4294901760, %v28351_v58  ;;  %v30782_v25 = vld [vmem:[#allocation16_spill] sm:$0xff] }
 0x609   :  { %v17199_v63 = vpop.f32.mrb[77].mxu1  ;;  %20742 = vmatpush3.bf16.msra.mxu0 %v28608_v10  ;;  %v20773_v30 = vpack.c.bf16 %v13759_v22, %v13752_v6  ;;  %v30778_v6 = vld [vmem:[#allocation25_spill] sm:$0xff]  ;;  %v20795_v4 = vpack.c.bf16 %v30782_v25, %v28468_v62 }
 0x60a   :  { %v17200_v48 = vadd.f32 %v17199_v63, %v17198_v5  ;;  %20766 = vmatpush3.bf16.msra.mxu1 %v20765_v28  ;;  %20776 = vmatprep.subr.bf16.mxu0 %v20775_v36  ;;  %v20785_v28 = vpack.c.bf16 %v28369_v3, %v28367_v31  ;;  %v30783_v5 = vld [vmem:[#allocation28_spill] sm:$0xff]  ;;  %v30787_v22 = vld [vmem:[#allocation29_spill] sm:$0xff] }
 0x60b   :  { %20768 = vmatprep.subr.bf16.mxu1 %v20767_v29  ;;  %v20793_v29 = vpack.c.bf16 %v28461_v52, %v28441_v1 }
 0x60c   :  { %v11810_v44 = vadd.f32 %v17200_v48, %v11706_v32  ;;  %13644 = vmatmul.mubr.f32.vlgmr.msra.gmra.mrb[90].mxu0 %v13643_v57  ;;  %v20787_v32 = vpack.c.bf16 %v28392_v35, %v28388_v39  ;;  %v30784_v57 = vld [vmem:[#allocation24_spill] sm:$0xff] }
 0x60d   :  { %20778 = vmatpush3.bf16.msra.mxu0 %v20777_v11  ;;  %14011 = vmatprep.mubr.f32.mxu0 %v28351_v58  ;;  %v20797_v63 = vpack.c.bf16 %v30784_v57, %v28481_v0  ;;  %v30785_v11 = vld [vmem:[#allocation30_spill] sm:$0xff] }
 0x60e   :  { %20770 = vmatpush3.bf16.msra.mxu1 %v20769_v49  ;;  %20780 = vmatprep.subr.bf16.mxu0 %v20779_v51  ;;  %v30777_v49 = vld [vmem:[#allocation22_spill] sm:$0xff] }
 0x60f   :  { %20772 = vmatprep.subr.bf16.mxu1 %v20771_v55  ;;  %v20789_v36 = vpack.c.bf16 %v30778_v6, %v30777_v49  ;;  %v30786_v58 = vld [vmem:[#allocation26_spill] sm:$0xff] }
 0x610   :  { %v20799_v51 = vpack.c.bf16 %v28506_v50, %v30786_v58 }
 0x611   :  { %20782 = vmatpush3.bf16.msra.mxu0 %v20781_v54 }
 0x612   :  { %20774 = vmatpush3.bf16.msra.mxu1 %v20773_v30  ;;  %20784 = vmatprep.subr.bf16.mxu0 %v20783_v43  ;;  %v20801_v30 = vpack.c.bf16 %v28542_v60, %v28535_v41  ;;  %v30788_v43 = vld [vmem:[#allocation27_spill] sm:$0xff] }
 0x613   :  { %20808 = vmatprep.subr.bf16.mxu1 %v28317_v26 }
 0x615   :  { %13876 = vmatmul.mubr.f32.vlgmr.msra.gmra.mrb[90].mxu1 %v28532_v19  ;;  %20786 = vmatpush3.bf16.msra.mxu0 %v20785_v28  ;;  %v20803_v28 = vpack.c.bf16 %v28551_v56, %v28548_v24 }
 0x616   :  { %20810 = vmatpush3.bf16.msra.mxu1 %v30779_v18  ;;  %20788 = vmatprep.subr.bf16.mxu0 %v20787_v32 }
 0x617   :  { %20812 = vmatprep.subr.bf16.mxu1 %v30780_v2  ;;  %14118 = vmatprep.mubr.f32.mxu1 %v30781_v13  ;;  %v30790_v13 = vld [vmem:[#allocation21_spill] sm:$0xff] }
 0x619   :  { %20790 = vmatpush3.bf16.msra.mxu0 %v20789_v36  ;;  %v30789_v36 = vld [vmem:[#allocation20_spill] sm:$0xff] }
 0x61a   :  { %20814 = vmatpush3.bf16.msra.mxu1 %v28339_v15  ;;  %20792 = vmatprep.subr.bf16.mxu0 %v20791_v40  ;;  %v20805_v40 = vpack.c.bf16 %v28575_v46, %v28572_v47 }
 0x61b   :  { %20816 = vmatprep.subr.bf16.mxu1 %v30783_v5 }
 0x61d   :  { %20794 = vmatpush3.bf16.msra.mxu0 %v20793_v29  ;;  %v30791_v29 = vand.u32 4294901760, %v28219_v20  ;;  %v30797_v20 = vand.u32 4294901760, %v28282_v61  ;;  %v30802_v61 = vand.u32 4294901760, %v28348_v45  ;;  %v30808_v45 = vand.u32 4294901760, %v30778_v6 }
 0x61e   :  { %20818 = vmatpush3.bf16.msra.mxu1 %v30785_v11  ;;  %20796 = vmatprep.subr.bf16.mxu0 %v20795_v4  ;;  %v30792_v4 = vand.u32 4294901760, %v28223_v23 }
 0x61f   :  { %v17233_v48 = vpop.f32.mrb[78].mxu0  ;;  %20820 = vmatprep.subr.bf16.mxu1 %v30787_v22 }
 0x620   :  { %v17234_v55 = vpop.f32.mrb[79].mxu0 }
 0x621   :  { %v17235_v54 = vadd.f32 %v17234_v55, %v17233_v48  ;;  %20798 = vmatpush3.bf16.msra.mxu0 %v20797_v63  ;;  %v20839_v63 = vpack.c.bf16 %v30792_v4, %v30791_v29  ;;  %v30793_v48 = vld [vmem:[#allocation18_spill] sm:$0xff]  ;;  %v30800_v4 = vld [vmem:[#allocation23_spill] sm:$0xff] }
 0x622   :  { %20822 = vmatpush3.bf16.msra.mxu1 %v30788_v43  ;;  %20800 = vmatprep.subr.bf16.mxu0 %v20799_v51 }
 0x623   :  { %v11922_v32 = vadd.f32 %v17235_v54, %v11810_v44  ;;  %20824 = vmatprep.subr.bf16.mxu1 %v30789_v36  ;;  %v30794_v44 = vand.u32 4294901760, %v28247_v8  ;;  %v30795_v54 = vand.u32 4294901760, %v28259_v38  ;;  %v30798_v8 = vand.u32 4294901760, %v28320_v14 }
 0x624   :  { %v30799_v38 = vand.u32 4294901760, %v28325_v12  ;;  %v30804_v14 = vand.u32 4294901760, %v28369_v3  ;;  %v30805_v12 = vand.u32 4294901760, %v28388_v39  ;;  %v30809_v3 = vand.u32 4294901760, %v28415_v33 }
 0x625   :  { %20802 = vmatpush3.bf16.msra.mxu0 %v20801_v30  ;;  %v20841_v30 = vpack.c.bf16 %v30795_v54, %v30794_v44  ;;  %v30810_v39 = vand.u32 4294901760, %v28436_v9  ;;  %v30814_v33 = vand.u32 4294901760, %v30782_v25  ;;  %v30815_v9 = vand.u32 4294901760, %v28481_v0 }
 0x626   :  { %20826 = vmatpush3.bf16.msra.mxu1 %v30790_v13  ;;  %20804 = vmatprep.subr.bf16.mxu0 %v20803_v28  ;;  %v30796_v28 = vand.u32 4294901760, %v28279_v21  ;;  %v30801_v21 = vand.u32 4294901760, %v28346_v37  ;;  %v30807_v37 = vand.u32 4294901760, %v30777_v49  ;;  %v30813_v49 = vand.u32 4294901760, %v28468_v62 }
 0x627   :  { %20828 = vmatprep.subr.bf16.mxu1 %v30793_v48  ;;  %v30823_v54 = vand.u32 4294901760, %v28575_v46 }
 0x628   :  { %v17268_v51 = vpop.f32.mrb[78].mxu1  ;;  %v20843_v23 = vpack.c.bf16 %v30797_v20, %v30796_v28  ;;  %v20859_v6 = vpack.c.bf16 %v30814_v33, %v30813_v49 }
 0x629   :  { %v17269_v55 = vpop.f32.mrb[79].mxu1  ;;  %20806 = vmatpush3.bf16.msra.mxu0 %v20805_v40  ;;  %v20845_v40 = vpack.c.bf16 %v30799_v38, %v30798_v8 }
 0x62a   :  { %v17270_v34 = vadd.f32 %v17269_v55, %v17268_v51  ;;  %20830 = vmatpush3.bf16.msra.mxu1 %v28479_v42  ;;  %20840 = vmatprep.subr.bf16.mxu0 %v20839_v63  ;;  %v20847_v63 = vpack.c.bf16 %v30802_v61, %v30801_v21  ;;  %v30806_v51 = vand.u32 4294901760, %v28392_v35  ;;  %v20855_v35 = vpack.c.bf16 %v30810_v39, %v30809_v3 }
 0x62b   :  { %20832 = vmatprep.subr.bf16.mxu1 %v28500_v27 }
 0x62c   :  { %v12154_v29 = vadd.f32 %v17270_v34, %v11922_v32  ;;  %14014 = vmatmul.mubr.f32.vlgmr.msra.gmra.mrb[92].mxu0 %v28555_v53  ;;  %v30803_v34 = vand.u32 4294901760, %v28367_v31  ;;  %v20851_v55 = vpack.c.bf16 %v30806_v51, %v30805_v12  ;;  %v20853_v31 = vpack.c.bf16 %v30808_v45, %v30807_v37 }
 0x62d   :  { %20842 = vmatpush3.bf16.msra.mxu0 %v20841_v30  ;;  %14288 = vmatprep.mubr.f32.mxu0 %v30800_v4  ;;  %v30812_v53 = vand.u32 4294901760, %v28461_v52 }
 0x62e   :  { %20834 = vmatpush3.bf16.msra.mxu1 %v28558_v17  ;;  %20844 = vmatprep.subr.bf16.mxu0 %v20843_v23  ;;  %v20849_v32 = vpack.c.bf16 %v30804_v14, %v30803_v34 }
 0x62f   :  { %20836 = vmatprep.subr.bf16.mxu1 %v28584_v16 }
 0x631   :  { %20846 = vmatpush3.bf16.msra.mxu0 %v20845_v40 }
 0x632   :  { %20838 = vmatpush3.bf16.msra.mxu1 %v28608_v10  ;;  %20848 = vmatprep.subr.bf16.mxu0 %v20847_v63 }
 0x633   :  { %20872 = vmatprep.subr.bf16.mxu1 %v28317_v26  ;;  %v30811_v26 = vand.u32 4294901760, %v28441_v1  ;;  %v30817_v1 = vand.u32 4294901760, %v30786_v58 }
 0x635   :  { %14122 = vmatmul.mubr.f32.vlgmr.msra.gmra.mrb[92].mxu1 %v13641_v59  ;;  %20850 = vmatpush3.bf16.msra.mxu0 %v20849_v32  ;;  %v20857_v59 = vpack.c.bf16 %v30812_v53, %v30811_v26 }
 0x636   :  { %20874 = vmatpush3.bf16.msra.mxu1 %v30779_v18  ;;  %20852 = vmatprep.subr.bf16.mxu0 %v20851_v55  ;;  %v30816_v18 = vand.u32 4294901760, %v30784_v57  ;;  %v30820_v57 = vand.u32 4294901760, %v28548_v24 }
 0x637   :  { %20876 = vmatprep.subr.bf16.mxu1 %v30780_v2  ;;  %14392 = vmatprep.mubr.f32.mxu1 %v30800_v4 }
 0x638   :  { %v20861_v2 = vpack.c.bf16 %v30816_v18, %v30815_v9 }
 0x639   :  { %20854 = vmatpush3.bf16.msra.mxu0 %v20853_v31 }
 0x63a   :  { %20878 = vmatpush3.bf16.msra.mxu1 %v28339_v15  ;;  %20856 = vmatprep.subr.bf16.mxu0 %v20855_v35  ;;  %v30818_v15 = vand.u32 4294901760, %v28506_v50 }
 0x63b   :  { %20880 = vmatprep.subr.bf16.mxu1 %v30783_v5  ;;  %v30819_v5 = vand.u32 4294901760, %v28535_v41 }
 0x63c   :  { %v20863_v52 = vpack.c.bf16 %v30818_v15, %v30817_v1 }
 0x63d   :  { %20858 = vmatpush3.bf16.msra.mxu0 %v20857_v59  ;;  %v20865_v0 = vpack.c.bf16 %v13743_v7, %v30819_v5 }
 0x63e   :  { %20882 = vmatpush3.bf16.msra.mxu1 %v30785_v11  ;;  %20860 = vmatprep.subr.bf16.mxu0 %v20859_v6  ;;  %v30821_v11 = vand.u32 4294901760, %v28551_v56 }
 0x63f   :  { %v17303_v62 = vpop.f32.mrb[80].mxu0  ;;  %20884 = vmatprep.subr.bf16.mxu1 %v30787_v22  ;;  %v30822_v22 = vand.u32 4294901760, %v28572_v47 }
 0x640   :  { %v17304_v25 = vpop.f32.mrb[81].mxu0  ;;  %v20867_v50 = vpack.c.bf16 %v30821_v11, %v30820_v57 }
 0x641   :  { %v17305_v44 = vadd.f32 %v17304_v25, %v17303_v62  ;;  %20862 = vmatpush3.bf16.msra.mxu0 %v20861_v2  ;;  %v20869_v41 = vpack.c.bf16 %v30823_v54, %v30822_v22 }
 0x642   :  { %20886 = vmatpush3.bf16.msra.mxu1 %v30788_v43  ;;  %20864 = vmatprep.subr.bf16.mxu0 %v20863_v52 }
 0x643   :  { %v12292_v58 = vadd.f32 %v17305_v44, %v12154_v29  ;;  %20888 = vmatprep.subr.bf16.mxu1 %v30789_v36 }
 0x645   :  { %20866 = vmatpush3.bf16.msra.mxu0 %v20865_v0 }
 0x646   :  { %20890 = vmatpush3.bf16.msra.mxu1 %v30790_v13  ;;  %20868 = vmatprep.subr.bf16.mxu0 %v20867_v50 }
 0x647   :  { %20892 = vmatprep.subr.bf16.mxu1 %v30793_v48 }
 0x648   :  { %v17338_v60 = vpop.f32.mrb[80].mxu1 }
 0x649   :  { %v17339_v7 = vpop.f32.mrb[81].mxu1  ;;  %20870 = vmatpush3.bf16.msra.mxu0 %v20869_v41 }
 0x64a   :  { %v17340_v24 = vadd.f32 %v17339_v7, %v17338_v60  ;;  %20894 = vmatpush3.bf16.msra.mxu1 %v28479_v42 }
 0x64b   :  { %20896 = vmatprep.subr.bf16.mxu1 %v28500_v27 }
 0x64c   :  { %v12400_v56 = vadd.f32 %v17340_v24, %v12292_v58  ;;  %14290 = vmatmul.mubr.f32.vlgmr.msra.gmra.mrb[94].mxu0 %v28532_v19 }
 0x64e   :  { %20898 = vmatpush3.bf16.msra.mxu1 %v28558_v17 }
 0x64f   :  { %20900 = vmatprep.subr.bf16.mxu1 %v28584_v16 }
 0x652   :  { %20902 = vmatpush3.bf16.msra.mxu1 %v28608_v10 }
 0x655   :  { %14394 = vmatmul.mubr.f32.vlgmr.msra.gmra.mrb[94].mxu1 %v28532_v19 }
 0x65f   :  { %v17373_v47 = vpop.f32.mrb[82].mxu0 }
 0x660   :  { %v17374_v46 = vpop.f32.mrb[83].mxu0 }
 0x661   :  { %v17375_v43 = vadd.f32 %v17374_v46, %v17373_v47 }
 0x663   :  { %v12568_v36 = vadd.f32 %v17375_v43, %v12400_v56 }
 0x668   :  { %v17408_v13 = vpop.f32.mrb[82].mxu1 }
 0x669   :  { %v17409_v48 = vpop.f32.mrb[83].mxu1 }
 0x66a   :  { %v17410_v42 = vadd.f32 %v17409_v48, %v17408_v13 }
 0x66c   :  { %v12672_v30 = vadd.f32 %v17410_v42, %v12568_v36 }
 0x67f   :  { %v17443_v27 = vpop.f32.mrb[84].mxu0 }
 0x680   :  { %v17444_v28 = vpop.f32.mrb[85].mxu0 }
 0x681   :  { %v17445_v20 = vadd.f32 %v17444_v28, %v17443_v27 }
 0x683   :  { %v12784_v23 = vadd.f32 %v17445_v20, %v12672_v30 }
 0x688   :  { %v17478_v29 = vpop.f32.mrb[84].mxu1 }
 0x689   :  { %v17479_v17 = vpop.f32.mrb[85].mxu1 }
 0x68a   :  { %v17480_v8 = vadd.f32 %v17479_v17, %v17478_v29 }
 0x68c   :  { %v13016_v16 = vadd.f32 %v17480_v8, %v12784_v23 }
 0x69f   :  { %v17513_v38 = vpop.f32.mrb[86].mxu0 }
 0x6a0   :  { %v17514_v10 = vpop.f32.mrb[87].mxu0 }
 0x6a1   :  { %v17515_v40 = vadd.f32 %v17514_v10, %v17513_v38 }
 0x6a3   :  { %v13154_v19 = vadd.f32 %v17515_v40, %v13016_v16 }
 0x6a8   :  { %v17548_v4 = vpop.f32.mrb[86].mxu1 }
 0x6a9   :  { %v17549_v21 = vpop.f32.mrb[87].mxu1 }
 0x6aa   :  { %v17550_v61 = vadd.f32 %v17549_v21, %v17548_v4 }
 0x6ac   :  { %v13262_v63 = vadd.f32 %v17550_v61, %v13154_v19 }
 0x6bf   :  { %v17583_v34 = vpop.f32.mrb[88].mxu0 }
 0x6c0   :  { %v17584_v14 = vpop.f32.mrb[89].mxu0 }
 0x6c1   :  { %v17585_v32 = vadd.f32 %v17584_v14, %v17583_v34 }
 0x6c3   :  { %v13430_v12 = vadd.f32 %v17585_v32, %v13262_v63 }
 0x6c8   :  { %v17618_v51 = vpop.f32.mrb[88].mxu1 }
 0x6c9   :  { %v17619_v55 = vpop.f32.mrb[89].mxu1 }
 0x6ca   :  { %v17620_v37 = vadd.f32 %v17619_v55, %v17618_v51 }
 0x6cc   :  { %v13534_v45 = vadd.f32 %v17620_v37, %v13430_v12 }
 0x6df   :  { %v17653_v31 = vpop.f32.mrb[90].mxu0 }
 0x6e0   :  { %v17654_v3 = vpop.f32.mrb[91].mxu0 }
 0x6e1   :  { %v17655_v39 = vadd.f32 %v17654_v3, %v17653_v31 }
 0x6e3   :  { %v13646_v35 = vadd.f32 %v17655_v39, %v13534_v45 }
 0x6e8   :  { %v17688_v26 = vpop.f32.mrb[90].mxu1 }
 0x6e9   :  { %v17689_v53 = vpop.f32.mrb[91].mxu1 }
 0x6ea   :  { %v17690_v59 = vadd.f32 %v17689_v53, %v17688_v26 }
 0x6ec   :  { %v13878_v49 = vadd.f32 %v17690_v59, %v13646_v35 }
 0x6ff   :  { %v17723_v33 = vpop.f32.mrb[92].mxu0 }
 0x700   :  { %v17724_v6 = vpop.f32.mrb[93].mxu0 }
 0x701   :  { %v17725_v9 = vadd.f32 %v17724_v6, %v17723_v33 }
 0x703   :  { %v14016_v18 = vadd.f32 %v17725_v9, %v13878_v49 }
 0x708   :  { %v17758_v2 = vpop.f32.mrb[92].mxu1 }
 0x709   :  { %v17759_v1 = vpop.f32.mrb[93].mxu1 }
 0x70a   :  { %v17760_v15 = vadd.f32 %v17759_v1, %v17758_v2 }
 0x70c   :  { %v14124_v52 = vadd.f32 %v17760_v15, %v14016_v18 }
 0x71f   :  { %v17793_v62 = vpop.f32.mrb[94].mxu0 }
 0x720   :  { %v17794_v25 = vpop.f32.mrb[95].mxu0 }
 0x721   :  { %v17795_v44 = vadd.f32 %v17794_v25, %v17793_v62 }
 0x723   :  { %v14292_v5 = vadd.f32 %v17795_v44, %v14124_v52 }
 0x728   :  { %v17828_v0 = vpop.f32.mrb[94].mxu1 }
 0x729   :  { %v17829_v57 = vpop.f32.mrb[95].mxu1 }
 0x72a   :  { %v17830_v11 = vadd.f32 %v17829_v57, %v17828_v0 }
 0x72c   :  { %v14396_v50 = vadd.f32 %v17830_v11, %v14292_v5 }
 0x72e   :  { %v14399_v58 = vmax.f32 %v14396_v50, 0.0 }
 0x730   :  { %v14409_v22 = vsel %vm14400_vm0, %v14399_v58, 0.0  ;;  %v14418_v54 = vmul.f32 %v14399_v58, %v14399_v58  ;;  %14401 = vst.msk [vmem:[#allocation8] sm:$0xff] %vm14400_vm0, %v14399_v58 }
 0x731   :  { %v14410_v41 = vrot.slane %v14409_v22, 4 }
 0x732   :  { %20988 = shalt.err (!%p20985_p0)
}
 0x733   :  { %s20989_s9 = scalar_lea.hbm %s28809_s3, 128 }
 0x734   :  { %p20990_p1 = scmp.ne.s32.totalorder %s28809_s3, %s20989_s9  ;;  %p20993_p2 = scmp.lt.u32.totalorder %s20989_s9, %s28809_s3 }
 0x736   :  { %p20995_p3 = pnand %p20993_p2, %p20990_p1 }
 0x738   :  { %20998 = shalt.err (!%p20995_p3)
}
 0x739   :  { %14436 = dma.vmem_to_hbm [thread:$0]  %s14434_s30, 128, %s28809_s3, [#allocation4]   ;;  %v14419_v60 = vsel %vm14400_vm0, %v14418_v54, 0.0  ;;  %v14411_v7 = vadd.f32 %v14410_v41, %v14409_v22  ;;  %vm14416_vm1 = vcmask 253952  }
 0x73a   :  { %v14420_v24 = vrot.slane %v14419_v60, 4  ;;  %s21057_s16 = smov [#allocation9]   ;;  %s21058_s1 = smov [#allocation11]  }
 0x73b   :  { %v14412_v47 = vrot.slane %v14411_v7, 2  ;;  %s14443_s17 = sshll.u32 %s21057_s16, 4  ;;  %s14453_s18 = sshll.u32 %s21058_s1, 4  ;;  %s14444_s17 = int_to_ptr.vmem [resolvable:$true] %s14443_s17  ;;  %s28773_s18 = int_to_ptr.vmem [resolvable:$true] %s14453_s18 }
 0x73c   :  { %v14421_v56 = vadd.f32 %v14420_v24, %v14419_v60  ;;  %s20999_s3 = scalar_lea.vmem %s14444_s17, 16  ;;  %s21003_s19 = scalar_lea.vmem %s14444_s17, 32 }
 0x73d   :  { %v14413_v46 = vadd.f32 %v14412_v47, %v14411_v7  ;;  %p21000_p4 = scmp.ne.s32.totalorder %s14444_s17, %s20999_s3  ;;  %p21004_p5 = scmp.lt.s32.totalorder %s14444_s17, %s14444_s17 }
 0x73e   :  { %v14422_v43 = vrot.slane %v14421_v56, 2  ;;  %p21005_p6 = scmp.lt.s32.totalorder %s21003_s19, %s20999_s3 }
 0x73f   :  { %v14414_v36 = vrot.slane %v14413_v46, 1 }
 0x740   :  { %v14423_v13 = vadd.f32 %v14422_v43, %v14421_v56  ;;  %p21006_p7 = por %p21005_p6, %p21004_p5 }
 0x741   :  { %v14415_v48 = vadd.f32 %v14414_v36, %v14413_v46 }
 0x742   :  { %v14424_v42 = vrot.slane %v14423_v13, 1  ;;  %p21007_p8 = pnand %p21006_p7, %p21000_p4 }
 0x743   :  { %14417 = vst.msk [vmem:[#allocation9] sm:$0x1] %vm14416_vm1, %v14415_v48 }
 0x744   :  { %v14425_v30 = vadd.f32 %v14424_v42, %v14423_v13 }
 0x745   :  { %21010 = shalt.err (!%p21007_p8)
}
 0x746   :  { %s21011_s22 = scalar_lea.hbm %s28810_s4, 16 }
 0x747   :  { %p21012_p9 = scmp.ne.s32.totalorder %s28810_s4, %s21011_s22  ;;  %p21015_p10 = scmp.lt.u32.totalorder %s21011_s22, %s28810_s4 }
 0x749   :  { %p21017_p11 = pnand %p21015_p10, %p21012_p9 }
 0x74b   :  { %21020 = shalt.err (!%p21017_p11)
}
 0x74c   :  { %14446 = dma.vmem_to_hbm [thread:$0]  %s14444_s17, 16, %s28810_s4, [#allocation10]   ;;  %14426 = vst.msk [vmem:[#allocation11] sm:$0x1] %vm14416_vm1, %v14425_v30 }
 0x74d   :  { %s21021_s0 = scalar_lea.vmem %s28773_s18, 16  ;;  %s21025_s29 = scalar_lea.vmem %s28773_s18, 32 }
 0x74e   :  { %p21022_p12 = scmp.ne.s32.totalorder %s28773_s18, %s21021_s0  ;;  %p21026_p13 = scmp.lt.s32.totalorder %s28773_s18, %s28773_s18 }
 0x74f   :  { %p21027_p0 = scmp.lt.s32.totalorder %s21025_s29, %s21021_s0 }
 0x751   :  { %p21028_p1 = por %p21027_p0, %p21026_p13 }
 0x753   :  { %p21029_p2 = pnand %p21028_p1, %p21022_p12 }
 0x755   :  { %21032 = shalt.err (!%p21029_p2)
}
 0x756   :  { %s21033_s6 = scalar_lea.hbm %s28811_s5, 16 }
 0x757   :  { %p21034_p3 = scmp.ne.s32.totalorder %s28811_s5, %s21033_s6  ;;  %p21037_p4 = scmp.lt.u32.totalorder %s21033_s6, %s28811_s5 }
 0x759   :  { %p21039_p5 = pnand %p21037_p4, %p21034_p3 }
 0x75b   :  { %21042 = shalt.err (!%p21039_p5)
}
 0x75c   :  { %14456 = dma.vmem_to_hbm [thread:$0]  %s28773_s18, 16, %s28811_s5, [#allocation10]  }
 0x75d   :  { %21047 = dma.done.wait [#allocation4], 128  }
 0x75e   :  { %21048 = vsyncadd [#allocation4], 4294967168 }
 0x75f   :  { %21049 = dma.done.wait [#allocation10], 32  }
 0x760   :  { %21050 = vsyncadd [#allocation10], 4294967264 }
 0x761   :  { %14466 = vsyncpa [#allocation3], 1 }
 0x762   :  { %14467 = vsyncpa [#allocation6], 1 }
 0x763   :  { %14468 = vsyncpa [#allocation4], 1 }
 0x764   :  { %14469 = vsyncpa [#allocation10], 1 }

</bundles_post_ra>
